<compile_context>
chip_gen: v5e
topology: v5e:2x2
jax: 0.10.0
libtpu: 0.0.40
codegen_flags: <defaults>
</compile_context>

<pallas_src>
import functools

import jax
import jax.numpy as jnp
from jax.experimental import pallas as pl
from jax.experimental.pallas import tpu as pltpu


# ----------------------------------------------------------------------------
# Kernel
# ----------------------------------------------------------------------------
def _conv3x3_kernel(x_ref, top_ref, bot_ref, w_ref, b_ref, *refs,
                    apply_relu, pool, use_im2col):
    """Fused 3x3 conv (+bias, optional ReLU, optional fused ReLU+2x2 maxpool).

    x_ref   : (1, TH, W, Cin)   current row strip (unpadded)
    top_ref : (1, 1, W, Cin)    row above the strip (zeros at the image top)
    bot_ref : (1, 1, W, Cin)    row below the strip (zeros at the image bottom)
    w_ref   : (9, Cin, Cout)    taps, k = dy*3 + dx
    b_ref   : (1, Cout)         bias (f32)
    outputs : o_ref (1, TH, W, Cout) [, p_ref (1, TH//2, W//2, Cout)]
    scratch : band_ref (TH+2, W+2, Cin) [, col_ref (TH, W, 9*Cin)]
    """
    i = 0
    o_ref = refs[i]; i += 1
    p_ref = None
    if pool:
        p_ref = refs[i]; i += 1
    band_ref = refs[i]; i += 1
    col_ref = refs[i] if use_im2col else None

    TH, W, Cin = x_ref.shape[1], x_ref.shape[2], x_ref.shape[3]
    Cout = w_ref.shape[2]

    # ---- assemble the zero-padded (TH+2, W+2, Cin) band in VMEM ------------
    zcol = jnp.zeros((TH + 2, 1, Cin), band_ref.dtype)
    band_ref[:, pl.ds(0, 1), :] = zcol                       # left pad column
    band_ref[:, pl.ds(W + 1, 1), :] = zcol                   # right pad column
    band_ref[pl.ds(0, 1), pl.ds(1, W), :] = top_ref[0]       # halo row above
    band_ref[pl.ds(1, TH), pl.ds(1, W), :] = x_ref[0]        # strip body
    band_ref[pl.ds(TH + 1, 1), pl.ds(1, W), :] = bot_ref[0]  # halo row below

    # ---- 3x3 conv as MXU matmul(s) ------------------------------------------
    if use_im2col:
        # im2col: a single (TH*W, 9*Cin) x (9*Cin, Cout) matmul.
        for k in range(9):
            dy, dx = divmod(k, 3)
            col_ref[:, :, pl.ds(k * Cin, Cin)] = band_ref[pl.ds(dy, TH),
                                                          pl.ds(dx, W), :]
        patches = col_ref[...].reshape(TH * W, 9 * Cin)
        acc = jnp.dot(patches, w_ref[...].reshape(9 * Cin, Cout),
                      preferred_element_type=jnp.float32)
    else:
        # tiny-Cin path (conv0, Cin=3): FLOPs are negligible.
        acc = jnp.zeros((TH * W, Cout), jnp.float32)
        for k in range(9):
            dy, dx = divmod(k, 3)
            patch = band_ref[pl.ds(dy, TH), pl.ds(dx, W), :].reshape(TH * W, Cin)
            acc = acc + jnp.dot(patch, w_ref[k],
                                preferred_element_type=jnp.float32)

    acc = acc + b_ref[...]                        # (1, Cout) broadcasts
    if apply_relu:
        acc = jnp.maximum(acc, 0.0)
    o_ref[0] = acc.astype(o_ref.dtype).reshape(TH, W, Cout)

    if pool:
        # Fused epilogue: maxpool2x2(relu(conv)).  TH and W are even, so the
        # 2x2 windows never straddle strips.
        r = jnp.maximum(acc, 0.0)
        m = jnp.max(r.reshape(TH * W // 2, 2, Cout), axis=1)      # w-pairs
        p = jnp.max(m.reshape(TH // 2, 2, W // 2, Cout), axis=1)  # h-pairs
        p_ref[0] = p.astype(p_ref.dtype)


# ----------------------------------------------------------------------------
# Wrapper
# ----------------------------------------------------------------------------
def _pick_strip_rows(H, need_even):
    for th in (8, 4, 2, 1):
        if th <= H and H % th == 0 and (not need_even or th % 2 == 0):
            return th
    return H


def _halo_rows(x, TH):
    """Rows just above / below each TH-row strip (zeros at the image border)."""
    N, H, W, C = x.shape
    n_strips = H // TH
    zrow = jnp.zeros((N, 1, W, C), x.dtype)
    if n_strips == 1:
        return zrow, zrow
    top = jnp.concatenate([zrow, x[:, TH - 1::TH][:, :n_strips - 1]], axis=1)
    bot = jnp.concatenate([x[:, TH::TH][:, :n_strips - 1], zrow], axis=1)
    return top, bot


def conv3x3(x, w_taps, b, *, apply_relu, pool=False, strip_rows=None,
            out_dtype=jnp.bfloat16):
    """3x3 / pad=1 conv over NHWC `x`.  w_taps: (9, Cin, Cout), k = dy*3+dx.

    If pool=True, also returns maxpool2x2(relu(conv+bias)) as a fused second
    output.
    """
    N, H, W, Cin = x.shape
    assert w_taps.shape[:2] == (9, Cin)
    Cout = w_taps.shape[2]
    TH = strip_rows if strip_rows is not None else _pick_strip_rows(H, pool)
    assert H % TH == 0
    if pool:
        assert TH % 2 == 0 and W % 2 == 0
    n_strips = H // TH
    use_im2col = Cin >= 16

    w_taps = w_taps.astype(x.dtype)
    b = b.astype(jnp.float32).reshape(1, Cout)
    top, bot = _halo_rows(x, TH)

    out_shapes = [jax.ShapeDtypeStruct((N, H, W, Cout), out_dtype)]
    out_specs = [pl.BlockSpec((1, TH, W, Cout), lambda n, s: (n, s, 0, 0))]
    if pool:
        out_shapes.append(
            jax.ShapeDtypeStruct((N, H // 2, W // 2, Cout), out_dtype))
        out_specs.append(
            pl.BlockSpec((1, TH // 2, W // 2, Cout), lambda n, s: (n, s, 0, 0)))

    scratch = [pltpu.VMEM((TH + 2, W + 2, Cin), x.dtype)]
    if use_im2col:
        scratch.append(pltpu.VMEM((TH, W, 9 * Cin), x.dtype))

    itemsize = x.dtype.itemsize
    out_elems = N * H * W * Cout + (N * (H // 2) * (W // 2) * Cout if pool else 0)
    cost = pl.CostEstimate(
        flops=2 * N * H * W * 9 * Cin * Cout,
        transcendentals=0,
        bytes_accessed=(x.size + top.size + bot.size) * itemsize
        + w_taps.size * itemsize + b.size * 4
        + out_elems * jnp.dtype(out_dtype).itemsize,
    )

    kernel = functools.partial(_conv3x3_kernel, apply_relu=apply_relu,
                               pool=pool, use_im2col=use_im2col)

    return pl.pallas_call(
        kernel,
        out_shape=tuple(out_shapes) if pool else out_shapes[0],
        grid_spec=pltpu.PrefetchScalarGridSpec(
            num_scalar_prefetch=0,
            grid=(N, n_strips),
            in_specs=[
                pl.BlockSpec((1, TH, W, Cin), lambda n, s: (n, s, 0, 0)),
                pl.BlockSpec((1, 1, W, Cin), lambda n, s: (n, s, 0, 0)),
                pl.BlockSpec((1, 1, W, Cin), lambda n, s: (n, s, 0, 0)),
                pl.BlockSpec((9, Cin, Cout), lambda n, s: (0, 0, 0)),
                pl.BlockSpec((1, Cout), lambda n, s: (0, 0)),
            ],
            out_specs=out_specs if pool else out_specs[0],
            scratch_shapes=scratch,
        ),
        compiler_params=pltpu.CompilerParams(
            dimension_semantics=("parallel", "parallel")),
        cost_estimate=cost,
    )(x, top, bot, w_taps, b)


# ----------------------------------------------------------------------------
# VGG forward (layers 0..7 of vgg19.features, returning feats at 2, 4, 7)
# ----------------------------------------------------------------------------
def init_vgg_params(key):
    # Deterministic synthetic init (pretrained weights are not loaded).
    shapes = {"conv0": (64, 3), "conv2": (64, 64),
              "conv5": (128, 64), "conv7": (128, 128)}
    params = {}
    for i, (name, (cout, cin)) in enumerate(shapes.items()):
        kw, kb = jax.random.split(jax.random.fold_in(key, i))
        w = jax.random.normal(kw, (cout, cin, 3, 3), jnp.float32) / jnp.sqrt(cin * 9.0)
        b = jax.random.normal(kb, (cout,), jnp.float32) * 0.01
        params[name] = (w, b)
    return params


def vgg_features_nhwc(x_nhwc, params):
    """x: (N, H, W, 3). Returns (feat2, feat4, feat7) in NHWC (bf16)."""
    def taps(w):   # (Cout, Cin, 3, 3) -> (9, Cin, Cout), k = dy*3 + dx
        return jnp.transpose(w, (2, 3, 1, 0)).reshape(9, w.shape[1], w.shape[0])

    w0, b0 = params["conv0"]; w2, b2 = params["conv2"]
    w5, b5 = params["conv5"]; w7, b7 = params["conv7"]

    x = conv3x3(x_nhwc.astype(jnp.float32), taps(w0), b0, apply_relu=True)  # 0,1
    feat2, feat4 = conv3x3(x, taps(w2), b2, apply_relu=False, pool=True)    # 2,3,4
    x = conv3x3(feat4, taps(w5), b5, apply_relu=True)                       # 5,6
    feat7 = conv3x3(x, taps(w7), b7, apply_relu=False)                      # 7
    return feat2, feat4, feat7


@jax.jit
def vgg_features(x_nchw, params):
    """Returns [feat2, feat4, feat7] in NCHW/f32, matching VGG.forward."""
    x = jnp.transpose(x_nchw, (0, 2, 3, 1))
    f2, f4, f7 = vgg_features_nhwc(x, params)
    to_nchw = lambda t: jnp.transpose(t, (0, 3, 1, 2)).astype(jnp.float32)
    return [to_nchw(f2), to_nchw(f4), to_nchw(f7)]


# ----------------------------------------------------------------------------
# Pure-JAX reference for validation
# ----------------------------------------------------------------------------
def _ref_forward(x, params):
    def conv(x, w, b):
        y = jax.lax.conv_general_dilated(
            x, w, (1, 1), ((1, 1), (1, 1)),
            dimension_numbers=("NCHW", "OIHW", "NCHW"))
        return y + b[None, :, None, None]

    w0, b0 = params["conv0"]; w2, b2 = params["conv2"]
    w5, b5 = params["conv5"]; w7, b7 = params["conv7"]
    x = jax.nn.relu(conv(x, w0, b0))
    f2 = conv(x, w2, b2)
    f4 = jax.lax.reduce_window(jax.nn.relu(f2), -jnp.inf, jax.lax.max,
                               (1, 1, 2, 2), (1, 1, 2, 2), "VALID")
    x = jax.nn.relu(conv(f4, w5, b5))
    f7 = conv(x, w7, b7)
    return [f2, f4, f7]


if __name__ == "__main__":
    key = jax.random.PRNGKey(0)
    params = init_vgg_params(jax.random.fold_in(key, 123))
    x = jax.random.normal(jax.random.fold_in(key, 7), (2, 3, 16, 16), jnp.float32)

    feats = jax.block_until_ready(vgg_features(x, params))
    refs = _ref_forward(x, params)

    expected_shapes = [(2, 64, 16, 16), (2, 64, 8, 8), (2, 128, 8, 8)]
    for name, got, want, shp in zip(("feat2", "feat4", "feat7"),
                                    feats, refs, expected_shapes):
        assert got.shape == shp, (name, got.shape, shp)
        err = float(jnp.max(jnp.abs(got.astype(jnp.float32) - want)))
        scale = float(jnp.max(jnp.abs(want)))
        # bf16 activations/weights (f32 accumulation): allow a few % of scale.
        if err > 5e-2 * (scale + 1e-3):
            raise SystemExit(f"{name}: numerical mismatch max|diff|={err} "
                             f"(scale={scale})")
    print("KERNEL_OK")
</pallas_src>

<mosaic_0001>
module attributes {stable_mosaic.version = 11 : i64} {
  func.func @_conv3x3_kernel(%arg0: i32, %arg1: i32, %arg2: memref<1x8x16x64xbf16, #tpu.memory_space<vmem>>, %arg3: memref<1x1x16x64xbf16, #tpu.memory_space<vmem>>, %arg4: memref<1x1x16x64xbf16, #tpu.memory_space<vmem>>, %arg5: memref<9x64x64xbf16, #tpu.memory_space<vmem>>, %arg6: memref<1x64xf32, #tpu.memory_space<vmem>>, %arg7: memref<1x8x16x64xbf16, #tpu.memory_space<vmem>>, %arg8: memref<1x4x8x64xbf16, #tpu.memory_space<vmem>>, %arg9: memref<10x18x64xbf16, #tpu.memory_space<vmem>>, %arg10: memref<8x16x576xbf16, #tpu.memory_space<vmem>>) attributes {dimension_semantics = [#tpu.dimension_semantics<parallel>, #tpu.dimension_semantics<parallel>], iteration_bounds = array<i64: 2, 2>, scalar_prefetch = 0 : i64, scratch_operands = 2 : i64, tpu.core_type = #tpu.core_type<tc>, window_params = [{transform_indices = @transform_0, window_bounds = array<i64: 1, 8, 16, 64>}, {transform_indices = @transform_1, window_bounds = array<i64: 1, 1, 16, 64>}, {transform_indices = @transform_2, window_bounds = array<i64: 1, 1, 16, 64>}, {pipeline_mode = #tpu.pipeline_mode<synchronous>, transform_indices = @transform_3, window_bounds = array<i64: 9, 64, 64>}, {pipeline_mode = #tpu.pipeline_mode<synchronous>, transform_indices = @transform_4, window_bounds = array<i64: 1, 64>}, {transform_indices = @transform_5, window_bounds = array<i64: 1, 8, 16, 64>}, {transform_indices = @transform_6, window_bounds = array<i64: 1, 4, 8, 64>}]} {
    %cst = arith.constant 0.000000e+00 : bf16
    %0 = vector.broadcast %cst : bf16 to vector<10x1x64xbf16>
    %c0 = arith.constant 0 : index
    %c0_0 = arith.constant 0 : index
    %c0_1 = arith.constant 0 : index
    %1 = vector.load %arg9[%c0, %c0_0, %c0_1] : memref<10x18x64xbf16, #tpu.memory_space<vmem>>, vector<10x1x64xbf16>
    tpu.vector_store %arg9[%c0, %c0_0, %c0_1], %0 {strides = array<i32>} : memref<10x18x64xbf16, #tpu.memory_space<vmem>>, vector<10x1x64xbf16>,
    %c0_2 = arith.constant 0 : index
    %c17 = arith.constant 17 : index
    %c0_3 = arith.constant 0 : index
    %2 = vector.load %arg9[%c0_2, %c17, %c0_3] : memref<10x18x64xbf16, #tpu.memory_space<vmem>>, vector<10x1x64xbf16>
    tpu.vector_store %arg9[%c0_2, %c17, %c0_3], %0 {strides = array<i32>} : memref<10x18x64xbf16, #tpu.memory_space<vmem>>, vector<10x1x64xbf16>,
    %c0_4 = arith.constant 0 : index
    %c0_5 = arith.constant 0 : index
    %c0_6 = arith.constant 0 : index
    %c0_7 = arith.constant 0 : index
    %3 = vector.load %arg3[%c0_4, %c0_5, %c0_6, %c0_7] : memref<1x1x16x64xbf16, #tpu.memory_space<vmem>>, vector<1x1x16x64xbf16>
    %4 = vector.shape_cast %3 : vector<1x1x16x64xbf16> to vector<1x16x64xbf16>
    %c0_8 = arith.constant 0 : index
    %c1 = arith.constant 1 : index
    %c0_9 = arith.constant 0 : index
    %5 = vector.load %arg9[%c0_8, %c1, %c0_9] : memref<10x18x64xbf16, #tpu.memory_space<vmem>>, vector<1x16x64xbf16>
    tpu.vector_store %arg9[%c0_8, %c1, %c0_9], %4 {strides = array<i32>} : memref<10x18x64xbf16, #tpu.memory_space<vmem>>, vector<1x16x64xbf16>,
    %c0_10 = arith.constant 0 : index
    %c0_11 = arith.constant 0 : index
    %c0_12 = arith.constant 0 : index
    %c0_13 = arith.constant 0 : index
    %6 = vector.load %arg2[%c0_10, %c0_11, %c0_12, %c0_13] : memref<1x8x16x64xbf16, #tpu.memory_space<vmem>>, vector<1x8x16x64xbf16>
    %7 = vector.shape_cast %6 : vector<1x8x16x64xbf16> to vector<8x16x64xbf16>
    %c1_14 = arith.constant 1 : index
    %c1_15 = arith.constant 1 : index
    %c0_16 = arith.constant 0 : index
    %8 = vector.load %arg9[%c1_14, %c1_15, %c0_16] : memref<10x18x64xbf16, #tpu.memory_space<vmem>>, vector<8x16x64xbf16>
    tpu.vector_store %arg9[%c1_14, %c1_15, %c0_16], %7 {strides = array<i32>} : memref<10x18x64xbf16, #tpu.memory_space<vmem>>, vector<8x16x64xbf16>,
    %c0_17 = arith.constant 0 : index
    %c0_18 = arith.constant 0 : index
    %c0_19 = arith.constant 0 : index
    %c0_20 = arith.constant 0 : index
    %9 = vector.load %arg4[%c0_17, %c0_18, %c0_19, %c0_20] : memref<1x1x16x64xbf16, #tpu.memory_space<vmem>>, vector<1x1x16x64xbf16>
    %10 = vector.shape_cast %9 : vector<1x1x16x64xbf16> to vector<1x16x64xbf16>
    %c9 = arith.constant 9 : index
    %c1_21 = arith.constant 1 : index
    %c0_22 = arith.constant 0 : index
    %11 = vector.load %arg9[%c9, %c1_21, %c0_22] : memref<10x18x64xbf16, #tpu.memory_space<vmem>>, vector<1x16x64xbf16>
    tpu.vector_store %arg9[%c9, %c1_21, %c0_22], %10 {strides = array<i32>} : memref<10x18x64xbf16, #tpu.memory_space<vmem>>, vector<1x16x64xbf16>,
    %c0_23 = arith.constant 0 : index
    %c0_24 = arith.constant 0 : index
    %c0_25 = arith.constant 0 : index
    %12 = vector.load %arg9[%c0_23, %c0_24, %c0_25] : memref<10x18x64xbf16, #tpu.memory_space<vmem>>, vector<8x16x64xbf16>
    %c0_26 = arith.constant 0 : index
    %c0_27 = arith.constant 0 : index
    %c0_28 = arith.constant 0 : index
    %13 = vector.load %arg10[%c0_26, %c0_27, %c0_28] : memref<8x16x576xbf16, #tpu.memory_space<vmem>>, vector<8x16x64xbf16>
    tpu.vector_store %arg10[%c0_26, %c0_27, %c0_28], %12 {strides = array<i32>} : memref<8x16x576xbf16, #tpu.memory_space<vmem>>, vector<8x16x64xbf16>,
    %c0_29 = arith.constant 0 : index
    %c1_30 = arith.constant 1 : index
    %c0_31 = arith.constant 0 : index
    %14 = vector.load %arg9[%c0_29, %c1_30, %c0_31] : memref<10x18x64xbf16, #tpu.memory_space<vmem>>, vector<8x16x64xbf16>
    %c0_32 = arith.constant 0 : index
    %c0_33 = arith.constant 0 : index
    %c64 = arith.constant 64 : index
    %15 = vector.load %arg10[%c0_32, %c0_33, %c64] : memref<8x16x576xbf16, #tpu.memory_space<vmem>>, vector<8x16x64xbf16>
    tpu.vector_store %arg10[%c0_32, %c0_33, %c64], %14 {strides = array<i32>} : memref<8x16x576xbf16, #tpu.memory_space<vmem>>, vector<8x16x64xbf16>,
    %c0_34 = arith.constant 0 : index
    %c2 = arith.constant 2 : index
    %c0_35 = arith.constant 0 : index
    %16 = vector.load %arg9[%c0_34, %c2, %c0_35] : memref<10x18x64xbf16, #tpu.memory_space<vmem>>, vector<8x16x64xbf16>
    %c0_36 = arith.constant 0 : index
    %c0_37 = arith.constant 0 : index
    %c128 = arith.constant 128 : index
    %17 = vector.load %arg10[%c0_36, %c0_37, %c128] : memref<8x16x576xbf16, #tpu.memory_space<vmem>>, vector<8x16x64xbf16>
    tpu.vector_store %arg10[%c0_36, %c0_37, %c128], %16 {strides = array<i32>} : memref<8x16x576xbf16, #tpu.memory_space<vmem>>, vector<8x16x64xbf16>,
    %c1_38 = arith.constant 1 : index
    %c0_39 = arith.constant 0 : index
    %c0_40 = arith.constant 0 : index
    %18 = vector.load %arg9[%c1_38, %c0_39, %c0_40] : memref<10x18x64xbf16, #tpu.memory_space<vmem>>, vector<8x16x64xbf16>
    %c0_41 = arith.constant 0 : index
    %c0_42 = arith.constant 0 : index
    %c192 = arith.constant 192 : index
    %19 = vector.load %arg10[%c0_41, %c0_42, %c192] : memref<8x16x576xbf16, #tpu.memory_space<vmem>>, vector<8x16x64xbf16>
    tpu.vector_store %arg10[%c0_41, %c0_42, %c192], %18 {strides = array<i32>} : memref<8x16x576xbf16, #tpu.memory_space<vmem>>, vector<8x16x64xbf16>,
    %c1_43 = arith.constant 1 : index
    %c1_44 = arith.constant 1 : index
    %c0_45 = arith.constant 0 : index
    %20 = vector.load %arg9[%c1_43, %c1_44, %c0_45] : memref<10x18x64xbf16, #tpu.memory_space<vmem>>, vector<8x16x64xbf16>
    %c0_46 = arith.constant 0 : index
    %c0_47 = arith.constant 0 : index
    %c256 = arith.constant 256 : index
    %21 = vector.load %arg10[%c0_46, %c0_47, %c256] : memref<8x16x576xbf16, #tpu.memory_space<vmem>>, vector<8x16x64xbf16>
    tpu.vector_store %arg10[%c0_46, %c0_47, %c256], %20 {strides = array<i32>} : memref<8x16x576xbf16, #tpu.memory_space<vmem>>, vector<8x16x64xbf16>,
    %c1_48 = arith.constant 1 : index
    %c2_49 = arith.constant 2 : index
    %c0_50 = arith.constant 0 : index
    %22 = vector.load %arg9[%c1_48, %c2_49, %c0_50] : memref<10x18x64xbf16, #tpu.memory_space<vmem>>, vector<8x16x64xbf16>
    %c0_51 = arith.constant 0 : index
    %c0_52 = arith.constant 0 : index
    %c320 = arith.constant 320 : index
    %23 = vector.load %arg10[%c0_51, %c0_52, %c320] : memref<8x16x576xbf16, #tpu.memory_space<vmem>>, vector<8x16x64xbf16>
    tpu.vector_store %arg10[%c0_51, %c0_52, %c320], %22 {strides = array<i32>} : memref<8x16x576xbf16, #tpu.memory_space<vmem>>, vector<8x16x64xbf16>,
    %c2_53 = arith.constant 2 : index
    %c0_54 = arith.constant 0 : index
    %c0_55 = arith.constant 0 : index
    %24 = vector.load %arg9[%c2_53, %c0_54, %c0_55] : memref<10x18x64xbf16, #tpu.memory_space<vmem>>, vector<8x16x64xbf16>
    %c0_56 = arith.constant 0 : index
    %c0_57 = arith.constant 0 : index
    %c384 = arith.constant 384 : index
    %25 = vector.load %arg10[%c0_56, %c0_57, %c384] : memref<8x16x576xbf16, #tpu.memory_space<vmem>>, vector<8x16x64xbf16>
    tpu.vector_store %arg10[%c0_56, %c0_57, %c384], %24 {strides = array<i32>} : memref<8x16x576xbf16, #tpu.memory_space<vmem>>, vector<8x16x64xbf16>,
    %c2_58 = arith.constant 2 : index
    %c1_59 = arith.constant 1 : index
    %c0_60 = arith.constant 0 : index
    %26 = vector.load %arg9[%c2_58, %c1_59, %c0_60] : memref<10x18x64xbf16, #tpu.memory_space<vmem>>, vector<8x16x64xbf16>
    %c0_61 = arith.constant 0 : index
    %c0_62 = arith.constant 0 : index
    %c448 = arith.constant 448 : index
    %27 = vector.load %arg10[%c0_61, %c0_62, %c448] : memref<8x16x576xbf16, #tpu.memory_space<vmem>>, vector<8x16x64xbf16>
    tpu.vector_store %arg10[%c0_61, %c0_62, %c448], %26 {strides = array<i32>} : memref<8x16x576xbf16, #tpu.memory_space<vmem>>, vector<8x16x64xbf16>,
    %c2_63 = arith.constant 2 : index
    %c2_64 = arith.constant 2 : index
    %c0_65 = arith.constant 0 : index
    %28 = vector.load %arg9[%c2_63, %c2_64, %c0_65] : memref<10x18x64xbf16, #tpu.memory_space<vmem>>, vector<8x16x64xbf16>
    %c0_66 = arith.constant 0 : index
    %c0_67 = arith.constant 0 : index
    %c512 = arith.constant 512 : index
    %29 = vector.load %arg10[%c0_66, %c0_67, %c512] : memref<8x16x576xbf16, #tpu.memory_space<vmem>>, vector<8x16x64xbf16>
    tpu.vector_store %arg10[%c0_66, %c0_67, %c512], %28 {strides = array<i32>} : memref<8x16x576xbf16, #tpu.memory_space<vmem>>, vector<8x16x64xbf16>,
    %c0_68 = arith.constant 0 : index
    %c0_69 = arith.constant 0 : index
    %c0_70 = arith.constant 0 : index
    %30 = vector.load %arg10[%c0_68, %c0_69, %c0_70] : memref<8x16x576xbf16, #tpu.memory_space<vmem>>, vector<8x16x576xbf16>
    %31 = vector.shape_cast %30 : vector<8x16x576xbf16> to vector<128x576xbf16>
    %c0_71 = arith.constant 0 : index
    %c0_72 = arith.constant 0 : index
    %c0_73 = arith.constant 0 : index
    %32 = vector.load %arg5[%c0_71, %c0_72, %c0_73] : memref<9x64x64xbf16, #tpu.memory_space<vmem>>, vector<9x64x64xbf16>
    %33 = vector.shape_cast %32 : vector<9x64x64xbf16> to vector<576x64xbf16>
    %cst_74 = arith.constant dense<0.000000e+00> : vector<128x64xf32>
    %34 = tpu.matmul %31, %33, %cst_74 {dimension_numbers = #tpu.dot_dimension_numbers<[1], [0], [0], [1], [0, 0, 1, 1], [], []>} : vector<128x576xbf16>, vector<576x64xbf16>, vector<128x64xf32> -> vector<128x64xf32>
    %c0_75 = arith.constant 0 : index
    %c0_76 = arith.constant 0 : index
    %35 = vector.load %arg6[%c0_75, %c0_76] : memref<1x64xf32, #tpu.memory_space<vmem>>, vector<1x64xf32>
    %36 = vector.broadcast %35 : vector<1x64xf32> to vector<128x64xf32>
    %37 = arith.addf %34, %36 : vector<128x64xf32>
    %38 = arith.truncf %37 : vector<128x64xf32> to vector<128x64xbf16>
    %39 = vector.shape_cast %38 : vector<128x64xbf16> to vector<8x16x64xbf16>
    %c0_77 = arith.constant 0 : index
    %c0_78 = arith.constant 0 : index
    %c0_79 = arith.constant 0 : index
    %c0_80 = arith.constant 0 : index
    %40 = vector.load %arg7[%c0_77, %c0_78, %c0_79, %c0_80] : memref<1x8x16x64xbf16, #tpu.memory_space<vmem>>, vector<1x8x16x64xbf16>
    %41 = vector.shape_cast %40 : vector<1x8x16x64xbf16> to vector<8x16x64xbf16>
    %42 = vector.shape_cast %39 : vector<8x16x64xbf16> to vector<1x8x16x64xbf16>
    tpu.vector_store %arg7[%c0_77, %c0_78, %c0_79, %c0_80], %42 {strides = array<i32>} : memref<1x8x16x64xbf16, #tpu.memory_space<vmem>>, vector<1x8x16x64xbf16>,
    %cst_81 = arith.constant 0.000000e+00 : f32
    %43 = vector.broadcast %cst_81 : f32 to vector<128x64xf32>
    %44 = arith.maximumf %37, %43 : vector<128x64xf32>
    %45 = vector.shape_cast %44 : vector<128x64xf32> to vector<64x2x64xf32>
    %cst_82 = arith.constant dense<0xFF800000> : vector<64x64xf32>
    %46 = vector.multi_reduction <maximumf>, %45, %cst_82 [1] : vector<64x2x64xf32> to vector<64x64xf32>
    %47 = vector.shape_cast %46 : vector<64x64xf32> to vector<4x2x8x64xf32>
    %cst_83 = arith.constant dense<0xFF800000> : vector<4x8x64xf32>
    %48 = vector.multi_reduction <maximumf>, %47, %cst_83 [1] : vector<4x2x8x64xf32> to vector<4x8x64xf32>
    %49 = arith.truncf %48 : vector<4x8x64xf32> to vector<4x8x64xbf16>
    %c0_84 = arith.constant 0 : index
    %c0_85 = arith.constant 0 : index
    %c0_86 = arith.constant 0 : index
    %c0_87 = arith.constant 0 : index
    %50 = vector.load %arg8[%c0_84, %c0_85, %c0_86, %c0_87] : memref<1x4x8x64xbf16, #tpu.memory_space<vmem>>, vector<1x4x8x64xbf16>
    %51 = vector.shape_cast %50 : vector<1x4x8x64xbf16> to vector<4x8x64xbf16>
    %52 = vector.shape_cast %49 : vector<4x8x64xbf16> to vector<1x4x8x64xbf16>
    tpu.vector_store %arg8[%c0_84, %c0_85, %c0_86, %c0_87], %52 {strides = array<i32>} : memref<1x4x8x64xbf16, #tpu.memory_space<vmem>>, vector<1x4x8x64xbf16>,
    return
  }
  func.func @transform_0(%arg0: i32, %arg1: i32) -> (i32, i32, i32, i32) {
    %c0_i32 = arith.constant 0 : i32
    %c0_i32_0 = arith.constant 0 : i32
    %c0_i32_1 = arith.constant 0 : i32
    return %arg0, %arg1, %c0_i32, %c0_i32_0 : i32, i32, i32, i32
  }
  func.func @transform_1(%arg0: i32, %arg1: i32) -> (i32, i32, i32, i32) {
    %c0_i32 = arith.constant 0 : i32
    %c0_i32_0 = arith.constant 0 : i32
    %c0_i32_1 = arith.constant 0 : i32
    return %arg0, %arg1, %c0_i32, %c0_i32_0 : i32, i32, i32, i32
  }
  func.func @transform_2(%arg0: i32, %arg1: i32) -> (i32, i32, i32, i32) {
    %c0_i32 = arith.constant 0 : i32
    %c0_i32_0 = arith.constant 0 : i32
    %c0_i32_1 = arith.constant 0 : i32
    return %arg0, %arg1, %c0_i32, %c0_i32_0 : i32, i32, i32, i32
  }
  func.func @transform_3(%arg0: i32, %arg1: i32) -> (i32, i32, i32) {
    %c0_i32 = arith.constant 0 : i32
    %c0_i32_0 = arith.constant 0 : i32
    %c0_i32_1 = arith.constant 0 : i32
    %c0_i32_2 = arith.constant 0 : i32
    return %c0_i32, %c0_i32_0, %c0_i32_1 : i32, i32, i32
  }
  func.func @transform_4(%arg0: i32, %arg1: i32) -> (i32, i32) {
    %c0_i32 = arith.constant 0 : i32
    %c0_i32_0 = arith.constant 0 : i32
    %c0_i32_1 = arith.constant 0 : i32
    return %c0_i32, %c0_i32_0 : i32, i32
  }
  func.func @transform_5(%arg0: i32, %arg1: i32) -> (i32, i32, i32, i32) {
    %c0_i32 = arith.constant 0 : i32
    %c0_i32_0 = arith.constant 0 : i32
    %c0_i32_1 = arith.constant 0 : i32
    return %arg0, %arg1, %c0_i32, %c0_i32_0 : i32, i32, i32, i32
  }
  func.func @transform_6(%arg0: i32, %arg1: i32) -> (i32, i32, i32, i32) {
    %c0_i32 = arith.constant 0 : i32
    %c0_i32_0 = arith.constant 0 : i32
    %c0_i32_1 = arith.constant 0 : i32
    return %arg0, %arg1, %c0_i32, %c0_i32_0 : i32, i32, i32, i32
  }
}

module attributes {stable_mosaic.version = 11 : i64} {
  func.func @_conv3x3_kernel(%arg0: i32, %arg1: i32, %arg2: memref<1x8x16x3xf32, #tpu.memory_space<vmem>>, %arg3: memref<1x1x16x3xf32, #tpu.memory_space<vmem>>, %arg4: memref<1x1x16x3xf32, #tpu.memory_space<vmem>>, %arg5: memref<9x3x64xf32, #tpu.memory_space<vmem>>, %arg6: memref<1x64xf32, #tpu.memory_space<vmem>>, %arg7: memref<1x8x16x64xbf16, #tpu.memory_space<vmem>>, %arg8: memref<10x18x3xf32, #tpu.memory_space<vmem>>) attributes {dimension_semantics = [#tpu.dimension_semantics<parallel>, #tpu.dimension_semantics<parallel>], iteration_bounds = array<i64: 2, 2>, scalar_prefetch = 0 : i64, scratch_operands = 1 : i64, tpu.core_type = #tpu.core_type<tc>, window_params = [{transform_indices = @transform_0, window_bounds = array<i64: 1, 8, 16, 3>}, {transform_indices = @transform_1, window_bounds = array<i64: 1, 1, 16, 3>}, {transform_indices = @transform_2, window_bounds = array<i64: 1, 1, 16, 3>}, {pipeline_mode = #tpu.pipeline_mode<synchronous>, transform_indices = @transform_3, window_bounds = array<i64: 9, 3, 64>}, {pipeline_mode = #tpu.pipeline_mode<synchronous>, transform_indices = @transform_4, window_bounds = array<i64: 1, 64>}, {transform_indices = @transform_5, window_bounds = array<i64: 1, 8, 16, 64>}]} {
    %cst = arith.constant 0.000000e+00 : f32
    %0 = vector.broadcast %cst : f32 to vector<10x1x3xf32>
    %c0 = arith.constant 0 : index
    %c0_0 = arith.constant 0 : index
    %c0_1 = arith.constant 0 : index
    %1 = vector.load %arg8[%c0, %c0_0, %c0_1] : memref<10x18x3xf32, #tpu.memory_space<vmem>>, vector<10x1x3xf32>
    tpu.vector_store %arg8[%c0, %c0_0, %c0_1], %0 {strides = array<i32>} : memref<10x18x3xf32, #tpu.memory_space<vmem>>, vector<10x1x3xf32>,
    %c0_2 = arith.constant 0 : index
    %c17 = arith.constant 17 : index
    %c0_3 = arith.constant 0 : index
    %2 = vector.load %arg8[%c0_2, %c17, %c0_3] : memref<10x18x3xf32, #tpu.memory_space<vmem>>, vector<10x1x3xf32>
    tpu.vector_store %arg8[%c0_2, %c17, %c0_3], %0 {strides = array<i32>} : memref<10x18x3xf32, #tpu.memory_space<vmem>>, vector<10x1x3xf32>,
    %c0_4 = arith.constant 0 : index
    %c0_5 = arith.constant 0 : index
    %c0_6 = arith.constant 0 : index
    %c0_7 = arith.constant 0 : index
    %3 = vector.load %arg3[%c0_4, %c0_5, %c0_6, %c0_7] : memref<1x1x16x3xf32, #tpu.memory_space<vmem>>, vector<1x1x16x3xf32>
    %4 = vector.shape_cast %3 : vector<1x1x16x3xf32> to vector<1x16x3xf32>
    %c0_8 = arith.constant 0 : index
    %c1 = arith.constant 1 : index
    %c0_9 = arith.constant 0 : index
    %5 = vector.load %arg8[%c0_8, %c1, %c0_9] : memref<10x18x3xf32, #tpu.memory_space<vmem>>, vector<1x16x3xf32>
    tpu.vector_store %arg8[%c0_8, %c1, %c0_9], %4 {strides = array<i32>} : memref<10x18x3xf32, #tpu.memory_space<vmem>>, vector<1x16x3xf32>,
    %c0_10 = arith.constant 0 : index
    %c0_11 = arith.constant 0 : index
    %c0_12 = arith.constant 0 : index
    %c0_13 = arith.constant 0 : index
    %6 = vector.load %arg2[%c0_10, %c0_11, %c0_12, %c0_13] : memref<1x8x16x3xf32, #tpu.memory_space<vmem>>, vector<1x8x16x3xf32>
    %7 = vector.shape_cast %6 : vector<1x8x16x3xf32> to vector<8x16x3xf32>
    %c1_14 = arith.constant 1 : index
    %c1_15 = arith.constant 1 : index
    %c0_16 = arith.constant 0 : index
    %8 = vector.load %arg8[%c1_14, %c1_15, %c0_16] : memref<10x18x3xf32, #tpu.memory_space<vmem>>, vector<8x16x3xf32>
    tpu.vector_store %arg8[%c1_14, %c1_15, %c0_16], %7 {strides = array<i32>} : memref<10x18x3xf32, #tpu.memory_space<vmem>>, vector<8x16x3xf32>,
    %c0_17 = arith.constant 0 : index
    %c0_18 = arith.constant 0 : index
    %c0_19 = arith.constant 0 : index
    %c0_20 = arith.constant 0 : index
    %9 = vector.load %arg4[%c0_17, %c0_18, %c0_19, %c0_20] : memref<1x1x16x3xf32, #tpu.memory_space<vmem>>, vector<1x1x16x3xf32>
    %10 = vector.shape_cast %9 : vector<1x1x16x3xf32> to vector<1x16x3xf32>
    %c9 = arith.constant 9 : index
    %c1_21 = arith.constant 1 : index
    %c0_22 = arith.constant 0 : index
    %11 = vector.load %arg8[%c9, %c1_21, %c0_22] : memref<10x18x3xf32, #tpu.memory_space<vmem>>, vector<1x16x3xf32>
    tpu.vector_store %arg8[%c9, %c1_21, %c0_22], %10 {strides = array<i32>} : memref<10x18x3xf32, #tpu.memory_space<vmem>>, vector<1x16x3xf32>,
    %cst_23 = arith.constant 0.000000e+00 : f32
    %12 = vector.broadcast %cst_23 : f32 to vector<128x64xf32>
    %c0_24 = arith.constant 0 : index
    %c0_25 = arith.constant 0 : index
    %c0_26 = arith.constant 0 : index
    %13 = vector.load %arg8[%c0_24, %c0_25, %c0_26] : memref<10x18x3xf32, #tpu.memory_space<vmem>>, vector<8x16x3xf32>
    %14 = vector.shape_cast %13 : vector<8x16x3xf32> to vector<128x3xf32>
    %c0_27 = arith.constant 0 : index
    %c0_28 = arith.constant 0 : index
    %c0_29 = arith.constant 0 : index
    %15 = vector.load %arg5[%c0_27, %c0_28, %c0_29] : memref<9x3x64xf32, #tpu.memory_space<vmem>>, vector<1x3x64xf32>
    %16 = vector.shape_cast %15 : vector<1x3x64xf32> to vector<3x64xf32>
    %cst_30 = arith.constant dense<0.000000e+00> : vector<128x64xf32>
    %17 = tpu.matmul %14, %16, %cst_30 {dimension_numbers = #tpu.dot_dimension_numbers<[1], [0], [0], [1], [0, 0, 1, 1], [], []>} : vector<128x3xf32>, vector<3x64xf32>, vector<128x64xf32> -> vector<128x64xf32>
    %18 = arith.addf %12, %17 : vector<128x64xf32>
    %c0_31 = arith.constant 0 : index
    %c1_32 = arith.constant 1 : index
    %c0_33 = arith.constant 0 : index
    %19 = vector.load %arg8[%c0_31, %c1_32, %c0_33] : memref<10x18x3xf32, #tpu.memory_space<vmem>>, vector<8x16x3xf32>
    %20 = vector.shape_cast %19 : vector<8x16x3xf32> to vector<128x3xf32>
    %c1_34 = arith.constant 1 : index
    %c0_35 = arith.constant 0 : index
    %c0_36 = arith.constant 0 : index
    %21 = vector.load %arg5[%c1_34, %c0_35, %c0_36] : memref<9x3x64xf32, #tpu.memory_space<vmem>>, vector<1x3x64xf32>
    %22 = vector.shape_cast %21 : vector<1x3x64xf32> to vector<3x64xf32>
    %cst_37 = arith.constant dense<0.000000e+00> : vector<128x64xf32>
    %23 = tpu.matmul %20, %22, %cst_37 {dimension_numbers = #tpu.dot_dimension_numbers<[1], [0], [0], [1], [0, 0, 1, 1], [], []>} : vector<128x3xf32>, vector<3x64xf32>, vector<128x64xf32> -> vector<128x64xf32>
    %24 = arith.addf %18, %23 : vector<128x64xf32>
    %c0_38 = arith.constant 0 : index
    %c2 = arith.constant 2 : index
    %c0_39 = arith.constant 0 : index
    %25 = vector.load %arg8[%c0_38, %c2, %c0_39] : memref<10x18x3xf32, #tpu.memory_space<vmem>>, vector<8x16x3xf32>
    %26 = vector.shape_cast %25 : vector<8x16x3xf32> to vector<128x3xf32>
    %c2_40 = arith.constant 2 : index
    %c0_41 = arith.constant 0 : index
    %c0_42 = arith.constant 0 : index
    %27 = vector.load %arg5[%c2_40, %c0_41, %c0_42] : memref<9x3x64xf32, #tpu.memory_space<vmem>>, vector<1x3x64xf32>
    %28 = vector.shape_cast %27 : vector<1x3x64xf32> to vector<3x64xf32>
    %cst_43 = arith.constant dense<0.000000e+00> : vector<128x64xf32>
    %29 = tpu.matmul %26, %28, %cst_43 {dimension_numbers = #tpu.dot_dimension_numbers<[1], [0], [0], [1], [0, 0, 1, 1], [], []>} : vector<128x3xf32>, vector<3x64xf32>, vector<128x64xf32> -> vector<128x64xf32>
    %30 = arith.addf %24, %29 : vector<128x64xf32>
    %c1_44 = arith.constant 1 : index
    %c0_45 = arith.constant 0 : index
    %c0_46 = arith.constant 0 : index
    %31 = vector.load %arg8[%c1_44, %c0_45, %c0_46] : memref<10x18x3xf32, #tpu.memory_space<vmem>>, vector<8x16x3xf32>
    %32 = vector.shape_cast %31 : vector<8x16x3xf32> to vector<128x3xf32>
    %c3 = arith.constant 3 : index
    %c0_47 = arith.constant 0 : index
    %c0_48 = arith.constant 0 : index
    %33 = vector.load %arg5[%c3, %c0_47, %c0_48] : memref<9x3x64xf32, #tpu.memory_space<vmem>>, vector<1x3x64xf32>
    %34 = vector.shape_cast %33 : vector<1x3x64xf32> to vector<3x64xf32>
    %cst_49 = arith.constant dense<0.000000e+00> : vector<128x64xf32>
    %35 = tpu.matmul %32, %34, %cst_49 {dimension_numbers = #tpu.dot_dimension_numbers<[1], [0], [0], [1], [0, 0, 1, 1], [], []>} : vector<128x3xf32>, vector<3x64xf32>, vector<128x64xf32> -> vector<128x64xf32>
    %36 = arith.addf %30, %35 : vector<128x64xf32>
    %c1_50 = arith.constant 1 : index
    %c1_51 = arith.constant 1 : index
    %c0_52 = arith.constant 0 : index
    %37 = vector.load %arg8[%c1_50, %c1_51, %c0_52] : memref<10x18x3xf32, #tpu.memory_space<vmem>>, vector<8x16x3xf32>
    %38 = vector.shape_cast %37 : vector<8x16x3xf32> to vector<128x3xf32>
    %c4 = arith.constant 4 : index
    %c0_53 = arith.constant 0 : index
    %c0_54 = arith.constant 0 : index
    %39 = vector.load %arg5[%c4, %c0_53, %c0_54] : memref<9x3x64xf32, #tpu.memory_space<vmem>>, vector<1x3x64xf32>
    %40 = vector.shape_cast %39 : vector<1x3x64xf32> to vector<3x64xf32>
    %cst_55 = arith.constant dense<0.000000e+00> : vector<128x64xf32>
    %41 = tpu.matmul %38, %40, %cst_55 {dimension_numbers = #tpu.dot_dimension_numbers<[1], [0], [0], [1], [0, 0, 1, 1], [], []>} : vector<128x3xf32>, vector<3x64xf32>, vector<128x64xf32> -> vector<128x64xf32>
    %42 = arith.addf %36, %41 : vector<128x64xf32>
    %c1_56 = arith.constant 1 : index
    %c2_57 = arith.constant 2 : index
    %c0_58 = arith.constant 0 : index
    %43 = vector.load %arg8[%c1_56, %c2_57, %c0_58] : memref<10x18x3xf32, #tpu.memory_space<vmem>>, vector<8x16x3xf32>
    %44 = vector.shape_cast %43 : vector<8x16x3xf32> to vector<128x3xf32>
    %c5 = arith.constant 5 : index
    %c0_59 = arith.constant 0 : index
    %c0_60 = arith.constant 0 : index
    %45 = vector.load %arg5[%c5, %c0_59, %c0_60] : memref<9x3x64xf32, #tpu.memory_space<vmem>>, vector<1x3x64xf32>
    %46 = vector.shape_cast %45 : vector<1x3x64xf32> to vector<3x64xf32>
    %cst_61 = arith.constant dense<0.000000e+00> : vector<128x64xf32>
    %47 = tpu.matmul %44, %46, %cst_61 {dimension_numbers = #tpu.dot_dimension_numbers<[1], [0], [0], [1], [0, 0, 1, 1], [], []>} : vector<128x3xf32>, vector<3x64xf32>, vector<128x64xf32> -> vector<128x64xf32>
    %48 = arith.addf %42, %47 : vector<128x64xf32>
    %c2_62 = arith.constant 2 : index
    %c0_63 = arith.constant 0 : index
    %c0_64 = arith.constant 0 : index
    %49 = vector.load %arg8[%c2_62, %c0_63, %c0_64] : memref<10x18x3xf32, #tpu.memory_space<vmem>>, vector<8x16x3xf32>
    %50 = vector.shape_cast %49 : vector<8x16x3xf32> to vector<128x3xf32>
    %c6 = arith.constant 6 : index
    %c0_65 = arith.constant 0 : index
    %c0_66 = arith.constant 0 : index
    %51 = vector.load %arg5[%c6, %c0_65, %c0_66] : memref<9x3x64xf32, #tpu.memory_space<vmem>>, vector<1x3x64xf32>
    %52 = vector.shape_cast %51 : vector<1x3x64xf32> to vector<3x64xf32>
    %cst_67 = arith.constant dense<0.000000e+00> : vector<128x64xf32>
    %53 = tpu.matmul %50, %52, %cst_67 {dimension_numbers = #tpu.dot_dimension_numbers<[1], [0], [0], [1], [0, 0, 1, 1], [], []>} : vector<128x3xf32>, vector<3x64xf32>, vector<128x64xf32> -> vector<128x64xf32>
    %54 = arith.addf %48, %53 : vector<128x64xf32>
    %c2_68 = arith.constant 2 : index
    %c1_69 = arith.constant 1 : index
    %c0_70 = arith.constant 0 : index
    %55 = vector.load %arg8[%c2_68, %c1_69, %c0_70] : memref<10x18x3xf32, #tpu.memory_space<vmem>>, vector<8x16x3xf32>
    %56 = vector.shape_cast %55 : vector<8x16x3xf32> to vector<128x3xf32>
    %c7 = arith.constant 7 : index
    %c0_71 = arith.constant 0 : index
    %c0_72 = arith.constant 0 : index
    %57 = vector.load %arg5[%c7, %c0_71, %c0_72] : memref<9x3x64xf32, #tpu.memory_space<vmem>>, vector<1x3x64xf32>
    %58 = vector.shape_cast %57 : vector<1x3x64xf32> to vector<3x64xf32>
    %cst_73 = arith.constant dense<0.000000e+00> : vector<128x64xf32>
    %59 = tpu.matmul %56, %58, %cst_73 {dimension_numbers = #tpu.dot_dimension_numbers<[1], [0], [0], [1], [0, 0, 1, 1], [], []>} : vector<128x3xf32>, vector<3x64xf32>, vector<128x64xf32> -> vector<128x64xf32>
    %60 = arith.addf %54, %59 : vector<128x64xf32>
    %c2_74 = arith.constant 2 : index
    %c2_75 = arith.constant 2 : index
    %c0_76 = arith.constant 0 : index
    %61 = vector.load %arg8[%c2_74, %c2_75, %c0_76] : memref<10x18x3xf32, #tpu.memory_space<vmem>>, vector<8x16x3xf32>
    %62 = vector.shape_cast %61 : vector<8x16x3xf32> to vector<128x3xf32>
    %c8 = arith.constant 8 : index
    %c0_77 = arith.constant 0 : index
    %c0_78 = arith.constant 0 : index
    %63 = vector.load %arg5[%c8, %c0_77, %c0_78] : memref<9x3x64xf32, #tpu.memory_space<vmem>>, vector<1x3x64xf32>
    %64 = vector.shape_cast %63 : vector<1x3x64xf32> to vector<3x64xf32>
    %cst_79 = arith.constant dense<0.000000e+00> : vector<128x64xf32>
    %65 = tpu.matmul %62, %64, %cst_79 {dimension_numbers = #tpu.dot_dimension_numbers<[1], [0], [0], [1], [0, 0, 1, 1], [], []>} : vector<128x3xf32>, vector<3x64xf32>, vector<128x64xf32> -> vector<128x64xf32>
    %66 = arith.addf %60, %65 : vector<128x64xf32>
    %c0_80 = arith.constant 0 : index
    %c0_81 = arith.constant 0 : index
    %67 = vector.load %arg6[%c0_80, %c0_81] : memref<1x64xf32, #tpu.memory_space<vmem>>, vector<1x64xf32>
    %68 = vector.broadcast %67 : vector<1x64xf32> to vector<128x64xf32>
    %69 = arith.addf %66, %68 : vector<128x64xf32>
    %cst_82 = arith.constant 0.000000e+00 : f32
    %70 = vector.broadcast %cst_82 : f32 to vector<128x64xf32>
    %71 = arith.maximumf %69, %70 : vector<128x64xf32>
    %72 = arith.truncf %71 : vector<128x64xf32> to vector<128x64xbf16>
    %73 = vector.shape_cast %72 : vector<128x64xbf16> to vector<8x16x64xbf16>
    %c0_83 = arith.constant 0 : index
    %c0_84 = arith.constant 0 : index
    %c0_85 = arith.constant 0 : index
    %c0_86 = arith.constant 0 : index
    %74 = vector.load %arg7[%c0_83, %c0_84, %c0_85, %c0_86] : memref<1x8x16x64xbf16, #tpu.memory_space<vmem>>, vector<1x8x16x64xbf16>
    %75 = vector.shape_cast %74 : vector<1x8x16x64xbf16> to vector<8x16x64xbf16>
    %76 = vector.shape_cast %73 : vector<8x16x64xbf16> to vector<1x8x16x64xbf16>
    tpu.vector_store %arg7[%c0_83, %c0_84, %c0_85, %c0_86], %76 {strides = array<i32>} : memref<1x8x16x64xbf16, #tpu.memory_space<vmem>>, vector<1x8x16x64xbf16>,
    return
  }
  func.func @transform_0(%arg0: i32, %arg1: i32) -> (i32, i32, i32, i32) {
    %c0_i32 = arith.constant 0 : i32
    %c0_i32_0 = arith.constant 0 : i32
    %c0_i32_1 = arith.constant 0 : i32
    return %arg0, %arg1, %c0_i32, %c0_i32_0 : i32, i32, i32, i32
  }
  func.func @transform_1(%arg0: i32, %arg1: i32) -> (i32, i32, i32, i32) {
    %c0_i32 = arith.constant 0 : i32
    %c0_i32_0 = arith.constant 0 : i32
    %c0_i32_1 = arith.constant 0 : i32
    return %arg0, %arg1, %c0_i32, %c0_i32_0 : i32, i32, i32, i32
  }
  func.func @transform_2(%arg0: i32, %arg1: i32) -> (i32, i32, i32, i32) {
    %c0_i32 = arith.constant 0 : i32
    %c0_i32_0 = arith.constant 0 : i32
    %c0_i32_1 = arith.constant 0 : i32
    return %arg0, %arg1, %c0_i32, %c0_i32_0 : i32, i32, i32, i32
  }
  func.func @transform_3(%arg0: i32, %arg1: i32) -> (i32, i32, i32) {
    %c0_i32 = arith.constant 0 : i32
    %c0_i32_0 = arith.constant 0 : i32
    %c0_i32_1 = arith.constant 0 : i32
    %c0_i32_2 = arith.constant 0 : i32
    return %c0_i32, %c0_i32_0, %c0_i32_1 : i32, i32, i32
  }
  func.func @transform_4(%arg0: i32, %arg1: i32) -> (i32, i32) {
    %c0_i32 = arith.constant 0 : i32
    %c0_i32_0 = arith.constant 0 : i32
    %c0_i32_1 = arith.constant 0 : i32
    return %c0_i32, %c0_i32_0 : i32, i32
  }
  func.func @transform_5(%arg0: i32, %arg1: i32) -> (i32, i32, i32, i32) {
    %c0_i32 = arith.constant 0 : i32
    %c0_i32_0 = arith.constant 0 : i32
    %c0_i32_1 = arith.constant 0 : i32
    return %arg0, %arg1, %c0_i32, %c0_i32_0 : i32, i32, i32, i32
  }
}

module attributes {stable_mosaic.version = 11 : i64} {
  func.func @_conv3x3_kernel(%arg0: i32, %arg1: i32, %arg2: memref<1x8x8x64xbf16, #tpu.memory_space<vmem>>, %arg3: memref<1x1x8x64xbf16, #tpu.memory_space<vmem>>, %arg4: memref<1x1x8x64xbf16, #tpu.memory_space<vmem>>, %arg5: memref<9x64x128xbf16, #tpu.memory_space<vmem>>, %arg6: memref<1x128xf32, #tpu.memory_space<vmem>>, %arg7: memref<1x8x8x128xbf16, #tpu.memory_space<vmem>>, %arg8: memref<10x10x64xbf16, #tpu.memory_space<vmem>>, %arg9: memref<8x8x576xbf16, #tpu.memory_space<vmem>>) attributes {dimension_semantics = [#tpu.dimension_semantics<parallel>, #tpu.dimension_semantics<parallel>], iteration_bounds = array<i64: 2, 1>, scalar_prefetch = 0 : i64, scratch_operands = 2 : i64, tpu.core_type = #tpu.core_type<tc>, window_params = [{transform_indices = @transform_0, window_bounds = array<i64: 1, 8, 8, 64>}, {transform_indices = @transform_1, window_bounds = array<i64: 1, 1, 8, 64>}, {transform_indices = @transform_2, window_bounds = array<i64: 1, 1, 8, 64>}, {pipeline_mode = #tpu.pipeline_mode<synchronous>, transform_indices = @transform_3, window_bounds = array<i64: 9, 64, 128>}, {pipeline_mode = #tpu.pipeline_mode<synchronous>, transform_indices = @transform_4, window_bounds = array<i64: 1, 128>}, {transform_indices = @transform_5, window_bounds = array<i64: 1, 8, 8, 128>}]} {
    %cst = arith.constant 0.000000e+00 : bf16
    %0 = vector.broadcast %cst : bf16 to vector<10x1x64xbf16>
    %c0 = arith.constant 0 : index
    %c0_0 = arith.constant 0 : index
    %c0_1 = arith.constant 0 : index
    %1 = vector.load %arg8[%c0, %c0_0, %c0_1] : memref<10x10x64xbf16, #tpu.memory_space<vmem>>, vector<10x1x64xbf16>
    tpu.vector_store %arg8[%c0, %c0_0, %c0_1], %0 {strides = array<i32>} : memref<10x10x64xbf16, #tpu.memory_space<vmem>>, vector<10x1x64xbf16>,
    %c0_2 = arith.constant 0 : index
    %c9 = arith.constant 9 : index
    %c0_3 = arith.constant 0 : index
    %2 = vector.load %arg8[%c0_2, %c9, %c0_3] : memref<10x10x64xbf16, #tpu.memory_space<vmem>>, vector<10x1x64xbf16>
    tpu.vector_store %arg8[%c0_2, %c9, %c0_3], %0 {strides = array<i32>} : memref<10x10x64xbf16, #tpu.memory_space<vmem>>, vector<10x1x64xbf16>,
    %c0_4 = arith.constant 0 : index
    %c0_5 = arith.constant 0 : index
    %c0_6 = arith.constant 0 : index
    %c0_7 = arith.constant 0 : index
    %3 = vector.load %arg3[%c0_4, %c0_5, %c0_6, %c0_7] : memref<1x1x8x64xbf16, #tpu.memory_space<vmem>>, vector<1x1x8x64xbf16>
    %4 = vector.shape_cast %3 : vector<1x1x8x64xbf16> to vector<1x8x64xbf16>
    %c0_8 = arith.constant 0 : index
    %c1 = arith.constant 1 : index
    %c0_9 = arith.constant 0 : index
    %5 = vector.load %arg8[%c0_8, %c1, %c0_9] : memref<10x10x64xbf16, #tpu.memory_space<vmem>>, vector<1x8x64xbf16>
    tpu.vector_store %arg8[%c0_8, %c1, %c0_9], %4 {strides = array<i32>} : memref<10x10x64xbf16, #tpu.memory_space<vmem>>, vector<1x8x64xbf16>,
    %c0_10 = arith.constant 0 : index
    %c0_11 = arith.constant 0 : index
    %c0_12 = arith.constant 0 : index
    %c0_13 = arith.constant 0 : index
    %6 = vector.load %arg2[%c0_10, %c0_11, %c0_12, %c0_13] : memref<1x8x8x64xbf16, #tpu.memory_space<vmem>>, vector<1x8x8x64xbf16>
    %7 = vector.shape_cast %6 : vector<1x8x8x64xbf16> to vector<8x8x64xbf16>
    %c1_14 = arith.constant 1 : index
    %c1_15 = arith.constant 1 : index
    %c0_16 = arith.constant 0 : index
    %8 = vector.load %arg8[%c1_14, %c1_15, %c0_16] : memref<10x10x64xbf16, #tpu.memory_space<vmem>>, vector<8x8x64xbf16>
    tpu.vector_store %arg8[%c1_14, %c1_15, %c0_16], %7 {strides = array<i32>} : memref<10x10x64xbf16, #tpu.memory_space<vmem>>, vector<8x8x64xbf16>,
    %c0_17 = arith.constant 0 : index
    %c0_18 = arith.constant 0 : index
    %c0_19 = arith.constant 0 : index
    %c0_20 = arith.constant 0 : index
    %9 = vector.load %arg4[%c0_17, %c0_18, %c0_19, %c0_20] : memref<1x1x8x64xbf16, #tpu.memory_space<vmem>>, vector<1x1x8x64xbf16>
    %10 = vector.shape_cast %9 : vector<1x1x8x64xbf16> to vector<1x8x64xbf16>
    %c9_21 = arith.constant 9 : index
    %c1_22 = arith.constant 1 : index
    %c0_23 = arith.constant 0 : index
    %11 = vector.load %arg8[%c9_21, %c1_22, %c0_23] : memref<10x10x64xbf16, #tpu.memory_space<vmem>>, vector<1x8x64xbf16>
    tpu.vector_store %arg8[%c9_21, %c1_22, %c0_23], %10 {strides = array<i32>} : memref<10x10x64xbf16, #tpu.memory_space<vmem>>, vector<1x8x64xbf16>,
    %c0_24 = arith.constant 0 : index
    %c0_25 = arith.constant 0 : index
    %c0_26 = arith.constant 0 : index
    %12 = vector.load %arg8[%c0_24, %c0_25, %c0_26] : memref<10x10x64xbf16, #tpu.memory_space<vmem>>, vector<8x8x64xbf16>
    %c0_27 = arith.constant 0 : index
    %c0_28 = arith.constant 0 : index
    %c0_29 = arith.constant 0 : index
    %13 = vector.load %arg9[%c0_27, %c0_28, %c0_29] : memref<8x8x576xbf16, #tpu.memory_space<vmem>>, vector<8x8x64xbf16>
    tpu.vector_store %arg9[%c0_27, %c0_28, %c0_29], %12 {strides = array<i32>} : memref<8x8x576xbf16, #tpu.memory_space<vmem>>, vector<8x8x64xbf16>,
    %c0_30 = arith.constant 0 : index
    %c1_31 = arith.constant 1 : index
    %c0_32 = arith.constant 0 : index
    %14 = vector.load %arg8[%c0_30, %c1_31, %c0_32] : memref<10x10x64xbf16, #tpu.memory_space<vmem>>, vector<8x8x64xbf16>
    %c0_33 = arith.constant 0 : index
    %c0_34 = arith.constant 0 : index
    %c64 = arith.constant 64 : index
    %15 = vector.load %arg9[%c0_33, %c0_34, %c64] : memref<8x8x576xbf16, #tpu.memory_space<vmem>>, vector<8x8x64xbf16>
    tpu.vector_store %arg9[%c0_33, %c0_34, %c64], %14 {strides = array<i32>} : memref<8x8x576xbf16, #tpu.memory_space<vmem>>, vector<8x8x64xbf16>,
    %c0_35 = arith.constant 0 : index
    %c2 = arith.constant 2 : index
    %c0_36 = arith.constant 0 : index
    %16 = vector.load %arg8[%c0_35, %c2, %c0_36] : memref<10x10x64xbf16, #tpu.memory_space<vmem>>, vector<8x8x64xbf16>
    %c0_37 = arith.constant 0 : index
    %c0_38 = arith.constant 0 : index
    %c128 = arith.constant 128 : index
    %17 = vector.load %arg9[%c0_37, %c0_38, %c128] : memref<8x8x576xbf16, #tpu.memory_space<vmem>>, vector<8x8x64xbf16>
    tpu.vector_store %arg9[%c0_37, %c0_38, %c128], %16 {strides = array<i32>} : memref<8x8x576xbf16, #tpu.memory_space<vmem>>, vector<8x8x64xbf16>,
    %c1_39 = arith.constant 1 : index
    %c0_40 = arith.constant 0 : index
    %c0_41 = arith.constant 0 : index
    %18 = vector.load %arg8[%c1_39, %c0_40, %c0_41] : memref<10x10x64xbf16, #tpu.memory_space<vmem>>, vector<8x8x64xbf16>
    %c0_42 = arith.constant 0 : index
    %c0_43 = arith.constant 0 : index
    %c192 = arith.constant 192 : index
    %19 = vector.load %arg9[%c0_42, %c0_43, %c192] : memref<8x8x576xbf16, #tpu.memory_space<vmem>>, vector<8x8x64xbf16>
    tpu.vector_store %arg9[%c0_42, %c0_43, %c192], %18 {strides = array<i32>} : memref<8x8x576xbf16, #tpu.memory_space<vmem>>, vector<8x8x64xbf16>,
    %c1_44 = arith.constant 1 : index
    %c1_45 = arith.constant 1 : index
    %c0_46 = arith.constant 0 : index
    %20 = vector.load %arg8[%c1_44, %c1_45, %c0_46] : memref<10x10x64xbf16, #tpu.memory_space<vmem>>, vector<8x8x64xbf16>
    %c0_47 = arith.constant 0 : index
    %c0_48 = arith.constant 0 : index
    %c256 = arith.constant 256 : index
    %21 = vector.load %arg9[%c0_47, %c0_48, %c256] : memref<8x8x576xbf16, #tpu.memory_space<vmem>>, vector<8x8x64xbf16>
    tpu.vector_store %arg9[%c0_47, %c0_48, %c256], %20 {strides = array<i32>} : memref<8x8x576xbf16, #tpu.memory_space<vmem>>, vector<8x8x64xbf16>,
    %c1_49 = arith.constant 1 : index
    %c2_50 = arith.constant 2 : index
    %c0_51 = arith.constant 0 : index
    %22 = vector.load %arg8[%c1_49, %c2_50, %c0_51] : memref<10x10x64xbf16, #tpu.memory_space<vmem>>, vector<8x8x64xbf16>
    %c0_52 = arith.constant 0 : index
    %c0_53 = arith.constant 0 : index
    %c320 = arith.constant 320 : index
    %23 = vector.load %arg9[%c0_52, %c0_53, %c320] : memref<8x8x576xbf16, #tpu.memory_space<vmem>>, vector<8x8x64xbf16>
    tpu.vector_store %arg9[%c0_52, %c0_53, %c320], %22 {strides = array<i32>} : memref<8x8x576xbf16, #tpu.memory_space<vmem>>, vector<8x8x64xbf16>,
    %c2_54 = arith.constant 2 : index
    %c0_55 = arith.constant 0 : index
    %c0_56 = arith.constant 0 : index
    %24 = vector.load %arg8[%c2_54, %c0_55, %c0_56] : memref<10x10x64xbf16, #tpu.memory_space<vmem>>, vector<8x8x64xbf16>
    %c0_57 = arith.constant 0 : index
    %c0_58 = arith.constant 0 : index
    %c384 = arith.constant 384 : index
    %25 = vector.load %arg9[%c0_57, %c0_58, %c384] : memref<8x8x576xbf16, #tpu.memory_space<vmem>>, vector<8x8x64xbf16>
    tpu.vector_store %arg9[%c0_57, %c0_58, %c384], %24 {strides = array<i32>} : memref<8x8x576xbf16, #tpu.memory_space<vmem>>, vector<8x8x64xbf16>,
    %c2_59 = arith.constant 2 : index
    %c1_60 = arith.constant 1 : index
    %c0_61 = arith.constant 0 : index
    %26 = vector.load %arg8[%c2_59, %c1_60, %c0_61] : memref<10x10x64xbf16, #tpu.memory_space<vmem>>, vector<8x8x64xbf16>
    %c0_62 = arith.constant 0 : index
    %c0_63 = arith.constant 0 : index
    %c448 = arith.constant 448 : index
    %27 = vector.load %arg9[%c0_62, %c0_63, %c448] : memref<8x8x576xbf16, #tpu.memory_space<vmem>>, vector<8x8x64xbf16>
    tpu.vector_store %arg9[%c0_62, %c0_63, %c448], %26 {strides = array<i32>} : memref<8x8x576xbf16, #tpu.memory_space<vmem>>, vector<8x8x64xbf16>,
    %c2_64 = arith.constant 2 : index
    %c2_65 = arith.constant 2 : index
    %c0_66 = arith.constant 0 : index
    %28 = vector.load %arg8[%c2_64, %c2_65, %c0_66] : memref<10x10x64xbf16, #tpu.memory_space<vmem>>, vector<8x8x64xbf16>
    %c0_67 = arith.constant 0 : index
    %c0_68 = arith.constant 0 : index
    %c512 = arith.constant 512 : index
    %29 = vector.load %arg9[%c0_67, %c0_68, %c512] : memref<8x8x576xbf16, #tpu.memory_space<vmem>>, vector<8x8x64xbf16>
    tpu.vector_store %arg9[%c0_67, %c0_68, %c512], %28 {strides = array<i32>} : memref<8x8x576xbf16, #tpu.memory_space<vmem>>, vector<8x8x64xbf16>,
    %c0_69 = arith.constant 0 : index
    %c0_70 = arith.constant 0 : index
    %c0_71 = arith.constant 0 : index
    %30 = vector.load %arg9[%c0_69, %c0_70, %c0_71] : memref<8x8x576xbf16, #tpu.memory_space<vmem>>, vector<8x8x576xbf16>
    %31 = vector.shape_cast %30 : vector<8x8x576xbf16> to vector<64x576xbf16>
    %c0_72 = arith.constant 0 : index
    %c0_73 = arith.constant 0 : index
    %c0_74 = arith.constant 0 : index
    %32 = vector.load %arg5[%c0_72, %c0_73, %c0_74] : memref<9x64x128xbf16, #tpu.memory_space<vmem>>, vector<9x64x128xbf16>
    %33 = vector.shape_cast %32 : vector<9x64x128xbf16> to vector<576x128xbf16>
    %cst_75 = arith.constant dense<0.000000e+00> : vector<64x128xf32>
    %34 = tpu.matmul %31, %33, %cst_75 {dimension_numbers = #tpu.dot_dimension_numbers<[1], [0], [0], [1], [0, 0, 1, 1], [], []>} : vector<64x576xbf16>, vector<576x128xbf16>, vector<64x128xf32> -> vector<64x128xf32>
    %c0_76 = arith.constant 0 : index
    %c0_77 = arith.constant 0 : index
    %35 = vector.load %arg6[%c0_76, %c0_77] : memref<1x128xf32, #tpu.memory_space<vmem>>, vector<1x128xf32>
    %36 = vector.broadcast %35 : vector<1x128xf32> to vector<64x128xf32>
    %37 = arith.addf %34, %36 : vector<64x128xf32>
    %cst_78 = arith.constant 0.000000e+00 : f32
    %38 = vector.broadcast %cst_78 : f32 to vector<64x128xf32>
    %39 = arith.maximumf %37, %38 : vector<64x128xf32>
    %40 = arith.truncf %39 : vector<64x128xf32> to vector<64x128xbf16>
    %41 = vector.shape_cast %40 : vector<64x128xbf16> to vector<8x8x128xbf16>
    %c0_79 = arith.constant 0 : index
    %c0_80 = arith.constant 0 : index
    %c0_81 = arith.constant 0 : index
    %c0_82 = arith.constant 0 : index
    %42 = vector.load %arg7[%c0_79, %c0_80, %c0_81, %c0_82] : memref<1x8x8x128xbf16, #tpu.memory_space<vmem>>, vector<1x8x8x128xbf16>
    %43 = vector.shape_cast %42 : vector<1x8x8x128xbf16> to vector<8x8x128xbf16>
    %44 = vector.shape_cast %41 : vector<8x8x128xbf16> to vector<1x8x8x128xbf16>
    tpu.vector_store %arg7[%c0_79, %c0_80, %c0_81, %c0_82], %44 {strides = array<i32>} : memref<1x8x8x128xbf16, #tpu.memory_space<vmem>>, vector<1x8x8x128xbf16>,
    return
  }
  func.func @transform_0(%arg0: i32, %arg1: i32) -> (i32, i32, i32, i32) {
    %c0_i32 = arith.constant 0 : i32
    %c0_i32_0 = arith.constant 0 : i32
    %c0_i32_1 = arith.constant 0 : i32
    return %arg0, %arg1, %c0_i32, %c0_i32_0 : i32, i32, i32, i32
  }
  func.func @transform_1(%arg0: i32, %arg1: i32) -> (i32, i32, i32, i32) {
    %c0_i32 = arith.constant 0 : i32
    %c0_i32_0 = arith.constant 0 : i32
    %c0_i32_1 = arith.constant 0 : i32
    return %arg0, %arg1, %c0_i32, %c0_i32_0 : i32, i32, i32, i32
  }
  func.func @transform_2(%arg0: i32, %arg1: i32) -> (i32, i32, i32, i32) {
    %c0_i32 = arith.constant 0 : i32
    %c0_i32_0 = arith.constant 0 : i32
    %c0_i32_1 = arith.constant 0 : i32
    return %arg0, %arg1, %c0_i32, %c0_i32_0 : i32, i32, i32, i32
  }
  func.func @transform_3(%arg0: i32, %arg1: i32) -> (i32, i32, i32) {
    %c0_i32 = arith.constant 0 : i32
    %c0_i32_0 = arith.constant 0 : i32
    %c0_i32_1 = arith.constant 0 : i32
    %c0_i32_2 = arith.constant 0 : i32
    return %c0_i32, %c0_i32_0, %c0_i32_1 : i32, i32, i32
  }
  func.func @transform_4(%arg0: i32, %arg1: i32) -> (i32, i32) {
    %c0_i32 = arith.constant 0 : i32
    %c0_i32_0 = arith.constant 0 : i32
    %c0_i32_1 = arith.constant 0 : i32
    return %c0_i32, %c0_i32_0 : i32, i32
  }
  func.func @transform_5(%arg0: i32, %arg1: i32) -> (i32, i32, i32, i32) {
    %c0_i32 = arith.constant 0 : i32
    %c0_i32_0 = arith.constant 0 : i32
    %c0_i32_1 = arith.constant 0 : i32
    return %arg0, %arg1, %c0_i32, %c0_i32_0 : i32, i32, i32, i32
  }
}

module attributes {stable_mosaic.version = 11 : i64} {
  func.func @_conv3x3_kernel(%arg0: i32, %arg1: i32, %arg2: memref<1x8x8x128xbf16, #tpu.memory_space<vmem>>, %arg3: memref<1x1x8x128xbf16, #tpu.memory_space<vmem>>, %arg4: memref<1x1x8x128xbf16, #tpu.memory_space<vmem>>, %arg5: memref<9x128x128xbf16, #tpu.memory_space<vmem>>, %arg6: memref<1x128xf32, #tpu.memory_space<vmem>>, %arg7: memref<1x8x8x128xbf16, #tpu.memory_space<vmem>>, %arg8: memref<10x10x128xbf16, #tpu.memory_space<vmem>>, %arg9: memref<8x8x1152xbf16, #tpu.memory_space<vmem>>) attributes {dimension_semantics = [#tpu.dimension_semantics<parallel>, #tpu.dimension_semantics<parallel>], iteration_bounds = array<i64: 2, 1>, scalar_prefetch = 0 : i64, scratch_operands = 2 : i64, tpu.core_type = #tpu.core_type<tc>, window_params = [{transform_indices = @transform_0, window_bounds = array<i64: 1, 8, 8, 128>}, {transform_indices = @transform_1, window_bounds = array<i64: 1, 1, 8, 128>}, {transform_indices = @transform_2, window_bounds = array<i64: 1, 1, 8, 128>}, {pipeline_mode = #tpu.pipeline_mode<synchronous>, transform_indices = @transform_3, window_bounds = array<i64: 9, 128, 128>}, {pipeline_mode = #tpu.pipeline_mode<synchronous>, transform_indices = @transform_4, window_bounds = array<i64: 1, 128>}, {transform_indices = @transform_5, window_bounds = array<i64: 1, 8, 8, 128>}]} {
    %cst = arith.constant 0.000000e+00 : bf16
    %0 = vector.broadcast %cst : bf16 to vector<10x1x128xbf16>
    %c0 = arith.constant 0 : index
    %c0_0 = arith.constant 0 : index
    %c0_1 = arith.constant 0 : index
    %1 = vector.load %arg8[%c0, %c0_0, %c0_1] : memref<10x10x128xbf16, #tpu.memory_space<vmem>>, vector<10x1x128xbf16>
    tpu.vector_store %arg8[%c0, %c0_0, %c0_1], %0 {strides = array<i32>} : memref<10x10x128xbf16, #tpu.memory_space<vmem>>, vector<10x1x128xbf16>,
    %c0_2 = arith.constant 0 : index
    %c9 = arith.constant 9 : index
    %c0_3 = arith.constant 0 : index
    %2 = vector.load %arg8[%c0_2, %c9, %c0_3] : memref<10x10x128xbf16, #tpu.memory_space<vmem>>, vector<10x1x128xbf16>
    tpu.vector_store %arg8[%c0_2, %c9, %c0_3], %0 {strides = array<i32>} : memref<10x10x128xbf16, #tpu.memory_space<vmem>>, vector<10x1x128xbf16>,
    %c0_4 = arith.constant 0 : index
    %c0_5 = arith.constant 0 : index
    %c0_6 = arith.constant 0 : index
    %c0_7 = arith.constant 0 : index
    %3 = vector.load %arg3[%c0_4, %c0_5, %c0_6, %c0_7] : memref<1x1x8x128xbf16, #tpu.memory_space<vmem>>, vector<1x1x8x128xbf16>
    %4 = vector.shape_cast %3 : vector<1x1x8x128xbf16> to vector<1x8x128xbf16>
    %c0_8 = arith.constant 0 : index
    %c1 = arith.constant 1 : index
    %c0_9 = arith.constant 0 : index
    %5 = vector.load %arg8[%c0_8, %c1, %c0_9] : memref<10x10x128xbf16, #tpu.memory_space<vmem>>, vector<1x8x128xbf16>
    tpu.vector_store %arg8[%c0_8, %c1, %c0_9], %4 {strides = array<i32>} : memref<10x10x128xbf16, #tpu.memory_space<vmem>>, vector<1x8x128xbf16>,
    %c0_10 = arith.constant 0 : index
    %c0_11 = arith.constant 0 : index
    %c0_12 = arith.constant 0 : index
    %c0_13 = arith.constant 0 : index
    %6 = vector.load %arg2[%c0_10, %c0_11, %c0_12, %c0_13] : memref<1x8x8x128xbf16, #tpu.memory_space<vmem>>, vector<1x8x8x128xbf16>
    %7 = vector.shape_cast %6 : vector<1x8x8x128xbf16> to vector<8x8x128xbf16>
    %c1_14 = arith.constant 1 : index
    %c1_15 = arith.constant 1 : index
    %c0_16 = arith.constant 0 : index
    %8 = vector.load %arg8[%c1_14, %c1_15, %c0_16] : memref<10x10x128xbf16, #tpu.memory_space<vmem>>, vector<8x8x128xbf16>
    tpu.vector_store %arg8[%c1_14, %c1_15, %c0_16], %7 {strides = array<i32>} : memref<10x10x128xbf16, #tpu.memory_space<vmem>>, vector<8x8x128xbf16>,
    %c0_17 = arith.constant 0 : index
    %c0_18 = arith.constant 0 : index
    %c0_19 = arith.constant 0 : index
    %c0_20 = arith.constant 0 : index
    %9 = vector.load %arg4[%c0_17, %c0_18, %c0_19, %c0_20] : memref<1x1x8x128xbf16, #tpu.memory_space<vmem>>, vector<1x1x8x128xbf16>
    %10 = vector.shape_cast %9 : vector<1x1x8x128xbf16> to vector<1x8x128xbf16>
    %c9_21 = arith.constant 9 : index
    %c1_22 = arith.constant 1 : index
    %c0_23 = arith.constant 0 : index
    %11 = vector.load %arg8[%c9_21, %c1_22, %c0_23] : memref<10x10x128xbf16, #tpu.memory_space<vmem>>, vector<1x8x128xbf16>
    tpu.vector_store %arg8[%c9_21, %c1_22, %c0_23], %10 {strides = array<i32>} : memref<10x10x128xbf16, #tpu.memory_space<vmem>>, vector<1x8x128xbf16>,
    %c0_24 = arith.constant 0 : index
    %c0_25 = arith.constant 0 : index
    %c0_26 = arith.constant 0 : index
    %12 = vector.load %arg8[%c0_24, %c0_25, %c0_26] : memref<10x10x128xbf16, #tpu.memory_space<vmem>>, vector<8x8x128xbf16>
    %c0_27 = arith.constant 0 : index
    %c0_28 = arith.constant 0 : index
    %c0_29 = arith.constant 0 : index
    %13 = vector.load %arg9[%c0_27, %c0_28, %c0_29] : memref<8x8x1152xbf16, #tpu.memory_space<vmem>>, vector<8x8x128xbf16>
    tpu.vector_store %arg9[%c0_27, %c0_28, %c0_29], %12 {strides = array<i32>} : memref<8x8x1152xbf16, #tpu.memory_space<vmem>>, vector<8x8x128xbf16>,
    %c0_30 = arith.constant 0 : index
    %c1_31 = arith.constant 1 : index
    %c0_32 = arith.constant 0 : index
    %14 = vector.load %arg8[%c0_30, %c1_31, %c0_32] : memref<10x10x128xbf16, #tpu.memory_space<vmem>>, vector<8x8x128xbf16>
    %c0_33 = arith.constant 0 : index
    %c0_34 = arith.constant 0 : index
    %c128 = arith.constant 128 : index
    %15 = vector.load %arg9[%c0_33, %c0_34, %c128] : memref<8x8x1152xbf16, #tpu.memory_space<vmem>>, vector<8x8x128xbf16>
    tpu.vector_store %arg9[%c0_33, %c0_34, %c128], %14 {strides = array<i32>} : memref<8x8x1152xbf16, #tpu.memory_space<vmem>>, vector<8x8x128xbf16>,
    %c0_35 = arith.constant 0 : index
    %c2 = arith.constant 2 : index
    %c0_36 = arith.constant 0 : index
    %16 = vector.load %arg8[%c0_35, %c2, %c0_36] : memref<10x10x128xbf16, #tpu.memory_space<vmem>>, vector<8x8x128xbf16>
    %c0_37 = arith.constant 0 : index
    %c0_38 = arith.constant 0 : index
    %c256 = arith.constant 256 : index
    %17 = vector.load %arg9[%c0_37, %c0_38, %c256] : memref<8x8x1152xbf16, #tpu.memory_space<vmem>>, vector<8x8x128xbf16>
    tpu.vector_store %arg9[%c0_37, %c0_38, %c256], %16 {strides = array<i32>} : memref<8x8x1152xbf16, #tpu.memory_space<vmem>>, vector<8x8x128xbf16>,
    %c1_39 = arith.constant 1 : index
    %c0_40 = arith.constant 0 : index
    %c0_41 = arith.constant 0 : index
    %18 = vector.load %arg8[%c1_39, %c0_40, %c0_41] : memref<10x10x128xbf16, #tpu.memory_space<vmem>>, vector<8x8x128xbf16>
    %c0_42 = arith.constant 0 : index
    %c0_43 = arith.constant 0 : index
    %c384 = arith.constant 384 : index
    %19 = vector.load %arg9[%c0_42, %c0_43, %c384] : memref<8x8x1152xbf16, #tpu.memory_space<vmem>>, vector<8x8x128xbf16>
    tpu.vector_store %arg9[%c0_42, %c0_43, %c384], %18 {strides = array<i32>} : memref<8x8x1152xbf16, #tpu.memory_space<vmem>>, vector<8x8x128xbf16>,
    %c1_44 = arith.constant 1 : index
    %c1_45 = arith.constant 1 : index
    %c0_46 = arith.constant 0 : index
    %20 = vector.load %arg8[%c1_44, %c1_45, %c0_46] : memref<10x10x128xbf16, #tpu.memory_space<vmem>>, vector<8x8x128xbf16>
    %c0_47 = arith.constant 0 : index
    %c0_48 = arith.constant 0 : index
    %c512 = arith.constant 512 : index
    %21 = vector.load %arg9[%c0_47, %c0_48, %c512] : memref<8x8x1152xbf16, #tpu.memory_space<vmem>>, vector<8x8x128xbf16>
    tpu.vector_store %arg9[%c0_47, %c0_48, %c512], %20 {strides = array<i32>} : memref<8x8x1152xbf16, #tpu.memory_space<vmem>>, vector<8x8x128xbf16>,
    %c1_49 = arith.constant 1 : index
    %c2_50 = arith.constant 2 : index
    %c0_51 = arith.constant 0 : index
    %22 = vector.load %arg8[%c1_49, %c2_50, %c0_51] : memref<10x10x128xbf16, #tpu.memory_space<vmem>>, vector<8x8x128xbf16>
    %c0_52 = arith.constant 0 : index
    %c0_53 = arith.constant 0 : index
    %c640 = arith.constant 640 : index
    %23 = vector.load %arg9[%c0_52, %c0_53, %c640] : memref<8x8x1152xbf16, #tpu.memory_space<vmem>>, vector<8x8x128xbf16>
    tpu.vector_store %arg9[%c0_52, %c0_53, %c640], %22 {strides = array<i32>} : memref<8x8x1152xbf16, #tpu.memory_space<vmem>>, vector<8x8x128xbf16>,
    %c2_54 = arith.constant 2 : index
    %c0_55 = arith.constant 0 : index
    %c0_56 = arith.constant 0 : index
    %24 = vector.load %arg8[%c2_54, %c0_55, %c0_56] : memref<10x10x128xbf16, #tpu.memory_space<vmem>>, vector<8x8x128xbf16>
    %c0_57 = arith.constant 0 : index
    %c0_58 = arith.constant 0 : index
    %c768 = arith.constant 768 : index
    %25 = vector.load %arg9[%c0_57, %c0_58, %c768] : memref<8x8x1152xbf16, #tpu.memory_space<vmem>>, vector<8x8x128xbf16>
    tpu.vector_store %arg9[%c0_57, %c0_58, %c768], %24 {strides = array<i32>} : memref<8x8x1152xbf16, #tpu.memory_space<vmem>>, vector<8x8x128xbf16>,
    %c2_59 = arith.constant 2 : index
    %c1_60 = arith.constant 1 : index
    %c0_61 = arith.constant 0 : index
    %26 = vector.load %arg8[%c2_59, %c1_60, %c0_61] : memref<10x10x128xbf16, #tpu.memory_space<vmem>>, vector<8x8x128xbf16>
    %c0_62 = arith.constant 0 : index
    %c0_63 = arith.constant 0 : index
    %c896 = arith.constant 896 : index
    %27 = vector.load %arg9[%c0_62, %c0_63, %c896] : memref<8x8x1152xbf16, #tpu.memory_space<vmem>>, vector<8x8x128xbf16>
    tpu.vector_store %arg9[%c0_62, %c0_63, %c896], %26 {strides = array<i32>} : memref<8x8x1152xbf16, #tpu.memory_space<vmem>>, vector<8x8x128xbf16>,
    %c2_64 = arith.constant 2 : index
    %c2_65 = arith.constant 2 : index
    %c0_66 = arith.constant 0 : index
    %28 = vector.load %arg8[%c2_64, %c2_65, %c0_66] : memref<10x10x128xbf16, #tpu.memory_space<vmem>>, vector<8x8x128xbf16>
    %c0_67 = arith.constant 0 : index
    %c0_68 = arith.constant 0 : index
    %c1024 = arith.constant 1024 : index
    %29 = vector.load %arg9[%c0_67, %c0_68, %c1024] : memref<8x8x1152xbf16, #tpu.memory_space<vmem>>, vector<8x8x128xbf16>
    tpu.vector_store %arg9[%c0_67, %c0_68, %c1024], %28 {strides = array<i32>} : memref<8x8x1152xbf16, #tpu.memory_space<vmem>>, vector<8x8x128xbf16>,
    %c0_69 = arith.constant 0 : index
    %c0_70 = arith.constant 0 : index
    %c0_71 = arith.constant 0 : index
    %30 = vector.load %arg9[%c0_69, %c0_70, %c0_71] : memref<8x8x1152xbf16, #tpu.memory_space<vmem>>, vector<8x8x1152xbf16>
    %31 = vector.shape_cast %30 : vector<8x8x1152xbf16> to vector<64x1152xbf16>
    %c0_72 = arith.constant 0 : index
    %c0_73 = arith.constant 0 : index
    %c0_74 = arith.constant 0 : index
    %32 = vector.load %arg5[%c0_72, %c0_73, %c0_74] : memref<9x128x128xbf16, #tpu.memory_space<vmem>>, vector<9x128x128xbf16>
    %33 = vector.shape_cast %32 : vector<9x128x128xbf16> to vector<1152x128xbf16>
    %cst_75 = arith.constant dense<0.000000e+00> : vector<64x128xf32>
    %34 = tpu.matmul %31, %33, %cst_75 {dimension_numbers = #tpu.dot_dimension_numbers<[1], [0], [0], [1], [0, 0, 1, 1], [], []>} : vector<64x1152xbf16>, vector<1152x128xbf16>, vector<64x128xf32> -> vector<64x128xf32>
    %c0_76 = arith.constant 0 : index
    %c0_77 = arith.constant 0 : index
    %35 = vector.load %arg6[%c0_76, %c0_77] : memref<1x128xf32, #tpu.memory_space<vmem>>, vector<1x128xf32>
    %36 = vector.broadcast %35 : vector<1x128xf32> to vector<64x128xf32>
    %37 = arith.addf %34, %36 : vector<64x128xf32>
    %38 = arith.truncf %37 : vector<64x128xf32> to vector<64x128xbf16>
    %39 = vector.shape_cast %38 : vector<64x128xbf16> to vector<8x8x128xbf16>
    %c0_78 = arith.constant 0 : index
    %c0_79 = arith.constant 0 : index
    %c0_80 = arith.constant 0 : index
    %c0_81 = arith.constant 0 : index
    %40 = vector.load %arg7[%c0_78, %c0_79, %c0_80, %c0_81] : memref<1x8x8x128xbf16, #tpu.memory_space<vmem>>, vector<1x8x8x128xbf16>
    %41 = vector.shape_cast %40 : vector<1x8x8x128xbf16> to vector<8x8x128xbf16>
    %42 = vector.shape_cast %39 : vector<8x8x128xbf16> to vector<1x8x8x128xbf16>
    tpu.vector_store %arg7[%c0_78, %c0_79, %c0_80, %c0_81], %42 {strides = array<i32>} : memref<1x8x8x128xbf16, #tpu.memory_space<vmem>>, vector<1x8x8x128xbf16>,
    return
  }
  func.func @transform_0(%arg0: i32, %arg1: i32) -> (i32, i32, i32, i32) {
    %c0_i32 = arith.constant 0 : i32
    %c0_i32_0 = arith.constant 0 : i32
    %c0_i32_1 = arith.constant 0 : i32
    return %arg0, %arg1, %c0_i32, %c0_i32_0 : i32, i32, i32, i32
  }
  func.func @transform_1(%arg0: i32, %arg1: i32) -> (i32, i32, i32, i32) {
    %c0_i32 = arith.constant 0 : i32
    %c0_i32_0 = arith.constant 0 : i32
    %c0_i32_1 = arith.constant 0 : i32
    return %arg0, %arg1, %c0_i32, %c0_i32_0 : i32, i32, i32, i32
  }
  func.func @transform_2(%arg0: i32, %arg1: i32) -> (i32, i32, i32, i32) {
    %c0_i32 = arith.constant 0 : i32
    %c0_i32_0 = arith.constant 0 : i32
    %c0_i32_1 = arith.constant 0 : i32
    return %arg0, %arg1, %c0_i32, %c0_i32_0 : i32, i32, i32, i32
  }
  func.func @transform_3(%arg0: i32, %arg1: i32) -> (i32, i32, i32) {
    %c0_i32 = arith.constant 0 : i32
    %c0_i32_0 = arith.constant 0 : i32
    %c0_i32_1 = arith.constant 0 : i32
    %c0_i32_2 = arith.constant 0 : i32
    return %c0_i32, %c0_i32_0, %c0_i32_1 : i32, i32, i32
  }
  func.func @transform_4(%arg0: i32, %arg1: i32) -> (i32, i32) {
    %c0_i32 = arith.constant 0 : i32
    %c0_i32_0 = arith.constant 0 : i32
    %c0_i32_1 = arith.constant 0 : i32
    return %c0_i32, %c0_i32_0 : i32, i32
  }
  func.func @transform_5(%arg0: i32, %arg1: i32) -> (i32, i32, i32, i32) {
    %c0_i32 = arith.constant 0 : i32
    %c0_i32_0 = arith.constant 0 : i32
    %c0_i32_1 = arith.constant 0 : i32
    return %arg0, %arg1, %c0_i32, %c0_i32_0 : i32, i32, i32, i32
  }
}

</mosaic_0001>

<bundles_post_ra>
// kernel: vgg_features.4
= control target key start
LH: loop header
LB: loop body
LE: loop exit
PB: predicated region body
PF: predicated region fallthrough
CT: control target
= control target key end

     0   :  { %s2228_s18 = smov 0   ;;  %s2230_s19 = smov 0   ;;  %s2913_s0 = inlined_call_operand.vmem [shape: f32[2,16,16,3], index: 0, kind: input, shape index: {}]   ;;  %s2914_s1 = inlined_call_operand.vmem [shape: f32[2,2,16,3], index: 1, kind: input, shape index: {}]   ;;  %s2915_s2 = inlined_call_operand.vmem [shape: f32[2,2,16,3], index: 2, kind: input, shape index: {}]   ;;  %s2916_s3 = inlined_call_operand.vmem [shape: f32[9,3,64], index: 3, kind: input, shape index: {}]   ;;  %s2917_s4 = inlined_call_operand.vmem [shape: f32[1,64], index: 4, kind: input, shape index: {}]   ;;  %s2918_s5 = inlined_call_operand.vmem [shape: bf16[2,16,16,64], index: 5, kind: output, shape index: {}]  }
   0x1   :  { %s2232_s20 = smov 0   ;;  %s2234_s21 = smov 0  }
   0x2   :  { %s2236_s22 = smov 0  }
   0x3 LB: > { %s24_s23 = sadd.s32 1, %s2187_s20  ;;  %s27_s24 = sadd.s32 1, %s2191_s21  ;;  %s2195_s22 = sphi %s2236_s22, %s15_s22   ;;  %s2191_s21 = sphi %s2234_s21, %s2926_s21   ;;  %s2187_s20 = sphi %s2232_s20, %s2925_s20   ;;  %s2183_s19 = sphi %s2230_s19, %s2924_s19   ;;  %s2179_s18 = sphi %s2228_s18, %s2923_s18  }
   0x4   : > { %p25_p0 = scmp.ge.s32.totalorder %s24_s23, 2  ;;  %p1934_p1 = scmp.ge.s32.totalorder %s2195_s22, 1 }
   0x5   : > { %p241_p2 = scmp.lt.s32.totalorder %s2195_s22, 5 }
   0x6   : > { %s2928_s23 = smov (%p25_p0, %s24_s23), 0  ;;  %s2930_s24 = smov (!%p25_p0, %s27_s24), %s2191_s21 }
   0x7   : > { %p242_p3 = pnand %p1934_p1, %p241_p2  ;;  %p29_p4 = scmp.ge.s32.totalorder %s2930_s24, 2 }
   0x9   : > { %s2932_s24 = smov (%p29_p4, %s2930_s24), 0  ;;  %245 = sbr.rel (%p242_p3) target bundleno = 457 (0x1c9), region = 40 }
   0xe   : > { %v1949_v0 = vld [vmem:[%s2916_s3 + $0x4] sm:$0x7]  ;;  %vm484_vm0 = vcmask 1042432   ;;  %s1935_s27 = sshll.u32 %s2179_s18, 3  ;;  %p298_p5 = scmp.lt.s32.totalorder %s2183_s19, 1  ;;  %vm360_vm1 = vcmask 23552  }
   0xf   : > { %2112 = vmatpush.msk.msra.mxu1 %vm484_vm0, %v1949_v0  ;;  %2113 = vmatpush.msk.msra.mxu2 %vm484_vm0, %v1949_v0  ;;  %p300_p6 = scmp.lt.s32.totalorder %s1935_s27, 15  ;;  %v1984_v1 = vld [vmem:[%s2916_s3 + $0x8] sm:$0x7]  ;;  %v2002_v2 = vld [vmem:[%s2916_s3 + $0xc] sm:$0x7]  ;;  %p310_p7 = scmp.lt.s32.totalorder %s2179_s18, 1 }
  0x10   : > { %s2934_s19 = smov (!%p298_p5, %s2183_s19), 1  ;;  %2114 = vmatpush.msk.msra.mxu3 %vm484_vm0, %v1949_v0  ;;  %v417_v3 = vld [vmem:[%s2916_s3] sm:$0x7]  ;;  %v2020_v4 = vld [vmem:[%s2916_s3 + $0x10] sm:$0x7]  ;;  %1950 = vmatpush.msk.msra.mxu0 %vm484_vm0, %v1949_v0  ;;  %vm337_vm2 = vcmask 16384  }
  0x11   : > { %1985 = vmatpush.msk.msrb.mxu2 %vm484_vm0, %v1984_v1  ;;  %s2936_s27 = smov (!%p300_p6, %s1935_s27), 15  ;;  %1967 = vmatpush.msk.msrb.mxu1 %vm484_vm0, %v417_v3  ;;  %s1937_s11 = sshll.u32 %s2934_s19, 5  ;;  %v2056_v21 = vld [vmem:[%s2916_s3 + $0x18] sm:$0x7]  ;;  %v2074_v24 = vld [vmem:[%s2916_s3 + $0x1c] sm:$0x7] }
  0x12   : > { %2003 = vmatpush.msk.msrb.mxu3 %vm484_vm0, %v2002_v2  ;;  %s1936_s12 = sshll.u32 %s2936_s27, 1  ;;  %2021 = vmatpush.msk.msrb.mxu0 %vm484_vm0, %v2020_v4  ;;  %s1940_s25 = sshll.u32 %s2934_s19, 2  ;;  %v2038_v25 = vld [vmem:[%s2916_s3 + $0x14] sm:$0x7]  ;;  %v2197_v30 = vmov 0.0   ;;  %vm1772_vm3 = vcmask 519168  }
  0x13   : > { %s2288_s13 = sadd.s32 %s1937_s11, %s1936_s12  ;;  %s2938_s18 = smov (!%p310_p7, %s2179_s18), 1  ;;  %338 = vst.msk [vmem:[#allocation2] sm:$0x1] %vm337_vm2, %v2197_v30  ;;  %v2092_v32 = vld [vmem:[%s2916_s3 + $0x20] sm:$0x7] }
  0x14   : > { %s1938_s14 = sshll.u32 %s2288_s13, 3  ;;  %s1939_s26 = sshll.u32 %s2938_s18, 1  ;;  %339 = vst.msk [vmem:[#allocation2 + $0x18] sm:$0x1] %vm337_vm2, %v2197_v30 }
  0x15   : > { %s2294_s17 = scalar_lea.vmem %s2913_s0, %s1938_s14  ;;  %s2306_s27 = sadd.s32 %s1940_s25, %s1939_s26  ;;  %340 = vst.msk [vmem:[#allocation2 + $0x30] sm:$0x1] %vm337_vm2, %v2197_v30 }
  0x16   : > { %v365_v5 = vld [vmem:[%s2294_s17 + $0x10] sm:$0xff]  ;;  %v366_v8 = vld [vmem:[%s2294_s17 + $0x18] sm:$0xff]  ;;  %s1941_s19 = sshll.u32 %s2306_s27, 3  ;;  %v367_v11 = vld [vmem:[%s2294_s17 + $0x20] sm:$0xff]  ;;  %341 = vst.msk [vmem:[#allocation2 + $0x48] sm:$0x1] %vm337_vm2, %v2197_v30 }
  0x17   : > { %v369_v6 = vld [vmem:[%s2294_s17 + $0x30] sm:$0xff]  ;;  %382 = vst.msk [vmem:[#allocation2 + $0x31] sm:$0xff] %vm360_vm1, %v365_v5  ;;  %v370_v9 = vld [vmem:[%s2294_s17 + $0x38] sm:$0xff]  ;;  %s316_s30 = scalar_lea.vmem %s2914_s1, %s1941_s19  ;;  %v371_v13 = vld [vmem:[%s2294_s17 + $0x40] sm:$0xff]  ;;  %s325_s16 = scalar_lea.vmem %s2915_s2, %s1941_s19 }
  0x18   : > { %v373_v7 = vld [vmem:[%s2294_s17 + $0x50] sm:$0xff]  ;;  %386 = vst.msk [vmem:[#allocation2 + $0x61] sm:$0xff] %vm360_vm1, %v369_v6  ;;  %v374_v10 = vld [vmem:[%s2294_s17 + $0x58] sm:$0xff]  ;;  %v358_v12 = vld [vmem:[%s316_s30] sm:$0xff]  ;;  %s1948_s26 = sshll.u32 %s2288_s13, 2 }
  0x19   : > { %390 = vst.msk [vmem:[#allocation2 + $0x91] sm:$0xff] %vm360_vm1, %v373_v7  ;;  %v359_v14 = vld [vmem:[%s316_s30 + $0x8] sm:$0xff]  ;;  %v375_v16 = vld [vmem:[%s2294_s17 + $0x60] sm:$0xff]  ;;  %v377_v0 = vld [vmem:[%s2294_s17 + $0x70] sm:$0xff]  ;;  %s2829_s28 = scalar_lea.vmem %s2918_s5, %s1948_s26 }
  0x1a   : > { %383 = vst.msk [vmem:[#allocation2 + $0x39] sm:$0xff] %vm360_vm1, %v366_v8  ;;  %v368_v18 = vld [vmem:[%s2294_s17 + $0x28] sm:$0xff]  ;;  %v363_v22 = vld [vmem:[%s2294_s17] sm:$0xff]  ;;  %v378_v3 = vld [vmem:[%s2294_s17 + $0x78] sm:$0xff] }
  0x1b   : > { %387 = vst.msk [vmem:[#allocation2 + $0x69] sm:$0xff] %vm360_vm1, %v370_v9  ;;  %v372_v20 = vld [vmem:[%s2294_s17 + $0x48] sm:$0xff] }
  0x1c   : > { %391 = vst.msk [vmem:[#allocation2 + $0x99] sm:$0xff] %vm360_vm1, %v374_v10  ;;  %v376_v23 = vld [vmem:[%s2294_s17 + $0x68] sm:$0xff] }
  0x1d   : > { %361 = vst.msk [vmem:[#allocation2 + $0x1] sm:$0xff] %vm360_vm1, %v358_v12  ;;  %v364_v40 = vld [vmem:[%s2294_s17 + $0x8] sm:$0xff] }
  0x1e   : > { %v2321_v15 = vld [vmem:[#allocation2 + $0x31] sm:$0xff]  ;;  %384 = vst.msk [vmem:[#allocation2 + $0x49] sm:$0xff] %vm360_vm1, %v367_v11 }
  0x1f   : > { %1955 = vmatmul.msk.f32.vlgmr.msra.gmra.mxu1 %vm360_vm1, %v2321_v15  ;;  %v2327_v17 = vld [vmem:[#allocation2 + $0x61] sm:$0xff]  ;;  %388 = vst.msk [vmem:[#allocation2 + $0x79] sm:$0xff] %vm360_vm1, %v371_v13  ;;  %v2433_v49 = vld [vmem:[#allocation2 + $0x30] sm:$0xff] }
  0x20   : > { %1959 = vmatmul.msk.f32.vlgmr.msra.gmra.mxu2 %vm360_vm1, %v2327_v17  ;;  %v2333_v19 = vld [vmem:[#allocation2 + $0x91] sm:$0xff]  ;;  %362 = vst.msk [vmem:[#allocation2 + $0x9] sm:$0xff] %vm360_vm1, %v359_v14  ;;  %2039 = vmatpush.msk.msra.mxu1 %vm484_vm0, %v2038_v25 }
  0x21   : > { %1963 = vmatmul.msk.f32.vlgmr.msra.gmra.mxu3 %vm360_vm1, %v2333_v19  ;;  %392 = vst.msk [vmem:[#allocation2 + $0xa9] sm:$0xff] %vm360_vm1, %v375_v16  ;;  %2057 = vmatpush.msk.msra.mxu2 %vm484_vm0, %v2056_v21  ;;  %v2356_v26 = vld [vmem:[#allocation2 + $0x39] sm:$0xff] }
  0x22   : > { %385 = vst.msk [vmem:[#allocation2 + $0x51] sm:$0xff] %vm360_vm1, %v368_v18  ;;  %2075 = vmatpush.msk.msra.mxu3 %vm484_vm0, %v2074_v24  ;;  %v2359_v28 = vld [vmem:[#allocation2 + $0x69] sm:$0xff]  ;;  %v2443_v51 = vld [vmem:[#allocation2 + $0x38] sm:$0xff] }
  0x23   : > { %389 = vst.msk [vmem:[#allocation2 + $0x81] sm:$0xff] %vm360_vm1, %v372_v20  ;;  %v2363_v29 = vld [vmem:[#allocation2 + $0x99] sm:$0xff]  ;;  %v2490_v59 = vld [vmem:[#allocation2 + $0x68] sm:$0xff] }
  0x24   : > { %v418_v27 = vld [vmem:[#allocation2 + $0x1] sm:$0xff]  ;;  %380 = vst.msk [vmem:[#allocation2 + $0x19] sm:$0xff] %vm360_vm1, %v363_v22  ;;  %v2452_v52 = vld [vmem:[#allocation2 + $0x32] sm:$0xff] }
  0x25   : > { %1951 = vmatmul.msk.f32.vlgmr.msra.gmra.mxu0 %vm360_vm1, %v418_v27  ;;  %393 = vst.msk [vmem:[#allocation2 + $0xb1] sm:$0xff] %vm360_vm1, %v376_v23  ;;  %v2381_v33 = vld [vmem:[#allocation2 + $0x49] sm:$0xff]  ;;  %v401_v41 = vld [vmem:[#allocation2] sm:$0xff]  ;;  %v2542_v5 = vld [vmem:[#allocation2 + $0x98] sm:$0xff] }
  0x26   : > { %342 = vst.msk [vmem:[#allocation2 + $0x60] sm:$0x1] %vm337_vm2, %v2197_v30  ;;  %2093 = vmatpush.msk.msra.mxu0 %vm484_vm0, %v2092_v32  ;;  %v2384_v34 = vld [vmem:[#allocation2 + $0x79] sm:$0xff]  ;;  %v2454_v53 = vld [vmem:[#allocation2 + $0x48] sm:$0xff] }
  0x27   : > { %1956 = vmatmul.msk.f32.gmra.mxu1 %vm360_vm1, %v2356_v26  ;;  %v419_v31 = vld [vmem:[#allocation2 + $0x9] sm:$0xff]  ;;  %343 = vst.msk [vmem:[#allocation2 + $0x78] sm:$0x1] %vm337_vm2, %v2197_v30  ;;  %v2554_v7 = vld [vmem:[#allocation2 + $0x92] sm:$0xff] }
  0x28   : > { %1960 = vmatmul.msk.f32.gmra.mxu2 %vm360_vm1, %v2359_v28  ;;  %344 = vst.msk [vmem:[#allocation2 + $0x90] sm:$0x1] %vm337_vm2, %v2197_v30  ;;  %v2388_v35 = vld [vmem:[#allocation2 + $0xa9] sm:$0xff] }
  0x29   : > { %1964 = vmatmul.msk.f32.gmra.mxu3 %vm360_vm1, %v2363_v29  ;;  %345 = vst.msk [vmem:[#allocation2 + $0xa8] sm:$0x1] %vm337_vm2, %v2197_v30  ;;  %v2402_v37 = vld [vmem:[#allocation2 + $0x51] sm:$0xff]  ;;  %v669_v42 = vld [vmem:[#allocation2 + $0x2] sm:$0xff] }
  0x2a   : > { %346 = vst.msk [vmem:[#allocation2 + $0xc0] sm:$0x1] %vm337_vm2, %v2197_v30  ;;  %v2405_v38 = vld [vmem:[#allocation2 + $0x81] sm:$0xff]  ;;  %v2466_v55 = vld [vmem:[#allocation2 + $0x50] sm:$0xff] }
  0x2b   : > { %347 = vst.msk [vmem:[#allocation2 + $0xd8] sm:$0x1] %vm337_vm2, %v2197_v30  ;;  %v420_v36 = vld [vmem:[#allocation2 + $0x19] sm:$0xff]  ;;  %v402_v45 = vld [vmem:[#allocation2 + $0x8] sm:$0xff] }
  0x2c   : > { %348 = vst.msk [vmem:[#allocation2 + $0x11] sm:$0x1] %vm337_vm2, %v2197_v30  ;;  %v2409_v39 = vld [vmem:[#allocation2 + $0xb1] sm:$0xff]  ;;  %v2500_v60 = vld [vmem:[#allocation2 + $0x62] sm:$0xff]  ;;  %v2526_v1 = vld [vmem:[#allocation2 + $0x7a] sm:$0xff] }
  0x2d   : > { %1952 = vmatmul.msk.f32.gmra.mxu0 %vm360_vm1, %v419_v31  ;;  %349 = vst.msk [vmem:[#allocation2 + $0x29] sm:$0x1] %vm337_vm2, %v2197_v30  ;;  %v819_v43 = vld [vmem:[#allocation2 + $0x18] sm:$0xff]  ;;  %v2476_v56 = vld [vmem:[#allocation2 + $0x4a] sm:$0xff]  ;;  %v2478_v57 = vld [vmem:[#allocation2 + $0x60] sm:$0xff] }
  0x2e   : > { %350 = vst.msk [vmem:[#allocation2 + $0x41] sm:$0x1] %vm337_vm2, %v2197_v30  ;;  %v2502_v61 = vld [vmem:[#allocation2 + $0x78] sm:$0xff]  ;;  %v2514_v63 = vld [vmem:[#allocation2 + $0x80] sm:$0xff]  ;;  %v2574_v14 = vld [vmem:[#allocation2 + $0xb0] sm:$0xff] }
  0x2f   : > { %1957 = vmatmul.msk.f32.gmra.mxu1 %vm360_vm1, %v2381_v33  ;;  %351 = vst.msk [vmem:[#allocation2 + $0x59] sm:$0x1] %vm337_vm2, %v2197_v30  ;;  %v2528_v2 = vld [vmem:[#allocation2 + $0x90] sm:$0xff] }
  0x30   : > { %1961 = vmatmul.msk.f32.gmra.mxu2 %vm360_vm1, %v2384_v34  ;;  %352 = vst.msk [vmem:[#allocation2 + $0x71] sm:$0x1] %vm337_vm2, %v2197_v30  ;;  %v2556_v8 = vld [vmem:[#allocation2 + $0xa8] sm:$0xff] }
  0x31   : > { %1965 = vmatmul.msk.f32.gmra.mxu3 %vm360_vm1, %v2388_v35  ;;  %353 = vst.msk [vmem:[#allocation2 + $0x89] sm:$0x1] %vm337_vm2, %v2197_v30  ;;  %v2590_v22 = vld [vmem:[#allocation2 + $0xaa] sm:$0xff] }
  0x32   : > { %354 = vst.msk [vmem:[#allocation2 + $0xa1] sm:$0x1] %vm337_vm2, %v2197_v30 }
  0x33   : > { %355 = vst.msk [vmem:[#allocation2 + $0xb9] sm:$0x1] %vm337_vm2, %v2197_v30  ;;  %v670_v46 = vld [vmem:[#allocation2 + $0xa] sm:$0xff] }
  0x34   : > { %356 = vst.msk [vmem:[#allocation2 + $0xd1] sm:$0x1] %vm337_vm2, %v2197_v30 }
  0x35   : > { %1953 = vmatmul.msk.f32.gmra.mxu0 %vm360_vm1, %v420_v36  ;;  %357 = vst.msk [vmem:[#allocation2 + $0xe9] sm:$0x1] %vm337_vm2, %v2197_v30  ;;  %v2464_v54 = vld [vmem:[#allocation2 + $0x3a] sm:$0xff] }
  0x36   : > { %381 = vst.msk [vmem:[#allocation2 + $0x21] sm:$0xff] %vm360_vm1, %v364_v40  ;;  %v2488_v58 = vld [vmem:[#allocation2 + $0x52] sm:$0xff] }
  0x37   : > { %1958 = vmatmul.msk.f32.gmra.mxu1 %vm360_vm1, %v2402_v37  ;;  %v2512_v62 = vld [vmem:[#allocation2 + $0x6a] sm:$0xff]  ;;  %394 = vst.msk [vmem:[#allocation2 + $0xc1] sm:$0xff] %vm360_vm1, %v377_v0 }
  0x38   : > { %1962 = vmatmul.msk.f32.gmra.mxu2 %vm360_vm1, %v2405_v38  ;;  %395 = vst.msk [vmem:[#allocation2 + $0xc9] sm:$0xff] %vm360_vm1, %v378_v3  ;;  %v2540_v4 = vld [vmem:[#allocation2 + $0x82] sm:$0xff] }
  0x39   : > { %1966 = vmatmul.msk.f32.gmra.mxu3 %vm360_vm1, %v2409_v39  ;;  %v2572_v13 = vld [vmem:[#allocation2 + $0x9a] sm:$0xff] }
  0x3a   : > { %v2608_v31 = vld [vmem:[#allocation2 + $0xb2] sm:$0xff] }
  0x3d   : > { %v421_v44 = vld [vmem:[#allocation2 + $0x21] sm:$0xff] }
  0x3e   : > { %1954 = vmatmul.msk.f32.gmra.mxu0 %vm360_vm1, %v421_v44  ;;  %v820_v47 = vld [vmem:[#allocation2 + $0x20] sm:$0xff] }
  0x3f   : > { %1968 = vmatmul.msk.f32.vlgmr.msrb.gmra.mxu1 %vm360_vm1, %v401_v41  ;;  %v2431_v48 = vld [vmem:[#allocation2 + $0x1a] sm:$0xff]  ;;  %v2441_v50 = vld [vmem:[#allocation2 + $0x22] sm:$0xff] }
  0x40   : > { %1986 = vmatmul.msk.f32.vlgmr.msrb.gmra.mxu2 %vm360_vm1, %v669_v42  ;;  %v2592_v23 = vld [vmem:[#allocation2 + $0xc0] sm:$0xff]  ;;  %v2610_v32 = vld [vmem:[#allocation2 + $0xc8] sm:$0xff] }
  0x41   : > { %2004 = vmatmul.msk.f32.vlgmr.msrb.gmra.mxu3 %vm360_vm1, %v819_v43 }
  0x46   : > { %2022 = vmatmul.msk.f32.vlgmr.msrb.gmra.mxu0 %vm360_vm1, %v420_v36  ;;  %v2614_v36 = vld [vmem:[#allocation2 + $0xc1] sm:$0xff] }
  0x47   : > { %1969 = vmatmul.msk.f32.gmra.mxu1 %vm360_vm1, %v402_v45 }
  0x48   : > { %1987 = vmatmul.msk.f32.gmra.mxu2 %vm360_vm1, %v670_v46 }
  0x49   : > { %2005 = vmatmul.msk.f32.gmra.mxu3 %vm360_vm1, %v820_v47 }
  0x4e   : > { %2023 = vmatmul.msk.f32.gmra.mxu0 %vm360_vm1, %v421_v44  ;;  %v2628_v44 = vld [vmem:[#allocation2 + $0xc9] sm:$0xff] }
  0x4f   : > { %1970 = vmatmul.msk.f32.gmra.mxu1 %vm360_vm1, %v819_v43 }
  0x50   : > { %1988 = vmatmul.msk.f32.gmra.mxu2 %vm360_vm1, %v2431_v48 }
  0x51   : > { %2006 = vmatmul.msk.f32.gmra.mxu3 %vm360_vm1, %v2433_v49 }
  0x56   : > { %2024 = vmatmul.msk.f32.gmra.mxu0 %vm360_vm1, %v2321_v15 }
  0x57   : > { %1971 = vmatmul.msk.f32.gmra.mxu1 %vm360_vm1, %v820_v47 }
  0x58   : > { %1989 = vmatmul.msk.f32.gmra.mxu2 %vm360_vm1, %v2441_v50 }
  0x59   : > { %2007 = vmatmul.msk.f32.gmra.mxu3 %vm360_vm1, %v2443_v51 }
  0x5e   : > { %2025 = vmatmul.msk.f32.gmra.mxu0 %vm360_vm1, %v2356_v26 }
  0x5f   : > { %1972 = vmatmul.msk.f32.gmra.mxu1 %vm360_vm1, %v2433_v49 }
  0x60   : > { %1990 = vmatmul.msk.f32.gmra.mxu2 %vm360_vm1, %v2452_v52 }
  0x61   : > { %2008 = vmatmul.msk.f32.gmra.mxu3 %vm360_vm1, %v2454_v53 }
  0x66   : > { %2026 = vmatmul.msk.f32.gmra.mxu0 %vm360_vm1, %v2381_v33 }
  0x67   : > { %1973 = vmatmul.msk.f32.gmra.mxu1 %vm360_vm1, %v2443_v51 }
  0x68   : > { %1991 = vmatmul.msk.f32.gmra.mxu2 %vm360_vm1, %v2464_v54 }
  0x69   : > { %2009 = vmatmul.msk.f32.gmra.mxu3 %vm360_vm1, %v2466_v55 }
  0x6e   : > { %2027 = vmatmul.msk.f32.gmra.mxu0 %vm360_vm1, %v2402_v37 }
  0x6f   : > { %1974 = vmatmul.msk.f32.gmra.mxu1 %vm360_vm1, %v2454_v53 }
  0x70   : > { %1992 = vmatmul.msk.f32.gmra.mxu2 %vm360_vm1, %v2476_v56 }
  0x71   : > { %2010 = vmatmul.msk.f32.gmra.mxu3 %vm360_vm1, %v2478_v57 }
  0x76   : > { %2028 = vmatmul.msk.f32.gmra.mxu0 %vm360_vm1, %v2327_v17 }
  0x77   : > { %1975 = vmatmul.msk.f32.gmra.mxu1 %vm360_vm1, %v2466_v55 }
  0x78   : > { %1993 = vmatmul.msk.f32.gmra.mxu2 %vm360_vm1, %v2488_v58 }
  0x79   : > { %2011 = vmatmul.msk.f32.gmra.mxu3 %vm360_vm1, %v2490_v59 }
  0x7e   : > { %2029 = vmatmul.msk.f32.gmra.mxu0 %vm360_vm1, %v2359_v28 }
  0x7f   : > { %1976 = vmatmul.msk.f32.gmra.mxu1 %vm360_vm1, %v2478_v57 }
  0x80   : > { %1994 = vmatmul.msk.f32.gmra.mxu2 %vm360_vm1, %v2500_v60 }
  0x81   : > { %2012 = vmatmul.msk.f32.gmra.mxu3 %vm360_vm1, %v2502_v61 }
  0x86   : > { %2030 = vmatmul.msk.f32.gmra.mxu0 %vm360_vm1, %v2384_v34 }
  0x87   : > { %1977 = vmatmul.msk.f32.gmra.mxu1 %vm360_vm1, %v2490_v59 }
  0x88   : > { %1995 = vmatmul.msk.f32.gmra.mxu2 %vm360_vm1, %v2512_v62 }
  0x89   : > { %2013 = vmatmul.msk.f32.gmra.mxu3 %vm360_vm1, %v2514_v63 }
  0x8e   : > { %2031 = vmatmul.msk.f32.gmra.mxu0 %vm360_vm1, %v2405_v38 }
  0x8f   : > { %1978 = vmatmul.msk.f32.gmra.mxu1 %vm360_vm1, %v2502_v61 }
  0x90   : > { %1996 = vmatmul.msk.f32.gmra.mxu2 %vm360_vm1, %v2526_v1 }
  0x91   : > { %2014 = vmatmul.msk.f32.gmra.mxu3 %vm360_vm1, %v2528_v2 }
  0x96   : > { %2032 = vmatmul.msk.f32.gmra.mxu0 %vm360_vm1, %v2333_v19 }
  0x97   : > { %1979 = vmatmul.msk.f32.gmra.mxu1 %vm360_vm1, %v2514_v63 }
  0x98   : > { %1997 = vmatmul.msk.f32.gmra.mxu2 %vm360_vm1, %v2540_v4 }
  0x99   : > { %2015 = vmatmul.msk.f32.gmra.mxu3 %vm360_vm1, %v2542_v5 }
  0x9c   : > { %v2552_v6 = vpop.f32.mrf.mxu1 }
  0x9e   : > { %2033 = vmatmul.msk.f32.gmra.mxu0 %vm360_vm1, %v2363_v29 }
  0x9f   : > { %1980 = vmatmul.msk.f32.gmra.mxu1 %vm360_vm1, %v2528_v2 }
  0xa0   : > { %1998 = vmatmul.msk.f32.gmra.mxu2 %vm360_vm1, %v2554_v7 }
  0xa1   : > { %2016 = vmatmul.msk.f32.gmra.mxu3 %vm360_vm1, %v2556_v8 }
  0xa2   : > { %v505_v9 = vpop.f32.mrf.mxu0 }
  0xa3   : > { %v2566_v10 = vpop.f32.mrf.mxu2 }
  0xa4   : > { %v2568_v11 = vpop.f32.mrf.mxu1  ;;  %v2570_v12 = vpop.f32.mrf.mxu3 }
  0xa6   : > { %2034 = vmatmul.msk.f32.gmra.mxu0 %vm360_vm1, %v2388_v35 }
  0xa7   : > { %1981 = vmatmul.msk.f32.gmra.mxu1 %vm360_vm1, %v2542_v5 }
  0xa8   : > { %1999 = vmatmul.msk.f32.gmra.mxu2 %vm360_vm1, %v2572_v13 }
  0xa9   : > { %2017 = vmatmul.msk.f32.gmra.mxu3 %vm360_vm1, %v2574_v14 }
  0xaa   : > { %v508_v18 = vpop.f32.mrf.mxu0 }
  0xab   : > { %v2584_v16 = vpop.f32.mrf.mxu2 }
  0xac   : > { %v2586_v20 = vpop.f32.mrf.mxu1  ;;  %v2588_v21 = vpop.f32.mrf.mxu3 }
  0xae   : > { %2035 = vmatmul.msk.f32.gmra.mxu0 %vm360_vm1, %v2409_v39 }
  0xaf   : > { %1982 = vmatmul.msk.f32.gmra.mxu1 %vm360_vm1, %v2556_v8 }
  0xb0   : > { %2000 = vmatmul.msk.f32.gmra.mxu2 %vm360_vm1, %v2590_v22 }
  0xb1   : > { %2018 = vmatmul.msk.f32.gmra.mxu3 %vm360_vm1, %v2592_v23 }
  0xb2   : > { %v511_v30 = vpop.f32.mrf.mxu0 }
  0xb3   : > { %v2602_v24 = vpop.f32.mrf.mxu2 }
  0xb4   : > { %v2604_v25 = vpop.f32.mrf.mxu1  ;;  %v2606_v27 = vpop.f32.mrf.mxu3 }
  0xb5   : > { %2919 = vst [vmem:[#allocation3_spill] sm:$0xff] %v2606_v27 }
  0xb6   : > { %2036 = vmatmul.msk.f32.gmra.mxu0 %vm360_vm1, %v2614_v36 }
  0xb7   : > { %1983 = vmatmul.msk.f32.gmra.mxu1 %vm360_vm1, %v2574_v14 }
  0xb8   : > { %2001 = vmatmul.msk.f32.gmra.mxu2 %vm360_vm1, %v2608_v31 }
  0xb9   : > { %2019 = vmatmul.msk.f32.gmra.mxu3 %vm360_vm1, %v2610_v32 }
  0xbb   : > { %v2622_v40 = vpop.f32.mrf.mxu2  ;;  %v514_v43 = vpop.f32.mrf.mxu0 }
  0xbc   : > { %v2624_v41 = vpop.f32.mrf.mxu3  ;;  %v621_v42 = vpop.f32.mrf.mxu1 }
  0xbd   : > { %2920 = vst [vmem:[#allocation4_spill] sm:$0xff] %v2624_v41  ;;  %v622_v45 = vadd.f32 %v621_v42, %v505_v9 }
  0xbe   : > { %2037 = vmatmul.msk.f32.gmra.mxu0 %vm360_vm1, %v2628_v44 }
  0xbf   : > { %2040 = vmatmul.msk.f32.vlgmr.msra.gmra.mxu1 %vm360_vm1, %v2431_v48 }
  0xc0   : > { %2058 = vmatmul.msk.f32.vlgmr.msra.gmra.mxu2 %vm360_vm1, %v2433_v49 }
  0xc1   : > { %2076 = vmatmul.msk.f32.vlgmr.msra.gmra.mxu3 %vm360_vm1, %v2321_v15 }
  0xc3   : > { %v755_v46 = vpop.f32.mrf.mxu2  ;;  %v2638_v27 = vpop.f32.mrf.mxu0 }
  0xc4   : > { %v803_v47 = vadd.f32 %v755_v46, %v622_v45  ;;  %v624_v0 = vpop.f32.mrf.mxu1  ;;  %v905_v3 = vpop.f32.mrf.mxu3 }
  0xc5   : > { %v625_v15 = vadd.f32 %v624_v0, %v508_v18 }
  0xc6   : > { %v2636_v41 = vadd.f32 %v905_v3, %v803_v47  ;;  %2094 = vmatmul.msk.f32.vlgmr.msra.gmra.mxu0 %vm360_vm1, %v2452_v52 }
  0xc7   : > { %2041 = vmatmul.msk.f32.gmra.mxu1 %vm360_vm1, %v2441_v50 }
  0xc8   : > { %2059 = vmatmul.msk.f32.gmra.mxu2 %vm360_vm1, %v2443_v51 }
  0xc9   : > { %2077 = vmatmul.msk.f32.gmra.mxu3 %vm360_vm1, %v2356_v26 }
  0xcb   : > { %v758_v48 = vpop.f32.mrf.mxu2  ;;  %v2650_v46 = vpop.f32.mrf.mxu0 }
  0xcc   : > { %v804_v49 = vadd.f32 %v758_v48, %v625_v15  ;;  %v627_v9 = vpop.f32.mrf.mxu1  ;;  %v908_v42 = vpop.f32.mrf.mxu3 }
  0xcd   : > { %v628_v26 = vadd.f32 %v627_v9, %v511_v30 }
  0xce   : > { %v2648_v45 = vadd.f32 %v908_v42, %v804_v49  ;;  %2095 = vmatmul.msk.f32.gmra.mxu0 %vm360_vm1, %v2464_v54 }
  0xcf   : > { %2042 = vmatmul.msk.f32.gmra.mxu1 %vm360_vm1, %v2452_v52 }
  0xd0   : > { %2060 = vmatmul.msk.f32.gmra.mxu2 %vm360_vm1, %v2454_v53 }
  0xd1   : > { %2078 = vmatmul.msk.f32.gmra.mxu3 %vm360_vm1, %v2381_v33 }
  0xd3   : > { %v761_v50 = vpop.f32.mrf.mxu2  ;;  %v2662_v3 = vpop.f32.mrf.mxu0 }
  0xd4   : > { %v805_v51 = vadd.f32 %v761_v50, %v628_v26  ;;  %v630_v18 = vpop.f32.mrf.mxu1  ;;  %v911_v47 = vpop.f32.mrf.mxu3 }
  0xd5   : > { %v631_v33 = vadd.f32 %v630_v18, %v514_v43 }
  0xd6   : > { %v2660_v0 = vadd.f32 %v911_v47, %v805_v51  ;;  %2096 = vmatmul.msk.f32.gmra.mxu0 %vm360_vm1, %v2476_v56 }
  0xd7   : > { %2043 = vmatmul.msk.f32.gmra.mxu1 %vm360_vm1, %v2464_v54 }
  0xd8   : > { %2061 = vmatmul.msk.f32.gmra.mxu2 %vm360_vm1, %v2466_v55 }
  0xd9   : > { %2079 = vmatmul.msk.f32.gmra.mxu3 %vm360_vm1, %v2402_v37 }
  0xdb   : > { %v764_v52 = vpop.f32.mrf.mxu2  ;;  %v2674_v49 = vpop.f32.mrf.mxu0 }
  0xdc   : > { %v806_v53 = vadd.f32 %v764_v52, %v631_v33  ;;  %v633_v30 = vpop.f32.mrf.mxu1  ;;  %v914_v15 = vpop.f32.mrf.mxu3 }
  0xdd   : > { %v634_v37 = vadd.f32 %v633_v30, %v2552_v6 }
  0xde   : > { %v2672_v48 = vadd.f32 %v914_v15, %v806_v53  ;;  %2097 = vmatmul.msk.f32.gmra.mxu0 %vm360_vm1, %v2488_v58 }
  0xdf   : > { %2044 = vmatmul.msk.f32.gmra.mxu1 %vm360_vm1, %v2476_v56 }
  0xe0   : > { %2062 = vmatmul.msk.f32.gmra.mxu2 %vm360_vm1, %v2478_v57 }
  0xe1   : > { %2080 = vmatmul.msk.f32.gmra.mxu3 %vm360_vm1, %v2327_v17 }
  0xe3   : > { %v767_v54 = vpop.f32.mrf.mxu2  ;;  %v2687_v26 = vpop.f32.mrf.mxu0 }
  0xe4   : > { %v807_v55 = vadd.f32 %v767_v54, %v634_v37  ;;  %v636_v43 = vpop.f32.mrf.mxu1  ;;  %v917_v9 = vpop.f32.mrf.mxu3 }
  0xe5   : > { %v637_v17 = vadd.f32 %v636_v43, %v2568_v11 }
  0xe6   : > { %v2685_v42 = vadd.f32 %v917_v9, %v807_v55  ;;  %2098 = vmatmul.msk.f32.gmra.mxu0 %vm360_vm1, %v2500_v60 }
  0xe7   : > { %2045 = vmatmul.msk.f32.gmra.mxu1 %vm360_vm1, %v2488_v58 }
  0xe8   : > { %2063 = vmatmul.msk.f32.gmra.mxu2 %vm360_vm1, %v2490_v59 }
  0xe9   : > { %2081 = vmatmul.msk.f32.gmra.mxu3 %vm360_vm1, %v2359_v28 }
  0xeb   : > { %v770_v56 = vpop.f32.mrf.mxu2  ;;  %v2700_v18 = vpop.f32.mrf.mxu0 }
  0xec   : > { %v808_v57 = vadd.f32 %v770_v56, %v637_v17  ;;  %v639_v6 = vpop.f32.mrf.mxu1  ;;  %v920_v50 = vpop.f32.mrf.mxu3 }
  0xed   : > { %v640_v28 = vadd.f32 %v639_v6, %v2586_v20 }
  0xee   : > { %v2698_v51 = vadd.f32 %v920_v50, %v808_v57  ;;  %2099 = vmatmul.msk.f32.gmra.mxu0 %vm360_vm1, %v2512_v62 }
  0xef   : > { %2046 = vmatmul.msk.f32.gmra.mxu1 %vm360_vm1, %v2500_v60 }
  0xf0   : > { %2064 = vmatmul.msk.f32.gmra.mxu2 %vm360_vm1, %v2502_v61 }
  0xf1   : > { %2082 = vmatmul.msk.f32.gmra.mxu3 %vm360_vm1, %v2384_v34 }
  0xf3   : > { %v773_v58 = vpop.f32.mrf.mxu2  ;;  %v2713_v52 = vpop.f32.mrf.mxu0 }
  0xf4   : > { %v809_v59 = vadd.f32 %v773_v58, %v640_v28  ;;  %v642_v11 = vpop.f32.mrf.mxu1  ;;  %v923_v47 = vpop.f32.mrf.mxu3 }
  0xf5   : > { %v643_v34 = vadd.f32 %v642_v11, %v2604_v25 }
  0xf6   : > { %v2711_v33 = vadd.f32 %v923_v47, %v809_v59  ;;  %2100 = vmatmul.msk.f32.gmra.mxu0 %vm360_vm1, %v2526_v1 }
  0xf7   : > { %2047 = vmatmul.msk.f32.gmra.mxu1 %vm360_vm1, %v2512_v62 }
  0xf8   : > { %2065 = vmatmul.msk.f32.gmra.mxu2 %vm360_vm1, %v2514_v63 }
  0xf9   : > { %2083 = vmatmul.msk.f32.gmra.mxu3 %vm360_vm1, %v2405_v38 }
  0xfb   : > { %v776_v60 = vpop.f32.mrf.mxu2  ;;  %v2726_v15 = vpop.f32.mrf.mxu0 }
  0xfc   : > { %v810_v61 = vadd.f32 %v776_v60, %v643_v34  ;;  %v645_v20 = vpop.f32.mrf.mxu1  ;;  %v926_v53 = vpop.f32.mrf.mxu3 }
  0xfd   : > { %v646_v38 = vadd.f32 %v645_v20, %v2566_v10 }
  0xfe   : > { %v2724_v30 = vadd.f32 %v926_v53, %v810_v61  ;;  %2101 = vmatmul.msk.f32.gmra.mxu0 %vm360_vm1, %v2540_v4 }
  0xff   : > { %2048 = vmatmul.msk.f32.gmra.mxu1 %vm360_vm1, %v2526_v1 }
 0x100   : > { %2066 = vmatmul.msk.f32.gmra.mxu2 %vm360_vm1, %v2528_v2 }
 0x101   : > { %2084 = vmatmul.msk.f32.gmra.mxu3 %vm360_vm1, %v2333_v19  ;;  %v396_v19 = vld [vmem:[%s325_s16] sm:$0xff] }
 0x102   : > { %399 = vst.msk [vmem:[#allocation2 + $0xd9] sm:$0xff] %vm360_vm1, %v396_v19  ;;  %v1583_v19 = vld [vmem:[#allocation2 + $0xca] sm:$0xff] }
 0x103   : > { %v779_v62 = vpop.f32.mrf.mxu2  ;;  %v1079_v54 = vpop.f32.mrf.mxu0 }
 0x104   : > { %v811_v63 = vadd.f32 %v779_v62, %v646_v38  ;;  %v648_v25 = vpop.f32.mrf.mxu1  ;;  %v929_v37 = vpop.f32.mrf.mxu3 }
 0x105   : > { %v649_v10 = vadd.f32 %v648_v25, %v2584_v16 }
 0x106   : > { %v961_v1 = vadd.f32 %v929_v37, %v811_v63  ;;  %2102 = vmatmul.msk.f32.gmra.mxu0 %vm360_vm1, %v2554_v7 }
 0x107   : > { %2049 = vmatmul.msk.f32.gmra.mxu1 %vm360_vm1, %v2540_v4 }
 0x108   : > { %v2744_v2 = vadd.f32 %v1079_v54, %v961_v1  ;;  %2067 = vmatmul.msk.f32.gmra.mxu2 %vm360_vm1, %v2542_v5  ;;  %v397_v5 = vld [vmem:[%s325_s16 + $0x8] sm:$0xff] }
 0x109   : > { %2085 = vmatmul.msk.f32.gmra.mxu3 %vm360_vm1, %v2363_v29  ;;  %400 = vst.msk [vmem:[#allocation2 + $0xe1] sm:$0xff] %vm360_vm1, %v397_v5  ;;  %v1284_v37 = vld [vmem:[#allocation2 + $0xd8] sm:$0xff] }
 0x10b   : > { %v782_v55 = vpop.f32.mrf.mxu2  ;;  %v1082_v56 = vpop.f32.mrf.mxu0 }
 0x10c   : > { %v812_v43 = vadd.f32 %v782_v55, %v649_v10  ;;  %v651_v9 = vpop.f32.mrf.mxu1  ;;  %v932_v4 = vpop.f32.mrf.mxu3 }
 0x10d   : > { %v652_v29 = vadd.f32 %v651_v9, %v2602_v24 }
 0x10e   : > { %v962_v17 = vadd.f32 %v932_v4, %v812_v43  ;;  %2103 = vmatmul.msk.f32.gmra.mxu0 %vm360_vm1, %v2572_v13 }
 0x10f   : > { %2050 = vmatmul.msk.f32.gmra.mxu1 %vm360_vm1, %v2554_v7 }
 0x110   : > { %v2756_v57 = vadd.f32 %v1082_v56, %v962_v17  ;;  %2068 = vmatmul.msk.f32.gmra.mxu2 %vm360_vm1, %v2556_v8  ;;  %v1285_v4 = vld [vmem:[#allocation2 + $0xe0] sm:$0xff] }
 0x111   : > { %2086 = vmatmul.msk.f32.gmra.mxu3 %vm360_vm1, %v2388_v35  ;;  %v1435_v56 = vld [vmem:[#allocation2 + $0xe1] sm:$0xff] }
 0x113   : > { %v785_v16 = vpop.f32.mrf.mxu2  ;;  %v1085_v58 = vpop.f32.mrf.mxu0 }
 0x114   : > { %v813_v6 = vadd.f32 %v785_v16, %v652_v29  ;;  %v654_v50 = vpop.f32.mrf.mxu1  ;;  %v935_v7 = vpop.f32.mrf.mxu3  ;;  %v1584_v29 = vld [vmem:[#allocation2 + $0xda] sm:$0xff] }
 0x115   : > { %v655_v35 = vadd.f32 %v654_v50, %v2622_v40 }
 0x116   : > { %v963_v28 = vadd.f32 %v935_v7, %v813_v6  ;;  %2104 = vmatmul.msk.f32.gmra.mxu0 %vm360_vm1, %v2590_v22  ;;  %v2922_v6 = vld [vmem:[#allocation4_spill] sm:$0xff] }
 0x117   : > { %2051 = vmatmul.msk.f32.gmra.mxu1 %vm360_vm1, %v2572_v13 }
 0x118   : > { %v2768_v8 = vadd.f32 %v1085_v58, %v963_v28  ;;  %2069 = vmatmul.msk.f32.gmra.mxu2 %vm360_vm1, %v2574_v14 }
 0x119   : > { %2087 = vmatmul.msk.f32.gmra.mxu3 %vm360_vm1, %v2409_v39 }
 0x11b   : > { %v788_v24 = vpop.f32.mrf.mxu2  ;;  %v1088_v60 = vpop.f32.mrf.mxu0 }
 0x11c   : > { %v814_v59 = vadd.f32 %v788_v24, %v655_v35  ;;  %v657_v11 = vpop.f32.mrf.mxu1  ;;  %v938_v47 = vpop.f32.mrf.mxu3 }
 0x11d   : > { %v658_v39 = vadd.f32 %v657_v11, %v2570_v12  ;;  %v1585_v11 = vld [vmem:[#allocation2 + $0xe2] sm:$0xff] }
 0x11e   : > { %v964_v34 = vadd.f32 %v938_v47, %v814_v59  ;;  %2105 = vmatmul.msk.f32.gmra.mxu0 %vm360_vm1, %v2608_v31  ;;  %v1103_v47 = vadd.f32 %v2638_v27, %v2636_v41 }
 0x11f   : > { %2052 = vmatmul.msk.f32.gmra.mxu1 %vm360_vm1, %v2590_v22  ;;  %v1582_v22 = vld [vmem:[#allocation2 + $0xc2] sm:$0xff] }
 0x120   : > { %v2779_v13 = vadd.f32 %v1088_v60, %v964_v34  ;;  %2070 = vmatmul.msk.f32.gmra.mxu2 %vm360_vm1, %v2592_v23 }
 0x121   : > { %2088 = vmatmul.msk.f32.gmra.mxu3 %vm360_vm1, %v2614_v36 }
 0x123   : > { %v791_v14 = vpop.f32.mrf.mxu2  ;;  %v1091_v38 = vpop.f32.mrf.mxu0 }
 0x124   : > { %v815_v40 = vadd.f32 %v791_v14, %v658_v39  ;;  %v660_v61 = vpop.f32.mrf.mxu1  ;;  %v941_v20 = vpop.f32.mrf.mxu3 }
 0x125   : > { %v661_v12 = vadd.f32 %v660_v61, %v2588_v21  ;;  %v2921_v21 = vld [vmem:[#allocation3_spill] sm:$0xff] }
 0x126   : > { %v965_v53 = vadd.f32 %v941_v20, %v815_v40  ;;  %2106 = vmatmul.msk.f32.gmra.mxu0 %vm360_vm1, %v1582_v22 }
 0x127   : > { %2053 = vmatmul.msk.f32.gmra.mxu1 %vm360_vm1, %v2608_v31  ;;  %v1434_v31 = vld [vmem:[#allocation2 + $0xd9] sm:$0xff] }
 0x128   : > { %v2790_v62 = vadd.f32 %v1091_v38, %v965_v53  ;;  %2071 = vmatmul.msk.f32.gmra.mxu2 %vm360_vm1, %v2610_v32  ;;  %v2820_v53 = vld [vmem:[%s2917_s4] ss:$0 sm:$0xff] }
 0x129   : > { %2089 = vmatmul.msk.f32.gmra.mxu3 %vm360_vm1, %v2628_v44 }
 0x12b   : > { %v794_v23 = vpop.f32.mrf.mxu2  ;;  %v1094_v54 = vpop.f32.mrf.mxu0 }
 0x12c   : > { %v816_v36 = vadd.f32 %v794_v23, %v661_v12  ;;  %v663_v63 = vpop.f32.mrf.mxu1  ;;  %v944_v25 = vpop.f32.mrf.mxu3 }
 0x12d   : > { %v664_v32 = vadd.f32 %v663_v63, %v2921_v21 }
 0x12e   : > { %v966_v1 = vadd.f32 %v944_v25, %v816_v36  ;;  %2107 = vmatmul.msk.f32.gmra.mxu0 %vm360_vm1, %v1583_v19 }
 0x12f   : > { %2054 = vmatmul.msk.f32.gmra.mxu1 %vm360_vm1, %v1582_v22  ;;  %v1104_v22 = vadd.f32 %v2650_v46, %v2648_v45  ;;  %v1105_v46 = vadd.f32 %v2662_v3, %v2660_v0 }
 0x130   : > { %v2799_v10 = vadd.f32 %v1094_v54, %v966_v1  ;;  %2072 = vmatmul.msk.f32.gmra.mxu2 %vm360_vm1, %v1284_v37 }
 0x131   : > { %2090 = vmatmul.msk.f32.gmra.mxu3 %vm360_vm1, %v1434_v31 }
 0x133   : > { %v797_v44 = vpop.f32.mrf.mxu2  ;;  %v1097_v5 = vpop.f32.mrf.mxu0 }
 0x134   : > { %v817_v55 = vadd.f32 %v797_v44, %v664_v32  ;;  %v666_v43 = vpop.f32.mrf.mxu1  ;;  %v947_v9 = vpop.f32.mrf.mxu3 }
 0x135   : > { %v667_v50 = vadd.f32 %v666_v43, %v2922_v6 }
 0x136   : > { %v967_v17 = vadd.f32 %v947_v9, %v817_v55  ;;  %2108 = vmatmul.msk.f32.gmra.mxu0 %vm360_vm1, %v1584_v29 }
 0x137   : > { %2055 = vmatmul.msk.f32.gmra.mxu1 %vm360_vm1, %v1583_v19 }
 0x138   : > { %v2806_v16 = vadd.f32 %v1097_v5, %v967_v17  ;;  %2073 = vmatmul.msk.f32.gmra.mxu2 %vm360_vm1, %v1285_v4  ;;  %v1106_v5 = vadd.f32 %v2674_v49, %v2672_v48 }
 0x139   : > { %2091 = vmatmul.msk.f32.gmra.mxu3 %vm360_vm1, %v1435_v56 }
 0x13b   : > { %v800_v7 = vpop.f32.mrf.mxu2  ;;  %v1100_v59 = vpop.f32.mrf.mxu0 }
 0x13c   : > { %v818_v28 = vadd.f32 %v800_v7, %v667_v50  ;;  %v950_v58 = vpop.f32.mrf.mxu3  ;;  %v1205_v35 = vpop.f32.mrf.mxu1 }
 0x13d   : > { %v1253_v60 = vadd.f32 %v1205_v35, %v1103_v47 }
 0x13e   : > { %v968_v24 = vadd.f32 %v950_v58, %v818_v28  ;;  %2109 = vmatmul.msk.f32.gmra.mxu0 %vm360_vm1, %v1585_v11  ;;  %v1107_v11 = vadd.f32 %v2687_v26, %v2685_v42 }
 0x140   : > { %v2814_v34 = vadd.f32 %v1100_v59, %v968_v24 }
 0x143   : > { %v1356_v39 = vpop.f32.mrf.mxu2  ;;  %v1656_v38 = vpop.f32.mrf.mxu0 }
 0x144   : > { %v1404_v14 = vadd.f32 %v1356_v39, %v1253_v60  ;;  %v1208_v40 = vpop.f32.mrf.mxu1  ;;  %v1506_v61 = vpop.f32.mrf.mxu3 }
 0x145   : > { %v1254_v41 = vadd.f32 %v1208_v40, %v1104_v22 }
 0x146   : > { %v1554_v20 = vadd.f32 %v1506_v61, %v1404_v14 }
 0x148   : > { %v1704_v27 = vadd.f32 %v1656_v38, %v1554_v20 }
 0x14a   : > { %v1724_v12 = vadd.f32 %v2820_v53, %v1704_v27  ;;  %v1108_v27 = vadd.f32 %v2700_v18, %v2698_v51 }
 0x14b   : > { %v1359_v23 = vpop.f32.mrf.mxu2  ;;  %v1659_v45 = vpop.f32.mrf.mxu0 }
 0x14c   : > { %v1740_v36 = vmax.f32 %v1724_v12, 0.0  ;;  %v1405_v63 = vadd.f32 %v1359_v23, %v1254_v41  ;;  %v1211_v25 = vpop.f32.mrf.mxu1  ;;  %v1509_v37 = vpop.f32.mrf.mxu3 }
 0x14d   : > { %v1255_v19 = vadd.f32 %v1211_v25, %v1105_v46 }
 0x14e   : > { %v1756_v1 = vpack.c.bf16 %v1740_v36, %v1740_v36  ;;  %v1555_v31 = vadd.f32 %v1509_v37, %v1405_v63 }
 0x150   : > { %1773 = vst.msk [vmem:[%s2829_s28] sm:$0xf] %vm1772_vm3, %v1756_v1  ;;  %v1705_v54 = vadd.f32 %v1659_v45, %v1555_v31  ;;  %v1109_v45 = vadd.f32 %v2713_v52, %v2711_v33 }
 0x152   : > { %v1725_v21 = vadd.f32 %v2820_v53, %v1705_v54 }
 0x153   : > { %v1362_v32 = vpop.f32.mrf.mxu2  ;;  %v1662_v56 = vpop.f32.mrf.mxu0 }
 0x154   : > { %v1741_v44 = vmax.f32 %v1725_v21, 0.0  ;;  %v1406_v55 = vadd.f32 %v1362_v32, %v1255_v19  ;;  %v1214_v43 = vpop.f32.mrf.mxu1  ;;  %v1512_v9 = vpop.f32.mrf.mxu3 }
 0x155   : > { %v1256_v3 = vadd.f32 %v1214_v43, %v1106_v5 }
 0x156   : > { %v1757_v4 = vpack.c.bf16 %v1741_v44, %v1741_v44  ;;  %v1556_v17 = vadd.f32 %v1512_v9, %v1406_v55 }
 0x158   : > { %1774 = vst.msk [vmem:[%s2829_s28 + $0x4] sm:$0xf] %vm1772_vm3, %v1757_v4  ;;  %v1706_v0 = vadd.f32 %v1662_v56, %v1556_v17  ;;  %v1110_v4 = vadd.f32 %v2726_v15, %v2724_v30 }
 0x15a   : > { %v1726_v29 = vadd.f32 %v2820_v53, %v1706_v0 }
 0x15b   : > { %v1365_v6 = vpop.f32.mrf.mxu2  ;;  %v1665_v59 = vpop.f32.mrf.mxu0 }
 0x15c   : > { %v1742_v50 = vmax.f32 %v1726_v29, 0.0  ;;  %v1407_v7 = vadd.f32 %v1365_v6, %v1256_v3  ;;  %v1217_v28 = vpop.f32.mrf.mxu1  ;;  %v1515_v58 = vpop.f32.mrf.mxu3 }
 0x15d   : > { %v1257_v49 = vadd.f32 %v1217_v28, %v1107_v11 }
 0x15e   : > { %v1758_v35 = vpack.c.bf16 %v1742_v50, %v1742_v50  ;;  %v1557_v24 = vadd.f32 %v1515_v58, %v1407_v7 }
 0x160   : > { %1775 = vst.msk [vmem:[%s2829_s28 + $0x8] sm:$0xf] %vm1772_vm3, %v1758_v35  ;;  %v1707_v48 = vadd.f32 %v1665_v59, %v1557_v24 }
 0x162   : > { %v1727_v47 = vadd.f32 %v2820_v53, %v1707_v48 }
 0x163   : > { %v1368_v60 = vpop.f32.mrf.mxu2  ;;  %v1668_v22 = vpop.f32.mrf.mxu0 }
 0x164   : > { %v1743_v39 = vmax.f32 %v1727_v47, 0.0  ;;  %v1408_v14 = vadd.f32 %v1368_v60, %v1257_v49  ;;  %v1220_v40 = vpop.f32.mrf.mxu1  ;;  %v1518_v61 = vpop.f32.mrf.mxu3 }
 0x165   : > { %v1258_v26 = vadd.f32 %v1220_v40, %v1108_v27 }
 0x166   : > { %v1759_v20 = vpack.c.bf16 %v1743_v39, %v1743_v39  ;;  %v1558_v38 = vadd.f32 %v1518_v61, %v1408_v14 }
 0x168   : > { %1776 = vst.msk [vmem:[%s2829_s28 + $0xc] sm:$0xf] %vm1772_vm3, %v1759_v20  ;;  %v1708_v42 = vadd.f32 %v1668_v22, %v1558_v38 }
 0x16a   : > { %v1728_v41 = vadd.f32 %v2820_v53, %v1708_v42 }
 0x16b   : > { %v1371_v12 = vpop.f32.mrf.mxu2  ;;  %v1671_v31 = vpop.f32.mrf.mxu0 }
 0x16c   : > { %v1744_v23 = vmax.f32 %v1728_v41, 0.0  ;;  %v1409_v36 = vadd.f32 %v1371_v12, %v1258_v26  ;;  %v1223_v63 = vpop.f32.mrf.mxu1  ;;  %v1521_v25 = vpop.f32.mrf.mxu3 }
 0x16d   : > { %v1259_v18 = vadd.f32 %v1223_v63, %v1109_v45 }
 0x16e   : > { %v1760_v37 = vpack.c.bf16 %v1744_v23, %v1744_v23  ;;  %v1559_v1 = vadd.f32 %v1521_v25, %v1409_v36 }
 0x170   : > { %1777 = vst.msk [vmem:[%s2829_s28 + $0x10] sm:$0xf] %vm1772_vm3, %v1760_v37  ;;  %v1709_v51 = vadd.f32 %v1671_v31, %v1559_v1 }
 0x172   : > { %v1729_v46 = vadd.f32 %v2820_v53, %v1709_v51 }
 0x173   : > { %v1374_v54 = vpop.f32.mrf.mxu2  ;;  %v1674_v9 = vpop.f32.mrf.mxu0 }
 0x174   : > { %v1745_v19 = vmax.f32 %v1729_v46, 0.0  ;;  %v1410_v21 = vadd.f32 %v1374_v54, %v1259_v18  ;;  %v1226_v32 = vpop.f32.mrf.mxu1  ;;  %v1524_v44 = vpop.f32.mrf.mxu3 }
 0x175   : > { %v1260_v52 = vadd.f32 %v1226_v32, %v1110_v4 }
 0x176   : > { %v1761_v55 = vpack.c.bf16 %v1745_v19, %v1745_v19  ;;  %v1560_v43 = vadd.f32 %v1524_v44, %v1410_v21 }
 0x178   : > { %1778 = vst.msk [vmem:[%s2829_s28 + $0x14] sm:$0xf] %vm1772_vm3, %v1761_v55  ;;  %v1710_v33 = vadd.f32 %v1674_v9, %v1560_v43 }
 0x17a   : > { %v1730_v17 = vadd.f32 %v2820_v53, %v1710_v33 }
 0x17b   : > { %v1377_v56 = vpop.f32.mrf.mxu2  ;;  %v1677_v7 = vpop.f32.mrf.mxu0 }
 0x17c   : > { %v1746_v5 = vmax.f32 %v1730_v17, 0.0  ;;  %v1411_v0 = vadd.f32 %v1377_v56, %v1260_v52  ;;  %v1229_v3 = vpop.f32.mrf.mxu1  ;;  %v1527_v29 = vpop.f32.mrf.mxu3 }
 0x17d   : > { %v1261_v30 = vadd.f32 %v1229_v3, %v2744_v2 }
 0x17e   : > { %v1762_v6 = vpack.c.bf16 %v1746_v5, %v1746_v5  ;;  %v1561_v50 = vadd.f32 %v1527_v29, %v1411_v0 }
 0x180   : > { %1779 = vst.msk [vmem:[%s2829_s28 + $0x18] sm:$0xf] %vm1772_vm3, %v1762_v6  ;;  %v1711_v28 = vadd.f32 %v1677_v7, %v1561_v50 }
 0x182   : > { %v1731_v15 = vadd.f32 %v2820_v53, %v1711_v28 }
 0x183   : > { %v1380_v58 = vpop.f32.mrf.mxu2  ;;  %v1680_v47 = vpop.f32.mrf.mxu0 }
 0x184   : > { %v1747_v35 = vmax.f32 %v1731_v15, 0.0  ;;  %v1412_v24 = vadd.f32 %v1380_v58, %v1261_v30  ;;  %v1232_v59 = vpop.f32.mrf.mxu1  ;;  %v1530_v11 = vpop.f32.mrf.mxu3 }
 0x185   : > { %v1262_v39 = vadd.f32 %v1232_v59, %v2756_v57 }
 0x186   : > { %v1763_v48 = vpack.c.bf16 %v1747_v35, %v1747_v35  ;;  %v1562_v49 = vadd.f32 %v1530_v11, %v1412_v24 }
 0x188   : > { %1780 = vst.msk [vmem:[%s2829_s28 + $0x1c] sm:$0xf] %vm1772_vm3, %v1763_v48  ;;  %v1712_v60 = vadd.f32 %v1680_v47, %v1562_v49 }
 0x18a   : > { %v1732_v14 = vadd.f32 %v2820_v53, %v1712_v60 }
 0x18b   : > { %v1383_v40 = vpop.f32.mrf.mxu2  ;;  %v1683_v42 = vpop.f32.mrf.mxu0 }
 0x18c   : > { %v1748_v2 = vmax.f32 %v1732_v14, 0.0  ;;  %v1413_v61 = vadd.f32 %v1383_v40, %v1262_v39  ;;  %v1235_v20 = vpop.f32.mrf.mxu1  ;;  %v1533_v38 = vpop.f32.mrf.mxu3 }
 0x18d   : > { %v1263_v41 = vadd.f32 %v1235_v20, %v2768_v8 }
 0x18e   : > { %v1764_v22 = vpack.c.bf16 %v1748_v2, %v1748_v2  ;;  %v1563_v27 = vadd.f32 %v1533_v38, %v1413_v61 }
 0x190   : > { %1781 = vst.msk [vmem:[%s2829_s28 + $0x20] sm:$0xf] %vm1772_vm3, %v1764_v22  ;;  %v1713_v26 = vadd.f32 %v1683_v42, %v1563_v27 }
 0x192   : > { %v1733_v12 = vadd.f32 %v2820_v53, %v1713_v26 }
 0x193   : > { %v1386_v23 = vpop.f32.mrf.mxu2  ;;  %v1686_v31 = vpop.f32.mrf.mxu0 }
 0x194   : > { %v1749_v57 = vmax.f32 %v1733_v12, 0.0  ;;  %v1414_v36 = vadd.f32 %v1386_v23, %v1263_v41  ;;  %v1238_v63 = vpop.f32.mrf.mxu1  ;;  %v1536_v25 = vpop.f32.mrf.mxu3 }
 0x195   : > { %v1264_v51 = vadd.f32 %v1238_v63, %v2779_v13 }
 0x196   : > { %v1765_v37 = vpack.c.bf16 %v1749_v57, %v1749_v57  ;;  %v1564_v1 = vadd.f32 %v1536_v25, %v1414_v36 }
 0x198   : > { %1782 = vst.msk [vmem:[%s2829_s28 + $0x24] sm:$0xf] %vm1772_vm3, %v1765_v37  ;;  %v1714_v45 = vadd.f32 %v1686_v31, %v1564_v1 }
 0x19a   : > { %v1734_v18 = vadd.f32 %v2820_v53, %v1714_v45 }
 0x19b   : > { %v1389_v46 = vpop.f32.mrf.mxu2  ;;  %v1689_v55 = vpop.f32.mrf.mxu0 }
 0x19c   : > { %v1750_v8 = vmax.f32 %v1734_v18, 0.0  ;;  %v1415_v54 = vadd.f32 %v1389_v46, %v1264_v51  ;;  %v1241_v19 = vpop.f32.mrf.mxu1  ;;  %v1539_v21 = vpop.f32.mrf.mxu3 }
 0x19d   : > { %v1265_v9 = vadd.f32 %v1241_v19, %v2790_v62 }
 0x19e   : > { %v1766_v32 = vpack.c.bf16 %v1750_v8, %v1750_v8  ;;  %v1565_v44 = vadd.f32 %v1539_v21, %v1415_v54 }
 0x1a0   : > { %1783 = vst.msk [vmem:[%s2829_s28 + $0x28] sm:$0xf] %vm1772_vm3, %v1766_v32  ;;  %v1715_v43 = vadd.f32 %v1689_v55, %v1565_v44 }
 0x1a2   : > { %v1735_v4 = vadd.f32 %v2820_v53, %v1715_v43 }
 0x1a3   : > { %v1392_v33 = vpop.f32.mrf.mxu2  ;;  %v1692_v3 = vpop.f32.mrf.mxu0 }
 0x1a4   : > { %v1751_v13 = vmax.f32 %v1735_v4, 0.0  ;;  %v1416_v52 = vadd.f32 %v1392_v33, %v1265_v9  ;;  %v1244_v17 = vpop.f32.mrf.mxu1  ;;  %v1542_v56 = vpop.f32.mrf.mxu3 }
 0x1a5   : > { %v1266_v6 = vadd.f32 %v1244_v17, %v2799_v10 }
 0x1a6   : > { %v1767_v5 = vpack.c.bf16 %v1751_v13, %v1751_v13  ;;  %v1566_v0 = vadd.f32 %v1542_v56, %v1416_v52 }
 0x1a8   : > { %1784 = vst.msk [vmem:[%s2829_s28 + $0x2c] sm:$0xf] %vm1772_vm3, %v1767_v5  ;;  %v1716_v29 = vadd.f32 %v1692_v3, %v1566_v0 }
 0x1aa   : > { %v1736_v50 = vadd.f32 %v2820_v53, %v1716_v29 }
 0x1ab   : > { %v1395_v7 = vpop.f32.mrf.mxu2  ;;  %v1695_v24 = vpop.f32.mrf.mxu0 }
 0x1ac   : > { %v1752_v62 = vmax.f32 %v1736_v50, 0.0  ;;  %v1417_v28 = vadd.f32 %v1395_v7, %v1266_v6  ;;  %v1545_v30 = vpop.f32.mrf.mxu3  ;;  %v1247_v15 = vpop.f32.mrf.mxu1 }
 0x1ad   : > { %v1267_v11 = vadd.f32 %v1247_v15, %v2806_v16 }
 0x1ae   : > { %v1768_v58 = vpack.c.bf16 %v1752_v62, %v1752_v62  ;;  %v1567_v35 = vadd.f32 %v1545_v30, %v1417_v28 }
 0x1b0   : > { %1785 = vst.msk [vmem:[%s2829_s28 + $0x30] sm:$0xf] %vm1772_vm3, %v1768_v58  ;;  %v1717_v59 = vadd.f32 %v1695_v24, %v1567_v35 }
 0x1b2   : > { %v1737_v48 = vadd.f32 %v2820_v53, %v1717_v59 }
 0x1b3   : > { %v1398_v49 = vpop.f32.mrf.mxu2  ;;  %v1698_v2 = vpop.f32.mrf.mxu0 }
 0x1b4   : > { %v1753_v10 = vmax.f32 %v1737_v48, 0.0  ;;  %v1418_v47 = vadd.f32 %v1398_v49, %v1267_v11  ;;  %v1548_v60 = vpop.f32.mrf.mxu3  ;;  %v1250_v40 = vpop.f32.mrf.mxu1 }
 0x1b5   : > { %v1268_v20 = vadd.f32 %v1250_v40, %v2814_v34 }
 0x1b6   : > { %v1769_v39 = vpack.c.bf16 %v1753_v10, %v1753_v10  ;;  %v1568_v14 = vadd.f32 %v1548_v60, %v1418_v47 }
 0x1b8   : > { %1786 = vst.msk [vmem:[%s2829_s28 + $0x34] sm:$0xf] %vm1772_vm3, %v1769_v39  ;;  %v1718_v61 = vadd.f32 %v1698_v2, %v1568_v14 }
 0x1ba   : > { %v1738_v38 = vadd.f32 %v2820_v53, %v1718_v61 }
 0x1bb   : > { %v1401_v16 = vpop.f32.mrf.mxu2  ;;  %v1701_v12 = vpop.f32.mrf.mxu0 }
 0x1bc   : > { %v1754_v22 = vmax.f32 %v1738_v38, 0.0  ;;  %v1419_v27 = vadd.f32 %v1401_v16, %v1268_v20  ;;  %v1551_v42 = vpop.f32.mrf.mxu3 }
 0x1be   : > { %v1770_v26 = vpack.c.bf16 %v1754_v22, %v1754_v22  ;;  %v1569_v41 = vadd.f32 %v1551_v42, %v1419_v27 }
 0x1c0   : > { %1787 = vst.msk [vmem:[%s2829_s28 + $0x38] sm:$0xf] %vm1772_vm3, %v1770_v26  ;;  %v1719_v23 = vadd.f32 %v1701_v12, %v1569_v41 }
 0x1c2   : > { %v1739_v57 = vadd.f32 %v2820_v53, %v1719_v23 }
 0x1c4   : > { %v1755_v36 = vmax.f32 %v1739_v57, 0.0 }
 0x1c6   : > { %v1771_v63 = vpack.c.bf16 %v1755_v36, %v1755_v36 }
 0x1c8   : > { %1788 = vst.msk [vmem:[%s2829_s28 + $0x3c] sm:$0xf] %vm1772_vm3, %v1771_v63 }
 0x1c9 PF: > { %s15_s22 = sadd.s32 1, %s2195_s22   ;;  %s2923_s18 = smov %s2187_s20 }
 0x1ca   : > { %p12_p8 = scmp.ge.s32.totalorder %s15_s22, 6   ;;  %s2924_s19 = smov %s2191_s21 }
 0x1cb   : > { %s2925_s20 = smov %s2928_s23  ;;  %s2926_s21 = smov %s2932_s24 }
 0x1cc   :  { %14 = sbr.rel (!%p12_p8) target bundleno = 3 (0x3), region = 87 }

// kernel: vgg_features.5
= control target key start
LH: loop header
LB: loop body
LE: loop exit
PB: predicated region body
PF: predicated region fallthrough
CT: control target
= control target key end

     0   :  { %s4594_s21 = smov 0   ;;  %s4596_s22 = smov 0   ;;  %s5963_s0 = inlined_call_operand.vmem [shape: bf16[2,16,16,64], index: 0, kind: input, shape index: {}]   ;;  %s5964_s1 = inlined_call_operand.vmem [shape: bf16[2,2,16,64], index: 1, kind: input, shape index: {}]   ;;  %s5965_s2 = inlined_call_operand.vmem [shape: bf16[2,2,16,64], index: 2, kind: input, shape index: {}]   ;;  %s5966_s3 = inlined_call_operand.vmem [shape: bf16[9,64,64], index: 3, kind: input, shape index: {}]   ;;  %s5967_s4 = inlined_call_operand.vmem [shape: f32[1,64], index: 4, kind: input, shape index: {}]   ;;  %s5968_s5 = inlined_call_operand.vmem [shape: bf16[2,16,16,64], index: 5, kind: output, shape index: {0}]   ;;  %s5969_s6 = inlined_call_operand.vmem [shape: bf16[2,8,8,64], index: 6, kind: output, shape index: {1}]  }
   0x1   :  { %s4598_s23 = smov 0   ;;  %s4600_s24 = smov 0  }
   0x2   :  { %s4602_s25 = smov 0  }
   0x3 LB: > { %s26_s26 = sadd.s32 1, %s4548_s23  ;;  %s29_s27 = sadd.s32 1, %s4552_s24  ;;  %s4556_s25 = sphi %s4602_s25, %s17_s25   ;;  %s4552_s24 = sphi %s4600_s24, %s5987_s24   ;;  %s4548_s23 = sphi %s4598_s23, %s5986_s23   ;;  %s4544_s22 = sphi %s4596_s22, %s5985_s22   ;;  %s4540_s21 = sphi %s4594_s21, %s5984_s21  }
   0x4   : > { %p27_p0 = scmp.ge.s32.totalorder %s26_s26, 2  ;;  %p4020_p1 = scmp.ge.s32.totalorder %s4556_s25, 1 }
   0x5   : > { %p271_p2 = scmp.lt.s32.totalorder %s4556_s25, 5 }
   0x6   : > { %s5989_s26 = smov (%p27_p0, %s26_s26), 0  ;;  %s5991_s27 = smov (!%p27_p0, %s29_s27), %s4552_s24 }
   0x7   : > { %p272_p3 = pnand %p4020_p1, %p271_p2  ;;  %p31_p4 = scmp.ge.s32.totalorder %s5991_s27, 2 }
   0x8   : > { %p339_p5 = scmp.lt.s32.totalorder (!%p272_p3), %s4544_s22, 1  ;;  %p351_p6 = scmp.lt.s32.totalorder (!%p272_p3), %s4540_s21, 1 }
   0x9   : > { %s5993_s27 = smov (%p31_p4, %s5991_s27), 0  ;;  %275 = sbr.rel (%p272_p3) target bundleno = 584 (0x248), region = 40 }
   0xa   : > { %s4021_s7 = sshll.u32 (!%p272_p3), %s4540_s21, 3 }
   0xb   : > { %p4650_p7 = scmp.lt.s32.totalorder (!%p272_p3), %s4021_s7, 15 }
   0xe   : > { %vm389_vm0 = vcmask 516096   ;;  %vm390_vm1 = vsmask.f32 256  ;;  %vm422_vm3 = vsmask.f32 7938  ;;  %s5995_s22 = smov (!%p339_p5, %s4544_s22), 1 }
   0xf   : > { %vm4628_vm2 = vmand %vm389_vm0, %vm390_vm1  ;;  %v424_v1 = vld [vmem:[#allocation2 + $0x8] sm:$0x1]  ;;  %vm456_vm5 = vsmask.f32 4368  ;;  %s352_s28 = scalar_select %p351_p6, %s4540_s21, 1  ;;  %vm478_vm6 = vcmask 519168  }
  0x10   : > { %vm4635_vm4 = vmand %vm389_vm0, %vm422_vm3  ;;  %v392_v4 = vld [vmem:[#allocation2] sm:$0x1]  ;;  %v410_v5 = vld [vmem:[#allocation2 + $0x48] sm:$0x1]  ;;  %s4026_s29 = sshll.u32 %s5995_s22, 2  ;;  %s4023_s11 = sshll.u32 %s5995_s22, 5 }
  0x11   : > { %v425_v3 = vsel %vm4635_vm4, 0, %v424_v1  ;;  %v393_v6 = vsel %vm4628_vm2, 0, %v392_v4  ;;  %v411_v7 = vsel %vm4628_vm2, 0, %v410_v5  ;;  %s4025_s30 = sshll.u32 %s352_s28, 1  ;;  %v404_v8 = vld [vmem:[#allocation2 + $0x30] sm:$0x1]  ;;  %vm4673_vm7 = vmor %vm390_vm1, %vm456_vm5 }
  0x12   : > { %426 = vst [vmem:[#allocation2 + $0x8] sm:$0x1] %v425_v3  ;;  %s4648_s8 = sadd.s32 %s4026_s29, %s4025_s30  ;;  %v405_v9 = vsel %vm4628_vm2, 0, %v404_v8  ;;  %v442_v10 = vld [vmem:[#allocation2 + $0x50] sm:$0x1]  ;;  %s5997_s7 = smov (!%p4650_p7, %s4021_s7), 15  ;;  %vm4681_vm8 = vmand %vm478_vm6, %vm422_vm3 }
  0x13   : > { %394 = vst [vmem:[#allocation2] sm:$0x1] %v393_v6  ;;  %s4027_s10 = sshll.u32 %s4648_s8, 2  ;;  %v443_v11 = vsel %vm4635_vm4, 0, %v442_v10  ;;  %v436_v12 = vld [vmem:[#allocation2 + $0x38] sm:$0x1] }
  0x14   : > { %412 = vst [vmem:[#allocation2 + $0x48] sm:$0x1] %v411_v7  ;;  %s357_s14 = scalar_lea.vmem %s5964_s1, %s4027_s10  ;;  %v398_v13 = vld [vmem:[#allocation2 + $0x18] sm:$0x1]  ;;  %v437_v16 = vsel %vm4635_vm4, 0, %v436_v12  ;;  %s4022_s15 = sshll.u32 %s5997_s7, 1 }
  0x15   : > { %406 = vst [vmem:[#allocation2 + $0x30] sm:$0x1] %v405_v9  ;;  %v454_v14 = vld [vmem:[%s357_s14] sm:$0xf]  ;;  %v455_v15 = vld [vmem:[%s357_s14 + $0x4] sm:$0xf]  ;;  %s4677_s16 = sadd.s32 %s4023_s11, %s4022_s15  ;;  %s5044_s13 = scalar_lea.vmem %s5965_s2, %s4027_s10 }
  0x16   : > { %444 = vst [vmem:[#allocation2 + $0x50] sm:$0x1] %v443_v11  ;;  %v459_v17 = vshrl.u32 %v454_v14, 16  ;;  %v462_v18 = vshll.u32 %v454_v14, 16  ;;  %v467_v19 = vshrl.u32 %v455_v15, 16  ;;  %v470_v20 = vshll.u32 %v455_v15, 16 }
  0x17   : > { %438 = vst [vmem:[#allocation2 + $0x38] sm:$0x1] %v437_v16  ;;  %v399_v21 = vsel %vm4628_vm2, 0, %v398_v13  ;;  %v413_v22 = vld [vmem:[#allocation2 + $0x54] sm:$0x1]  ;;  %s4024_s17 = sshll.u32 %s4677_s16, 2 }
  0x18   : > { %v461_v24 = vrot.slane %v459_v17, 7  ;;  %v469_v25 = vrot.slane %v467_v19, 7  ;;  %400 = vst [vmem:[#allocation2 + $0x18] sm:$0x1] %v399_v21  ;;  %v414_v29 = vsel %vm4628_vm2, 0, %v413_v22  ;;  %s4693_s20 = scalar_lea.vmem %s5963_s0, %s4024_s17  ;;  %s4558_s28 = smov 64  }
  0x19   : > { %v485_v27 = vld [vmem:[#allocation2 + $0x8] sm:$0x1]  ;;  %415 = vst [vmem:[#allocation2 + $0x54] sm:$0x1] %v414_v29  ;;  %v499_v35 = vld [vmem:[%s4693_s20 + $0x2c] sm:$0xf]  ;;  %s5596_s15 = scalar_lea.vmem %s5968_s5, %s4024_s17 }
  0x1a   : > { %v480_v28 = vld [vmem:[#allocation2] sm:$0xf]  ;;  %v465_v30 = vrot.slane %v461_v24, 4  ;;  %v472_v31 = vor.u32 %v470_v20, %v469_v25  ;;  %v474_v32 = vrot.slane %v469_v25, 4  ;;  %v464_v33 = vor.u32 %v462_v18, %v461_v24  ;;  %v498_v34 = vld [vmem:[%s4693_s20 + $0x28] sm:$0xf] }
  0x1b   : > { %v494_v36 = vld [vmem:[%s4693_s20 + $0x18] sm:$0xf]  ;;  %v590_v40 = vshrl.u32 %v498_v34, 16  ;;  %v495_v41 = vld [vmem:[%s4693_s20 + $0x1c] sm:$0xf]  ;;  %v593_v42 = vshll.u32 %v498_v34, 16 }
  0x1c   : > { %v473_v37 = vsel %vm4673_vm7, %v465_v30, %v472_v31  ;;  %v486_v38 = vsel %vm4628_vm2, %v474_v32, %v485_v27  ;;  %v481_v39 = vsel %vm4681_vm8, %v464_v33, %v480_v28  ;;  %v598_v43 = vshrl.u32 %v499_v35, 16  ;;  %v700_v51 = vld [vmem:[#allocation2 + $0x48] sm:$0xf]  ;;  %v686_v56 = vld [vmem:[#allocation2 + $0x30] sm:$0xf]  ;;  %v4428_v2 = vld [vmem:[%s5966_s3 + $0x60] sm:$0xff] }
  0x1d   : > { %484 = vst.msk [vmem:[#allocation2 + $0x4] sm:$0xf] %vm478_vm6, %v473_v37  ;;  %v601_v44 = vshll.u32 %v499_v35, 16  ;;  %v556_v45 = vshrl.u32 %v494_v36, 16  ;;  %v592_v46 = vrot.slane %v590_v40, 7  ;;  %v559_v47 = vshll.u32 %v494_v36, 16 }
  0x1e   : > { %487 = vst [vmem:[#allocation2 + $0x8] sm:$0x1] %v486_v38  ;;  %v564_v48 = vshrl.u32 %v495_v41, 16  ;;  %v567_v49 = vshll.u32 %v495_v41, 16  ;;  %vm807_vm9 = vsmask.f32 3328 }
  0x1f   : > { %vm808_vm10 = vsmask.f32 7440  ;;  %482 = vst [vmem:[#allocation2] sm:$0xf] %v481_v39  ;;  %v600_v50 = vrot.slane %v598_v43, 7  ;;  %v558_v52 = vrot.slane %v556_v45, 7  ;;  %v595_v53 = vor.u32 %v593_v42, %v592_v46 }
  0x20   : > { %v596_v54 = vrot.slane %v592_v46, 4  ;;  %v566_v55 = vrot.slane %v564_v48, 7  ;;  %v490_v57 = vld [vmem:[%s4693_s20 + $0x8] sm:$0xf]  ;;  %v704_v62 = vld [vmem:[#allocation2 + $0x50] sm:$0x1]  ;;  %vm4735_vm11 = vmor %vm807_vm9, %vm808_vm10 }
  0x21   : > { %v603_v58 = vor.u32 %v601_v44, %v600_v50  ;;  %v561_v59 = vor.u32 %v559_v47, %v558_v52  ;;  %v562_v60 = vrot.slane %v558_v52, 4  ;;  %v605_v61 = vrot.slane %v600_v50, 4  ;;  %v491_v63 = vld [vmem:[%s4693_s20 + $0xc] sm:$0xf]  ;;  %v690_v5 = vld [vmem:[#allocation2 + $0x38] sm:$0x1] }
  0x22   : > { %v701_v1 = vsel %vm4681_vm8, %v595_v53, %v700_v51  ;;  %v569_v3 = vor.u32 %v567_v49, %v566_v55  ;;  %v571_v4 = vrot.slane %v566_v55, 4  ;;  %v522_v6 = vshrl.u32 %v490_v57, 16  ;;  %v672_v10 = vld [vmem:[#allocation2 + $0x18] sm:$0xf]  ;;  %v4720_v16 = vld [vmem:[%s4693_s20 + $0x30] sm:$0xf] }
  0x23   : > { %v604_v7 = vsel %vm4673_vm7, %v596_v54, %v603_v58  ;;  %702 = vst [vmem:[#allocation2 + $0x48] sm:$0xf] %v701_v1  ;;  %v687_v8 = vsel %vm4681_vm8, %v561_v59, %v686_v56  ;;  %v525_v9 = vshll.u32 %v490_v57, 16  ;;  %v705_v13 = vsel %vm4628_vm2, %v605_v61, %v704_v62  ;;  %v4725_v21 = vld [vmem:[%s4693_s20 + $0x34] sm:$0xf]  ;;  %s4035_s16 = sshll.u32 %s4540_s21, 2 }
  0x24   : > { %v784_v11 = vld [vmem:[#allocation2 + $0x4] sm:$0xf]  ;;  %703 = vst.msk [vmem:[#allocation2 + $0x4c] sm:$0xf] %vm478_vm6, %v604_v7  ;;  %v570_v12 = vsel %vm4673_vm7, %v562_v60, %v569_v3  ;;  %v524_v14 = vrot.slane %v522_v6, 7  ;;  %v530_v15 = vshrl.u32 %v491_v63, 16  ;;  %v691_v20 = vsel %vm4628_vm2, %v571_v4, %v690_v5 }
  0x25   : > { %v785_v17 = vld [vmem:[#allocation2 + $0x8] sm:$0x1]  ;;  %v820_v18 = vshll.u32 %v784_v11, 16  ;;  %v824_v19 = vshrl.u32 %v784_v11, 16  ;;  %688 = vst [vmem:[#allocation2 + $0x30] sm:$0xf] %v687_v8 }
  0x26   : > { %v830_v22 = vshll.u32 %v785_v17, 16  ;;  %v783_v24 = vld [vmem:[#allocation2] sm:$0xf]  ;;  %689 = vst.msk [vmem:[#allocation2 + $0x34] sm:$0xf] %vm478_vm6, %v570_v12  ;;  %v527_v25 = vor.u32 %v525_v9, %v524_v14  ;;  %v528_v27 = vrot.slane %v524_v14, 4 }
  0x27   : > { %v822_v28 = vrot.slane %v820_v18, 5  ;;  %v826_v29 = vrot.slane %v824_v19, 4  ;;  %v811_v30 = vshrl.u32 %v783_v24, 16  ;;  %v814_v31 = vshll.u32 %v783_v24, 16  ;;  %706 = vst [vmem:[#allocation2 + $0x50] sm:$0x1] %v705_v13 }
  0x28   : > { %v832_v32 = vrot.slane %v830_v22, 5  ;;  %692 = vst [vmem:[#allocation2 + $0x38] sm:$0x1] %v691_v20  ;;  %v4728_v33 = vrot.slane %v530_v15, 7  ;;  %v533_v34 = vshll.u32 %v491_v63, 16  ;;  %v673_v35 = vsel %vm4681_vm8, %v527_v25, %v672_v10  ;;  %v4426_v0 = vld [vmem:[%s5966_s3 + $0x50] sm:$0xff] }
  0x29   : > { %v827_v36 = vor.u32 %v826_v29, %v822_v28  ;;  %v813_v37 = vrot.slane %v811_v30, 4  ;;  %v816_v38 = vrot.slane %v814_v31, 5  ;;  %674 = vst [vmem:[#allocation2 + $0x18] sm:$0xf] %v673_v35  ;;  %v607_v39 = vshrl.u32 %v4720_v16, 16  ;;  %p5680_p8 = scmp.lt.s32.totalorder %s4035_s16, 7 }
  0x2a   : > { %v801_v41 = vld [vmem:[#allocation2 + $0x48] sm:$0xf]  ;;  %v535_v42 = vor.u32 %v533_v34, %v4728_v33  ;;  %v610_v43 = vshll.u32 %v4720_v16, 16  ;;  %v615_v44 = vshrl.u32 %v4725_v21, 16  ;;  %v618_v20 = vshll.u32 %v4725_v21, 16  ;;  %s4036_s18 = sshll.u32 %s5995_s22, 3 }
  0x2b   : > { %v828_v45 = vrot.slane %v827_v36, 4  ;;  %v817_v46 = vor.u32 %v816_v38, %v813_v37  ;;  %v802_v47 = vld [vmem:[#allocation2 + $0x4c] sm:$0xf]  ;;  %v955_v48 = vshrl.u32 %v801_v41, 16  ;;  %v958_v49 = vshll.u32 %v801_v41, 16  ;;  %s5999_s16 = smov (!%p5680_p8, %s4035_s16), 7 }
  0x2c   : > { %v964_v50 = vshll.u32 %v802_v47, 16  ;;  %v968_v51 = vshrl.u32 %v802_v47, 16  ;;  %v795_v52 = vld [vmem:[#allocation2 + $0x30] sm:$0xf]  ;;  %v536_v53 = vsel %vm4673_vm7, %v528_v27, %v535_v42  ;;  %v4744_v54 = vrot.slane %v607_v39, 7  ;;  %s5706_s21 = sadd.s32 %s4036_s18, %s5999_s16 }
  0x2d   : > { %v833_v55 = vsel %vm4735_vm11, %v828_v45, %v832_v32  ;;  %v818_v56 = vrot.slane %v817_v46, 4  ;;  %v957_v57 = vrot.slane %v955_v48, 4  ;;  %v960_v58 = vrot.slane %v958_v49, 5  ;;  %v796_v59 = vld [vmem:[#allocation2 + $0x34] sm:$0xf]  ;;  %s4037_s22 = sshll.u32 %s5706_s21, 2 }
  0x2e   : > { %1004 = vrot.lane.b32.xlu1 %v833_v55, %s4558_s28  ;;  %v966_v60 = vrot.slane %v964_v50, 5  ;;  %v907_v61 = vshrl.u32 %v795_v52, 16  ;;  %v910_v62 = vshll.u32 %v795_v52, 16  ;;  %v916_v63 = vshll.u32 %v796_v59, 16  ;;  %v803_v1 = vld [vmem:[#allocation2 + $0x50] sm:$0x1]  ;;  %s5720_s30 = scalar_lea.vmem %s5969_s6, %s4037_s22 }
  0x2f   : > { %v823_v3 = vsel %vm4735_vm11, %v818_v56, %v822_v28  ;;  %v961_v4 = vor.u32 %v960_v58, %v957_v57  ;;  %v920_v5 = vshrl.u32 %v796_v59, 16  ;;  %v970_v6 = vrot.slane %v968_v51, 4  ;;  %v797_v7 = vld [vmem:[#allocation2 + $0x38] sm:$0x1]  ;;  %675 = vst.msk [vmem:[#allocation2 + $0x1c] sm:$0xf] %vm478_vm6, %v536_v53 }
  0x30   : > { %1002 = vrot.lane.b32.xlu0 %v823_v3, %s4558_s28  ;;  %v909_v8 = vrot.slane %v907_v61, 4  ;;  %v912_v9 = vrot.slane %v910_v62, 5  ;;  %v918_v10 = vrot.slane %v916_v63, 5  ;;  %v974_v11 = vshll.u32 %v803_v1, 16  ;;  %v789_v12 = vld [vmem:[#allocation2 + $0x18] sm:$0xf] }
  0x31   : > { %v962_v13 = vrot.slane %v961_v4, 4  ;;  %v971_v14 = vor.u32 %v970_v6, %v966_v60  ;;  %v922_v15 = vrot.slane %v920_v5, 4  ;;  %v926_v16 = vshll.u32 %v797_v7, 16  ;;  %v439_v22 = vld [vmem:[#allocation2 + $0x44] sm:$0x1] }
  0x32   : > { %v913_v17 = vor.u32 %v912_v9, %v909_v8  ;;  %v859_v18 = vshrl.u32 %v789_v12, 16  ;;  %v862_v19 = vshll.u32 %v789_v12, 16  ;;  %v976_v27 = vrot.slane %v974_v11, 5  ;;  %v707_v29 = vld [vmem:[#allocation2 + $0x54] sm:$0xf] }
  0x33   : > { %v967_v24 = vsel %vm4735_vm11, %v962_v13, %v966_v60  ;;  %v972_v25 = vrot.slane %v971_v14, 4  ;;  %v923_v28 = vor.u32 %v922_v15, %v918_v10  ;;  %v4757_v30 = vld [vmem:[%s4693_s20 + $0x20] sm:$0xf]  ;;  %v612_v35 = vor.u32 %v610_v43, %v4744_v54  ;;  %v497_v36 = vld [vmem:[%s4693_s20 + $0x24] sm:$0xf] }
  0x34   : > { %v914_v31 = vrot.slane %v913_v17, 4  ;;  %v861_v32 = vrot.slane %v859_v18, 4  ;;  %v864_v34 = vrot.slane %v862_v19, 5  ;;  %v928_v38 = vrot.slane %v926_v16, 5  ;;  %v430_v41 = vld [vmem:[#allocation2 + $0x20] sm:$0x1] }
  0x35   : > { %v924_v37 = vrot.slane %v923_v28, 4  ;;  %v613_v21 = vrot.slane %v4744_v54, 4  ;;  %v4762_v39 = vrot.slane %v615_v44, 7  ;;  %v708_v43 = vsel %vm4681_vm8, %v612_v35, %v707_v29  ;;  %v433_v48 = vld [vmem:[#allocation2 + $0x2c] sm:$0x1] }
  0x36   : > { %1026 = vrot.lane.b32.xlu1 %v967_v24, %s4558_s28  ;;  %v919_v42 = vsel %vm4735_vm11, %v914_v31, %v918_v10  ;;  %v790_v45 = vld [vmem:[#allocation2 + $0x1c] sm:$0xf]  ;;  %v865_v46 = vor.u32 %v864_v34, %v861_v32  ;;  %v440_v47 = vsel %vm4635_vm4, 0, %v439_v22  ;;  %709 = vst [vmem:[#allocation2 + $0x54] sm:$0xf] %v708_v43  ;;  %v573_v53 = vshrl.u32 %v4757_v30, 16 }
  0x37   : > { %v868_v49 = vshll.u32 %v790_v45, 16  ;;  %v872_v50 = vshrl.u32 %v790_v45, 16  ;;  %v620_v44 = vor.u32 %v618_v20, %v4762_v39  ;;  %v4773_v51 = vld [vmem:[%s4693_s20 + $0x10] sm:$0xf]  ;;  %441 = vst [vmem:[#allocation2 + $0x44] sm:$0x1] %v440_v47  ;;  %v977_v56 = vsel %vm4735_vm11, %v972_v25, %v976_v27 }
  0x38   : > { %1018 = vrot.lane.b32.xlu0 %v919_v42, %s4558_s28  ;;  %v866_v52 = vrot.slane %v865_v46, 4  ;;  %v581_v54 = vshrl.u32 %v497_v36, 16  ;;  %v493_v55 = vld [vmem:[%s4693_s20 + $0x14] sm:$0xf]  ;;  %v584_v59 = vshll.u32 %v497_v36, 16  ;;  %v929_v63 = vsel %vm4735_vm11, %v924_v37, %v928_v38 }
  0x39   : > { %v4780_v57 = vrot.slane %v868_v49, 5  ;;  %v621_v58 = vsel %vm4673_vm7, %v613_v21, %v620_v44  ;;  %v401_v60 = vld [vmem:[#allocation2 + $0x24] sm:$0x1]  ;;  %v427_v61 = vld [vmem:[#allocation2 + $0x14] sm:$0x1]  ;;  %v4790_v1 = vrot.slane %v573_v53, 7 }
  0x3a   : > { %v4785_v62 = vld [vmem:[%s4693_s20] sm:$0xf]  ;;  %710 = vst.msk [vmem:[#allocation2 + $0x58] sm:$0xf] %vm478_vm6, %v621_v58  ;;  %v583_v3 = vrot.slane %v581_v54, 7  ;;  %v431_v4 = vsel %vm4635_vm4, 0, %v430_v41 }
  0x3b   : > { %v871_v5 = vsel %vm4735_vm11, %v866_v52, %v4780_v57  ;;  %v4797_v6 = vrot.slane %v872_v50, 4  ;;  %432 = vst [vmem:[#allocation2 + $0x20] sm:$0x1] %v431_v4  ;;  %v434_v7 = vsel %vm4635_vm4, 0, %v433_v48  ;;  %v539_v8 = vshrl.u32 %v4773_v51, 16 }
  0x3c   : > { %1010 = vrot.lane.b32.xlu2 %v871_v5, %s4558_s28  ;;  %v579_v9 = vrot.slane %v4790_v1, 4  ;;  %v586_v10 = vor.u32 %v584_v59, %v583_v3  ;;  %v588_v11 = vrot.slane %v583_v3, 4  ;;  %v537_v12 = vrot.slane %v4728_v33, 4  ;;  %435 = vst [vmem:[#allocation2 + $0x2c] sm:$0x1] %v434_v7 }
  0x3d   : > { %v541_v13 = vrot.slane %v539_v8, 7  ;;  %v542_v14 = vshll.u32 %v4773_v51, 16  ;;  %v547_v15 = vshrl.u32 %v493_v55, 16  ;;  %v550_v16 = vshll.u32 %v493_v55, 16  ;;  %v804_v17 = vld [vmem:[#allocation2 + $0x54] sm:$0xf] }
  0x3e   : > { %1028 = vrot.lane.b32.xlu1 %v977_v56, %s4558_s28  ;;  %v587_v18 = vsel %vm4673_vm7, %v579_v9, %v586_v10  ;;  %v402_v19 = vsel %vm4628_vm2, 0, %v401_v60  ;;  %v428_v20 = vsel %vm4635_vm4, 0, %v427_v61  ;;  %v489_v22 = vld [vmem:[%s4693_s20 + $0x4] sm:$0xf]  ;;  %v505_v33 = vshrl.u32 %v4785_v62, 16 }
  0x3f   : > { %v979_v24 = vshrl.u32 %v804_v17, 16  ;;  %v982_v25 = vshll.u32 %v804_v17, 16  ;;  %696 = vst.msk [vmem:[#allocation2 + $0x40] sm:$0xf] %vm478_vm6, %v587_v18  ;;  %v697_v27 = vld [vmem:[#allocation2 + $0x44] sm:$0x1]  ;;  %v544_v47 = vor.u32 %v542_v14, %v541_v13  ;;  %v875_v8 = vor.u32 %v4797_v6, %v4780_v57 }
  0x40   : > { %1020 = vrot.lane.b32.xlu0 %v929_v63, %s4558_s28  ;;  %v698_v28 = vsel %vm4628_vm2, %v588_v11, %v697_v27  ;;  %v545_v29 = vrot.slane %v541_v13, 4  ;;  %v549_v31 = vrot.slane %v547_v15, 7  ;;  %403 = vst [vmem:[#allocation2 + $0x24] sm:$0x1] %v402_v19  ;;  %v507_v32 = vrot.slane %v505_v33, 7 }
  0x41   : > { %v4819_v34 = vld [vmem:[#allocation2 + $0x58] sm:$0xf]  ;;  %v981_v35 = vrot.slane %v979_v24, 4  ;;  %v984_v36 = vrot.slane %v982_v25, 5  ;;  %699 = vst [vmem:[#allocation2 + $0x44] sm:$0x1] %v698_v28 }
  0x42   : > { %v988_v37 = vshll.u32 %v4819_v34, 16  ;;  %v676_v38 = vld [vmem:[#allocation2 + $0x20] sm:$0x1]  ;;  %v552_v21 = vor.u32 %v550_v16, %v549_v31  ;;  %v554_v41 = vrot.slane %v549_v31, 4  ;;  %v395_v42 = vld [vmem:[#allocation2 + $0xc] sm:$0x1] }
  0x43   : > { %v985_v45 = vor.u32 %v984_v36, %v981_v35  ;;  %v677_v46 = vsel %vm4628_vm2, %v537_v12, %v676_v38  ;;  %v683_v43 = vld [vmem:[#allocation2 + $0x2c] sm:$0x1]  ;;  %429 = vst [vmem:[#allocation2 + $0x14] sm:$0x1] %v428_v20  ;;  %v513_v48 = vshrl.u32 %v489_v22, 16  ;;  %v516_v51 = vshll.u32 %v489_v22, 16 }
  0x44   : > { %v4824_v49 = vrot.slane %v988_v37, 5  ;;  %678 = vst [vmem:[#allocation2 + $0x20] sm:$0x1] %v677_v46  ;;  %v553_v50 = vsel %vm4673_vm7, %v545_v29, %v552_v21  ;;  %v684_v44 = vsel %vm4628_vm2, %v554_v41, %v683_v43  ;;  %v407_v52 = vld [vmem:[#allocation2 + $0x3c] sm:$0x1]  ;;  %v511_v54 = vrot.slane %v507_v32, 4 }
  0x45   : > { %v986_v53 = vrot.slane %v985_v45, 4  ;;  %682 = vst.msk [vmem:[#allocation2 + $0x28] sm:$0xf] %vm478_vm6, %v553_v50  ;;  %v515_v55 = vrot.slane %v513_v48, 7  ;;  %v396_v56 = vsel %vm4628_vm2, 0, %v395_v42  ;;  %v576_v58 = vshll.u32 %v4757_v30, 16 }
  0x46   : > { %v799_v59 = vld [vmem:[#allocation2 + $0x40] sm:$0xf]  ;;  %685 = vst [vmem:[#allocation2 + $0x2c] sm:$0x1] %v684_v44  ;;  %v508_v60 = vshll.u32 %v4785_v62, 16  ;;  %v408_v62 = vsel %vm4628_vm2, 0, %v407_v52 }
  0x47   : > { %v991_v61 = vsel %vm4735_vm11, %v986_v53, %v4824_v49  ;;  %v940_v63 = vshll.u32 %v799_v59, 16  ;;  %v944_v3 = vshrl.u32 %v799_v59, 16  ;;  %v679_v4 = vld [vmem:[#allocation2 + $0x24] sm:$0xf]  ;;  %v518_v5 = vor.u32 %v516_v51, %v515_v55  ;;  %397 = vst [vmem:[#allocation2 + $0xc] sm:$0x1] %v396_v56 }
  0x48   : > { %1030 = vrot.lane.b32.xlu1 %v991_v61, %s4558_s28  ;;  %v800_v7 = vld [vmem:[#allocation2 + $0x44] sm:$0x1]  ;;  %v680_v30 = vsel %vm4681_vm8, %v544_v47, %v679_v4  ;;  %v520_v9 = vrot.slane %v515_v55, 4  ;;  %v510_v17 = vor.u32 %v508_v60, %v507_v32  ;;  %409 = vst [vmem:[#allocation2 + $0x3c] sm:$0x1] %v408_v62  ;;  %v876_v19 = vrot.slane %v875_v8, 4 }
  0x49   : > { %v4845_v10 = vrot.slane %v940_v63, 5  ;;  %v946_v11 = vrot.slane %v944_v3, 4  ;;  %v950_v12 = vshll.u32 %v800_v7, 16  ;;  %681 = vst [vmem:[#allocation2 + $0x24] sm:$0xf] %v680_v30  ;;  %v519_v13 = vsel %vm4673_vm7, %v511_v54, %v518_v5 }
  0x4a   : > { %668 = vst.msk [vmem:[#allocation2 + $0x10] sm:$0xf] %vm478_vm6, %v519_v13  ;;  %v669_v14 = vld [vmem:[#allocation2 + $0x14] sm:$0x1]  ;;  %v1752_v18 = vld [vmem:[#allocation2 + $0x1c] sm:$0xf]  ;;  %v578_v28 = vor.u32 %v576_v58, %v4790_v1 }
  0x4b   : > { %v947_v57 = vor.u32 %v946_v11, %v4845_v10  ;;  %v952_v6 = vrot.slane %v950_v12, 5  ;;  %v791_v15 = vld [vmem:[#allocation2 + $0x20] sm:$0x1]  ;;  %v670_v16 = vsel %vm4628_vm2, %v520_v9, %v669_v14  ;;  %vm1115_vm12 = vcmask 1042432   ;;  %v1751_v1 = vld [vmem:[#allocation2 + $0x18] sm:$0xf] }
  0x4c   : > { %v878_v20 = vshll.u32 %v791_v15, 16  ;;  %v793_v22 = vld [vmem:[#allocation2 + $0x28] sm:$0xf]  ;;  %671 = vst [vmem:[#allocation2 + $0x14] sm:$0x1] %v670_v16  ;;  %vm1116_vm13 = vcmask 1046532  }
  0x4d   : > { %v948_v33 = vrot.slane %v947_v57, 4  ;;  %v794_v24 = vld [vmem:[#allocation2 + $0x2c] sm:$0x1]  ;;  %v892_v25 = vshll.u32 %v793_v22, 16  ;;  %v896_v27 = vshrl.u32 %v793_v22, 16  ;;  %v1785_v42 = vshll.u32 %v1752_v18, 16  ;;  %vm4879_vm14 = vmor %vm1115_vm12, %vm1116_vm13 }
  0x4e   : > { %v880_v29 = vrot.slane %v878_v20, 5  ;;  %v902_v31 = vshll.u32 %v794_v24, 16  ;;  %v665_v35 = vld [vmem:[#allocation2 + $0xc] sm:$0xf]  ;;  %v1789_v45 = vshrl.u32 %v1752_v18, 16  ;;  %v1776_v5 = vshrl.u32 %v1751_v1, 16 }
  0x4f   : > { %v953_v32 = vsel %vm4735_vm11, %v948_v33, %v952_v6  ;;  %v894_v36 = vrot.slane %v892_v25, 5  ;;  %v898_v37 = vrot.slane %v896_v27, 4  ;;  %v666_v38 = vsel %vm4681_vm8, %v510_v17, %v665_v35  ;;  %v693_v52 = vld [vmem:[#allocation2 + $0x3c] sm:$0xf]  ;;  %v1753_v30 = vld [vmem:[#allocation2 + $0x20] sm:$0x1] }
  0x50   : > { %1024 = vrot.lane.b32.xlu0 %v953_v32, %s4558_s28  ;;  %v881_v21 = vsel %vm4735_vm11, %v876_v19, %v880_v29  ;;  %v792_v41 = vld [vmem:[#allocation2 + $0x24] sm:$0xf]  ;;  %667 = vst [vmem:[#allocation2 + $0xc] sm:$0xf] %v666_v38  ;;  %v904_v43 = vrot.slane %v902_v31, 5  ;;  %v694_v59 = vsel %vm4681_vm8, %v578_v28, %v693_v52  ;;  %v1779_v7 = vshll.u32 %v1751_v1, 16 }
  0x51   : > { %1012 = vrot.lane.b32.xlu2 %v881_v21, %s4558_s28  ;;  %v899_v46 = vor.u32 %v898_v37, %v894_v36  ;;  %v883_v47 = vshrl.u32 %v792_v41, 16  ;;  %v886_v48 = vshll.u32 %v792_v41, 16  ;;  %v787_v50 = vld [vmem:[#allocation2 + $0x10] sm:$0xf]  ;;  %v445_v53 = vld [vmem:[#allocation2 + $0x5c] sm:$0x1] }
  0x52   : > { %v844_v44 = vshll.u32 %v787_v50, 16  ;;  %v848_v51 = vshrl.u32 %v787_v50, 16  ;;  %v4862_v58 = vld [vmem:[#allocation2 + $0x10] sm:$0xf]  ;;  %695 = vst [vmem:[#allocation2 + $0x3c] sm:$0xf] %v694_v59 }
  0x53   : > { %v900_v54 = vrot.slane %v899_v46, 4  ;;  %v885_v55 = vrot.slane %v883_v47, 4  ;;  %v888_v56 = vrot.slane %v886_v48, 5  ;;  %v788_v60 = vld [vmem:[#allocation2 + $0x14] sm:$0x1]  ;;  %v4871_v8 = vrot.slane %v1785_v42, 5 }
  0x54   : > { %v4866_v61 = vrot.slane %v844_v44, 5  ;;  %v850_v63 = vrot.slane %v848_v51, 4  ;;  %v1791_v9 = vrot.slane %v1789_v45, 4  ;;  %v446_v62 = vsel %vm4635_vm4, 0, %v445_v53  ;;  %v1755_v46 = vld [vmem:[#allocation2 + $0x28] sm:$0xf] }
  0x55   : > { %v905_v3 = vsel %vm4735_vm11, %v900_v54, %v904_v43  ;;  %v889_v4 = vor.u32 %v888_v56, %v885_v55  ;;  %v854_v13 = vshll.u32 %v788_v60, 16  ;;  %v1600_v57 = vrot.slane %v4862_v58, 5  ;;  %447 = vst [vmem:[#allocation2 + $0x5c] sm:$0x1] %v446_v62  ;;  %v1553_v48 = vld [vmem:[#allocation2 + $0x18] sm:$0xe] }
  0x56   : > { %1016 = vrot.lane.b32.xlu1 %v905_v3, %s4558_s28  ;;  %v851_v12 = vor.u32 %v850_v63, %v4866_v61  ;;  %v1778_v17 = vrot.slane %v1776_v5, 4  ;;  %v1781_v18 = vrot.slane %v1779_v7, 5  ;;  %v1792_v19 = vor.u32 %v1791_v9, %v4871_v8  ;;  %v4901_v50 = vld [vmem:[#allocation2 + $0x1c] sm:$0xf]  ;;  %v1754_v52 = vld [vmem:[#allocation2 + $0x24] sm:$0xf] }
  0x57   : > { %v890_v11 = vrot.slane %v889_v4, 4  ;;  %v1550_v14 = vld [vmem:[#allocation2 + $0xc] sm:$0xe]  ;;  %v1795_v20 = vshll.u32 %v1753_v30, 16  ;;  %v856_v33 = vrot.slane %v854_v13, 5  ;;  %v622_v29 = vrot.slane %v4762_v39, 4 }
  0x58   : > { %v4046_v15 = vrot.slane %v1550_v14, 9  ;;  %v852_v22 = vrot.slane %v851_v12, 4  ;;  %v992_v31 = vshrl.u32 %v4819_v34, 16  ;;  %v1782_v35 = vor.u32 %v1781_v18, %v1778_v17  ;;  %v786_v45 = vld [vmem:[#allocation2 + $0xc] sm:$0xf] }
  0x59   : > { %v895_v16 = vsel %vm4735_vm11, %v890_v11, %v894_v36  ;;  %v798_v25 = vld [vmem:[#allocation2 + $0x3c] sm:$0xf]  ;;  %v1793_v37 = vrot.slane %v1792_v19, 4  ;;  %v1797_v38 = vrot.slane %v1795_v20, 5  ;;  %v835_v44 = vshrl.u32 %v786_v45, 16 }
  0x5a   : > { %1014 = vrot.lane.b32.xlu0 %v895_v16, %s4558_s28  ;;  %v1601_v24 = vsel %vm4879_vm14, %v4046_v15, %v1600_v57  ;;  %v931_v27 = vshrl.u32 %v798_v25, 16  ;;  %v934_v28 = vshll.u32 %v798_v25, 16  ;;  %v857_v21 = vsel %vm4735_vm11, %v852_v22, %v856_v33  ;;  %v1756_v62 = vld [vmem:[#allocation2 + $0x2c] sm:$0x1]  ;;  %v1207_v20 = vld [vmem:[#allocation2 + $0x10] sm:$0xf] }
  0x5b   : > { %v1783_v39 = vrot.slane %v1782_v35, 4  ;;  %v994_v34 = vrot.slane %v992_v31, 4  ;;  %v1798_v47 = vsel %vm4735_vm11, %v1793_v37, %v1797_v38  ;;  %v838_v51 = vshll.u32 %v786_v45, 16  ;;  %v1758_v25 = vld [vmem:[#allocation2 + $0x34] sm:$0xf] }
  0x5c   : > { %v933_v32 = vrot.slane %v931_v27, 4  ;;  %v936_v36 = vrot.slane %v934_v28, 5  ;;  %v711_v41 = vld [vmem:[#allocation2 + $0x5c] sm:$0x1]  ;;  %v1809_v53 = vshll.u32 %v1755_v46, 16  ;;  %v1813_v54 = vshrl.u32 %v1755_v46, 16 }
  0x5d   : > { %v712_v42 = vsel %vm4628_vm2, %v622_v29, %v711_v41  ;;  %v1788_v56 = vsel %vm4735_vm11, %v1783_v39, %v4871_v8  ;;  %v995_v59 = vor.u32 %v994_v34, %v4824_v49  ;;  %v4047_v60 = vrot.slane %v1553_v48, 9  ;;  %v1552_v28 = vld [vmem:[#allocation2 + $0x14] sm:$0x1]  ;;  %v4423_v29 = vld [vmem:[%s5966_s3 + $0x38] sm:$0xff] }
  0x5e   : > { %1654 = vrot.lane.b32.xlu1 %v1601_v24, %s4558_s28  ;;  %v937_v1 = vor.u32 %v936_v36, %v933_v32  ;;  %713 = vst [vmem:[#allocation2 + $0x5c] sm:$0x1] %v712_v42  ;;  %v1607_v63 = vrot.slane %v4901_v50, 5  ;;  %v1800_v3 = vshrl.u32 %v1754_v52, 16  ;;  %v1803_v4 = vshll.u32 %v1754_v52, 16  ;;  %2732 = vmatpush.bf16.msra.mxu0 %v4423_v29  ;;  %v4422_v48 = vld [vmem:[%s5966_s3 + $0x30] sm:$0xff] }
  0x5f   : > { %v837_v5 = vrot.slane %v835_v44, 4  ;;  %v840_v7 = vrot.slane %v838_v51, 5  ;;  %v1811_v30 = vrot.slane %v1809_v53, 5  ;;  %v1815_v9 = vrot.slane %v1813_v54, 4  ;;  %v1556_v32 = vld [vmem:[#allocation2 + $0x24] sm:$0xe]  ;;  %4452 = vmatpush.bf16.msra.mxu1 %v4423_v29  ;;  %4453 = vmatpush.bf16.msra.mxu2 %v4423_v29 }
  0x60   : > { %v938_v43 = vrot.slane %v937_v1, 4  ;;  %v996_v11 = vrot.slane %v995_v59, 4  ;;  %v1608_v49 = vsel %vm4879_vm14, %v4047_v60, %v1607_v63  ;;  %v1802_v8 = vrot.slane %v1800_v3, 4  ;;  %v1757_v36 = vld [vmem:[#allocation2 + $0x30] sm:$0xf]  ;;  %4454 = vmatpush.bf16.msra.mxu3 %v4423_v29  ;;  %v4421_v54 = vld [vmem:[%s5966_s3 + $0x28] sm:$0xff] }
  0x61   : > { %v1805_v13 = vrot.slane %v1803_v4, 5  ;;  %v841_v15 = vor.u32 %v840_v7, %v837_v5  ;;  %v1816_v16 = vor.u32 %v1815_v9, %v1811_v30  ;;  %v1819_v17 = vshll.u32 %v1756_v62, 16  ;;  %v1761_v3 = vld [vmem:[#allocation2 + $0x40] sm:$0xf]  ;;  %v1206_v4 = vld [vmem:[#allocation2 + $0xc] sm:$0xf] }
  0x62   : > { %1008 = vrot.lane.b32.xlu0 %v857_v21, %s4558_s28  ;;  %v943_v55 = vsel %vm4735_vm11, %v938_v43, %v4845_v10  ;;  %v1833_v37 = vshll.u32 %v1758_v25, 16  ;;  %v1837_v38 = vshrl.u32 %v1758_v25, 16  ;;  %v4931_v21 = vld [vmem:[#allocation2 + $0x28] sm:$0xf]  ;;  %v1602_v41 = vrot.slane %v1600_v57, 4  ;;  %2733 = vmatpush.bf16.msra.mxu0 %v4422_v48  ;;  %v4420_v9 = vld [vmem:[%s5966_s3 + $0x20] sm:$0xff] }
  0x63   : > { %1022 = vrot.lane.b32.xlu2 %v943_v55, %s4558_s28  ;;  %v1806_v19 = vor.u32 %v1805_v13, %v1802_v8  ;;  %v842_v22 = vrot.slane %v841_v15, 4  ;;  %v1817_v33 = vrot.slane %v1816_v16, 4  ;;  %v1821_v24 = vrot.slane %v1819_v17, 5  ;;  %4455 = vmatpush.bf16.msra.mxu1 %v4422_v48  ;;  %v1555_v5 = vld [vmem:[#allocation2 + $0x20] sm:$0x1]  ;;  %v4419_v13 = vld [vmem:[%s5966_s3 + $0x18] sm:$0xff] }
  0x64   : > { %v4048_v1 = vrot.slane %v1556_v32, 9  ;;  %v1824_v42 = vshrl.u32 %v1757_v36, 16  ;;  %v1827_v45 = vshll.u32 %v1757_v36, 16  ;;  %v1614_v39 = vrot.slane %v4931_v21, 5  ;;  %4456 = vmatpush.bf16.msra.mxu2 %v4422_v48  ;;  %4457 = vmatpush.bf16.msra.mxu3 %v4422_v48  ;;  %v4962_v8 = vld [vmem:[#allocation2 + $0x34] sm:$0xf] }
  0x65   : > { %v806_v10 = vld [vmem:[#allocation2 + $0x5c] sm:$0x1]  ;;  %v1807_v27 = vrot.slane %v1806_v19, 4  ;;  %v847_v31 = vsel %vm4735_vm11, %v842_v22, %v4866_v61  ;;  %v1822_v35 = vsel %vm4735_vm11, %v1817_v33, %v1821_v24  ;;  %v1603_v61 = vrot.slane %v1552_v28, 5  ;;  %v1762_v50 = vld [vmem:[#allocation2 + $0x44] sm:$0x1] }
  0x66   : > { %1969 = vrot.lane.b32.xlu1 %v1798_v47, %s4558_s28  ;;  %v998_v12 = vshll.u32 %v806_v10, 16  ;;  %v1835_v34 = vrot.slane %v1833_v37, 5  ;;  %v1839_v43 = vrot.slane %v1837_v38, 4  ;;  %v1759_v47 = vld [vmem:[#allocation2 + $0x38] sm:$0x1]  ;;  %v1826_v58 = vrot.slane %v1824_v42, 4  ;;  %2734 = vmatpush.bf16.msra.mxu0 %v4421_v54 }
  0x67   : > { %v1812_v46 = vsel %vm4735_vm11, %v1807_v27, %v1811_v30  ;;  %v1829_v57 = vrot.slane %v1827_v45, 5  ;;  %v1604_v44 = vsel %vm4879_vm14, %v1602_v41, %v1603_v61  ;;  %v1615_v51 = vsel %vm4879_vm14, %v4048_v1, %v1614_v39  ;;  %4458 = vmatpush.bf16.msra.mxu1 %v4421_v54  ;;  %v1559_v30 = vld [vmem:[#allocation2 + $0x30] sm:$0xe]  ;;  %v755_v10 = vld [vmem:[#allocation2 + $0x18] sm:$0xf]  ;;  %v4417_v37 = vld [vmem:[%s5966_s3 + $0x8] sm:$0xff] }
  0x68   : > { %v1000_v14 = vrot.slane %v998_v12, 5  ;;  %v1840_v52 = vor.u32 %v1839_v43, %v1835_v34  ;;  %v1843_v53 = vshll.u32 %v1759_v47, 16  ;;  %4459 = vmatpush.bf16.msra.mxu2 %v4421_v54  ;;  %4460 = vmatpush.bf16.msra.mxu3 %v4421_v54  ;;  %v1857_v12 = vshll.u32 %v1761_v3, 16  ;;  %771 = vst.msk [vmem:[#allocation3 + $0x50] sm:$0xf] %vm478_vm6, %v755_v10  ;;  %v4418_v25 = vld [vmem:[%s5966_s3 + $0x10] sm:$0xff] }
  0x69   : > { %v1830_v55 = vor.u32 %v1829_v57, %v1826_v58  ;;  %v1610_v16 = vrot.slane %v1555_v5, 5  ;;  %v4049_v17 = vrot.slane %v1559_v30, 9  ;;  %v1621_v19 = vrot.slane %v4962_v8, 5  ;;  %v752_v27 = vld [vmem:[#allocation2 + $0x4] sm:$0xf] }
  0x6a   : > { %1967 = vrot.lane.b32.xlu0 %v1788_v56, %s4558_s28  ;;  %v1001_v18 = vsel %vm4735_vm11, %v996_v11, %v1000_v14  ;;  %v1209_v56 = vld [vmem:[#allocation2 + $0x1c] sm:$0xf]  ;;  %v1841_v59 = vrot.slane %v1840_v52, 4  ;;  %v1845_v60 = vrot.slane %v1843_v53, 5  ;;  %2735 = vmatpush.bf16.msra.mxu0 %v4420_v9  ;;  %v1609_v14 = vrot.slane %v1607_v63, 4  ;;  %v4416_v52 = vld [vmem:[%s5966_s3] sm:$0xff] }
  0x6b   : > { %1032 = vrot.lane.b32.xlu2 %v1001_v18, %s4558_s28  ;;  %v1831_v7 = vrot.slane %v1830_v55, 4  ;;  %v1760_v11 = vld [vmem:[#allocation2 + $0x3c] sm:$0xf]  ;;  %4461 = vmatpush.bf16.msra.mxu1 %v4420_v9  ;;  %v4974_v22 = vrot.slane %v1857_v12, 5  ;;  %v751_v28 = vld [vmem:[#allocation2] sm:$0xf]  ;;  %v1622_v29 = vsel %vm4879_vm14, %v4049_v17, %v1621_v19 }
  0x6c   : > { %v1846_v62 = vsel %vm4735_vm11, %v1841_v59, %v1845_v60  ;;  %4462 = vmatpush.bf16.msra.mxu2 %v4420_v9  ;;  %4463 = vmatpush.bf16.msra.mxu3 %v4420_v9  ;;  %v1848_v18 = vshrl.u32 %v1760_v11, 16  ;;  %v1611_v63 = vsel %vm4879_vm14, %v1609_v14, %v1610_v16  ;;  %v1867_v32 = vshll.u32 %v1762_v50, 16  ;;  %768 = vst.msk [vmem:[#allocation3 + $0x14] sm:$0xf] %vm478_vm6, %v752_v27  ;;  %v756_v36 = vld [vmem:[#allocation2 + $0x1c] sm:$0xf] }
  0x6d   : > { %v1836_v15 = vsel %vm4735_vm11, %v1831_v7, %v1835_v34  ;;  %767 = vst.msk [vmem:[#allocation3] sm:$0xf] %vm478_vm6, %v751_v28  ;;  %v1763_v38 = vld [vmem:[#allocation2 + $0x48] sm:$0xf]  ;;  %v1764_v41 = vld [vmem:[#allocation2 + $0x4c] sm:$0xf] }
  0x6e   : > { %1658 = vrot.lane.b32.xlu1 %v1608_v49, %s4558_s28  ;;  %v1861_v49 = vshrl.u32 %v1761_v3, 16  ;;  %2736 = vmatpush.bf16.msra.mxu0 %v4419_v13  ;;  %v1850_v24 = vrot.slane %v1848_v18, 4  ;;  %772 = vst.msk [vmem:[#allocation3 + $0x64] sm:$0xf] %vm478_vm6, %v756_v36  ;;  %v1211_v61 = vld [vmem:[#allocation2 + $0x28] sm:$0xf] }
  0x6f   : > { %4464 = vmatpush.bf16.msra.mxu1 %v4419_v13  ;;  %v1869_v45 = vrot.slane %v1867_v32, 5  ;;  %v1558_v34 = vld [vmem:[#allocation2 + $0x2c] sm:$0x1]  ;;  %v1872_v43 = vshrl.u32 %v1763_v38, 16  ;;  %v1208_v58 = vld [vmem:[#allocation2 + $0x18] sm:$0xf] }
  0x70   : > { %v1863_v33 = vrot.slane %v1861_v49, 4  ;;  %4465 = vmatpush.bf16.msra.mxu2 %v4419_v13  ;;  %4466 = vmatpush.bf16.msra.mxu3 %v4419_v13  ;;  %v1562_v57 = vld [vmem:[#allocation2 + $0x3c] sm:$0xe]  ;;  %v1875_v48 = vshll.u32 %v1763_v38, 16  ;;  %v763_v53 = vld [vmem:[#allocation2 + $0x48] sm:$0xf] }
  0x71   : > { %v759_v54 = vld [vmem:[#allocation2 + $0x30] sm:$0xf]  ;;  %v1616_v59 = vrot.slane %v1614_v39, 4  ;;  %v5005_v60 = vld [vmem:[#allocation2 + $0x40] sm:$0xf]  ;;  %v1617_v3 = vrot.slane %v1558_v34, 5 }
  0x72   : > { %1240 = vrot.lane.b32.xlu0 %v1207_v20, %s4558_s28  ;;  %v1851_v20 = vshll.u32 %v1760_v11, 16  ;;  %2737 = vmatpush.bf16.msra.mxu0 %v4418_v25  ;;  %779 = vst.msk [vmem:[#allocation3 + $0xf0] sm:$0xf] %vm478_vm6, %v763_v53  ;;  %vm1050_vm15 = vcmask 1043968   ;;  %v1874_v5 = vrot.slane %v1872_v43, 4  ;;  %v1877_v7 = vrot.slane %v1875_v48, 5 }
  0x73   : > { %1006 = vrot.lane.b32.xlu2 %v847_v31, %s4558_s28  ;;  %4467 = vmatpush.bf16.msra.mxu1 %v4418_v25  ;;  %775 = vst.msk [vmem:[#allocation3 + $0xa0] sm:$0xf] %vm478_vm6, %v759_v54  ;;  %v502_v21 = vld [vmem:[%s4693_s20 + $0x38] sm:$0xf]  ;;  %v503_v9 = vld [vmem:[%s4693_s20 + $0x3c] sm:$0xf]  ;;  %v1618_v28 = vsel %vm4879_vm14, %v1616_v59, %v1617_v3 }
  0x74   : > { %v1853_v31 = vrot.slane %v1851_v20, 5  ;;  %4468 = vmatpush.bf16.msra.mxu2 %v4418_v25  ;;  %4469 = vmatpush.bf16.msra.mxu3 %v4418_v25  ;;  %v627_v11 = vshll.u32 %v502_v21, 16  ;;  %v632_v12 = vshrl.u32 %v503_v9, 16  ;;  %v1628_v13 = vrot.slane %v5005_v60, 5  ;;  %v1765_v14 = vld [vmem:[#allocation2 + $0x50] sm:$0x1] }
  0x75   : > { %v1878_v18 = vor.u32 %v1877_v7, %v1874_v5  ;;  %v1766_v20 = vld [vmem:[#allocation2 + $0x54] sm:$0xf]  ;;  %v1561_v34 = vld [vmem:[#allocation2 + $0x38] sm:$0x1]  ;;  %v1623_v43 = vrot.slane %v1621_v19, 4  ;;  %vm2707_vm0 = vcmask 523264  }
  0x76   : > { %1973 = vrot.lane.b32.xlu1 %v1822_v35, %s4558_s28  ;;  %v1864_v35 = vor.u32 %v1863_v33, %v4974_v22  ;;  %v1854_v1 = vor.u32 %v1853_v31, %v1850_v24  ;;  %2738 = vmatpush.bf16.msra.mxu0 %v4417_v37  ;;  %v5020_v17 = vrot.slane %v632_v12, 7  ;;  %v764_v24 = vld [vmem:[#allocation2 + $0x4c] sm:$0xf]  ;;  %v760_v25 = vld [vmem:[#allocation2 + $0x34] sm:$0xf]  ;;  %v1899_v32 = vshll.u32 %v1766_v20, 16 }
  0x77   : > { %4470 = vmatpush.bf16.msra.mxu1 %v4417_v37  ;;  %780 = vst.msk [vmem:[#allocation3 + $0x104] sm:$0xf] %vm478_vm6, %v764_v24  ;;  %v1213_v38 = vld [vmem:[#allocation2 + $0x34] sm:$0xf]  ;;  %v419_v53 = vld [vmem:[#allocation2 + $0x6c] sm:$0x1] }
  0x78   : > { %v1865_v42 = vrot.slane %v1864_v35, 4  ;;  %4471 = vmatpush.bf16.msra.mxu2 %v4417_v37  ;;  %4472 = vmatpush.bf16.msra.mxu3 %v4417_v37  ;;  %v1855_v55 = vrot.slane %v1854_v1, 4  ;;  %v1896_v35 = vshrl.u32 %v1766_v20, 16  ;;  %776 = vst.msk [vmem:[#allocation3 + $0xb4] sm:$0xf] %vm478_vm6, %v760_v25  ;;  %v1879_v1 = vrot.slane %v1878_v18, 4 }
  0x79   : > { %v448_v37 = vld [vmem:[#allocation2 + $0x68] sm:$0x1]  ;;  %v1901_v48 = vrot.slane %v1899_v32, 5  ;;  %v5054_v54 = vld [vmem:[%s5044_s13] sm:$0xf]  ;;  %v4447_v5 = vld [vmem:[%s5966_s3 + $0xf8] sm:$0xff] }
  0x7a   : > { %1971 = vrot.lane.b32.xlu0 %v1812_v46, %s4558_s28  ;;  %v416_v46 = vld [vmem:[#allocation2 + $0x60] sm:$0x1]  ;;  %2739 = vmatpush.bf16.msra.mxu0 %v4416_v52  ;;  %v1860_v49 = vsel %vm4735_vm11, %v1855_v55, %v4974_v22  ;;  %v1565_v19 = vld [vmem:[#allocation2 + $0x48] sm:$0xe]  ;;  %v765_v55 = vld [vmem:[#allocation2 + $0x54] sm:$0xf] }
  0x7b   : > { %1656 = vrot.lane.b32.xlu2 %v1604_v44, %s4558_s28  ;;  %v417_v47 = vsel %vm4628_vm2, 0, %v416_v46  ;;  %v1881_v44 = vshll.u32 %v1764_v41, 16  ;;  %4473 = vmatpush.bf16.msra.mxu1 %v4416_v52  ;;  %v761_v46 = vld [vmem:[#allocation2 + $0x3c] sm:$0xf]  ;;  %v5060_v3 = vld [vmem:[#allocation2 + $0x4c] sm:$0xf] }
  0x7c   : > { %418 = vst [vmem:[#allocation2 + $0x60] sm:$0x1] %v417_v47  ;;  %4474 = vmatpush.bf16.msra.mxu2 %v4416_v52  ;;  %4475 = vmatpush.bf16.msra.mxu3 %v4416_v52  ;;  %v449_v47 = vsel %vm4635_vm4, 0, %v448_v37  ;;  %v1210_v52 = vld [vmem:[#allocation2 + $0x24] sm:$0xf]  ;;  %v1624_v7 = vrot.slane %v1561_v34, 5 }
  0x7d   : > { %v5009_v30 = vrot.slane %v1881_v44, 5  ;;  %777 = vst.msk [vmem:[#allocation3 + $0xc8] sm:$0xf] %vm478_vm6, %v761_v46  ;;  %v1635_v18 = vrot.slane %v5060_v3, 5  ;;  %v5089_v24 = vld [vmem:[#allocation2 + $0x44] sm:$0x1] }
  0x7e   : > { %1662 = vrot.lane.b32.xlu1 %v1615_v51, %s4558_s28  ;;  %v1885_v51 = vshrl.u32 %v1764_v41, 16  ;;  %v1767_v41 = vld [vmem:[#allocation2 + $0x58] sm:$0xf]  ;;  %450 = vst [vmem:[#allocation2 + $0x68] sm:$0x1] %v449_v47  ;;  %v4438_v32 = vld [vmem:[%s5966_s3 + $0xb0] sm:$0xff] }
  0x7f   : > { %v1905_v44 = vshll.u32 %v1767_v41, 16  ;;  %781 = vst.msk [vmem:[#allocation3 + $0x118] sm:$0xf] %vm478_vm6, %v765_v55  ;;  %v1215_v47 = vld [vmem:[#allocation2 + $0x40] sm:$0xf]  ;;  %vm3137_vm1 = vcmask 517120  }
  0x80   : > { %v1887_v10 = vrot.slane %v1885_v51, 4  ;;  %v1909_v51 = vshrl.u32 %v1767_v41, 16  ;;  %2879 = vmatpush.bf16.msrb.mxu3 %v4447_v5  ;;  %vm3780_vm3 = vcmask 1042434   ;;  %vm3784_vm5 = vcmask 1044484  }
  0x81   : > { %vm3790_vm9 = vcmask 1047559  }
  0x82   : > { %1244 = vrot.lane.b32.xlu0 %v1209_v56, %s4558_s28  ;;  %v1870_v56 = vsel %vm4735_vm11, %v1865_v42, %v1869_v45  ;;  %v1888_v50 = vor.u32 %v1887_v10, %v5009_v30  ;;  %v1911_v10 = vrot.slane %v1909_v51, 4 }
  0x83   : > { %1238 = vrot.lane.b32.xlu2 %v1206_v4, %s4558_s28  ;;  %v4050_v4 = vrot.slane %v1562_v57, 9  ;;  %v714_v33 = vld [vmem:[#allocation2 + $0x60] sm:$0xf]  ;;  %v1898_v57 = vrot.slane %v1896_v35, 4 }
  0x84   : > { %v1889_v42 = vrot.slane %v1888_v50, 4  ;;  %v1625_v50 = vsel %vm4879_vm14, %v1623_v43, %v1624_v7  ;;  %v757_v43 = vld [vmem:[#allocation2 + $0x24] sm:$0xf]  ;;  %v1303_v7 = vld [vmem:[#allocation2 + $0x10] sm:$0xf] }
  0x85   : > { %v1902_v12 = vor.u32 %v1901_v48, %v1898_v57  ;;  %v718_v25 = vld [vmem:[#allocation2 + $0x68] sm:$0x1]  ;;  %v4431_v57 = vld [vmem:[%s5966_s3 + $0x78] sm:$0xff]  ;;  %773 = vst.msk [vmem:[#allocation3 + $0x78] sm:$0xf] %vm478_vm6, %v757_v43 }
  0x86   : > { %1977 = vrot.lane.b32.xlu1 %v1846_v62, %s4558_s28  ;;  %v624_v62 = vshrl.u32 %v502_v21, 16  ;;  %v1768_v21 = vld [vmem:[#allocation2 + $0x5c] sm:$0x1]  ;;  %v4437_v48 = vld [vmem:[%s5966_s3 + $0xa8] sm:$0xff]  ;;  %2781 = vmatpush.bf16.msrb.mxu1 %v4431_v57 }
  0x88   : > { %v626_v16 = vrot.slane %v624_v62, 7  ;;  %v639_v62 = vrot.slane %v5020_v17, 4 }
  0x8a   : > { %1975 = vrot.lane.b32.xlu0 %v1836_v15, %s4558_s28  ;;  %v635_v15 = vshll.u32 %v503_v9, 16  ;;  %v629_v22 = vor.u32 %v627_v11, %v626_v16  ;;  %v630_v31 = vrot.slane %v626_v16, 4  ;;  %v420_v9 = vsel %vm4628_vm2, 0, %v419_v53 }
  0x8b   : > { %1660 = vrot.lane.b32.xlu2 %v1611_v63, %s4558_s28  ;;  %v1891_v63 = vshll.u32 %v1765_v14, 16  ;;  %v724_v11 = vshrl.u32 %v5054_v54, 16  ;;  %421 = vst [vmem:[#allocation2 + $0x6c] sm:$0x1] %v420_v9  ;;  %v722_v14 = vld [vmem:[%s5044_s13 + $0x4] sm:$0xf]  ;;  %v719_v35 = vsel %vm4628_vm2, %v639_v62, %v718_v25 }
  0x8c   : > { %v637_v27 = vor.u32 %v635_v15, %v5020_v17  ;;  %v715_v36 = vsel %vm4681_vm8, %v629_v22, %v714_v33  ;;  %v1884_v15 = vsel %vm4735_vm11, %v1879_v1, %v5009_v30  ;;  %v4051_v16 = vrot.slane %v1565_v19, 9  ;;  %v5112_v1 = vld [vmem:[#allocation2 + $0x58] sm:$0xf]  ;;  %720 = vst [vmem:[#allocation2 + $0x68] sm:$0x1] %v719_v35 }
  0x8d   : > { %716 = vst [vmem:[#allocation2 + $0x60] sm:$0xf] %v715_v36  ;;  %v1893_v45 = vrot.slane %v1891_v63, 5  ;;  %v1915_v63 = vshll.u32 %v1768_v21, 16  ;;  %v732_v22 = vshrl.u32 %v722_v14, 16  ;;  %v4446_v36 = vld [vmem:[%s5966_s3 + $0xf0] sm:$0xff] }
  0x8e   : > { %1666 = vrot.lane.b32.xlu1 %v1622_v29, %s4558_s28  ;;  %v1629_v29 = vsel %vm4879_vm14, %v4050_v4, %v1628_v13  ;;  %v4439_v4 = vld [vmem:[%s5966_s3 + $0xb8] sm:$0xff]  ;;  %v5105_v37 = vrot.slane %v724_v11, 7  ;;  %v1636_v41 = vsel %vm4879_vm14, %v4051_v16, %v1635_v18  ;;  %v735_v46 = vshll.u32 %v722_v14, 16  ;;  %2880 = vmatpush.bf16.msrb.mxu3 %v4446_v36  ;;  %v1212_v9 = vld [vmem:[#allocation2 + $0x30] sm:$0xf] }
  0x8f   : > { %v1894_v59 = vsel %vm4735_vm11, %v1889_v42, %v1893_v45  ;;  %2830 = vmatpush.bf16.msrb.mxu2 %v4439_v4  ;;  %v758_v42 = vld [vmem:[#allocation2 + $0x28] sm:$0xf]  ;;  %v5114_v45 = vrot.slane %v732_v22, 7  ;;  %v5133_v53 = vrot.slane %v1628_v13, 4  ;;  %v1642_v5 = vrot.slane %v5112_v1, 5  ;;  %v4430_v14 = vld [vmem:[%s5966_s3 + $0x70] sm:$0xff] }
  0x90   : > { %774 = vst.msk [vmem:[#allocation3 + $0x8c] sm:$0xf] %vm478_vm6, %v758_v42  ;;  %v727_v21 = vshll.u32 %v5054_v54, 16  ;;  %v1302_v11 = vld [vmem:[#allocation2 + $0xc] sm:$0xf]  ;;  %v1340_v16 = vshrl.u32 %v1303_v7, 16  ;;  %2782 = vmatpush.bf16.msrb.mxu1 %v4430_v14 }
  0x91   : > { %v1330_v35 = vshll.u32 %v1302_v11, 16  ;;  %v4451_v36 = vld [vmem:[%s5966_s3 + $0x118] sm:$0xff] }
  0x92   : > { %1248 = vrot.lane.b32.xlu0 %v1211_v61, %s4558_s28  ;;  %v638_v61 = vsel %vm4673_vm7, %v630_v31, %v637_v27  ;;  %v5095_v31 = vld [vmem:[#allocation2 + $0x54] sm:$0xe]  ;;  %2932 = vmatpush.bf16.msrb.mxu0 %v4451_v36  ;;  %v1720_v14 = vld [vmem:[#allocation2 + $0x1c] sm:$0xf] }
  0x93   : > { %1242 = vrot.lane.b32.xlu2 %v1208_v58, %s4558_s28  ;;  %717 = vst.msk [vmem:[#allocation2 + $0x64] sm:$0xf] %vm478_vm6, %v638_v61  ;;  %2831 = vmatpush.bf16.msrb.mxu2 %v4438_v32  ;;  %v4052_v55 = vrot.slane %v5095_v31, 9  ;;  %v1332_v43 = vrot.slane %v1330_v35, 5 }
  0x94   : > { %v5084_v33 = vld [vmem:[#allocation2 + $0x60] sm:$0xf]  ;;  %1736 = vst.msk [vmem:[#allocation3 + $0x20] sm:$0xf] %vm478_vm6, %v1720_v14 }
  0x95   : > { %v1923_v60 = vshll.u32 %v5084_v33, 16  ;;  %v1571_v36 = vld [vmem:[#allocation2 + $0x60] sm:$0xe] }
  0x96   : > { %1981 = vrot.lane.b32.xlu1 %v1870_v56, %s4558_s28  ;;  %v1011_v39 = vpop.permute.xlu2 %1010  ;;  %v762_v56 = vld [vmem:[#allocation2 + $0x40] sm:$0xf] }
  0x97   : > { %1055 = vst.msk [vmem:[#allocation3 + $0x50] sm:$0xf] %vm1050_vm15, %v1011_v39  ;;  %v5071_v39 = vrot.slane %v1905_v44, 5  ;;  %v4445_v44 = vld [vmem:[%s5966_s3 + $0xe8] sm:$0xff]  ;;  %2832 = vmatpush.bf16.msrb.mxu2 %v4437_v48  ;;  %v5164_v22 = vrot.slane %v1923_v60, 5 }
  0x98   : > { %778 = vst.msk [vmem:[#allocation3 + $0xdc] sm:$0xf] %vm478_vm6, %v762_v56  ;;  %v730_v56 = vrot.slane %v5105_v37, 4  ;;  %2881 = vmatpush.bf16.msrb.mxu3 %v4445_v44  ;;  %v451_v48 = vld [vmem:[#allocation2 + $0x74] sm:$0x1] }
  0x9a   : > { %1979 = vrot.lane.b32.xlu0 %v1860_v49, %s4558_s28  ;;  %v766_v49 = vld [vmem:[#allocation2 + $0x58] sm:$0xf]  ;;  %v5117_v34 = vld [vmem:[#allocation2 + $0x64] sm:$0xf] }
  0x9b   : > { %1664 = vrot.lane.b32.xlu2 %v1618_v28, %s4558_s28  ;;  %782 = vst.msk [vmem:[#allocation3 + $0x12c] sm:$0xf] %vm478_vm6, %v766_v49  ;;  %v5092_v28 = vrot.slane %v1902_v12, 4  ;;  %v1929_v13 = vshll.u32 %v5117_v34, 16  ;;  %v1933_v62 = vshrl.u32 %v5117_v34, 16 }
  0x9c   : > { %v753_v49 = vld [vmem:[#allocation2 + $0xc] sm:$0xf] }
  0x9d   : > { %769 = vst.msk [vmem:[#allocation3 + $0x28] sm:$0xf] %vm478_vm6, %v753_v49  ;;  %v1908_v42 = vsel %vm4735_vm11, %v5092_v28, %v5071_v39  ;;  %v5189_v34 = vrot.slane %v1933_v62, 4 }
  0x9e   : > { %1670 = vrot.lane.b32.xlu1 %v1629_v29, %s4558_s28  ;;  %v1912_v29 = vor.u32 %v1911_v10, %v5071_v39  ;;  %v4104_v19 = vld [vmem:[#allocation3 + $0x50] sm:$0xf] }
  0xa0   : > { %v1005_v58 = vpop.permute.xlu1 %1004  ;;  %v1913_v51 = vrot.slane %v1912_v29, 4  ;;  %v5169_v29 = vld [vmem:[#allocation2 + $0x68] sm:$0x1] }
  0xa1   : > { %1052 = vst.msk [vmem:[#allocation3 + $0x14] sm:$0xf] %vm1050_vm15, %v1005_v58  ;;  %v1920_v58 = vshrl.u32 %v5084_v33, 16  ;;  %v4444_v33 = vld [vmem:[%s5966_s3 + $0xe0] sm:$0xff]  ;;  %v1939_v39 = vshll.u32 %v5169_v29, 16 }
  0xa2   : > { %1252 = vrot.lane.b32.xlu0 %v1213_v38, %s4558_s28  ;;  %v1003_v8 = vpop.permute.xlu0 %1002  ;;  %2882 = vmatpush.bf16.msrb.mxu3 %v4444_v33  ;;  %v1217_v33 = vld [vmem:[#allocation2 + $0x4c] sm:$0xf]  ;;  %v1214_v29 = vld [vmem:[#allocation2 + $0x3c] sm:$0xf] }
  0xa3   : > { %1051 = vst.msk [vmem:[#allocation3] sm:$0xf] %vm1050_vm15, %v1003_v8  ;;  %1246 = vrot.lane.b32.xlu2 %v1210_v52, %s4558_s28  ;;  %v1917_v52 = vrot.slane %v1915_v63, 5  ;;  %v1631_v8 = vrot.slane %v5089_v24, 5  ;;  %v5146_v10 = vrot.slane %v1920_v58, 4  ;;  %v1342_v58 = vrot.slane %v1340_v16, 4 }
  0xa4   : > { %v1643_v24 = vsel %vm4879_vm14, %v4052_v55, %v1642_v5 }
  0xa5   : > { %v1918_v25 = vsel %vm4735_vm11, %v1913_v51, %v1917_v52  ;;  %v452_v52 = vsel %vm4635_vm4, 0, %v451_v48  ;;  %v1926_v31 = vor.u32 %v5164_v22, %v5146_v10  ;;  %v1637_v48 = vrot.slane %v1635_v18, 4  ;;  %v4449_v18 = vld [vmem:[%s5966_s3 + $0x108] sm:$0xff] }
  0xa6   : > { %1985 = vrot.lane.b32.xlu1 %v1894_v59, %s4558_s28  ;;  %v737_v59 = vor.u32 %v735_v46, %v5114_v45  ;;  %453 = vst [vmem:[#allocation2 + $0x74] sm:$0x1] %v452_v52  ;;  %vm3782_vm4 = vcmask 1043459  }
  0xa8   : > { %v1027_v17 = vpop.permute.xlu1 %1026  ;;  %v4378_v20 = vld [vmem:[#allocation3 + $0x10] sm:$0xf0] }
  0xa9   : > { %1063 = vst.msk [vmem:[#allocation3 + $0xf0] sm:$0xf] %vm1050_vm15, %v1027_v17  ;;  %v1327_v17 = vshrl.u32 %v1302_v11, 16 }
  0xaa   : > { %1983 = vrot.lane.b32.xlu0 %v1884_v15, %s4558_s28  ;;  %v1019_v30 = vpop.permute.xlu0 %1018  ;;  %v4064_v27 = vld [vmem:[#allocation3] sm:$0xf]  ;;  %v1336_v15 = vshll.u32 %v1303_v7, 16 }
  0xab   : > { %v1013_v38 = vpop.permute.xlu2 %1012  ;;  %1059 = vst.msk [vmem:[#allocation3 + $0xa0] sm:$0xf] %vm1050_vm15, %v1019_v30  ;;  %v4065_v61 = vor.u32 %v4378_v20, %v4064_v27  ;;  %1668 = vrot.lane.b32.xlu2 %v1625_v50, %s4558_s28  ;;  %v4436_v20 = vld [vmem:[%s5966_s3 + $0xa0] sm:$0xff]  ;;  %v738_v50 = vsel %vm4673_vm7, %v730_v56, %v737_v59  ;;  %v5166_v30 = vrot.slane %v1929_v13, 5  ;;  %v754_v27 = vld [vmem:[#allocation2 + $0x10] sm:$0xf]  ;;  %v1632_v56 = vsel %vm4879_vm14, %v5133_v53, %v1631_v8 }
  0xac   : > { %1056 = vst.msk [vmem:[#allocation3 + $0x64] sm:$0xf] %vm1050_vm15, %v1013_v38  ;;  %2833 = vmatpush.bf16.msrb.mxu2 %v4436_v20  ;;  %v1329_v23 = vrot.slane %v1327_v17, 4  ;;  %v1338_v32 = vrot.slane %v1336_v15, 5  ;;  %v4429_v38 = vld [vmem:[%s5966_s3 + $0x68] sm:$0xff]  ;;  %v739_v8 = vrot.slane %v5114_v45, 4 }
  0xad   : > { %2740 = vmatmul.bf16.vlgmr.msra.gmra.mxu0 %v4065_v61  ;;  %770 = vst.msk [vmem:[#allocation3 + $0x3c] sm:$0xf] %vm478_vm6, %v754_v27  ;;  %v729_v61 = vor.u32 %v727_v21, %v5105_v37  ;;  %2783 = vmatpush.bf16.msrb.mxu1 %v4429_v38  ;;  %v744_v37 = vld [vmem:[#allocation2 + $0x6c] sm:$0xf]  ;;  %v4434_v21 = vld [vmem:[%s5966_s3 + $0x90] sm:$0xff]  ;;  %v1936_v55 = vor.u32 %v5189_v34, %v5166_v30  ;;  %v1941_v27 = vrot.slane %v1939_v39, 5 }
  0xae   : > { %1674 = vrot.lane.b32.xlu1 %v1636_v41, %s4558_s28  ;;  %v4435_v41 = vld [vmem:[%s5966_s3 + $0x98] sm:$0xff]  ;;  %747 = vst.msk [vmem:[#allocation2 + $0x70] sm:$0xf] %vm478_vm6, %v738_v50  ;;  %v1333_v28 = vor.u32 %v1332_v43, %v1329_v23  ;;  %v1343_v13 = vor.u32 %v1342_v58, %v1338_v32  ;;  %v4450_v17 = vld [vmem:[%s5966_s3 + $0x110] sm:$0xff]  ;;  %v4433_v50 = vld [vmem:[%s5966_s3 + $0x88] sm:$0xff]  ;;  %vm3786_vm7 = vcmask 1045509  }
  0xaf   : > { %v745_v60 = vsel %vm4681_vm8, %v729_v61, %v744_v37  ;;  %v1937_v22 = vrot.slane %v1936_v55, 4  ;;  %2933 = vmatpush.bf16.msrb.mxu0 %v4450_v17  ;;  %v1567_v23 = vld [vmem:[#allocation2 + $0x50] sm:$0x1]  ;;  %v748_v35 = vld [vmem:[#allocation2 + $0x74] sm:$0x1]  ;;  %v4440_v39 = vld [vmem:[%s5966_s3 + $0xc0] sm:$0xff] }
  0xb0   : > { %v1029_v4 = vpop.permute.xlu1 %1028  ;;  %v4184_v46 = vld [vmem:[#allocation3 + $0xf0] sm:$0xf]  ;;  %2834 = vmatpush.bf16.msrb.mxu2 %v4435_v41  ;;  %v1334_v26 = vrot.slane %v1333_v28, 4  ;;  %746 = vst [vmem:[#allocation2 + $0x6c] sm:$0xf] %v745_v60  ;;  %v1344_v62 = vrot.slane %v1343_v13, 4  ;;  %v749_v41 = vsel %vm4628_vm2, %v739_v8, %v748_v35 }
  0xb1   : > { %1064 = vst.msk [vmem:[#allocation3 + $0x104] sm:$0xf] %vm1050_vm15, %v1029_v4  ;;  %2784 = vmatpush.bf16.msrb.mxu1 %v4428_v2  ;;  %v1942_v58 = vsel %vm4735_vm11, %v1937_v22, %v1941_v27  ;;  %v1069_v28 = vld [vmem:[#allocation2 + $0x8] sm:$0x1]  ;;  %v1306_v2 = vld [vmem:[#allocation2 + $0x1c] sm:$0xf] }
  0xb2   : > { %1256 = vrot.lane.b32.xlu0 %v1215_v47, %s4558_s28  ;;  %v1021_v12 = vpop.permute.xlu0 %1020  ;;  %v4443_v47 = vld [vmem:[%s5966_s3 + $0xd8] sm:$0xff]  ;;  %v1339_v45 = vsel %vm4735_vm11, %v1334_v26, %v1338_v32  ;;  %750 = vst [vmem:[#allocation2 + $0x74] sm:$0x1] %v749_v41  ;;  %v1123_v3 = vrot.slane %v1069_v28, 5  ;;  %v1360_v55 = vshll.u32 %v1306_v2, 16  ;;  %v4424_v27 = vld [vmem:[%s5966_s3 + $0x40] sm:$0xff] }
  0xb3   : > { %v4388_v54 = vld [vmem:[#allocation3 + $0x60] sm:$0xf0]  ;;  %1060 = vst.msk [vmem:[#allocation3 + $0xb4] sm:$0xf] %vm1050_vm15, %v1021_v12  ;;  %1250 = vrot.lane.b32.xlu2 %v1212_v9, %s4558_s28  ;;  %v4144_v44 = vld [vmem:[#allocation3 + $0xa0] sm:$0xf]  ;;  %2883 = vmatpush.bf16.msrb.mxu3 %v4443_v47 }
  0xb4   : > { %v4105_v63 = vor.u32 %v4388_v54, %v4104_v19  ;;  %v1304_v19 = vld [vmem:[#allocation2 + $0x14] sm:$0x1]  ;;  %v1719_v12 = vld [vmem:[#allocation2 + $0x18] sm:$0xf]  ;;  %1534 = vst.msk [vmem:[#allocation3 + $0x8] sm:$0xf] %vm478_vm6, %v1339_v45  ;;  %2835 = vmatpush.bf16.msrb.mxu2 %v4434_v21  ;;  %2934 = vmatpush.bf16.msrb.mxu0 %v4449_v18 }
  0xb5   : > { %v1346_v7 = vshll.u32 %v1304_v19, 16  ;;  %v4442_v9 = vld [vmem:[%s5966_s3 + $0xd0] sm:$0xff]  ;;  %1735 = vst.msk [vmem:[#allocation3 + $0xc] sm:$0xf] %vm478_vm6, %v1719_v12  ;;  %v4427_v54 = vld [vmem:[%s5966_s3 + $0x58] sm:$0xff]  ;;  %v1638_v19 = vrot.slane %v1567_v23, 5 }
  0xb6   : > { %2750 = vmatmul.bf16.vlgmr.msra.gmra.mxu1 %v4105_v63  ;;  %1989 = vrot.lane.b32.xlu1 %v1918_v25, %s4558_s28  ;;  %v1773_v49 = vld [vmem:[#allocation2 + $0x70] sm:$0xf]  ;;  %v4441_v63 = vld [vmem:[%s5966_s3 + $0xc8] sm:$0xff]  ;;  %v5248_v25 = vrot.slane %v1926_v31, 4  ;;  %v1219_v23 = vld [vmem:[#allocation2 + $0x58] sm:$0xf] }
  0xb7   : > { %v1348_v11 = vrot.slane %v1346_v7, 5  ;;  %2884 = vmatpush.bf16.msrb.mxu3 %v4442_v9  ;;  %v1953_v10 = vshll.u32 %v1773_v49, 16  ;;  %v1957_v15 = vshrl.u32 %v1773_v49, 16  ;;  %2785 = vmatpush.bf16.msrb.mxu1 %v4427_v54  ;;  %v1772_v34 = vld [vmem:[#allocation2 + $0x6c] sm:$0xf]  ;;  %v1639_v12 = vsel %vm4879_vm14, %v1637_v48, %v1638_v19 }
  0xb8   : > { %v4408_v57 = vld [vmem:[#allocation3 + $0x100] sm:$0xf0]  ;;  %2836 = vmatpush.bf16.msrb.mxu2 %v4433_v50  ;;  %v1944_v37 = vshrl.u32 %v1772_v34, 16  ;;  %v1305_v7 = vld [vmem:[#allocation2 + $0x18] sm:$0xf]  ;;  %v4425_v31 = vld [vmem:[%s5966_s3 + $0x48] sm:$0xff] }
  0xb9   : > { %v4185_v51 = vor.u32 %v4408_v57, %v4184_v46  ;;  %v1349_v16 = vsel %vm4735_vm11, %v1344_v62, %v1348_v11  ;;  %v5252_v38 = vrot.slane %v1953_v10, 5  ;;  %v5256_v61 = vrot.slane %v1957_v15, 4  ;;  %v1068_v46 = vld [vmem:[#allocation2 + $0x4] sm:$0xf]  ;;  %v1307_v11 = vld [vmem:[#allocation2 + $0x20] sm:$0x1] }
  0xba   : > { %1987 = vrot.lane.b32.xlu0 %v1908_v42, %s4558_s28  ;;  %v1031_v59 = vpop.permute.xlu1 %1030  ;;  %v4398_v4 = vld [vmem:[#allocation3 + $0xb0] sm:$0xf0]  ;;  %1535 = vst.msk [vmem:[#allocation3 + $0x1c] sm:$0xf] %vm478_vm6, %v1349_v16  ;;  %v1067_v42 = vld [vmem:[#allocation2] sm:$0xe] }
  0xbb   : > { %1065 = vst.msk [vmem:[#allocation3 + $0x118] sm:$0xf] %vm1050_vm15, %v1031_v59  ;;  %v4145_v53 = vor.u32 %v4398_v4, %v4144_v44  ;;  %2770 = vmatmul.bf16.vlgmr.msra.gmra.mxu3 %v4185_v51  ;;  %1672 = vrot.lane.b32.xlu2 %v1632_v56, %s4558_s28  ;;  %v4038_v43 = vrot.slane %v1067_v42, 9  ;;  %v1120_v47 = vrot.slane %v1068_v46, 5  ;;  %v5261_v57 = vld [vmem:[#allocation2 + $0x64] sm:$0xf]  ;;  %v1932_v59 = vsel %vm4735_vm11, %v5248_v25, %v5166_v30 }
  0xbc   : > { %2885 = vmatpush.bf16.msrb.mxu3 %v4441_v63  ;;  %v4432_v51 = vld [vmem:[%s5966_s3 + $0x80] sm:$0xff]  ;;  %v1947_v56 = vshll.u32 %v1772_v34, 16  ;;  %2786 = vmatpush.bf16.msrb.mxu1 %v4426_v0  ;;  %v4053_v4 = vrot.slane %v1571_v36, 9  ;;  %v1649_v60 = vrot.slane %v5261_v57, 5  ;;  %v1960_v13 = vor.u32 %v5256_v61, %v5252_v38  ;;  %v1774_v16 = vld [vmem:[#allocation2 + $0x74] sm:$0x1] }
  0xbd   : > { %2760 = vmatmul.bf16.vlgmr.msra.gmra.mxu2 %v4145_v53  ;;  %v1023_v20 = vpop.permute.xlu2 %1022  ;;  %v1121_v44 = vsel %vm4879_vm14, %v4038_v43, %v1120_v47  ;;  %v1122_v52 = vrot.slane %v1120_v47, 4  ;;  %v5289_v8 = vrot.slane %v1944_v37, 4  ;;  %v1351_v21 = vshrl.u32 %v1305_v7, 16  ;;  %v1722_v36 = vld [vmem:[#allocation2 + $0x28] sm:$0xf] }
  0xbe   : > { %1678 = vrot.lane.b32.xlu1 %v1643_v24, %s4558_s28  ;;  %1061 = vst.msk [vmem:[#allocation3 + $0xc8] sm:$0xf] %vm1050_vm15, %v1023_v20  ;;  %2837 = vmatpush.bf16.msrb.mxu2 %v4432_v51  ;;  %v1354_v9 = vshll.u32 %v1305_v7, 16  ;;  %v1364_v62 = vshrl.u32 %v1306_v2, 16  ;;  %v1949_v49 = vrot.slane %v1947_v56, 5  ;;  %v1650_v10 = vsel %vm4879_vm14, %v4053_v4, %v1649_v60 }
  0xbf   : > { %1190 = vst.msk [vmem:[#allocation3 + $0x4] sm:$0xf] %vm478_vm6, %v1121_v44  ;;  %v1124_v30 = vsel %vm4879_vm14, %v1122_v52, %v1123_v3  ;;  %v1353_v14 = vrot.slane %v1351_v21, 4  ;;  %v1362_v54 = vrot.slane %v1360_v55, 5  ;;  %v5306_v50 = vrot.slane %v1960_v13, 4 }
  0xc0   : > { %2886 = vmatpush.bf16.msrb.mxu3 %v4440_v39  ;;  %2787 = vmatpush.bf16.msrb.mxu1 %v4425_v31  ;;  %1191 = vst.msk [vmem:[#allocation3 + $0x18] sm:$0xf] %vm478_vm6, %v1124_v30  ;;  %v1356_v17 = vrot.slane %v1354_v9, 5  ;;  %v1963_v63 = vshll.u32 %v1774_v16, 16  ;;  %v1366_v25 = vrot.slane %v1364_v62, 4  ;;  %v1370_v22 = vshll.u32 %v1307_v11, 16 }
  0xc1   : > { %v2031_v46 = vld [vmem:[#allocation2 + $0x18] sm:$0xe]  ;;  %v1950_v34 = vor.u32 %v1949_v49, %v5289_v8  ;;  %1738 = vst.msk [vmem:[#allocation3 + $0x48] sm:$0xf] %vm478_vm6, %v1722_v36  ;;  %v2032_v47 = vld [vmem:[#allocation2 + $0x1c] sm:$0xf] }
  0xc2   : > { %1260 = vrot.lane.b32.xlu0 %v1217_v33, %s4558_s28  ;;  %v1025_v32 = vpop.permute.xlu0 %1024  ;;  %v4204_v33 = vld [vmem:[#allocation3 + $0x118] sm:$0xf]  ;;  %v1357_v35 = vor.u32 %v1356_v17, %v1353_v14  ;;  %v1965_v41 = vrot.slane %v1963_v63, 5  ;;  %v1367_v61 = vor.u32 %v1366_v25, %v1362_v54  ;;  %v1372_v42 = vrot.slane %v1370_v22, 5  ;;  %v2033_v51 = vld [vmem:[#allocation2 + $0x20] sm:$0x1] }
  0xc3   : > { %1062 = vst.msk [vmem:[#allocation3 + $0xdc] sm:$0xf] %vm1050_vm15, %v1025_v32  ;;  %1254 = vrot.lane.b32.xlu2 %v1214_v29, %s4558_s28  ;;  %v4448_v29 = vld [vmem:[%s5966_s3 + $0x100] sm:$0xff]  ;;  %v2081_v39 = vrot.slane %v2032_v47, 5  ;;  %v1216_v52 = vld [vmem:[#allocation2 + $0x48] sm:$0xf] }
  0xc4   : > { %v1721_v32 = vld [vmem:[#allocation2 + $0x24] sm:$0xf]  ;;  %2788 = vmatpush.bf16.msrb.mxu1 %v4424_v27  ;;  %v1358_v43 = vrot.slane %v1357_v35, 4  ;;  %2935 = vmatpush.bf16.msrb.mxu0 %v4448_v29  ;;  %v1368_v44 = vrot.slane %v1367_v61, 4  ;;  %v1570_v19 = vld [vmem:[#allocation2 + $0x5c] sm:$0x1]  ;;  %v1966_v8 = vsel %vm4735_vm11, %v5306_v50, %v1965_v41 }
  0xc5   : > { %v1033_v24 = vpop.permute.xlu2 %1032  ;;  %v4164_v26 = vld [vmem:[#allocation3 + $0xc8] sm:$0xf]  ;;  %1737 = vst.msk [vmem:[#allocation3 + $0x34] sm:$0xf] %vm478_vm6, %v1721_v32  ;;  %v2084_v3 = vrot.slane %v2033_v51, 5  ;;  %v2083_v4 = vrot.slane %v2081_v39, 4 }
  0xc6   : > { %1993 = vrot.lane.b32.xlu1 %v1942_v58, %s4558_s28  ;;  %1066 = vst.msk [vmem:[#allocation3 + $0x12c] sm:$0xf] %vm1050_vm15, %v1033_v24  ;;  %v4054_v58 = vrot.slane %v2031_v46, 9  ;;  %v1363_v56 = vsel %vm4735_vm11, %v1358_v43, %v1362_v54  ;;  %v1951_v13 = vrot.slane %v1950_v34, 4  ;;  %v1644_v7 = vrot.slane %v1642_v5, 4 }
  0xc7   : > { %1536 = vst.msk [vmem:[#allocation3 + $0x30] sm:$0xf] %vm478_vm6, %v1363_v56  ;;  %v1070_v24 = vld [vmem:[#allocation2 + $0xc] sm:$0xe]  ;;  %v2085_v30 = vsel %vm4879_vm14, %v2083_v4, %v2084_v3  ;;  %v1071_v21 = vld [vmem:[#allocation2 + $0x10] sm:$0xf] }
  0xc8   : > { %v1017_v53 = vpop.permute.xlu1 %1016  ;;  %v2082_v2 = vsel %vm4879_vm14, %v4054_v58, %v2081_v39  ;;  %v4039_v5 = vrot.slane %v1070_v24, 9  ;;  %v1127_v9 = vrot.slane %v1071_v21, 5  ;;  %v1072_v31 = vld [vmem:[#allocation2 + $0x14] sm:$0x1]  ;;  %v1645_v55 = vrot.slane %v1570_v19, 5 }
  0xc9   : > { %1058 = vst.msk [vmem:[#allocation3 + $0x8c] sm:$0xf] %vm1050_vm15, %v1017_v53  ;;  %v1130_v62 = vrot.slane %v1072_v31, 5  ;;  %v1308_v11 = vld [vmem:[#allocation2 + $0x24] sm:$0xf]  ;;  %vm3778_vm2 = vcmask 1041409  }
  0xca   : > { %1991 = vrot.lane.b32.xlu0 %v1932_v59, %s4558_s28  ;;  %v4403_v45 = vld [vmem:[#allocation3 + $0xd8] sm:$0xf0]  ;;  %v1373_v59 = vsel %vm4735_vm11, %v1368_v44, %v1372_v42  ;;  %2151 = vst.msk [vmem:[#allocation3 + $0x10] sm:$0xf] %vm478_vm6, %v2082_v2  ;;  %v1129_v49 = vrot.slane %v1127_v9, 4  ;;  %v1378_v17 = vshll.u32 %v1308_v11, 16  ;;  %v1646_v22 = vsel %vm4879_vm14, %v1644_v7, %v1645_v55 }
  0xcb   : > { %v4165_v15 = vor.u32 %v4403_v45, %v4164_v26  ;;  %1676 = vrot.lane.b32.xlu2 %v1639_v12, %s4558_s28  ;;  %1537 = vst.msk [vmem:[#allocation3 + $0x44] sm:$0xf] %vm478_vm6, %v1373_v59  ;;  %v1956_v12 = vsel %vm4735_vm11, %v1951_v13, %v5252_v38  ;;  %v1128_v45 = vsel %vm4879_vm14, %v4039_v5, %v1127_v9  ;;  %v1309_v14 = vld [vmem:[#allocation2 + $0x28] sm:$0xf]  ;;  %v1310_v27 = vld [vmem:[#allocation2 + $0x2c] sm:$0x1] }
  0xcc   : > { %v1015_v20 = vpop.permute.xlu0 %1014  ;;  %2152 = vst.msk [vmem:[#allocation3 + $0x24] sm:$0xf] %vm478_vm6, %v2085_v30  ;;  %v1384_v54 = vshll.u32 %v1309_v14, 16  ;;  %v1131_v38 = vsel %vm4879_vm14, %v1129_v49, %v1130_v62  ;;  %v1380_v63 = vrot.slane %v1378_v17, 5  ;;  %v1394_v36 = vshll.u32 %v1310_v27, 16 }
  0xcd   : > { %1057 = vst.msk [vmem:[#allocation3 + $0x78] sm:$0xf] %vm1050_vm15, %v1015_v20  ;;  %2765 = vmatmul.bf16.gmra.mxu2 %v4165_v15  ;;  %v1007_v37 = vpop.permute.xlu2 %1006  ;;  %v4413_v48 = vld [vmem:[#allocation3 + $0x128] sm:$0xf0]  ;;  %v1723_v41 = vld [vmem:[#allocation2 + $0x30] sm:$0xf] }
  0xce   : > { %1682 = vrot.lane.b32.xlu1 %v1650_v10, %s4558_s28  ;;  %1053 = vst.msk [vmem:[#allocation3 + $0x28] sm:$0xf] %vm1050_vm15, %v1007_v37  ;;  %v4205_v28 = vor.u32 %v4413_v48, %v4204_v33  ;;  %v1375_v10 = vshrl.u32 %v1308_v11, 16  ;;  %v1388_v33 = vshrl.u32 %v1309_v14, 16  ;;  %v1386_v25 = vrot.slane %v1384_v54, 5 }
  0xcf   : > { %1192 = vst.msk [vmem:[#allocation3 + $0x2c] sm:$0xf] %vm478_vm6, %v1128_v45  ;;  %v1221_v42 = vld [vmem:[#allocation2 + $0x64] sm:$0xf]  ;;  %v1724_v34 = vld [vmem:[#allocation2 + $0x34] sm:$0xf] }
  0xd0   : > { %v1655_v0 = vpop.permute.xlu1 %1654  ;;  %v4393_v18 = vld [vmem:[#allocation3 + $0x88] sm:$0xf0]  ;;  %2775 = vmatmul.bf16.gmra.mxu3 %v4205_v28  ;;  %v1377_v20 = vrot.slane %v1375_v10, 4  ;;  %1193 = vst.msk [vmem:[#allocation3 + $0x40] sm:$0xf] %vm478_vm6, %v1131_v38  ;;  %v1390_v29 = vrot.slane %v1388_v33, 4 }
  0xd1   : > { %1702 = vst.msk [vmem:[#allocation3 + $0x8] sm:$0xf] %vm1050_vm15, %v1655_v0  ;;  %v1396_v58 = vrot.slane %v1394_v36, 5  ;;  %v5360_v37 = vld [vmem:[#allocation2 + $0x68] sm:$0x1]  ;;  %v1651_v7 = vrot.slane %v1649_v60, 4 }
  0xd2   : > { %1264 = vrot.lane.b32.xlu0 %v1219_v23, %s4558_s28  ;;  %v1381_v32 = vor.u32 %v1380_v63, %v1377_v20  ;;  %v1391_v46 = vor.u32 %v1390_v29, %v1386_v25  ;;  %1739 = vst.msk [vmem:[#allocation3 + $0x5c] sm:$0xf] %vm478_vm6, %v1723_v41  ;;  %v2034_v48 = vld [vmem:[#allocation2 + $0x24] sm:$0xe]  ;;  %v2036_v19 = vld [vmem:[#allocation2 + $0x2c] sm:$0x1] }
  0xd3   : > { %1258 = vrot.lane.b32.xlu2 %v1216_v52, %s4558_s28  ;;  %1740 = vst.msk [vmem:[#allocation3 + $0x70] sm:$0xf] %vm478_vm6, %v1724_v34  ;;  %v2035_v52 = vld [vmem:[#allocation2 + $0x28] sm:$0xf]  ;;  %v4055_v4 = vrot.slane %v2034_v48, 9  ;;  %v2091_v2 = vrot.slane %v2036_v19, 5 }
  0xd4   : > { %v1009_v53 = vpop.permute.xlu0 %1008  ;;  %v4124_v26 = vld [vmem:[#allocation3 + $0x78] sm:$0xf]  ;;  %v1382_v47 = vrot.slane %v1381_v32, 4  ;;  %v1392_v0 = vrot.slane %v1391_v46, 4  ;;  %v2088_v13 = vrot.slane %v2035_v52, 5  ;;  %v1652_v5 = vrot.slane %v5360_v37, 5 }
  0xd5   : > { %1054 = vst.msk [vmem:[#allocation3 + $0x3c] sm:$0xf] %vm1050_vm15, %v1009_v53  ;;  %v4125_v1 = vor.u32 %v4393_v18, %v4124_v26  ;;  %v1657_v15 = vpop.permute.xlu2 %1656  ;;  %v4084_v50 = vld [vmem:[#allocation3 + $0x28] sm:$0xf]  ;;  %v1218_v18 = vld [vmem:[#allocation2 + $0x54] sm:$0xf] }
  0xd6   : > { %1997 = vrot.lane.b32.xlu1 %v1966_v8, %s4558_s28  ;;  %1703 = vst.msk [vmem:[#allocation3 + $0x1c] sm:$0xf] %vm1050_vm15, %v1657_v15  ;;  %v1387_v28 = vsel %vm4735_vm11, %v1382_v47, %v1386_v25  ;;  %v1397_v59 = vsel %vm4735_vm11, %v1392_v0, %v1396_v58  ;;  %v1073_v24 = vld [vmem:[#allocation2 + $0x18] sm:$0xe]  ;;  %v2089_v53 = vsel %vm4879_vm14, %v4055_v4, %v2088_v13  ;;  %v2090_v26 = vrot.slane %v2088_v13, 4 }
  0xd7   : > { %2755 = vmatmul.bf16.gmra.mxu1 %v4125_v1  ;;  %1538 = vst.msk [vmem:[#allocation3 + $0x58] sm:$0xf] %vm478_vm6, %v1387_v28  ;;  %v1074_v8 = vld [vmem:[#allocation2 + $0x1c] sm:$0xf]  ;;  %v4040_v30 = vrot.slane %v1073_v24, 9  ;;  %vm3788_vm8 = vcmask 1046534  }
  0xd8   : > { %v1970_v16 = vpop.permute.xlu1 %1969  ;;  %v4072_v43 = vld [vmem:[#allocation3 + $0x8] sm:$0xf]  ;;  %1539 = vst.msk [vmem:[#allocation3 + $0x6c] sm:$0xf] %vm478_vm6, %v1397_v59  ;;  %v1134_v9 = vrot.slane %v1074_v8, 5  ;;  %v2092_v60 = vsel %vm4879_vm14, %v2090_v26, %v2091_v2 }
  0xd9   : > { %2016 = vst.msk [vmem:[#allocation3 + $0x20] sm:$0xf] %vm1050_vm15, %v1970_v16  ;;  %v1075_v31 = vld [vmem:[#allocation2 + $0x20] sm:$0x1]  ;;  %v1311_v55 = vld [vmem:[#allocation2 + $0x30] sm:$0xf] }
  0xda   : > { %1995 = vrot.lane.b32.xlu0 %v1956_v12, %s4558_s28  ;;  %v4080_v62 = vld [vmem:[#allocation3 + $0x10] sm:$0xf]  ;;  %2153 = vst.msk [vmem:[#allocation3 + $0x38] sm:$0xf] %vm478_vm6, %v2089_v53  ;;  %v1135_v11 = vsel %vm4879_vm14, %v4040_v30, %v1134_v9  ;;  %v1136_v12 = vrot.slane %v1134_v9, 4  ;;  %v1137_v45 = vrot.slane %v1075_v31, 5 }
  0xdb   : > { %1680 = vrot.lane.b32.xlu2 %v1646_v22, %s4558_s28  ;;  %v1312_v49 = vld [vmem:[#allocation2 + $0x34] sm:$0xf]  ;;  %2154 = vst.msk [vmem:[#allocation3 + $0x4c] sm:$0xf] %vm478_vm6, %v2092_v60  ;;  %v1399_v14 = vshrl.u32 %v1311_v55, 16  ;;  %v1402_v10 = vshll.u32 %v1311_v55, 16 }
  0xdc   : > { %v1968_v23 = vpop.permute.xlu0 %1967  ;;  %v4383_v35 = vld [vmem:[#allocation3 + $0x38] sm:$0xf0]  ;;  %v1408_v15 = vshll.u32 %v1312_v49, 16  ;;  %v1412_v16 = vshrl.u32 %v1312_v49, 16  ;;  %v4380_v38 = vld [vmem:[#allocation3 + $0x20] sm:$0xf0]  ;;  %v1138_v20 = vsel %vm4879_vm14, %v1136_v12, %v1137_v45 }
  0xdd   : > { %2015 = vst.msk [vmem:[#allocation3 + $0xc] sm:$0xf] %vm1050_vm15, %v1968_v23  ;;  %v4085_v61 = vor.u32 %v4383_v35, %v4084_v50  ;;  %v1239_v44 = vpop.permute.xlu2 %1238  ;;  %v4379_v39 = vld [vmem:[#allocation3 + $0x18] sm:$0xf0]  ;;  %v1313_v33 = vld [vmem:[#allocation2 + $0x38] sm:$0x1]  ;;  %v4081_v23 = vor.u32 %v4380_v38, %v4080_v62  ;;  %v1653_v35 = vsel %vm4879_vm14, %v1651_v7, %v1652_v5 }
  0xde   : > { %1286 = vst.msk [vmem:[#allocation3 + $0x4] sm:$0xf] %vm1050_vm15, %v1239_v44  ;;  %v4073_v56 = vor.u32 %v4379_v39, %v4072_v43  ;;  %v1401_v63 = vrot.slane %v1399_v14, 4  ;;  %v1404_v25 = vrot.slane %v1402_v10, 5  ;;  %v1410_v22 = vrot.slane %v1408_v15, 5 }
  0xdf   : > { %2745 = vmatmul.bf16.gmra.mxu0 %v4085_v61  ;;  %1194 = vst.msk [vmem:[#allocation3 + $0x54] sm:$0xf] %vm478_vm6, %v1135_v11  ;;  %v1414_v27 = vrot.slane %v1412_v16, 4  ;;  %v1418_v29 = vshll.u32 %v1313_v33, 16  ;;  %v1725_v36 = vld [vmem:[#allocation2 + $0x3c] sm:$0xf] }
  0xe0   : > { %v1659_v51 = vpop.permute.xlu1 %1658  ;;  %v4074_v3 = vld [vmem:[#allocation3 + $0x1c] sm:$0xf0]  ;;  %2838 = vmatmul.bf16.vlgmr.msrb.gmra.mxu2 %v4073_v56  ;;  %1195 = vst.msk [vmem:[#allocation3 + $0x68] sm:$0xf] %vm478_vm6, %v1138_v20  ;;  %v1405_v32 = vor.u32 %v1404_v25, %v1401_v63  ;;  %v1726_v41 = vld [vmem:[#allocation2 + $0x40] sm:$0xf] }
  0xe1   : > { %1704 = vst.msk [vmem:[#allocation3 + $0x30] sm:$0xf] %vm1050_vm15, %v1659_v51  ;;  %v1415_v46 = vor.u32 %v1414_v27, %v1410_v22  ;;  %v1420_v34 = vrot.slane %v1418_v29, 5  ;;  %v2037_v48 = vld [vmem:[#allocation2 + $0x30] sm:$0xe] }
  0xe2   : > { %1268 = vrot.lane.b32.xlu0 %v1221_v42, %s4558_s28  ;;  %1741 = vst.msk [vmem:[#allocation3 + $0x84] sm:$0xf] %vm478_vm6, %v1725_v36  ;;  %v1406_v47 = vrot.slane %v1405_v32, 4  ;;  %v2038_v44 = vld [vmem:[#allocation2 + $0x34] sm:$0xf]  ;;  %v4056_v56 = vrot.slane %v2037_v48, 9 }
  0xe3   : > { %1262 = vrot.lane.b32.xlu2 %v1218_v18, %s4558_s28  ;;  %v1416_v37 = vrot.slane %v1415_v46, 4  ;;  %1742 = vst.msk [vmem:[#allocation3 + $0x98] sm:$0xf] %vm478_vm6, %v1726_v41  ;;  %v2039_v51 = vld [vmem:[#allocation2 + $0x38] sm:$0x1] }
  0xe4   : > { %v1241_v21 = vpop.permute.xlu0 %1240  ;;  %v4377_v1 = vld [vmem:[#allocation3 + $0xc] sm:$0xf]  ;;  %v1411_v0 = vsel %vm4735_vm11, %v1406_v47, %v1410_v22  ;;  %v1220_v4 = vld [vmem:[#allocation2 + $0x60] sm:$0xf]  ;;  %v2098_v13 = vrot.slane %v2039_v51, 5 }
  0xe5   : > { %1287 = vst.msk [vmem:[#allocation3 + $0x18] sm:$0xf] %vm1050_vm15, %v1241_v21  ;;  %v4077_v57 = vor.u32 %v4377_v1, %v4074_v3  ;;  %v1661_v17 = vpop.permute.xlu2 %1660  ;;  %v4376_v50 = vld [vmem:[#allocation3 + $0x4] sm:$0xf]  ;;  %v1421_v19 = vsel %vm4735_vm11, %v1416_v37, %v1420_v34  ;;  %v2095_v3 = vrot.slane %v2038_v44, 5 }
  0xe6   : > { %1705 = vst.msk [vmem:[#allocation3 + $0x44] sm:$0xf] %vm1050_vm15, %v1661_v17  ;;  %v1076_v24 = vld [vmem:[#allocation2 + $0x24] sm:$0xe]  ;;  %v1077_v53 = vld [vmem:[#allocation2 + $0x28] sm:$0xf] }
  0xe7   : > { %2887 = vmatmul.bf16.vlgmr.msrb.gmra.mxu3 %v4077_v57  ;;  %1540 = vst.msk [vmem:[#allocation3 + $0x80] sm:$0xf] %vm478_vm6, %v1411_v0  ;;  %v2096_v7 = vsel %vm4879_vm14, %v4056_v56, %v2095_v3  ;;  %v2097_v2 = vrot.slane %v2095_v3, 4  ;;  %v4041_v26 = vrot.slane %v1076_v24, 9  ;;  %v1141_v1 = vrot.slane %v1077_v53, 5 }
  0xe8   : > { %v1974_v54 = vpop.permute.xlu1 %1973  ;;  %v4092_v58 = vld [vmem:[#allocation3 + $0x30] sm:$0xf]  ;;  %1541 = vst.msk [vmem:[#allocation3 + $0x94] sm:$0xf] %vm478_vm6, %v1421_v19  ;;  %v1078_v9 = vld [vmem:[#allocation2 + $0x2c] sm:$0x1] }
  0xe9   : > { %2018 = vst.msk [vmem:[#allocation3 + $0x48] sm:$0xf] %vm1050_vm15, %v1974_v54  ;;  %v2099_v21 = vsel %vm4879_vm14, %v2097_v2, %v2098_v13  ;;  %v1314_v57 = vld [vmem:[#allocation2 + $0x3c] sm:$0xf]  ;;  %v4100_v60 = vld [vmem:[#allocation3 + $0x38] sm:$0xf]  ;;  %v1142_v31 = vsel %vm4879_vm14, %v4041_v26, %v1141_v1 }
  0xea   : > { %2155 = vst.msk [vmem:[#allocation3 + $0x60] sm:$0xf] %vm478_vm6, %v2096_v7  ;;  %v1143_v55 = vrot.slane %v1141_v1, 4  ;;  %v1144_v62 = vrot.slane %v1078_v9, 5  ;;  %v1315_v11 = vld [vmem:[#allocation2 + $0x40] sm:$0xf] }
  0xeb   : > { %1684 = vrot.lane.b32.xlu2 %v1653_v35, %s4558_s28  ;;  %2156 = vst.msk [vmem:[#allocation3 + $0x74] sm:$0xf] %vm478_vm6, %v2099_v21  ;;  %v1423_v12 = vshrl.u32 %v1314_v57, 16  ;;  %v1426_v45 = vshll.u32 %v1314_v57, 16  ;;  %v1432_v49 = vshll.u32 %v1315_v11, 16  ;;  %v1436_v14 = vshrl.u32 %v1315_v11, 16 }
  0xec   : > { %v1972_v61 = vpop.permute.xlu0 %1971  ;;  %v4066_v42 = vld [vmem:[#allocation3 + $0x14] sm:$0xf0]  ;;  %1196 = vst.msk [vmem:[#allocation3 + $0x7c] sm:$0xf] %vm478_vm6, %v1142_v31  ;;  %v4385_v17 = vld [vmem:[#allocation3 + $0x48] sm:$0xf0]  ;;  %v1145_v54 = vsel %vm4879_vm14, %v1143_v55, %v1144_v62 }
  0xed   : > { %2017 = vst.msk [vmem:[#allocation3 + $0x34] sm:$0xf] %vm1050_vm15, %v1972_v61  ;;  %v4069_v43 = vor.u32 %v4376_v50, %v4066_v42  ;;  %v1243_v39 = vpop.permute.xlu2 %1242  ;;  %v4384_v52 = vld [vmem:[#allocation3 + $0x40] sm:$0xf0]  ;;  %v1316_v38 = vld [vmem:[#allocation2 + $0x44] sm:$0x1]  ;;  %v4101_v27 = vor.u32 %v4385_v17, %v4100_v60 }
  0xee   : > { %1288 = vst.msk [vmem:[#allocation3 + $0x2c] sm:$0xf] %vm1050_vm15, %v1243_v39  ;;  %v4093_v18 = vor.u32 %v4384_v52, %v4092_v58  ;;  %v1425_v20 = vrot.slane %v1423_v12, 4  ;;  %v1428_v33 = vrot.slane %v1426_v45, 5  ;;  %v2040_v50 = vld [vmem:[#allocation2 + $0x3c] sm:$0xe] }
  0xef   : > { %2789 = vmatmul.bf16.vlgmr.msrb.gmra.mxu1 %v4069_v43  ;;  %4366 = vmatmul.msk.bf16.vlgmr.msrb.gmra.mxu0 %vm2707_vm0, %v4081_v23  ;;  %v1434_v63 = vrot.slane %v1432_v49, 5  ;;  %v1438_v25 = vrot.slane %v1436_v14, 4  ;;  %v1442_v22 = vshll.u32 %v1316_v38, 16  ;;  %1197 = vst.msk [vmem:[#allocation3 + $0x90] sm:$0xf] %vm478_vm6, %v1145_v54  ;;  %v4057_v34 = vrot.slane %v2040_v50, 9 }
  0xf0   : > { %v1663_v28 = vpop.permute.xlu1 %1662  ;;  %v4094_v59 = vld [vmem:[#allocation3 + $0x44] sm:$0xf0]  ;;  %2843 = vmatmul.bf16.gmra.mxu2 %v4093_v18  ;;  %v1429_v29 = vor.u32 %v1428_v33, %v1425_v20  ;;  %v1727_v23 = vld [vmem:[#allocation2 + $0x48] sm:$0xf]  ;;  %v1728_v47 = vld [vmem:[#allocation2 + $0x4c] sm:$0xf] }
  0xf1   : > { %1706 = vst.msk [vmem:[#allocation3 + $0x58] sm:$0xf] %vm1050_vm15, %v1663_v28  ;;  %v1439_v36 = vor.u32 %v1438_v25, %v1434_v63  ;;  %v1444_v41 = vrot.slane %v1442_v22, 5  ;;  %v2041_v58 = vld [vmem:[#allocation2 + $0x40] sm:$0xf] }
  0xf2   : > { %1743 = vst.msk [vmem:[#allocation3 + $0xac] sm:$0xf] %vm478_vm6, %v1727_v23  ;;  %v1430_v46 = vrot.slane %v1429_v29, 4  ;;  %v2042_v0 = vld [vmem:[#allocation2 + $0x44] sm:$0x1]  ;;  %v2102_v48 = vrot.slane %v2041_v58, 5 }
  0xf3   : > { %1266 = vrot.lane.b32.xlu2 %v1220_v4, %s4558_s28  ;;  %v1440_v43 = vrot.slane %v1439_v36, 4  ;;  %1744 = vst.msk [vmem:[#allocation3 + $0xc0] sm:$0xf] %vm478_vm6, %v1728_v47  ;;  %v2105_v52 = vrot.slane %v2042_v0, 5  ;;  %v1080_v4 = vld [vmem:[#allocation2 + $0x34] sm:$0xf] }
  0xf4   : > { %v1245_v8 = vpop.permute.xlu0 %1244  ;;  %v4382_v30 = vld [vmem:[#allocation3 + $0x34] sm:$0xf]  ;;  %v1435_v37 = vsel %vm4735_vm11, %v1430_v46, %v1434_v63  ;;  %v2103_v3 = vsel %vm4879_vm14, %v4057_v34, %v2102_v48  ;;  %v2104_v18 = vrot.slane %v2102_v48, 4  ;;  %v1148_v2 = vrot.slane %v1080_v4, 5  ;;  %v1081_v24 = vld [vmem:[#allocation2 + $0x38] sm:$0x1] }
  0xf5   : > { %1289 = vst.msk [vmem:[#allocation3 + $0x40] sm:$0xf] %vm1050_vm15, %v1245_v8  ;;  %v4097_v5 = vor.u32 %v4382_v30, %v4094_v59  ;;  %v1665_v10 = vpop.permute.xlu2 %1664  ;;  %v4381_v16 = vld [vmem:[#allocation3 + $0x2c] sm:$0xf]  ;;  %v1445_v28 = vsel %vm4735_vm11, %v1440_v43, %v1444_v41  ;;  %v1079_v59 = vld [vmem:[#allocation2 + $0x30] sm:$0xe] }
  0xf6   : > { %1707 = vst.msk [vmem:[#allocation3 + $0x6c] sm:$0xf] %vm1050_vm15, %v1665_v10  ;;  %v2106_v13 = vsel %vm4879_vm14, %v2104_v18, %v2105_v52  ;;  %v4042_v7 = vrot.slane %v1079_v59, 9  ;;  %v1151_v8 = vrot.slane %v1081_v24, 5  ;;  %v1150_v1 = vrot.slane %v1148_v2, 4 }
  0xf7   : > { %2892 = vmatmul.bf16.gmra.mxu3 %v4097_v5  ;;  %1542 = vst.msk [vmem:[#allocation3 + $0xa8] sm:$0xf] %vm478_vm6, %v1435_v37  ;;  %v1317_v5 = vld [vmem:[#allocation2 + $0x48] sm:$0xf]  ;;  %v4120_v9 = vld [vmem:[#allocation3 + $0x60] sm:$0xf] }
  0xf8   : > { %v1978_v15 = vpop.permute.xlu1 %1977  ;;  %v4112_v42 = vld [vmem:[#allocation3 + $0x58] sm:$0xf]  ;;  %1543 = vst.msk [vmem:[#allocation3 + $0xbc] sm:$0xf] %vm478_vm6, %v1445_v28  ;;  %v1149_v21 = vsel %vm4879_vm14, %v4042_v7, %v1148_v2  ;;  %v1318_v57 = vld [vmem:[#allocation2 + $0x4c] sm:$0xf]  ;;  %v1152_v55 = vsel %vm4879_vm14, %v1150_v1, %v1151_v8 }
  0xf9   : > { %2020 = vst.msk [vmem:[#allocation3 + $0x70] sm:$0xf] %vm1050_vm15, %v1978_v15  ;;  %v1447_v60 = vshrl.u32 %v1317_v5, 16  ;;  %v1450_v31 = vshll.u32 %v1317_v5, 16  ;;  %v1456_v62 = vshll.u32 %v1318_v57, 16  ;;  %v1460_v11 = vshrl.u32 %v1318_v57, 16 }
  0xfa   : > { %2157 = vst.msk [vmem:[#allocation3 + $0x88] sm:$0xf] %vm478_vm6, %v2103_v3  ;;  %v1319_v12 = vld [vmem:[#allocation2 + $0x50] sm:$0x1]  ;;  %v4390_v14 = vld [vmem:[#allocation3 + $0x70] sm:$0xf0] }
  0xfb   : > { %2158 = vst.msk [vmem:[#allocation3 + $0x9c] sm:$0xf] %vm478_vm6, %v2106_v13  ;;  %v1449_v10 = vrot.slane %v1447_v60, 4  ;;  %v1452_v15 = vrot.slane %v1450_v31, 5  ;;  %v1458_v17 = vrot.slane %v1456_v62, 5  ;;  %v1462_v54 = vrot.slane %v1460_v11, 4 }
  0xfc   : > { %v1976_v35 = vpop.permute.xlu0 %1975  ;;  %v4086_v32 = vld [vmem:[#allocation3 + $0x3c] sm:$0xf0]  ;;  %1198 = vst.msk [vmem:[#allocation3 + $0xa4] sm:$0xf] %vm478_vm6, %v1149_v21  ;;  %v1466_v20 = vshll.u32 %v1319_v12, 16  ;;  %v4121_v50 = vor.u32 %v4390_v14, %v4120_v9 }
  0xfd   : > { %2019 = vst.msk [vmem:[#allocation3 + $0x5c] sm:$0xf] %vm1050_vm15, %v1976_v35  ;;  %v4089_v61 = vor.u32 %v4381_v16, %v4086_v32  ;;  %v1247_v44 = vpop.permute.xlu2 %1246  ;;  %v4389_v39 = vld [vmem:[#allocation3 + $0x68] sm:$0xf0]  ;;  %v1453_v38 = vor.u32 %v1452_v15, %v1449_v10  ;;  %v1729_v33 = vld [vmem:[#allocation2 + $0x54] sm:$0xf]  ;;  %v1463_v63 = vor.u32 %v1462_v54, %v1458_v17 }
  0xfe   : > { %1290 = vst.msk [vmem:[#allocation3 + $0x54] sm:$0xf] %vm1050_vm15, %v1247_v44  ;;  %v4113_v19 = vor.u32 %v4389_v39, %v4112_v42  ;;  %v1730_v25 = vld [vmem:[#allocation2 + $0x58] sm:$0xf]  ;;  %v1468_v23 = vrot.slane %v1466_v20, 5 }
  0xff   : > { %2794 = vmatmul.bf16.gmra.mxu1 %v4089_v61  ;;  %4367 = vmatmul.msk.bf16.gmra.mxu0 %vm2707_vm0, %v4101_v27  ;;  %1199 = vst.msk [vmem:[#allocation3 + $0xb8] sm:$0xf] %vm478_vm6, %v1152_v55  ;;  %v1454_v29 = vrot.slane %v1453_v38, 4  ;;  %v1464_v36 = vrot.slane %v1463_v63, 4  ;;  %v2043_v61 = vld [vmem:[#allocation2 + $0x48] sm:$0xe] }
 0x100   : > { %v1667_v51 = vpop.permute.xlu1 %1666  ;;  %v4114_v56 = vld [vmem:[#allocation3 + $0x6c] sm:$0xf0]  ;;  %2848 = vmatmul.bf16.gmra.mxu2 %v4113_v19  ;;  %1745 = vst.msk [vmem:[#allocation3 + $0xd4] sm:$0xf] %vm478_vm6, %v1729_v33  ;;  %v2044_v42 = vld [vmem:[#allocation2 + $0x4c] sm:$0xf] }
 0x101   : > { %1708 = vst.msk [vmem:[#allocation3 + $0x80] sm:$0xf] %vm1050_vm15, %v1667_v51  ;;  %v1459_v41 = vsel %vm4735_vm11, %v1454_v29, %v1458_v17  ;;  %v2045_v46 = vld [vmem:[#allocation2 + $0x50] sm:$0x1]  ;;  %v1469_v34 = vsel %vm4735_vm11, %v1464_v36, %v1468_v23  ;;  %v4058_v43 = vrot.slane %v2043_v61, 9  ;;  %v2109_v47 = vrot.slane %v2044_v42, 5 }
 0x102   : > { %1746 = vst.msk [vmem:[#allocation3 + $0xe8] sm:$0xf] %vm478_vm6, %v1730_v25  ;;  %v2112_v58 = vrot.slane %v2045_v46, 5  ;;  %v1082_v44 = vld [vmem:[#allocation2 + $0x3c] sm:$0xe] }
 0x103   : > { %1544 = vst.msk [vmem:[#allocation3 + $0xd0] sm:$0xf] %vm478_vm6, %v1459_v41  ;;  %v2110_v39 = vsel %vm4879_vm14, %v4058_v43, %v2109_v47  ;;  %v2111_v28 = vrot.slane %v2109_v47, 4  ;;  %v4043_v52 = vrot.slane %v1082_v44, 9  ;;  %v1084_v59 = vld [vmem:[#allocation2 + $0x44] sm:$0x1] }
 0x104   : > { %v1249_v53 = vpop.permute.xlu0 %1248  ;;  %v4387_v26 = vld [vmem:[#allocation3 + $0x5c] sm:$0xf]  ;;  %1545 = vst.msk [vmem:[#allocation3 + $0xe4] sm:$0xf] %vm478_vm6, %v1469_v34  ;;  %v1158_v7 = vrot.slane %v1084_v59, 5 }
 0x105   : > { %1291 = vst.msk [vmem:[#allocation3 + $0x68] sm:$0xf] %vm1050_vm15, %v1249_v53  ;;  %v4117_v30 = vor.u32 %v4387_v26, %v4114_v56  ;;  %v1669_v45 = vpop.permute.xlu2 %1668  ;;  %v4386_v16 = vld [vmem:[#allocation3 + $0x54] sm:$0xf]  ;;  %v1083_v56 = vld [vmem:[#allocation2 + $0x40] sm:$0xf]  ;;  %v2113_v3 = vsel %vm4879_vm14, %v2111_v28, %v2112_v58 }
 0x106   : > { %1709 = vst.msk [vmem:[#allocation3 + $0x94] sm:$0xf] %vm1050_vm15, %v1669_v45  ;;  %v1155_v18 = vrot.slane %v1083_v56, 5  ;;  %v1320_v26 = vld [vmem:[#allocation2 + $0x54] sm:$0xf] }
 0x107   : > { %2897 = vmatmul.bf16.gmra.mxu3 %v4117_v30  ;;  %2159 = vst.msk [vmem:[#allocation3 + $0xb0] sm:$0xf] %vm478_vm6, %v2110_v39  ;;  %v4140_v8 = vld [vmem:[#allocation3 + $0x88] sm:$0xf]  ;;  %v1321_v30 = vld [vmem:[#allocation2 + $0x58] sm:$0xf] }
 0x108   : > { %v1982_v49 = vpop.permute.xlu1 %1981  ;;  %v4132_v32 = vld [vmem:[#allocation3 + $0x80] sm:$0xf]  ;;  %2160 = vst.msk [vmem:[#allocation3 + $0xc4] sm:$0xf] %vm478_vm6, %v2113_v3  ;;  %v1156_v24 = vsel %vm4879_vm14, %v4043_v52, %v1155_v18  ;;  %v1157_v53 = vrot.slane %v1155_v18, 4  ;;  %v1471_v21 = vshrl.u32 %v1320_v26, 16 }
 0x109   : > { %2022 = vst.msk [vmem:[#allocation3 + $0x98] sm:$0xf] %vm1050_vm15, %v1982_v49  ;;  %v1474_v1 = vshll.u32 %v1320_v26, 16  ;;  %v4395_v5 = vld [vmem:[#allocation3 + $0x98] sm:$0xf0]  ;;  %v1480_v57 = vshll.u32 %v1321_v30, 16 }
 0x10a   : > { %1200 = vst.msk [vmem:[#allocation3 + $0xcc] sm:$0xf] %vm478_vm6, %v1156_v24  ;;  %v1159_v9 = vsel %vm4879_vm14, %v1157_v53, %v1158_v7  ;;  %v1484_v60 = vshrl.u32 %v1321_v30, 16  ;;  %v1322_v31 = vld [vmem:[#allocation2 + $0x5c] sm:$0x1]  ;;  %v1473_v11 = vrot.slane %v1471_v21, 4  ;;  %v4141_v17 = vor.u32 %v4395_v5, %v4140_v8 }
 0x10b   : > { %1201 = vst.msk [vmem:[#allocation3 + $0xe0] sm:$0xf] %vm478_vm6, %v1159_v9  ;;  %v1476_v12 = vrot.slane %v1474_v1, 5  ;;  %v2046_v45 = vld [vmem:[#allocation2 + $0x54] sm:$0xe]  ;;  %v1482_v49 = vrot.slane %v1480_v57, 5 }
 0x10c   : > { %v1980_v22 = vpop.permute.xlu0 %1979  ;;  %v4106_v27 = vld [vmem:[#allocation3 + $0x64] sm:$0xf0]  ;;  %v1486_v14 = vrot.slane %v1484_v60, 4  ;;  %v1732_v20 = vld [vmem:[#allocation2 + $0x64] sm:$0xf]  ;;  %v4059_v33 = vrot.slane %v2046_v45, 9 }
 0x10d   : > { %2021 = vst.msk [vmem:[#allocation3 + $0x84] sm:$0xf] %vm1050_vm15, %v1980_v22  ;;  %v4109_v35 = vor.u32 %v4386_v16, %v4106_v27  ;;  %v1251_v37 = vpop.permute.xlu2 %1250  ;;  %v4394_v48 = vld [vmem:[#allocation3 + $0x90] sm:$0xf0]  ;;  %v1477_v15 = vor.u32 %v1476_v12, %v1473_v11  ;;  %v1490_v16 = vshll.u32 %v1322_v31, 16 }
 0x10e   : > { %1292 = vst.msk [vmem:[#allocation3 + $0x7c] sm:$0xf] %vm1050_vm15, %v1251_v37  ;;  %v4133_v51 = vor.u32 %v4394_v48, %v4132_v32  ;;  %v1487_v54 = vor.u32 %v1486_v14, %v1482_v49  ;;  %v1731_v38 = vld [vmem:[#allocation2 + $0x60] sm:$0xf]  ;;  %v2048_v36 = vld [vmem:[#allocation2 + $0x5c] sm:$0x1] }
 0x10f   : > { %2799 = vmatmul.bf16.gmra.mxu1 %v4109_v35  ;;  %4368 = vmatmul.msk.bf16.gmra.mxu0 %vm2707_vm0, %v4121_v50  ;;  %v1478_v22 = vrot.slane %v1477_v15, 4  ;;  %v1492_v27 = vrot.slane %v1490_v16, 5  ;;  %1747 = vst.msk [vmem:[#allocation3 + $0xfc] sm:$0xf] %vm478_vm6, %v1731_v38  ;;  %v2047_v35 = vld [vmem:[#allocation2 + $0x58] sm:$0xf] }
 0x110   : > { %v1671_v0 = vpop.permute.xlu1 %1670  ;;  %v4134_v19 = vld [vmem:[#allocation3 + $0x94] sm:$0xf0]  ;;  %2853 = vmatmul.bf16.gmra.mxu2 %v4133_v51  ;;  %v1488_v23 = vrot.slane %v1487_v54, 4  ;;  %1748 = vst.msk [vmem:[#allocation3 + $0x110] sm:$0xf] %vm478_vm6, %v1732_v20  ;;  %v2116_v41 = vrot.slane %v2047_v35, 5 }
 0x111   : > { %1710 = vst.msk [vmem:[#allocation3 + $0xa8] sm:$0xf] %vm1050_vm15, %v1671_v0  ;;  %v1483_v32 = vsel %vm4735_vm11, %v1478_v22, %v1482_v49  ;;  %v2119_v42 = vrot.slane %v2048_v36, 5  ;;  %v1085_v46 = vld [vmem:[#allocation2 + $0x48] sm:$0xe] }
 0x112   : > { %1546 = vst.msk [vmem:[#allocation3 + $0xf8] sm:$0xf] %vm478_vm6, %v1483_v32  ;;  %v1493_v61 = vsel %vm4735_vm11, %v1488_v23, %v1492_v27  ;;  %v2117_v58 = vsel %vm4879_vm14, %v4059_v33, %v2116_v41  ;;  %v2118_v37 = vrot.slane %v2116_v41, 4  ;;  %v4044_v0 = vrot.slane %v1085_v46, 9  ;;  %v1086_v51 = vld [vmem:[#allocation2 + $0x4c] sm:$0xf] }
 0x113   : > { %1547 = vst.msk [vmem:[#allocation3 + $0x10c] sm:$0xf] %vm478_vm6, %v1493_v61  ;;  %v1162_v28 = vrot.slane %v1086_v51, 5  ;;  %v1087_v52 = vld [vmem:[#allocation2 + $0x50] sm:$0x1] }
 0x114   : > { %v1253_v4 = vpop.permute.xlu0 %1252  ;;  %v4392_v13 = vld [vmem:[#allocation3 + $0x84] sm:$0xf]  ;;  %v2120_v39 = vsel %vm4879_vm14, %v2118_v37, %v2119_v42  ;;  %2161 = vst.msk [vmem:[#allocation3 + $0xd8] sm:$0xf] %vm478_vm6, %v2117_v58  ;;  %v1323_v56 = vld [vmem:[#allocation2 + $0x60] sm:$0xf] }
 0x115   : > { %1293 = vst.msk [vmem:[#allocation3 + $0x90] sm:$0xf] %vm1050_vm15, %v1253_v4  ;;  %v4137_v2 = vor.u32 %v4392_v13, %v4134_v19  ;;  %v1673_v55 = vpop.permute.xlu2 %1672  ;;  %v4391_v10 = vld [vmem:[#allocation3 + $0x7c] sm:$0xf]  ;;  %v1165_v19 = vrot.slane %v1087_v52, 5  ;;  %v1163_v59 = vsel %vm4879_vm14, %v4044_v0, %v1162_v28  ;;  %v1164_v4 = vrot.slane %v1162_v28, 4 }
 0x116   : > { %1711 = vst.msk [vmem:[#allocation3 + $0xbc] sm:$0xf] %vm1050_vm15, %v1673_v55  ;;  %v1495_v13 = vshrl.u32 %v1323_v56, 16  ;;  %v1498_v24 = vshll.u32 %v1323_v56, 16  ;;  %v4160_v53 = vld [vmem:[#allocation3 + $0xb0] sm:$0xf] }
 0x117   : > { %2902 = vmatmul.bf16.gmra.mxu3 %v4137_v2  ;;  %2162 = vst.msk [vmem:[#allocation3 + $0xec] sm:$0xf] %vm478_vm6, %v2120_v39  ;;  %v1324_v2 = vld [vmem:[#allocation2 + $0x64] sm:$0xf]  ;;  %v1166_v26 = vsel %vm4879_vm14, %v1164_v4, %v1165_v19  ;;  %v1325_v5 = vld [vmem:[#allocation2 + $0x68] sm:$0x1] }
 0x118   : > { %v1986_v62 = vpop.permute.xlu1 %1985  ;;  %v4152_v25 = vld [vmem:[#allocation3 + $0xa8] sm:$0xf]  ;;  %1202 = vst.msk [vmem:[#allocation3 + $0xf4] sm:$0xf] %vm478_vm6, %v1163_v59  ;;  %v1497_v8 = vrot.slane %v1495_v13, 4  ;;  %v1504_v30 = vshll.u32 %v1324_v2, 16 }
 0x119   : > { %2024 = vst.msk [vmem:[#allocation3 + $0xc0] sm:$0xf] %vm1050_vm15, %v1986_v62  ;;  %v1508_v21 = vshrl.u32 %v1324_v2, 16  ;;  %v1500_v1 = vrot.slane %v1498_v24, 5  ;;  %v4400_v57 = vld [vmem:[#allocation3 + $0xc0] sm:$0xf0] }
 0x11a   : > { %1203 = vst.msk [vmem:[#allocation3 + $0x108] sm:$0xf] %vm478_vm6, %v1166_v26  ;;  %v1506_v60 = vrot.slane %v1504_v30, 5  ;;  %v1514_v55 = vshll.u32 %v1325_v5, 16  ;;  %v1733_v12 = vld [vmem:[#allocation2 + $0x6c] sm:$0xf] }
 0x11b   : > { %v1510_v31 = vrot.slane %v1508_v21, 4  ;;  %v1501_v11 = vor.u32 %v1500_v1, %v1497_v8  ;;  %1749 = vst.msk [vmem:[#allocation3 + $0x124] sm:$0xf] %vm478_vm6, %v1733_v12  ;;  %v1734_v20 = vld [vmem:[#allocation2 + $0x70] sm:$0xf] }
 0x11c   : > { %v1984_v50 = vpop.permute.xlu0 %1983  ;;  %v4126_v63 = vld [vmem:[#allocation3 + $0x8c] sm:$0xf0]  ;;  %v1516_v14 = vrot.slane %v1514_v55, 5  ;;  %v1089_v32 = vld [vmem:[#allocation2 + $0x58] sm:$0xf] }
 0x11d   : > { %2023 = vst.msk [vmem:[#allocation3 + $0xac] sm:$0xf] %vm1050_vm15, %v1984_v50  ;;  %v4129_v29 = vor.u32 %v4391_v10, %v4126_v63  ;;  %v1255_v34 = vpop.permute.xlu2 %1254  ;;  %v4399_v47 = vld [vmem:[#allocation3 + $0xb8] sm:$0xf0]  ;;  %v1511_v49 = vor.u32 %v1510_v31, %v1506_v60  ;;  %v4161_v10 = vor.u32 %v4400_v57, %v4160_v53  ;;  %v1502_v15 = vrot.slane %v1501_v11, 4 }
 0x11e   : > { %1294 = vst.msk [vmem:[#allocation3 + $0xa4] sm:$0xf] %vm1050_vm15, %v1255_v34  ;;  %v4153_v48 = vor.u32 %v4399_v47, %v4152_v25  ;;  %v2049_v63 = vld [vmem:[#allocation2 + $0x60] sm:$0xe]  ;;  %v2050_v25 = vld [vmem:[#allocation2 + $0x64] sm:$0xf] }
 0x11f   : > { %2804 = vmatmul.bf16.gmra.mxu1 %v4129_v29  ;;  %4369 = vmatmul.msk.bf16.gmra.mxu0 %vm2707_vm0, %v4141_v17  ;;  %v1512_v38 = vrot.slane %v1511_v49, 4  ;;  %v1507_v50 = vsel %vm4735_vm11, %v1502_v15, %v1506_v60  ;;  %v2051_v27 = vld [vmem:[#allocation2 + $0x68] sm:$0x1]  ;;  %v4060_v29 = vrot.slane %v2049_v63, 9  ;;  %v2123_v23 = vrot.slane %v2050_v25, 5 }
 0x120   : > { %v1675_v43 = vpop.permute.xlu1 %1674  ;;  %v4154_v44 = vld [vmem:[#allocation3 + $0xbc] sm:$0xf0]  ;;  %2858 = vmatmul.bf16.gmra.mxu2 %v4153_v48  ;;  %1548 = vst.msk [vmem:[#allocation3 + $0x120] sm:$0xf] %vm478_vm6, %v1507_v50  ;;  %v2126_v35 = vrot.slane %v2051_v27, 5  ;;  %v1169_v40 = vrot.slane %v1089_v32, 5 }
 0x121   : > { %1712 = vst.msk [vmem:[#allocation3 + $0xd0] sm:$0xf] %vm1050_vm15, %v1675_v43  ;;  %v1517_v22 = vsel %vm4735_vm11, %v1512_v38, %v1516_v14  ;;  %v2124_v61 = vsel %vm4879_vm14, %v4060_v29, %v2123_v23  ;;  %v2125_v42 = vrot.slane %v2123_v23, 4  ;;  %v1090_v47 = vld [vmem:[#allocation2 + $0x5c] sm:$0x1] }
 0x122   : > { %1549 = vst.msk [vmem:[#allocation3 + $0x134] sm:$0xf] %vm478_vm6, %v1517_v22  ;;  %v1171_v37 = vrot.slane %v1169_v40, 4  ;;  %v1172_v0 = vrot.slane %v1090_v47, 5  ;;  %v1088_v48 = vld [vmem:[#allocation2 + $0x54] sm:$0xe] }
 0x123   : > { %1750 = vst.msk [vmem:[#allocation3 + $0x138] sm:$0xf] %vm478_vm6, %v1734_v20  ;;  %v2127_v58 = vsel %vm4879_vm14, %v2125_v42, %v2126_v35  ;;  %v2052_v51 = vld [vmem:[#allocation2 + $0x6c] sm:$0xe]  ;;  %v2053_v19 = vld [vmem:[#allocation2 + $0x70] sm:$0xf] }
 0x124   : > { %v1257_v3 = vpop.permute.xlu0 %1256  ;;  %v4397_v18 = vld [vmem:[#allocation3 + $0xac] sm:$0xf]  ;;  %2163 = vst.msk [vmem:[#allocation3 + $0x100] sm:$0xf] %vm478_vm6, %v2124_v61  ;;  %v1173_v52 = vsel %vm4879_vm14, %v1171_v37, %v1172_v0  ;;  %v4061_v59 = vrot.slane %v2052_v51, 9  ;;  %v2130_v4 = vrot.slane %v2053_v19, 5 }
 0x125   : > { %1295 = vst.msk [vmem:[#allocation3 + $0xb8] sm:$0xf] %vm1050_vm15, %v1257_v3  ;;  %v4157_v7 = vor.u32 %v4397_v18, %v4154_v44  ;;  %v1677_v9 = vpop.permute.xlu2 %1676  ;;  %v4396_v45 = vld [vmem:[#allocation3 + $0xa4] sm:$0xf]  ;;  %v4045_v44 = vrot.slane %v1088_v48, 9 }
 0x126   : > { %1713 = vst.msk [vmem:[#allocation3 + $0xe4] sm:$0xf] %vm1050_vm15, %v1677_v9  ;;  %v2054_v18 = vld [vmem:[#allocation2 + $0x74] sm:$0x1]  ;;  %v2132_v2 = vrot.slane %v2130_v4, 4 }
 0x127   : > { %2907 = vmatmul.bf16.gmra.mxu3 %v4157_v7  ;;  %2164 = vst.msk [vmem:[#allocation3 + $0x114] sm:$0xf] %vm478_vm6, %v2127_v58  ;;  %v1170_v3 = vsel %vm4879_vm14, %v4045_v44, %v1169_v40  ;;  %v2133_v13 = vrot.slane %v2054_v18, 5  ;;  %v2131_v7 = vsel %vm4879_vm14, %v4061_v59, %v2130_v4  ;;  %v4180_v53 = vld [vmem:[#allocation3 + $0xd8] sm:$0xf] }
 0x128   : > { %v1990_v62 = vpop.permute.xlu1 %1989  ;;  %v4172_v54 = vld [vmem:[#allocation3 + $0xd0] sm:$0xf]  ;;  %1205 = vst.msk [vmem:[#allocation3 + $0x130] sm:$0xf] %vm478_vm6, %v1173_v52  ;;  %v4405_v26 = vld [vmem:[#allocation3 + $0xe8] sm:$0xf0] }
 0x129   : > { %2026 = vst.msk [vmem:[#allocation3 + $0xe8] sm:$0xf] %vm1050_vm15, %v1990_v62  ;;  %v2134_v30 = vsel %vm4879_vm14, %v2132_v2, %v2133_v13  ;;  %v4181_v1 = vor.u32 %v4405_v26, %v4180_v53  ;;  %v5539_v57 = vld [vmem:[%s5967_s4] ss:$0 sm:$0xff] }
 0x12a   : > { %1204 = vst.msk [vmem:[#allocation3 + $0x11c] sm:$0xf] %vm478_vm6, %v1170_v3  ;;  %v2741_v23 = vpop.f32.mrf.mxu0 }
 0x12b   : > { %2165 = vst.msk [vmem:[#allocation3 + $0x128] sm:$0xf] %vm478_vm6, %v2131_v7  ;;  %v4200_v50 = vld [vmem:[#allocation3 + $0x100] sm:$0xf] }
 0x12c   : > { %v1988_v16 = vpop.permute.xlu0 %1987  ;;  %v4146_v17 = vld [vmem:[#allocation3 + $0xb4] sm:$0xf0]  ;;  %2166 = vst.msk [vmem:[#allocation3 + $0x13c] sm:$0xf] %vm478_vm6, %v2134_v30 }
 0x12d   : > { %2025 = vst.msk [vmem:[#allocation3 + $0xd4] sm:$0xf] %vm1050_vm15, %v1988_v16  ;;  %v4149_v33 = vor.u32 %v4396_v45, %v4146_v17  ;;  %v1259_v36 = vpop.permute.xlu2 %1258  ;;  %v4404_v41 = vld [vmem:[#allocation3 + $0xe0] sm:$0xf0] }
 0x12e   : > { %1296 = vst.msk [vmem:[#allocation3 + $0xcc] sm:$0xf] %vm1050_vm15, %v1259_v36  ;;  %v4173_v34 = vor.u32 %v4404_v41, %v4172_v54  ;;  %v4410_v63 = vld [vmem:[#allocation3 + $0x110] sm:$0xf0] }
 0x12f   : > { %2809 = vmatmul.bf16.gmra.mxu1 %v4149_v33  ;;  %4370 = vmatmul.msk.bf16.gmra.mxu0 %vm2707_vm0, %v4161_v10  ;;  %v4201_v35 = vor.u32 %v4410_v63, %v4200_v50 }
 0x130   : > { %v1679_v46 = vpop.permute.xlu1 %1678  ;;  %v4174_v43 = vld [vmem:[#allocation3 + $0xe4] sm:$0xf0]  ;;  %2863 = vmatmul.bf16.gmra.mxu2 %v4173_v34 }
 0x131   : > { %1714 = vst.msk [vmem:[#allocation3 + $0xf8] sm:$0xf] %vm1050_vm15, %v1679_v46 }
 0x132   : > { %v4220_v19 = vld [vmem:[#allocation3 + $0x128] sm:$0xf] }
 0x133   : > { %v5550_v10 = vpop.f32.mrf.mxu1 }
 0x134   : > { %v1261_v39 = vpop.permute.xlu0 %1260  ;;  %v4402_v28 = vld [vmem:[#allocation3 + $0xd4] sm:$0xf] }
 0x135   : > { %1297 = vst.msk [vmem:[#allocation3 + $0xe0] sm:$0xf] %vm1050_vm15, %v1261_v39  ;;  %v4177_v56 = vor.u32 %v4402_v28, %v4174_v43  ;;  %v1681_v24 = vpop.permute.xlu2 %1680  ;;  %v4401_v21 = vld [vmem:[#allocation3 + $0xcc] sm:$0xf]  ;;  %v2743_v39 = vpop.f32.mrf.mxu0 }
 0x136   : > { %1715 = vst.msk [vmem:[#allocation3 + $0x10c] sm:$0xf] %vm1050_vm15, %v1681_v24 }
 0x137   : > { %2912 = vmatmul.bf16.gmra.mxu3 %v4177_v56  ;;  %v4415_v56 = vld [vmem:[#allocation3 + $0x138] sm:$0xf0] }
 0x138   : > { %v1994_v8 = vpop.permute.xlu1 %1993  ;;  %v4192_v31 = vld [vmem:[#allocation3 + $0xf8] sm:$0xf]  ;;  %v4221_v4 = vor.u32 %v4415_v56, %v4220_v19 }
 0x139   : > { %2028 = vst.msk [vmem:[#allocation3 + $0x110] sm:$0xf] %vm1050_vm15, %v1994_v8 }
 0x13b   : > { %v5562_v32 = vpop.f32.mrf.mxu1 }
 0x13c   : > { %v1992_v5 = vpop.permute.xlu0 %1991  ;;  %v4166_v9 = vld [vmem:[#allocation3 + $0xdc] sm:$0xf0] }
 0x13d   : > { %2027 = vst.msk [vmem:[#allocation3 + $0xfc] sm:$0xf] %vm1050_vm15, %v1992_v5  ;;  %v4169_v60 = vor.u32 %v4401_v21, %v4166_v9  ;;  %v1263_v62 = vpop.permute.xlu2 %1262  ;;  %v4409_v11 = vld [vmem:[#allocation3 + $0x108] sm:$0xf0] }
 0x13e   : > { %v2771_v55 = vpop.f32.mrf.mxu3  ;;  %1298 = vst.msk [vmem:[#allocation3 + $0xf4] sm:$0xf] %vm1050_vm15, %v1263_v62  ;;  %v4193_v49 = vor.u32 %v4409_v11, %v4192_v31 }
 0x13f   : > { %2814 = vmatmul.bf16.gmra.mxu1 %v4169_v60  ;;  %4371 = vmatmul.msk.bf16.gmra.mxu0 %vm2707_vm0, %v4181_v1  ;;  %v5544_v6 = vadd.f32 %v5539_v57, %v2771_v55  ;;  %v2742_v1 = vadd.f32 %v5539_v57, %v2741_v23 }
 0x140   : > { %v2761_v12 = vpop.f32.mrf.mxu2  ;;  %v1683_v45 = vpop.permute.xlu1 %1682  ;;  %v4194_v15 = vld [vmem:[#allocation3 + $0x10c] sm:$0xf0]  ;;  %2868 = vmatmul.bf16.gmra.mxu2 %v4193_v49 }
 0x141   : > { %v5548_v14 = vadd.f32 %v5539_v57, %v2761_v12  ;;  %1716 = vst.msk [vmem:[#allocation3 + $0x120] sm:$0xf] %vm1050_vm15, %v1683_v45  ;;  %v2744_v12 = vadd.f32 %v5539_v57, %v2743_v39 }
 0x144   : > { %v1265_v16 = vpop.permute.xlu0 %1264  ;;  %v4407_v17 = vld [vmem:[#allocation3 + $0xfc] sm:$0xf] }
 0x145   : > { %1299 = vst.msk [vmem:[#allocation3 + $0x108] sm:$0xf] %vm1050_vm15, %v1265_v16  ;;  %v4197_v54 = vor.u32 %v4407_v17, %v4194_v15  ;;  %v1685_v33 = vpop.permute.xlu2 %1684  ;;  %v4406_v29 = vld [vmem:[#allocation3 + $0xf4] sm:$0xf] }
 0x146   : > { %v2773_v38 = vpop.f32.mrf.mxu3  ;;  %1717 = vst.msk [vmem:[#allocation3 + $0x134] sm:$0xf] %vm1050_vm15, %v1685_v33 }
 0x147   : > { %2917 = vmatmul.bf16.gmra.mxu3 %v4197_v54  ;;  %v5555_v20 = vadd.f32 %v5539_v57, %v2773_v38 }
 0x148   : > { %v2763_v25 = vpop.f32.mrf.mxu2  ;;  %v1998_v22 = vpop.permute.xlu1 %1997  ;;  %v4212_v42 = vld [vmem:[#allocation3 + $0x120] sm:$0xf] }
 0x149   : > { %v5559_v27 = vadd.f32 %v5539_v57, %v2763_v25  ;;  %2030 = vst.msk [vmem:[#allocation3 + $0x138] sm:$0xf] %vm1050_vm15, %v1998_v22 }
 0x14c   : > { %v1996_v36 = vpop.permute.xlu0 %1995  ;;  %v4186_v41 = vld [vmem:[#allocation3 + $0x104] sm:$0xf0] }
 0x14d   : > { %2029 = vst.msk [vmem:[#allocation3 + $0x124] sm:$0xf] %vm1050_vm15, %v1996_v36  ;;  %v4189_v61 = vor.u32 %v4406_v29, %v4186_v41  ;;  %v1267_v40 = vpop.permute.xlu2 %1266  ;;  %v4414_v46 = vld [vmem:[#allocation3 + $0x130] sm:$0xf0] }
 0x14e   : > { %1300 = vst.msk [vmem:[#allocation3 + $0x11c] sm:$0xf] %vm1050_vm15, %v1267_v40  ;;  %v4213_v43 = vor.u32 %v4414_v46, %v4212_v42 }
 0x14f   : > { %2819 = vmatmul.bf16.gmra.mxu1 %v4189_v61  ;;  %4372 = vmatmul.msk.bf16.gmra.mxu0 %vm2707_vm0, %v4201_v35 }
 0x150   : > { %v2766_v34 = vpop.f32.mrf.mxu2  ;;  %v4214_v58 = vld [vmem:[#allocation3 + $0x134] sm:$0xf0]  ;;  %2873 = vmatmul.bf16.gmra.mxu2 %v4213_v43 }
 0x151   : > { %v5568_v47 = vadd.f32 %v5539_v57, %v2766_v34 }
 0x153   : > { %v2776_v28 = vpop.f32.mrf.mxu3 }
 0x154   : > { %v2756_v37 = vpop.f32.mrf.mxu1  ;;  %v1269_v0 = vpop.permute.xlu0 %1268  ;;  %v4412_v48 = vld [vmem:[#allocation3 + $0x124] sm:$0xf]  ;;  %v5575_v52 = vadd.f32 %v5539_v57, %v2776_v28 }
 0x155   : > { %v5571_v44 = vadd.f32 %v5539_v57, %v2756_v37  ;;  %1301 = vst.msk [vmem:[#allocation3 + $0x130] sm:$0xf] %vm1050_vm15, %v1269_v0  ;;  %v4217_v51 = vor.u32 %v4412_v48, %v4214_v58  ;;  %v4411_v59 = vld [vmem:[#allocation3 + $0x11c] sm:$0xf] }
 0x157   : > { %2922 = vmatmul.bf16.gmra.mxu3 %v4217_v51 }
 0x158   : > { %v2768_v3 = vpop.f32.mrf.mxu2 }
 0x159   : > { %v5578_v18 = vadd.f32 %v5539_v57, %v2768_v3 }
 0x15b   : > { %v2778_v26 = vpop.f32.mrf.mxu3 }
 0x15c   : > { %v2758_v13 = vpop.f32.mrf.mxu1  ;;  %v4206_v7 = vld [vmem:[#allocation3 + $0x12c] sm:$0xf0]  ;;  %v2746_v53 = vpop.f32.mrf.mxu0  ;;  %v5585_v8 = vadd.f32 %v5539_v57, %v2778_v26 }
 0x15d   : > { %v5581_v2 = vadd.f32 %v5539_v57, %v2758_v13  ;;  %v4209_v24 = vor.u32 %v4411_v59, %v4206_v7  ;;  %v2747_v46 = vadd.f32 %v5539_v57, %v2746_v53 }
 0x15f   : > { %2824 = vmatmul.bf16.gmra.mxu1 %v4209_v24  ;;  %4373 = vmatmul.msk.bf16.gmra.mxu0 %vm2707_vm0, %v4221_v4 }
 0x163   : > { %v2839_v30 = vpop.f32.mrf.mxu2 }
 0x164   : > { %v5587_v21 = vpop.f32.mrf.mxu0 }
 0x16a   : > { %v2888_v5 = vpop.f32.mrf.mxu3 }
 0x16b   : > { %v2841_v31 = vpop.f32.mrf.mxu2 }
 0x16c   : > { %v2790_v9 = vpop.f32.mrf.mxu1  ;;  %v2937_v11 = vpop.f32.mrf.mxu0 }
 0x16d   : > { %v2791_v60 = vadd.f32 %v2790_v9, %v2742_v1 }
 0x16f   : > { %v2840_v55 = vadd.f32 %v2839_v30, %v2791_v60 }
 0x171   : > { %v2889_v62 = vadd.f32 %v2888_v5, %v2840_v55 }
 0x172   : > { %v2890_v17 = vpop.f32.mrf.mxu3 }
 0x173   : > { %v2938_v45 = vadd.f32 %v2937_v11, %v2889_v62  ;;  %v2844_v38 = vpop.f32.mrf.mxu2 }
 0x174   : > { %v2792_v49 = vpop.f32.mrf.mxu1  ;;  %v2939_v48 = vpop.f32.mrf.mxu0 }
 0x175   : > { %v2977_v15 = vpack.c.bf16 %v2938_v45, %v2938_v45  ;;  %v3009_v16 = vmax.f32 %v2938_v45, 0.0  ;;  %v2793_v54 = vadd.f32 %v2792_v49, %v2744_v12  ;;  %v5615_v49 = vadd.f32 %v5539_v57, %v5550_v10 }
 0x177   : > { %2993 = vst.msk [vmem:[%s5596_s15] sm:$0xf] %vm478_vm6, %v2977_v15  ;;  %v3041_v33 = vrot.slane %v3009_v16, 2  ;;  %v3042_v50 = vrot.slane %v3009_v16, 4  ;;  %v3043_v63 = vrot.slane %v3009_v16, 6  ;;  %v3138_v25 = vsel %vm3137_vm1, %v3009_v16, -inf }
 0x178   : > { %v3139_v22 = vrot.slane %v3138_v25, 4  ;;  %v2842_v29 = vadd.f32 %v2841_v31, %v2793_v54 }
 0x179   : > { %v3145_v23 = vsel %vm3137_vm1, %v3041_v33, -inf  ;;  %v3152_v35 = vsel %vm3137_vm1, %v3042_v50, -inf  ;;  %v3159_v36 = vsel %vm3137_vm1, %v3043_v63, -inf }
 0x17a   : > { %v3140_v41 = vmax.f32 %v3138_v25, %v3139_v22  ;;  %v3146_v61 = vrot.slane %v3145_v23, 4  ;;  %v3153_v42 = vrot.slane %v3152_v35, 4  ;;  %v3160_v40 = vrot.slane %v3159_v36, 4  ;;  %v2893_v7 = vpop.f32.mrf.mxu3 }
 0x17b   : > { %v2891_v34 = vadd.f32 %v2890_v17, %v2842_v29  ;;  %v5605_v53 = vpop.f32.mrf.mxu2 }
 0x17c   : > { %v3141_v43 = vrot.slane %v3140_v41, 2  ;;  %v3147_v58 = vmax.f32 %v3145_v23, %v3146_v61  ;;  %v3154_v37 = vmax.f32 %v3152_v35, %v3153_v42  ;;  %v3161_v0 = vmax.f32 %v3159_v36, %v3160_v40  ;;  %v2795_v51 = vpop.f32.mrf.mxu1  ;;  %v2942_v10 = vpop.f32.mrf.mxu0 }
 0x17d   : > { %v2940_v39 = vadd.f32 %v2939_v48, %v2891_v34  ;;  %v2796_v28 = vadd.f32 %v2795_v51, %v2747_v46  ;;  %v2749_v61 = vadd.f32 %v5539_v57, %v5587_v21 }
 0x17e   : > { %v3142_v19 = vmax.f32 %v3140_v41, %v3141_v43  ;;  %v3148_v56 = vrot.slane %v3147_v58, 2  ;;  %v3155_v3 = vrot.slane %v3154_v37, 2  ;;  %v3162_v59 = vrot.slane %v3161_v0, 2 }
 0x17f   : > { %v2978_v4 = vpack.c.bf16 %v2940_v39, %v2940_v39  ;;  %v3010_v13 = vmax.f32 %v2940_v39, 0.0  ;;  %v2845_v55 = vadd.f32 %v2844_v38, %v2796_v28  ;;  %v5619_v38 = vadd.f32 %v5539_v57, %v5562_v32 }
 0x180   : > { %v3149_v24 = vmax.f32 %v3147_v58, %v3148_v56  ;;  %v3156_v26 = vmax.f32 %v3154_v37, %v3155_v3  ;;  %v3143_v60 = vrot.slane %v3142_v19, 1  ;;  %v3163_v31 = vmax.f32 %v3161_v0, %v3162_v59 }
 0x181   : > { %2994 = vst.msk [vmem:[%s5596_s15 + $0x4] sm:$0xf] %vm478_vm6, %v2978_v4  ;;  %v3044_v30 = vrot.slane %v3010_v13, 2  ;;  %v3045_v1 = vrot.slane %v3010_v13, 4  ;;  %v3046_v5 = vrot.slane %v3010_v13, 6  ;;  %v3166_v9 = vsel %vm3137_vm1, %v3010_v13, -inf }
 0x182   : > { %v3167_v62 = vrot.slane %v3166_v9, 4  ;;  %v3150_v15 = vrot.slane %v3149_v24, 1  ;;  %v3157_v16 = vrot.slane %v3156_v26, 1  ;;  %v3144_v25 = vmax.f32 %v3142_v19, %v3143_v60  ;;  %v2895_v37 = vpop.f32.mrf.mxu3 }
 0x183   : > { %v3173_v11 = vsel %vm3137_vm1, %v3044_v30, -inf  ;;  %v3180_v12 = vsel %vm3137_vm1, %v3045_v1, -inf  ;;  %v3187_v45 = vsel %vm3137_vm1, %v3046_v5, -inf  ;;  %v3164_v22 = vrot.slane %v3163_v31, 1  ;;  %v2849_v28 = vpop.f32.mrf.mxu2 }
 0x184   : > { %v2797_v17 = vpop.f32.mrf.mxu1  ;;  %v3168_v54 = vmax.f32 %v3166_v9, %v3167_v62  ;;  %v3174_v33 = vrot.slane %v3173_v11, 4  ;;  %v3181_v50 = vrot.slane %v3180_v12, 4  ;;  %v3188_v63 = vrot.slane %v3187_v45, 4 }
 0x185   : > { %v2894_v29 = vadd.f32 %v2893_v7, %v2845_v55  ;;  %v3151_v42 = vmax.f32 %v3149_v24, %v3150_v15  ;;  %v3158_v40 = vmax.f32 %v3156_v26, %v3157_v16  ;;  %v3165_v0 = vmax.f32 %v3163_v31, %v3164_v22 }
 0x186   : > { %v3169_v23 = vrot.slane %v3168_v54, 2  ;;  %v3175_v35 = vmax.f32 %v3173_v11, %v3174_v33  ;;  %v3182_v36 = vmax.f32 %v3180_v12, %v3181_v50  ;;  %v3189_v41 = vmax.f32 %v3187_v45, %v3188_v63 }
 0x187   : > { %v2943_v46 = vadd.f32 %v2942_v10, %v2894_v29  ;;  %v5624_v48 = vsel %vm2707_vm0, %v3144_v25, -inf  ;;  %v2798_v1 = vadd.f32 %v2797_v17, %v2749_v61  ;;  %v5633_v55 = vsel %vm2707_vm0, %v3151_v42, -inf  ;;  %v2944_v25 = vpop.f32.mrf.mxu0 }
 0x188   : > { %v3170_v34 = vmax.f32 %v3168_v54, %v3169_v23  ;;  %v3176_v43 = vrot.slane %v3175_v35, 2  ;;  %v3183_v58 = vrot.slane %v3182_v36, 2  ;;  %v3190_v32 = vrot.slane %v3189_v41, 2 }
 0x189   : > { %v2979_v51 = vpack.c.bf16 %v2943_v46, %v2943_v46  ;;  %v3011_v39 = vmax.f32 %v2943_v46, 0.0  ;;  %v3592_v33 = vsel %vm2707_vm0, %v3158_v40, -inf  ;;  %v3595_v17 = vsel %vm2707_vm0, %v3165_v0, -inf }
 0x18a   : > { %v3171_v19 = vrot.slane %v3170_v34, 1  ;;  %v3177_v56 = vmax.f32 %v3175_v35, %v3176_v43  ;;  %v3184_v3 = vmax.f32 %v3182_v36, %v3183_v58  ;;  %v3191_v57 = vmax.f32 %v3189_v41, %v3190_v32  ;;  %v5647_v42 = vpop.f32.mrf.mxu3 }
 0x18b   : > { %2995 = vst.msk [vmem:[%s5596_s15 + $0x8] sm:$0xf] %vm478_vm6, %v2979_v51  ;;  %v3047_v21 = vrot.slane %v3011_v39, 2  ;;  %v3048_v59 = vrot.slane %v3011_v39, 4  ;;  %v3049_v4 = vrot.slane %v3011_v39, 6  ;;  %v3194_v13 = vsel %vm3137_vm1, %v3011_v39, -inf  ;;  %v2851_v43 = vpop.f32.mrf.mxu2 }
 0x18c   : > { %v2800_v7 = vpop.f32.mrf.mxu1  ;;  %v3178_v24 = vrot.slane %v3177_v56, 1  ;;  %v3185_v26 = vrot.slane %v3184_v3, 1  ;;  %v3192_v30 = vrot.slane %v3191_v57, 1  ;;  %v3195_v5 = vrot.slane %v3194_v13, 4 }
 0x18d   : > { %v3201_v9 = vsel %vm3137_vm1, %v3047_v21, -inf  ;;  %v3208_v60 = vsel %vm3137_vm1, %v3048_v59, -inf  ;;  %v3215_v31 = vsel %vm3137_vm1, %v3049_v4, -inf  ;;  %v3172_v62 = vmax.f32 %v3170_v34, %v3171_v19 }
 0x18e   : > { %v3179_v11 = vmax.f32 %v3177_v56, %v3178_v24  ;;  %v3186_v12 = vmax.f32 %v3184_v3, %v3185_v26  ;;  %v3196_v45 = vmax.f32 %v3194_v13, %v3195_v5  ;;  %v3202_v15 = vrot.slane %v3201_v9, 4 }
 0x18f   : > { %v3209_v16 = vrot.slane %v3208_v60, 4  ;;  %v3216_v54 = vrot.slane %v3215_v31, 4  ;;  %v3193_v50 = vmax.f32 %v3191_v57, %v3192_v30  ;;  %v2847_v63 = vadd.f32 %v5605_v53, %v2798_v1 }
 0x190   : > { %v3197_v22 = vrot.slane %v3196_v45, 2  ;;  %v3203_v29 = vmax.f32 %v3201_v9, %v3202_v15  ;;  %v5639_v36 = vsel %vm2707_vm0, %v3172_v62, -inf  ;;  %v5642_v41 = vsel %vm2707_vm0, %v3179_v11, -inf }
 0x191   : > { %v3210_v23 = vmax.f32 %v3208_v60, %v3209_v16  ;;  %v3217_v35 = vmax.f32 %v3215_v31, %v3216_v54  ;;  %v5645_v10 = vsel %vm2707_vm0, %v3186_v12, -inf  ;;  %v2896_v61 = vadd.f32 %v2895_v37, %v2847_v63 }
 0x192   : > { %v3198_v40 = vmax.f32 %v3196_v45, %v3197_v22  ;;  %v3204_v46 = vrot.slane %v3203_v29, 2  ;;  %v5650_v32 = vsel %vm2707_vm0, %v3193_v50, -inf  ;;  %v2801_v51 = vadd.f32 %v2800_v7, %v5615_v49  ;;  %v2947_v45 = vpop.f32.mrf.mxu0 }
 0x193   : > { %v3211_v53 = vrot.slane %v3210_v23, 2  ;;  %v3218_v34 = vrot.slane %v3217_v35, 2  ;;  %v2945_v0 = vadd.f32 %v2944_v25, %v2896_v61 }
 0x194   : > { %v2802_v58 = vpop.f32.mrf.mxu1  ;;  %v3199_v19 = vrot.slane %v3198_v40, 1  ;;  %v3205_v56 = vmax.f32 %v3203_v29, %v3204_v46  ;;  %v2850_v59 = vadd.f32 %v2849_v28, %v2801_v51 }
 0x195   : > { %v2803_v39 = vadd.f32 %v2802_v58, %v5619_v38  ;;  %v3212_v37 = vmax.f32 %v3210_v23, %v3211_v53  ;;  %v3219_v3 = vmax.f32 %v3217_v35, %v3218_v34  ;;  %v2980_v57 = vpack.c.bf16 %v2945_v0, %v2945_v0  ;;  %v5666_v53 = vpop.f32.mrf.mxu2 }
 0x196   : > { %v3012_v21 = vmax.f32 %v2945_v0, 0.0  ;;  %v3200_v13 = vmax.f32 %v3198_v40, %v3199_v19  ;;  %v3206_v24 = vrot.slane %v3205_v56, 1 }
 0x197   : > { %v2852_v4 = vadd.f32 %v2851_v43, %v2803_v39  ;;  %v3213_v26 = vrot.slane %v3212_v37, 1  ;;  %v3220_v30 = vrot.slane %v3219_v3, 1  ;;  %2996 = vst.msk [vmem:[%s5596_s15 + $0xc] sm:$0xf] %vm478_vm6, %v2980_v57 }
 0x198   : > { %v3050_v49 = vrot.slane %v3012_v21, 2  ;;  %v3051_v7 = vrot.slane %v3012_v21, 4  ;;  %v3052_v1 = vrot.slane %v3012_v21, 6  ;;  %v3222_v38 = vsel %vm3137_vm1, %v3012_v21, -inf }
 0x199   : > { %v3207_v5 = vmax.f32 %v3205_v56, %v3206_v24  ;;  %v3214_v9 = vmax.f32 %v3212_v37, %v3213_v26  ;;  %v3221_v60 = vmax.f32 %v3219_v3, %v3220_v30  ;;  %v3587_v31 = vsel %vm2707_vm0, %v3200_v13, -inf }
 0x19a   : > { %v3588_v28 = vmax.f32 %v5624_v48, %v3587_v31  ;;  %v3223_v62 = vrot.slane %v3222_v38, 4  ;;  %v3229_v11 = vsel %vm3137_vm1, %v3050_v49, -inf  ;;  %v3236_v12 = vsel %vm3137_vm1, %v3051_v7, -inf  ;;  %v2900_v48 = vpop.f32.mrf.mxu3 }
 0x19b   : > { %v3590_v15 = vsel %vm2707_vm0, %v3207_v5, -inf  ;;  %v3593_v16 = vsel %vm2707_vm0, %v3214_v9, -inf  ;;  %v3596_v54 = vsel %vm2707_vm0, %v3221_v60, -inf  ;;  %v3230_v50 = vrot.slane %v3229_v11, 4 }
 0x19c   : > { %v2805_v63 = vpop.f32.mrf.mxu1  ;;  %v3591_v25 = vmax.f32 %v5633_v55, %v3590_v15  ;;  %v3594_v22 = vmax.f32 %v3592_v33, %v3593_v16  ;;  %v3597_v29 = vmax.f32 %v3595_v17, %v3596_v54  ;;  %v3682_v23 = vpack.c.bf16 %v3588_v28, %v3588_v28  ;;  %v2949_v28 = vpop.f32.mrf.mxu0 }
 0x19d   : > { %v3224_v35 = vmax.f32 %v3222_v38, %v3223_v62  ;;  %v3231_v61 = vmax.f32 %v3229_v11, %v3230_v50  ;;  %v3237_v40 = vrot.slane %v3236_v12, 4  ;;  %v3243_v46 = vsel %vm3137_vm1, %v3052_v1, -inf }
 0x19e   : > { %v3683_v34 = vpack.c.bf16 %v3591_v25, %v3591_v25  ;;  %v3684_v43 = vpack.c.bf16 %v3594_v22, %v3594_v22  ;;  %v3685_v58 = vpack.c.bf16 %v3597_v29, %v3597_v29  ;;  %v3746_v0 = vunpack.c.l.b16 %v3682_v23  ;;  %v5691_v29 = vpop.f32.mrf.mxu2 }
 0x19f   : > { %v3225_v51 = vrot.slane %v3224_v35, 2  ;;  %v3232_v39 = vrot.slane %v3231_v61, 2  ;;  %v3238_v19 = vmax.f32 %v3236_v12, %v3237_v40  ;;  %v3244_v55 = vrot.slane %v3243_v46, 4 }
 0x1a0   : > { %v3747_v33 = vunpack.c.l.b16 %v3683_v34  ;;  %v3748_v17 = vunpack.c.l.b16 %v3684_v43  ;;  %v3749_v56 = vunpack.c.l.b16 %v3685_v58  ;;  %v2899_v37 = vadd.f32 %v5647_v42, %v2850_v59 }
 0x1a1   : > { %v3226_v3 = vmax.f32 %v3224_v35, %v3225_v51  ;;  %v3233_v57 = vmax.f32 %v3231_v61, %v3232_v39  ;;  %v3239_v21 = vrot.slane %v3238_v19, 2  ;;  %v3245_v13 = vmax.f32 %v3243_v46, %v3244_v55 }
 0x1a2   : > { %v3779_v24 = vsel %vm3778_vm2, %v3747_v33, %v3746_v0  ;;  %v2948_v26 = vadd.f32 %v2947_v45, %v2899_v37  ;;  %v2901_v30 = vadd.f32 %v2900_v48, %v2852_v4  ;;  %v5672_v49 = vadd.f32 %v2805_v63, %v5571_v44  ;;  %v5686_v54 = vpop.f32.mrf.mxu3 }
 0x1a3   : > { %v3781_v7 = vsel %vm3780_vm3, %v3748_v17, %v3779_v24  ;;  %v3227_v1 = vrot.slane %v3226_v3, 1  ;;  %v3234_v38 = vrot.slane %v3233_v57, 1  ;;  %v3240_v5 = vmax.f32 %v3238_v19, %v3239_v21 }
 0x1a4   : > { %v5675_v42 = vpop.f32.mrf.mxu1  ;;  %v3783_v59 = vsel %vm3782_vm4, %v3749_v56, %v3781_v7  ;;  %v3246_v9 = vrot.slane %v3245_v13, 2  ;;  %v2981_v60 = vpack.c.bf16 %v2948_v26, %v2948_v26  ;;  %v3013_v31 = vmax.f32 %v2948_v26, 0.0 }
 0x1a5   : > { %v3228_v44 = vmax.f32 %v3226_v3, %v3227_v1  ;;  %v3235_v4 = vmax.f32 %v3233_v57, %v3234_v38  ;;  %v3241_v62 = vrot.slane %v3240_v5, 1  ;;  %v2950_v11 = vadd.f32 %v2949_v28, %v2901_v30 }
 0x1a6   : > { %v3247_v12 = vmax.f32 %v3245_v13, %v3246_v9  ;;  %2997 = vst.msk [vmem:[%s5596_s15 + $0x10] sm:$0xf] %vm478_vm6, %v2981_v60  ;;  %v3053_v45 = vrot.slane %v3013_v31, 2  ;;  %v3054_v15 = vrot.slane %v3013_v31, 4  ;;  %v3055_v16 = vrot.slane %v3013_v31, 6 }
 0x1a7   : > { %v3242_v50 = vmax.f32 %v3240_v5, %v3241_v62  ;;  %v3599_v63 = vsel %vm2707_vm0, %v3228_v44, -inf  ;;  %v3602_v25 = vsel %vm2707_vm0, %v3235_v4, -inf  ;;  %v3250_v22 = vsel %vm3137_vm1, %v3013_v31, -inf  ;;  %v2952_v44 = vpop.f32.mrf.mxu0 }
 0x1a8   : > { %v3248_v23 = vrot.slane %v3247_v12, 1  ;;  %v3600_v48 = vmax.f32 %v5639_v36, %v3599_v63  ;;  %v3603_v35 = vmax.f32 %v5642_v41, %v3602_v25  ;;  %v3251_v61 = vrot.slane %v3250_v22, 4 }
 0x1a9   : > { %v3605_v40 = vsel %vm2707_vm0, %v3242_v50, -inf  ;;  %v3257_v46 = vsel %vm3137_vm1, %v3053_v45, -inf  ;;  %v3264_v34 = vsel %vm3137_vm1, %v3054_v15, -inf  ;;  %v3271_v43 = vsel %vm3137_vm1, %v3055_v16, -inf  ;;  %v2859_v15 = vpop.f32.mrf.mxu2 }
 0x1aa   : > { %v3249_v58 = vmax.f32 %v3247_v12, %v3248_v23  ;;  %v3606_v0 = vmax.f32 %v5645_v10, %v3605_v40  ;;  %v3686_v36 = vpack.c.bf16 %v3600_v48, %v3600_v48  ;;  %v3687_v51 = vpack.c.bf16 %v3603_v35, %v3603_v35  ;;  %v2905_v4 = vpop.f32.mrf.mxu3 }
 0x1ab   : > { %v3252_v41 = vmax.f32 %v3250_v22, %v3251_v61  ;;  %v3258_v39 = vrot.slane %v3257_v46, 4  ;;  %v3265_v19 = vrot.slane %v3264_v34, 4  ;;  %v3272_v55 = vrot.slane %v3271_v43, 4 }
 0x1ac   : > { %v3608_v33 = vsel %vm2707_vm0, %v3249_v58, -inf  ;;  %v3688_v17 = vpack.c.bf16 %v3606_v0, %v3606_v0  ;;  %v3750_v56 = vunpack.c.l.b16 %v3686_v36  ;;  %v3751_v37 = vunpack.c.l.b16 %v3687_v51  ;;  %v2810_v13 = vpop.f32.mrf.mxu1 }
 0x1ad   : > { %v3609_v3 = vmax.f32 %v5650_v32, %v3608_v33  ;;  %v3253_v57 = vrot.slane %v3252_v41, 2  ;;  %v3259_v21 = vmax.f32 %v3257_v46, %v3258_v39  ;;  %v3266_v10 = vmax.f32 %v3264_v34, %v3265_v19 }
 0x1ae   : > { %v3752_v24 = vunpack.c.l.b16 %v3688_v17  ;;  %v3785_v26 = vsel %vm3784_vm5, %v3750_v56, %v3783_v59  ;;  %v3273_v30 = vmax.f32 %v3271_v43, %v3272_v55  ;;  %v2982_v7 = vpack.c.bf16 %v2950_v11, %v2950_v11 }
 0x1af   : > { %v3689_v1 = vpack.c.bf16 %v3609_v3, %v3609_v3  ;;  %v3787_v38 = vsel %vm3786_vm7, %v3751_v37, %v3785_v26  ;;  %v3254_v5 = vmax.f32 %v3252_v41, %v3253_v57  ;;  %v3260_v9 = vrot.slane %v3259_v21, 2 }
 0x1b0   : > { %v3789_v60 = vsel %vm3788_vm8, %v3752_v24, %v3787_v38  ;;  %v3267_v31 = vrot.slane %v3266_v10, 2  ;;  %v3274_v32 = vrot.slane %v3273_v30, 2  ;;  %2998 = vst.msk [vmem:[%s5596_s15 + $0x14] sm:$0xf] %vm478_vm6, %v2982_v7  ;;  %v3014_v28 = vmax.f32 %v2950_v11, 0.0  ;;  %v2954_v7 = vpop.f32.mrf.mxu0 }
 0x1b1   : > { %v3753_v62 = vunpack.c.l.b16 %v3689_v1  ;;  %v3255_v12 = vrot.slane %v3254_v5, 1  ;;  %v3261_v59 = vmax.f32 %v3259_v21, %v3260_v9  ;;  %v2855_v45 = vadd.f32 %v5666_v53, %v5672_v49 }
 0x1b2   : > { %v3268_v16 = vmax.f32 %v3266_v10, %v3267_v31  ;;  %v3275_v50 = vmax.f32 %v3273_v30, %v3274_v32  ;;  %v3056_v63 = vrot.slane %v3014_v28, 2  ;;  %v3057_v25 = vrot.slane %v3014_v28, 4  ;;  %v2908_v1 = vpop.f32.mrf.mxu3 }
 0x1b3   : > { %v3791_v11 = vsel %vm3790_vm9, %v3753_v62, %v3789_v60  ;;  %v3256_v22 = vmax.f32 %v3254_v5, %v3255_v12  ;;  %v3262_v23 = vrot.slane %v3261_v59, 1  ;;  %v3058_v48 = vrot.slane %v3014_v28, 6 }
 0x1b4   : > { %v3813_v35 = vpack.c.b16 %v3791_v11, %v3791_v11  ;;  %v3269_v61 = vrot.slane %v3268_v16, 1  ;;  %v3276_v40 = vrot.slane %v3275_v50, 1  ;;  %v3278_v53 = vsel %vm3137_vm1, %v3014_v28, -inf  ;;  %v2812_v33 = vpop.f32.mrf.mxu1  ;;  %v2861_v28 = vpop.f32.mrf.mxu2 }
 0x1b5   : > { %v3263_v49 = vmax.f32 %v3261_v59, %v3262_v23  ;;  %v5725_v46 = vsel %vm2707_vm0, %v3256_v22, -inf  ;;  %v3279_v34 = vrot.slane %v3278_v53, 4  ;;  %v3285_v43 = vsel %vm3137_vm1, %v3056_v63, -inf }
 0x1b6   : > { %3821 = vst.msk [vmem:[%s5720_s30] sm:$0xf] %vm478_vm6, %v3813_v35  ;;  %v3270_v58 = vmax.f32 %v3268_v16, %v3269_v61  ;;  %v3277_v0 = vmax.f32 %v3275_v50, %v3276_v40  ;;  %v3286_v36 = vrot.slane %v3285_v43, 4  ;;  %v3292_v51 = vsel %vm3137_vm1, %v3057_v25, -inf }
 0x1b7   : > { %v5732_v41 = vsel %vm2707_vm0, %v3263_v49, -inf  ;;  %v3280_v39 = vmax.f32 %v3278_v53, %v3279_v34  ;;  %v3293_v19 = vrot.slane %v3292_v51, 4  ;;  %v3299_v55 = vsel %vm3137_vm1, %v3058_v48, -inf }
 0x1b8   : > { %v5736_v17 = vsel %vm2707_vm0, %v3270_v58, -inf  ;;  %v5739_v56 = vsel %vm2707_vm0, %v3277_v0, -inf  ;;  %v3287_v37 = vmax.f32 %v3285_v43, %v3286_v36  ;;  %v3300_v3 = vrot.slane %v3299_v55, 4 }
 0x1b9   : > { %v3281_v57 = vrot.slane %v3280_v39, 2  ;;  %v3294_v21 = vmax.f32 %v3292_v51, %v3293_v19  ;;  %v2904_v10 = vadd.f32 %v5686_v54, %v2855_v45  ;;  %v2808_v24 = vadd.f32 %v5675_v42, %v5581_v2 }
 0x1ba   : > { %v3288_v26 = vrot.slane %v3287_v37, 2  ;;  %v3301_v30 = vmax.f32 %v3299_v55, %v3300_v3  ;;  %v2811_v38 = vadd.f32 %v2810_v13, %v5548_v14  ;;  %v2813_v5 = vadd.f32 %v2812_v33, %v5559_v27  ;;  %v2957_v33 = vpop.f32.mrf.mxu0 }
 0x1bb   : > { %v3282_v9 = vmax.f32 %v3280_v39, %v3281_v57  ;;  %v3295_v60 = vrot.slane %v3294_v21, 2  ;;  %v2953_v31 = vadd.f32 %v2952_v44, %v2904_v10  ;;  %v2857_v32 = vadd.f32 %v5691_v29, %v2808_v24 }
 0x1bc   : > { %v3289_v62 = vmax.f32 %v3287_v37, %v3288_v26  ;;  %v3302_v54 = vrot.slane %v3301_v30, 2  ;;  %v2860_v12 = vadd.f32 %v2859_v15, %v2811_v38  ;;  %v2862_v59 = vadd.f32 %v2861_v28, %v2813_v5  ;;  %v2910_v37 = vpop.f32.mrf.mxu3 }
 0x1bd   : > { %v3283_v2 = vrot.slane %v3282_v9, 1  ;;  %v3296_v42 = vmax.f32 %v3294_v21, %v3295_v60  ;;  %v2983_v45 = vpack.c.bf16 %v2953_v31, %v2953_v31  ;;  %v3015_v16 = vmax.f32 %v2953_v31, 0.0 }
 0x1be   : > { %v3290_v50 = vrot.slane %v3289_v62, 1  ;;  %v3303_v63 = vmax.f32 %v3301_v30, %v3302_v54  ;;  %v2906_v14 = vadd.f32 %v2905_v4, %v2857_v32  ;;  %v2909_v13 = vadd.f32 %v2908_v1, %v2860_v12 }
 0x1bf   : > { %v3284_v27 = vmax.f32 %v3282_v9, %v3283_v2  ;;  %v3297_v25 = vrot.slane %v3296_v42, 1  ;;  %2999 = vst.msk [vmem:[%s5596_s15 + $0x18] sm:$0xf] %vm478_vm6, %v2983_v45  ;;  %v3059_v44 = vrot.slane %v3015_v16, 2  ;;  %v3060_v29 = vrot.slane %v3015_v16, 4 }
 0x1c0   : > { %v3291_v11 = vmax.f32 %v3289_v62, %v3290_v50  ;;  %v3304_v22 = vrot.slane %v3303_v63, 1  ;;  %v3061_v23 = vrot.slane %v3015_v16, 6  ;;  %v3306_v15 = vsel %vm3137_vm1, %v3015_v16, -inf }
 0x1c1   : > { %v3298_v48 = vmax.f32 %v3296_v42, %v3297_v25  ;;  %v5751_v35 = vsel %vm2707_vm0, %v3284_v27, -inf  ;;  %v3307_v61 = vrot.slane %v3306_v15, 4  ;;  %v3313_v40 = vsel %vm3137_vm1, %v3059_v44, -inf }
 0x1c2   : > { %v3305_v4 = vmax.f32 %v3303_v63, %v3304_v22  ;;  %v5755_v53 = vsel %vm2707_vm0, %v3291_v11, -inf  ;;  %v3314_v49 = vrot.slane %v3313_v40, 4  ;;  %v3320_v34 = vsel %vm3137_vm1, %v3060_v29, -inf }
 0x1c3   : > { %v5759_v43 = vsel %vm2707_vm0, %v3298_v48, -inf  ;;  %v3308_v58 = vmax.f32 %v3306_v15, %v3307_v61  ;;  %v3321_v0 = vrot.slane %v3320_v34, 4  ;;  %v3327_v36 = vsel %vm3137_vm1, %v3061_v23, -inf }
 0x1c4   : > { %v5763_v51 = vsel %vm2707_vm0, %v3305_v4, -inf  ;;  %v3315_v39 = vmax.f32 %v3313_v40, %v3314_v49  ;;  %v3328_v19 = vrot.slane %v3327_v36, 4  ;;  %v2955_v55 = vadd.f32 %v2954_v7, %v2906_v14 }
 0x1c5   : > { %v3309_v3 = vrot.slane %v3308_v58, 2  ;;  %v3322_v57 = vmax.f32 %v3320_v34, %v3321_v0  ;;  %v2958_v21 = vadd.f32 %v2957_v33, %v2909_v13  ;;  %v5765_v10 = vadd.f32 %v2910_v37, %v2862_v59 }
 0x1c6   : > { %v3316_v24 = vrot.slane %v3315_v39, 2  ;;  %v3329_v26 = vmax.f32 %v3327_v36, %v3328_v19  ;;  %v2984_v30 = vpack.c.bf16 %v2955_v55, %v2955_v55  ;;  %v3016_v1 = vmax.f32 %v2955_v55, 0.0 }
 0x1c7   : > { %v3310_v38 = vmax.f32 %v3308_v58, %v3309_v3  ;;  %v3323_v5 = vrot.slane %v3322_v57, 2  ;;  %v2985_v9 = vpack.c.bf16 %v2958_v21, %v2958_v21  ;;  %v5767_v60 = vmax.f32 %v2958_v21, 0.0 }
 0x1c8   : > { %v3317_v31 = vmax.f32 %v3315_v39, %v3316_v24  ;;  %v3330_v7 = vrot.slane %v3329_v26, 2  ;;  %3000 = vst.msk [vmem:[%s5596_s15 + $0x1c] sm:$0xf] %vm478_vm6, %v2984_v30  ;;  %v3062_v32 = vrot.slane %v3016_v1, 2  ;;  %v3063_v28 = vrot.slane %v3016_v1, 4 }
 0x1c9   : > { %v3311_v62 = vrot.slane %v3310_v38, 1  ;;  %v3324_v54 = vmax.f32 %v3322_v57, %v3323_v5  ;;  %v3064_v12 = vrot.slane %v3016_v1, 6  ;;  %v3334_v59 = vsel %vm3137_vm1, %v3016_v1, -inf  ;;  %3001 = vst.msk [vmem:[%s5596_s15 + $0x20] sm:$0xf] %vm478_vm6, %v2985_v9 }
 0x1ca   : > { %v3318_v2 = vrot.slane %v3317_v31, 1  ;;  %v3331_v42 = vmax.f32 %v3329_v26, %v3330_v7  ;;  %v3335_v45 = vrot.slane %v3334_v59, 4  ;;  %v3341_v16 = vsel %vm3137_vm1, %v3062_v32, -inf }
 0x1cb   : > { %v3312_v50 = vmax.f32 %v3310_v38, %v3311_v62  ;;  %v3325_v63 = vrot.slane %v3324_v54, 1  ;;  %v3342_v14 = vrot.slane %v3341_v16, 4  ;;  %v3348_v13 = vsel %vm3137_vm1, %v3063_v28, -inf }
 0x1cc   : > { %v3319_v27 = vmax.f32 %v3317_v31, %v3318_v2  ;;  %v3332_v25 = vrot.slane %v3331_v42, 1  ;;  %v3336_v44 = vmax.f32 %v3334_v59, %v3335_v45  ;;  %v3349_v29 = vrot.slane %v3348_v13, 4 }
 0x1cd   : > { %v3326_v11 = vmax.f32 %v3324_v54, %v3325_v63  ;;  %v3611_v22 = vsel %vm2707_vm0, %v3312_v50, -inf  ;;  %v3343_v23 = vmax.f32 %v3341_v16, %v3342_v14  ;;  %v3355_v15 = vsel %vm3137_vm1, %v3064_v12, -inf }
 0x1ce   : > { %v3333_v48 = vmax.f32 %v3331_v42, %v3332_v25  ;;  %v3612_v61 = vmax.f32 %v5725_v46, %v3611_v22  ;;  %v3614_v40 = vsel %vm2707_vm0, %v3319_v27, -inf  ;;  %v3337_v4 = vrot.slane %v3336_v44, 2  ;;  %v2864_v25 = vpop.f32.mrf.mxu2 }
 0x1cf   : > { %v3615_v49 = vmax.f32 %v5732_v41, %v3614_v40  ;;  %v3617_v34 = vsel %vm2707_vm0, %v3326_v11, -inf  ;;  %v3344_v58 = vrot.slane %v3343_v23, 2  ;;  %v3350_v0 = vmax.f32 %v3348_v13, %v3349_v29  ;;  %v2815_v41 = vpop.f32.mrf.mxu1 }
 0x1d0   : > { %v3618_v36 = vmax.f32 %v5736_v17, %v3617_v34  ;;  %v3620_v39 = vsel %vm2707_vm0, %v3333_v48, -inf  ;;  %v3690_v19 = vpack.c.bf16 %v3612_v61, %v3612_v61  ;;  %v3338_v55 = vmax.f32 %v3336_v44, %v3337_v4 }
 0x1d1   : > { %v3621_v33 = vmax.f32 %v5739_v56, %v3620_v39  ;;  %v3691_v37 = vpack.c.bf16 %v3615_v49, %v3615_v49  ;;  %v3345_v3 = vmax.f32 %v3343_v23, %v3344_v58  ;;  %v3351_v46 = vrot.slane %v3350_v0, 2  ;;  %v2959_v23 = vpop.f32.mrf.mxu0 }
 0x1d2   : > { %v3692_v57 = vpack.c.bf16 %v3618_v36, %v3618_v36  ;;  %v3754_v21 = vunpack.c.l.b16 %v3690_v19  ;;  %v3339_v24 = vrot.slane %v3338_v55, 1  ;;  %v3356_v26 = vrot.slane %v3355_v15, 4 }
 0x1d3   : > { %v3693_v30 = vpack.c.bf16 %v3621_v33, %v3621_v33  ;;  %v3755_v1 = vunpack.c.l.b16 %v3691_v37  ;;  %v3346_v38 = vrot.slane %v3345_v3, 1  ;;  %v3352_v5 = vmax.f32 %v3350_v0, %v3351_v46 }
 0x1d4   : > { %v3756_v9 = vunpack.c.l.b16 %v3692_v57  ;;  %v3340_v17 = vmax.f32 %v3338_v55, %v3339_v24  ;;  %v3357_v31 = vmax.f32 %v3355_v15, %v3356_v26  ;;  %v3065_v7 = vrot.slane %v5767_v60, 2 }
 0x1d5   : > { %v3757_v32 = vunpack.c.l.b16 %v3693_v30  ;;  %v3792_v56 = vsel %vm3778_vm2, %v3755_v1, %v3754_v21  ;;  %v3347_v28 = vmax.f32 %v3345_v3, %v3346_v38  ;;  %v3353_v62 = vrot.slane %v3352_v5, 1 }
 0x1d6   : > { %v3793_v54 = vsel %vm3780_vm3, %v3756_v9, %v3792_v56  ;;  %v3358_v12 = vrot.slane %v3357_v31, 2  ;;  %v3623_v59 = vsel %vm2707_vm0, %v3340_v17, -inf  ;;  %v3066_v2 = vrot.slane %v5767_v60, 4 }
 0x1d7   : > { %v3794_v42 = vsel %vm3782_vm4, %v3757_v32, %v3793_v54  ;;  %v3354_v45 = vmax.f32 %v3352_v5, %v3353_v62  ;;  %v3624_v16 = vmax.f32 %v5751_v35, %v3623_v59  ;;  %v3626_v50 = vsel %vm2707_vm0, %v3347_v28, -inf  ;;  %v2817_v36 = vpop.f32.mrf.mxu1  ;;  %v2913_v5 = vpop.f32.mrf.mxu3 }
 0x1d8   : > { %v3359_v63 = vmax.f32 %v3357_v31, %v3358_v12  ;;  %v3627_v14 = vmax.f32 %v5755_v53, %v3626_v50  ;;  %v3067_v13 = vrot.slane %v5767_v60, 6  ;;  %v3362_v27 = vsel %vm3137_vm1, %v5767_v60, -inf }
 0x1d9   : > { %v3629_v44 = vsel %vm2707_vm0, %v3354_v45, -inf  ;;  %v3694_v29 = vpack.c.bf16 %v3624_v16, %v3624_v16  ;;  %v3363_v11 = vrot.slane %v3362_v27, 4  ;;  %v3369_v22 = vsel %vm3137_vm1, %v3065_v7, -inf }
 0x1da   : > { %v3360_v15 = vrot.slane %v3359_v63, 1  ;;  %v3630_v35 = vmax.f32 %v5759_v43, %v3629_v44  ;;  %v3695_v48 = vpack.c.bf16 %v3627_v14, %v3627_v14  ;;  %v3370_v61 = vrot.slane %v3369_v22, 4 }
 0x1db   : > { %v3758_v40 = vunpack.c.l.b16 %v3694_v29  ;;  %v3364_v53 = vmax.f32 %v3362_v27, %v3363_v11  ;;  %v3376_v4 = vsel %vm3137_vm1, %v3066_v2, -inf  ;;  %v3383_v49 = vsel %vm3137_vm1, %v3067_v13, -inf }
 0x1dc   : > { %v3361_v60 = vmax.f32 %v3359_v63, %v3360_v15  ;;  %v3696_v34 = vpack.c.bf16 %v3630_v35, %v3630_v35  ;;  %v3759_v58 = vunpack.c.l.b16 %v3695_v48  ;;  %v3371_v0 = vmax.f32 %v3369_v22, %v3370_v61 }
 0x1dd   : > { %v3795_v39 = vsel %vm3784_vm5, %v3758_v40, %v3794_v42  ;;  %v3365_v19 = vrot.slane %v3364_v53, 2  ;;  %v3377_v55 = vrot.slane %v3376_v4, 4  ;;  %v3384_v33 = vrot.slane %v3383_v49, 4  ;;  %v2962_v42 = vpop.f32.mrf.mxu0 }
 0x1de   : > { %v3632_v43 = vsel %vm2707_vm0, %v3361_v60, -inf  ;;  %v3760_v37 = vunpack.c.l.b16 %v3696_v34  ;;  %v3796_v3 = vsel %vm3786_vm7, %v3759_v58, %v3795_v39  ;;  %v3372_v46 = vrot.slane %v3371_v0, 2 }
 0x1df   : > { %v3633_v57 = vmax.f32 %v5763_v51, %v3632_v43  ;;  %v3366_v21 = vmax.f32 %v3364_v53, %v3365_v19  ;;  %v3378_v24 = vmax.f32 %v3376_v4, %v3377_v55  ;;  %v3385_v26 = vmax.f32 %v3383_v49, %v3384_v33  ;;  %v2866_v51 = vpop.f32.mrf.mxu2  ;;  %v2820_v29 = vpop.f32.mrf.mxu1 }
 0x1e0   : > { %v3797_v30 = vsel %vm3788_vm8, %v3760_v37, %v3796_v3  ;;  %v3373_v1 = vmax.f32 %v3371_v0, %v3372_v46  ;;  %v2960_v38 = vadd.f32 %v2959_v23, %v5765_v10  ;;  %v2816_v9 = vadd.f32 %v2815_v41, %v5568_v47  ;;  %v2915_v0 = vpop.f32.mrf.mxu3 }
 0x1e1   : > { %v3697_v17 = vpack.c.bf16 %v3633_v57, %v3633_v57  ;;  %v3367_v31 = vrot.slane %v3366_v21, 1  ;;  %v3379_v7 = vrot.slane %v3378_v24, 2  ;;  %v3386_v32 = vrot.slane %v3385_v26, 2 }
 0x1e2   : > { %v3374_v56 = vrot.slane %v3373_v1, 1  ;;  %v2986_v28 = vpack.c.bf16 %v2960_v38, %v2960_v38  ;;  %v3018_v62 = vmax.f32 %v2960_v38, 0.0  ;;  %v2865_v47 = vadd.f32 %v2864_v25, %v2816_v9 }
 0x1e3   : > { %v3761_v54 = vunpack.c.l.b16 %v3697_v17  ;;  %v3368_v12 = vmax.f32 %v3366_v21, %v3367_v31  ;;  %v3380_v59 = vmax.f32 %v3378_v24, %v3379_v7  ;;  %v3387_v2 = vmax.f32 %v3385_v26, %v3386_v32 }
 0x1e4   : > { %3002 = vst.msk [vmem:[%s5596_s15 + $0x24] sm:$0xf] %vm478_vm6, %v2986_v28  ;;  %v3068_v10 = vrot.slane %v3018_v62, 2  ;;  %v3069_v45 = vrot.slane %v3018_v62, 4  ;;  %v3070_v16 = vrot.slane %v3018_v62, 6  ;;  %v3375_v50 = vmax.f32 %v3373_v1, %v3374_v56 }
 0x1e5   : > { %v3798_v41 = vsel %vm3790_vm9, %v3761_v54, %v3797_v30  ;;  %v3381_v63 = vrot.slane %v3380_v59, 1  ;;  %v3388_v14 = vrot.slane %v3387_v2, 1  ;;  %v3390_v27 = vsel %vm3137_vm1, %v3018_v62, -inf  ;;  %v2964_v26 = vpop.f32.mrf.mxu0 }
 0x1e6   : > { %v3814_v13 = vpack.c.b16 %v3798_v41, %v3798_v41  ;;  %v3397_v44 = vsel %vm3137_vm1, %v3068_v10, -inf  ;;  %v5815_v22 = vsel %vm2707_vm0, %v3368_v12, -inf  ;;  %v3391_v23 = vrot.slane %v3390_v27, 4 }
 0x1e7   : > { %v3382_v11 = vmax.f32 %v3380_v59, %v3381_v63  ;;  %v3398_v15 = vrot.slane %v3397_v44, 4  ;;  %v3404_v25 = vsel %vm3137_vm1, %v3069_v45, -inf  ;;  %v3411_v35 = vsel %vm3137_vm1, %v3070_v16, -inf  ;;  %v2869_v46 = vpop.f32.mrf.mxu2 }
 0x1e8   : > { %3822 = vst.msk [vmem:[%s5720_s30 + $0x4] sm:$0xf] %vm478_vm6, %v3814_v13  ;;  %v2914_v48 = vadd.f32 %v2913_v5, %v2865_v47  ;;  %v2818_v61 = vadd.f32 %v2817_v36, %v5578_v18  ;;  %v3389_v40 = vmax.f32 %v3387_v2, %v3388_v14  ;;  %v5823_v53 = vsel %vm2707_vm0, %v3375_v50, -inf }
 0x1e9   : > { %v3392_v4 = vmax.f32 %v3390_v27, %v3391_v23  ;;  %v3399_v49 = vmax.f32 %v3397_v44, %v3398_v15  ;;  %v3405_v60 = vrot.slane %v3404_v25, 4  ;;  %v3412_v34 = vrot.slane %v3411_v35, 4 }
 0x1ea   : > { %v2963_v58 = vadd.f32 %v2962_v42, %v2914_v48  ;;  %v2867_v39 = vadd.f32 %v2866_v51, %v2818_v61  ;;  %v5826_v19 = vsel %vm2707_vm0, %v3382_v11, -inf  ;;  %v2821_v43 = vadd.f32 %v2820_v29, %v5544_v6  ;;  %v2822_v51 = vpop.f32.mrf.mxu1  ;;  %v2918_v29 = vpop.f32.mrf.mxu3 }
 0x1eb   : > { %v3393_v55 = vrot.slane %v3392_v4, 2  ;;  %v3400_v33 = vrot.slane %v3399_v49, 2  ;;  %v3406_v18 = vmax.f32 %v3404_v25, %v3405_v60  ;;  %v3413_v36 = vmax.f32 %v3411_v35, %v3412_v34 }
 0x1ec   : > { %v2987_v37 = vpack.c.bf16 %v2963_v58, %v2963_v58  ;;  %v3019_v3 = vmax.f32 %v2963_v58, 0.0  ;;  %v2916_v24 = vadd.f32 %v2915_v0, %v2867_v39  ;;  %v2870_v30 = vadd.f32 %v2869_v46, %v2821_v43 }
 0x1ed   : > { %v3394_v57 = vmax.f32 %v3392_v4, %v3393_v55  ;;  %v3401_v21 = vmax.f32 %v3399_v49, %v3400_v33  ;;  %v3407_v1 = vrot.slane %v3406_v18, 2  ;;  %v3414_v38 = vrot.slane %v3413_v36, 2  ;;  %v2967_v34 = vpop.f32.mrf.mxu0 }
 0x1ee   : > { %3003 = vst.msk [vmem:[%s5596_s15 + $0x28] sm:$0xf] %vm478_vm6, %v2987_v37  ;;  %v3071_v5 = vrot.slane %v3019_v3, 2  ;;  %v3072_v9 = vrot.slane %v3019_v3, 4  ;;  %v3073_v7 = vrot.slane %v3019_v3, 6  ;;  %v3418_v6 = vsel %vm3137_vm1, %v3019_v3, -inf }
 0x1ef   : > { %v3395_v17 = vrot.slane %v3394_v57, 1  ;;  %v3402_v31 = vrot.slane %v3401_v21, 1  ;;  %v3408_v32 = vmax.f32 %v3406_v18, %v3407_v1  ;;  %v3415_v56 = vmax.f32 %v3413_v36, %v3414_v38 }
 0x1f0   : > { %v3419_v28 = vrot.slane %v3418_v6, 4  ;;  %v3425_v62 = vsel %vm3137_vm1, %v3071_v5, -inf  ;;  %v3432_v2 = vsel %vm3137_vm1, %v3072_v9, -inf  ;;  %v5835_v47 = vsel %vm2707_vm0, %v3389_v40, -inf }
 0x1f1   : > { %v3396_v54 = vmax.f32 %v3394_v57, %v3395_v17  ;;  %v3403_v12 = vmax.f32 %v3401_v21, %v3402_v31  ;;  %v3426_v59 = vrot.slane %v3425_v62, 4  ;;  %v3409_v42 = vrot.slane %v3408_v32, 1 }
 0x1f2   : > { %v3416_v10 = vrot.slane %v3415_v56, 1  ;;  %v3420_v45 = vmax.f32 %v3418_v6, %v3419_v28  ;;  %v3433_v16 = vrot.slane %v3432_v2, 4  ;;  %v3439_v50 = vsel %vm3137_vm1, %v3073_v7, -inf }
 0x1f3   : > { %v3427_v41 = vmax.f32 %v3425_v62, %v3426_v59  ;;  %v5839_v63 = vadd.f32 %v2822_v51, %v5555_v20  ;;  %v3410_v14 = vmax.f32 %v3408_v32, %v3409_v42  ;;  %v5842_v13 = vsel %vm2707_vm0, %v3396_v54, -inf }
 0x1f4   : > { %v3421_v27 = vrot.slane %v3420_v45, 2  ;;  %v3434_v44 = vmax.f32 %v3432_v2, %v3433_v16  ;;  %v3440_v23 = vrot.slane %v3439_v50, 4  ;;  %v2965_v15 = vadd.f32 %v2964_v26, %v2916_v24 }
 0x1f5   : > { %v3428_v11 = vrot.slane %v3427_v41, 2  ;;  %v2919_v25 = vadd.f32 %v2918_v29, %v2870_v30  ;;  %v5844_v35 = vmax.f32 %v3415_v56, %v3416_v10  ;;  %v5847_v48 = vsel %vm2707_vm0, %v3403_v12, -inf }
 0x1f6   : > { %v3422_v61 = vmax.f32 %v3420_v45, %v3421_v27  ;;  %v3435_v20 = vrot.slane %v3434_v44, 2  ;;  %v3441_v4 = vmax.f32 %v3439_v50, %v3440_v23  ;;  %v2988_v49 = vpack.c.bf16 %v2965_v15, %v2965_v15 }
 0x1f7   : > { %v3429_v40 = vmax.f32 %v3427_v41, %v3428_v11  ;;  %v3020_v60 = vmax.f32 %v2965_v15, 0.0  ;;  %v5850_v58 = vsel %vm2707_vm0, %v3410_v14, -inf  ;;  %v2968_v55 = vadd.f32 %v2967_v34, %v2919_v25 }
 0x1f8   : > { %v3423_v0 = vrot.slane %v3422_v61, 1  ;;  %v3436_v39 = vmax.f32 %v3434_v44, %v3435_v20  ;;  %v3442_v43 = vrot.slane %v3441_v4, 2  ;;  %3004 = vst.msk [vmem:[%s5596_s15 + $0x2c] sm:$0xf] %vm478_vm6, %v2988_v49 }
 0x1f9   : > { %v3430_v33 = vrot.slane %v3429_v40, 1  ;;  %v3074_v18 = vrot.slane %v3020_v60, 2  ;;  %v3075_v36 = vrot.slane %v3020_v60, 4  ;;  %v3076_v46 = vrot.slane %v3020_v60, 6 }
 0x1fa   : > { %v3424_v37 = vmax.f32 %v3422_v61, %v3423_v0  ;;  %v3437_v3 = vrot.slane %v3436_v39, 1  ;;  %v3446_v57 = vsel %vm3137_vm1, %v3020_v60, -inf  ;;  %v3443_v24 = vmax.f32 %v3441_v4, %v3442_v43 }
 0x1fb   : > { %v3431_v21 = vmax.f32 %v3429_v40, %v3430_v33  ;;  %v3447_v26 = vrot.slane %v3446_v57, 4  ;;  %v3453_v30 = vsel %vm3137_vm1, %v3074_v18, -inf  ;;  %v3460_v9 = vsel %vm3137_vm1, %v3075_v36, -inf }
 0x1fc   : > { %v3438_v1 = vmax.f32 %v3436_v39, %v3437_v3  ;;  %v3635_v38 = vsel %vm2707_vm0, %v3424_v37, -inf  ;;  %v3454_v5 = vrot.slane %v3453_v30, 4  ;;  %v3444_v17 = vrot.slane %v3443_v24, 1 }
 0x1fd   : > { %v3636_v31 = vmax.f32 %v5815_v22, %v3635_v38  ;;  %v3638_v7 = vsel %vm2707_vm0, %v3431_v21, -inf  ;;  %v3448_v6 = vmax.f32 %v3446_v57, %v3447_v26  ;;  %v3461_v62 = vrot.slane %v3460_v9, 4 }
 0x1fe   : > { %v3639_v32 = vmax.f32 %v5823_v53, %v3638_v7  ;;  %v3641_v56 = vsel %vm2707_vm0, %v3438_v1, -inf  ;;  %v3455_v28 = vmax.f32 %v3453_v30, %v3454_v5  ;;  %v3445_v51 = vmax.f32 %v3443_v24, %v3444_v17 }
 0x1ff   : > { %v3642_v54 = vmax.f32 %v5826_v19, %v3641_v56  ;;  %v3698_v12 = vpack.c.bf16 %v3636_v31, %v3636_v31  ;;  %v3449_v59 = vrot.slane %v3448_v6, 2  ;;  %v3462_v10 = vmax.f32 %v3460_v9, %v3461_v62  ;;  %v2920_v56 = vpop.f32.mrf.mxu3 }
 0x200   : > { %v3699_v2 = vpack.c.bf16 %v3639_v32, %v3639_v32  ;;  %v3456_v42 = vrot.slane %v3455_v28, 2  ;;  %v3467_v45 = vsel %vm3137_vm1, %v3076_v46, -inf  ;;  %v3644_v22 = vsel %vm2707_vm0, %v3445_v51, -inf }
 0x201   : > { %v3700_v16 = vpack.c.bf16 %v3642_v54, %v3642_v54  ;;  %v3762_v41 = vunpack.c.l.b16 %v3698_v12  ;;  %v3450_v50 = vmax.f32 %v3448_v6, %v3449_v59  ;;  %v3645_v53 = vmax.f32 %v5835_v47, %v3644_v22  ;;  %v2871_v47 = vpop.f32.mrf.mxu2  ;;  %v2825_v12 = vpop.f32.mrf.mxu1 }
 0x202   : > { %v3763_v14 = vunpack.c.l.b16 %v3699_v2  ;;  %v3457_v27 = vmax.f32 %v3455_v28, %v3456_v42  ;;  %v3463_v44 = vrot.slane %v3462_v10, 2  ;;  %v3468_v11 = vrot.slane %v3467_v45, 4 }
 0x203   : > { %v3764_v29 = vunpack.c.l.b16 %v3700_v16  ;;  %v3451_v19 = vrot.slane %v3450_v50, 1  ;;  %v2989_v23 = vpack.c.bf16 %v2968_v55, %v2968_v55  ;;  %v3701_v15 = vpack.c.bf16 %v3645_v53, %v3645_v53 }
 0x204   : > { %v3799_v25 = vsel %vm3778_vm2, %v3763_v14, %v3762_v41  ;;  %v3458_v61 = vrot.slane %v3457_v27, 1  ;;  %v3464_v20 = vmax.f32 %v3462_v10, %v3463_v44  ;;  %v3469_v49 = vmax.f32 %v3467_v45, %v3468_v11  ;;  %v2969_v14 = vpop.f32.mrf.mxu0 }
 0x205   : > { %v3800_v40 = vsel %vm3780_vm3, %v3764_v29, %v3799_v25  ;;  %v3452_v4 = vmax.f32 %v3450_v50, %v3451_v19  ;;  %3005 = vst.msk [vmem:[%s5596_s15 + $0x30] sm:$0xf] %vm478_vm6, %v2989_v23  ;;  %v3021_v60 = vmax.f32 %v2968_v55, 0.0  ;;  %v3765_v34 = vunpack.c.l.b16 %v3701_v15 }
 0x206   : > { %v3459_v0 = vmax.f32 %v3457_v27, %v3458_v61  ;;  %v3465_v39 = vrot.slane %v3464_v20, 1  ;;  %v2872_v33 = vadd.f32 %v2871_v47, %v5839_v63  ;;  %v3470_v43 = vrot.slane %v3469_v49, 2 }
 0x207   : > { %v3647_v18 = vsel %vm2707_vm0, %v3452_v4, -inf  ;;  %v3077_v36 = vrot.slane %v3021_v60, 2  ;;  %v3078_v37 = vrot.slane %v3021_v60, 4  ;;  %v3801_v3 = vsel %vm3782_vm4, %v3765_v34, %v3800_v40 }
 0x208   : > { %v3466_v46 = vmax.f32 %v3464_v20, %v3465_v39  ;;  %v3648_v57 = vmax.f32 %v5842_v13, %v3647_v18  ;;  %v3650_v21 = vsel %vm2707_vm0, %v3459_v0, -inf  ;;  %v3471_v24 = vmax.f32 %v3469_v49, %v3470_v43  ;;  %v2923_v18 = vpop.f32.mrf.mxu3 }
 0x209   : > { %v3651_v55 = vmax.f32 %v5847_v48, %v3650_v21  ;;  %v3079_v26 = vrot.slane %v3021_v60, 6  ;;  %v3474_v30 = vsel %vm3137_vm1, %v3021_v60, -inf  ;;  %v3481_v5 = vsel %vm3137_vm1, %v3077_v36, -inf  ;;  %v2874_v25 = vpop.f32.mrf.mxu2  ;;  %v2827_v36 = vpop.f32.mrf.mxu1 }
 0x20a   : > { %v3653_v63 = vsel %vm2707_vm0, %v3466_v46, -inf  ;;  %v3702_v1 = vpack.c.bf16 %v3648_v57, %v3648_v57  ;;  %v3475_v38 = vrot.slane %v3474_v30, 4  ;;  %v3472_v9 = vrot.slane %v3471_v24, 1 }
 0x20b   : > { %v3654_v17 = vmax.f32 %v5850_v58, %v3653_v63  ;;  %v3703_v31 = vpack.c.bf16 %v3651_v55, %v3651_v55  ;;  %v3482_v7 = vrot.slane %v3481_v5, 4  ;;  %v3488_v32 = vsel %vm3137_vm1, %v3078_v37, -inf }
 0x20c   : > { %v3766_v13 = vunpack.c.l.b16 %v3702_v1  ;;  %v3476_v6 = vmax.f32 %v3474_v30, %v3475_v38  ;;  %v3495_v48 = vsel %vm3137_vm1, %v3079_v26, -inf  ;;  %v3473_v28 = vmax.f32 %v3471_v24, %v3472_v9  ;;  %v2972_v1 = vpop.f32.mrf.mxu0 }
 0x20d   : > { %v3704_v62 = vpack.c.bf16 %v3654_v17, %v3654_v17  ;;  %v3767_v51 = vunpack.c.l.b16 %v3703_v31  ;;  %v2921_v54 = vadd.f32 %v2920_v56, %v2872_v33  ;;  %v3483_v2 = vmax.f32 %v3481_v5, %v3482_v7 }
 0x20e   : > { %v3802_v59 = vsel %vm3784_vm5, %v3766_v13, %v3801_v3  ;;  %v3489_v42 = vrot.slane %v3488_v32, 4  ;;  %v3496_v10 = vrot.slane %v3495_v48, 4  ;;  %v3655_v58 = vsel %vm2707_vm0, %v5844_v35, -inf }
 0x20f   : > { %v3656_v45 = vsel %vm2707_vm0, %v3473_v28, -inf  ;;  %v3768_v22 = vunpack.c.l.b16 %v3704_v62  ;;  %v3803_v16 = vsel %vm3786_vm7, %v3767_v51, %v3802_v59  ;;  %v3477_v50 = vrot.slane %v3476_v6, 2 }
 0x210   : > { %v3657_v41 = vmax.f32 %v3655_v58, %v3656_v45  ;;  %v3490_v53 = vmax.f32 %v3488_v32, %v3489_v42  ;;  %v2970_v44 = vadd.f32 %v2969_v14, %v2921_v54  ;;  %v2826_v29 = vadd.f32 %v2825_v12, %v5575_v52 }
 0x211   : > { %v3804_v27 = vsel %vm3788_vm8, %v3768_v22, %v3803_v16  ;;  %v3484_v11 = vrot.slane %v3483_v2, 2  ;;  %v3497_v23 = vmax.f32 %v3495_v48, %v3496_v10  ;;  %v3478_v20 = vmax.f32 %v3476_v6, %v3477_v50  ;;  %v2876_v28 = vpop.f32.mrf.mxu2 }
 0x212   : > { %v3705_v19 = vpack.c.bf16 %v3657_v41, %v3657_v41  ;;  %v2990_v15 = vpack.c.bf16 %v2970_v44, %v2970_v44  ;;  %v3022_v35 = vmax.f32 %v2970_v44, 0.0  ;;  %v3491_v40 = vrot.slane %v3490_v53, 2 }
 0x213   : > { %v2875_v47 = vadd.f32 %v2874_v25, %v2826_v29  ;;  %v3485_v0 = vmax.f32 %v3483_v2, %v3484_v11  ;;  %v3498_v52 = vrot.slane %v3497_v23, 2  ;;  %v3479_v37 = vrot.slane %v3478_v20, 1 }
 0x214   : > { %v3769_v61 = vunpack.c.l.b16 %v3705_v19  ;;  %3006 = vst.msk [vmem:[%s5596_s15 + $0x34] sm:$0xf] %vm478_vm6, %v2990_v15  ;;  %v3080_v4 = vrot.slane %v3022_v35, 2  ;;  %v3081_v49 = vrot.slane %v3022_v35, 4  ;;  %v3082_v60 = vrot.slane %v3022_v35, 6 }
 0x215   : > { %v3502_v33 = vsel %vm3137_vm1, %v3022_v35, -inf  ;;  %v3492_v3 = vmax.f32 %v3490_v53, %v3491_v40  ;;  %v2924_v55 = vadd.f32 %v2923_v18, %v2875_v47  ;;  %v3486_v26 = vrot.slane %v3485_v0, 1  ;;  %v2925_v53 = vpop.f32.mrf.mxu3  ;;  %v2974_v47 = vpop.f32.mrf.mxu0 }
 0x216   : > { %v3805_v34 = vsel %vm3790_vm9, %v3769_v61, %v3804_v27  ;;  %v3509_v43 = vsel %vm3137_vm1, %v3080_v4, -inf  ;;  %v3503_v46 = vrot.slane %v3502_v33, 4  ;;  %v3516_v21 = vsel %vm3137_vm1, %v3081_v49, -inf }
 0x217   : > { %v3815_v39 = vpack.c.b16 %v3805_v34, %v3805_v34  ;;  %v3510_v57 = vrot.slane %v3509_v43, 4  ;;  %v3523_v24 = vsel %vm3137_vm1, %v3082_v60, -inf  ;;  %v3499_v30 = vmax.f32 %v3497_v23, %v3498_v52 }
 0x218   : > { %v3504_v63 = vmax.f32 %v3502_v33, %v3503_v46  ;;  %v2828_v38 = vadd.f32 %v2827_v36, %v5585_v8  ;;  %v3517_v9 = vrot.slane %v3516_v21, 4  ;;  %v3524_v17 = vrot.slane %v3523_v24, 4 }
 0x219   : > { %3823 = vst.msk [vmem:[%s5720_s30 + $0x8] sm:$0xf] %vm478_vm6, %v3815_v39  ;;  %v3511_v5 = vmax.f32 %v3509_v43, %v3510_v57  ;;  %v2973_v31 = vadd.f32 %v2972_v1, %v2924_v55  ;;  %v3480_v7 = vmax.f32 %v3478_v20, %v3479_v37  ;;  %v3493_v13 = vrot.slane %v3492_v3, 1 }
 0x21a   : > { %v3505_v6 = vrot.slane %v3504_v63, 2  ;;  %v3518_v32 = vmax.f32 %v3516_v21, %v3517_v9  ;;  %v3487_v62 = vmax.f32 %v3485_v0, %v3486_v26  ;;  %v3500_v51 = vrot.slane %v3499_v30, 1 }
 0x21b   : > { %v2991_v48 = vpack.c.bf16 %v2973_v31, %v2973_v31  ;;  %v3023_v56 = vmax.f32 %v2973_v31, 0.0  ;;  %v2877_v54 = vadd.f32 %v2876_v28, %v2828_v38  ;;  %v3512_v12 = vrot.slane %v3511_v5, 2 }
 0x21c   : > { %v3525_v59 = vmax.f32 %v3523_v24, %v3524_v17  ;;  %v3494_v42 = vmax.f32 %v3492_v3, %v3493_v13  ;;  %v3658_v10 = vsel %vm2707_vm0, %v3480_v7, -inf  ;;  %v3506_v22 = vmax.f32 %v3504_v63, %v3505_v6 }
 0x21d   : > { %3007 = vst.msk [vmem:[%s5596_s15 + $0x38] sm:$0xf] %vm478_vm6, %v2991_v48  ;;  %v3083_v8 = vrot.slane %v3023_v56, 2  ;;  %v3084_v2 = vrot.slane %v3023_v56, 4  ;;  %v3085_v58 = vrot.slane %v3023_v56, 6  ;;  %v3530_v45 = vsel %vm3137_vm1, %v3023_v56, -inf }
 0x21e   : > { %v3519_v16 = vrot.slane %v3518_v32, 2  ;;  %v3531_v41 = vrot.slane %v3530_v45, 4  ;;  %v3501_v14 = vmax.f32 %v3499_v30, %v3500_v51  ;;  %v2926_v29 = vadd.f32 %v2925_v53, %v2877_v54 }
 0x21f   : > { %v3537_v50 = vsel %vm3137_vm1, %v3083_v8, -inf  ;;  %v3544_v44 = vsel %vm3137_vm1, %v3084_v2, -inf  ;;  %v5905_v19 = vmax.f32 %v3511_v5, %v3512_v12  ;;  %v3526_v11 = vrot.slane %v3525_v59, 2 }
 0x220   : > { %v3538_v27 = vrot.slane %v3537_v50, 4  ;;  %v3532_v23 = vmax.f32 %v3530_v45, %v3531_v41  ;;  %v3545_v15 = vrot.slane %v3544_v44, 4  ;;  %v3661_v35 = vsel %vm2707_vm0, %v3487_v62, -inf }
 0x221   : > { %v3664_v25 = vsel %vm2707_vm0, %v3494_v42, -inf  ;;  %v3551_v20 = vsel %vm3137_vm1, %v3085_v58, -inf  ;;  %v3507_v40 = vrot.slane %v3506_v22, 1  ;;  %v5910_v4 = vmax.f32 %v3518_v32, %v3519_v16 }
 0x222   : > { %v3539_v61 = vmax.f32 %v3537_v50, %v3538_v27  ;;  %v3533_v49 = vrot.slane %v3532_v23, 2  ;;  %v3546_v60 = vmax.f32 %v3544_v44, %v3545_v15  ;;  %v3667_v34 = vsel %vm2707_vm0, %v3501_v14, -inf }
 0x223   : > { %v3552_v52 = vrot.slane %v3551_v20, 4  ;;  %v2975_v39 = vadd.f32 %v2974_v47, %v2926_v29  ;;  %v3514_v33 = vrot.slane %v5905_v19, 1  ;;  %v5914_v43 = vmax.f32 %v3525_v59, %v3526_v11 }
 0x224   : > { %v3540_v0 = vrot.slane %v3539_v61, 2  ;;  %v3534_v18 = vmax.f32 %v3532_v23, %v3533_v49  ;;  %v3547_v36 = vrot.slane %v3546_v60, 2  ;;  %v3508_v21 = vmax.f32 %v3506_v22, %v3507_v40 }
 0x225   : > { %v3553_v3 = vmax.f32 %v3551_v20, %v3552_v52  ;;  %v2992_v46 = vpack.c.bf16 %v2975_v39, %v2975_v39  ;;  %v3024_v57 = vmax.f32 %v2975_v39, 0.0  ;;  %v3521_v24 = vrot.slane %v5910_v4, 1 }
 0x226   : > { %v3541_v37 = vmax.f32 %v3539_v61, %v3540_v0  ;;  %v3535_v55 = vrot.slane %v3534_v18, 1  ;;  %v3548_v26 = vmax.f32 %v3546_v60, %v3547_v36  ;;  %v3515_v20 = vmax.f32 %v5905_v19, %v3514_v33 }
 0x227   : > { %v3554_v63 = vrot.slane %v3553_v3, 2  ;;  %3008 = vst.msk [vmem:[%s5596_s15 + $0x3c] sm:$0xf] %vm478_vm6, %v2992_v46  ;;  %v3086_v1 = vrot.slane %v3024_v57, 2  ;;  %v3087_v38 = vrot.slane %v3024_v57, 4  ;;  %v3088_v17 = vrot.slane %v3024_v57, 6 }
 0x228   : > { %v3542_v30 = vrot.slane %v3541_v37, 1  ;;  %v3536_v5 = vmax.f32 %v3534_v18, %v3535_v55  ;;  %v3549_v9 = vrot.slane %v3548_v26, 1  ;;  %v3558_v31 = vsel %vm3137_vm1, %v3024_v57, -inf }
 0x229   : > { %v3555_v13 = vmax.f32 %v3553_v3, %v3554_v63  ;;  %v3559_v6 = vrot.slane %v3558_v31, 4  ;;  %v3565_v32 = vsel %vm3137_vm1, %v3086_v1, -inf  ;;  %v3572_v62 = vsel %vm3137_vm1, %v3087_v38, -inf }
 0x22a   : > { %v3543_v7 = vmax.f32 %v3541_v37, %v3542_v30  ;;  %v3550_v48 = vmax.f32 %v3548_v26, %v3549_v9  ;;  %v3659_v56 = vsel %vm2707_vm0, %v3536_v5, -inf  ;;  %v3566_v28 = vrot.slane %v3565_v32, 4 }
 0x22b   : > { %v3556_v51 = vrot.slane %v3555_v13, 1  ;;  %v3660_v54 = vmax.f32 %v3658_v10, %v3659_v56  ;;  %v3560_v59 = vmax.f32 %v3558_v31, %v3559_v6  ;;  %v3573_v58 = vrot.slane %v3572_v62, 4 }
 0x22c   : > { %v3662_v12 = vsel %vm2707_vm0, %v3543_v7, -inf  ;;  %v3665_v2 = vsel %vm2707_vm0, %v3550_v48, -inf  ;;  %v3567_v42 = vmax.f32 %v3565_v32, %v3566_v28  ;;  %v3579_v27 = vsel %vm3137_vm1, %v3088_v17, -inf }
 0x22d   : > { %v3663_v8 = vmax.f32 %v3661_v35, %v3662_v12  ;;  %v3557_v45 = vmax.f32 %v3555_v13, %v3556_v51  ;;  %v3666_v22 = vmax.f32 %v3664_v25, %v3665_v2  ;;  %v3706_v16 = vpack.c.bf16 %v3660_v54, %v3660_v54 }
 0x22e   : > { %v3561_v41 = vrot.slane %v3560_v59, 2  ;;  %v3568_v53 = vrot.slane %v3567_v42, 2  ;;  %v3574_v14 = vmax.f32 %v3572_v62, %v3573_v58  ;;  %v3580_v49 = vrot.slane %v3579_v27, 4 }
 0x22f   : > { %v3707_v50 = vpack.c.bf16 %v3663_v8, %v3663_v8  ;;  %v3668_v44 = vsel %vm2707_vm0, %v3557_v45, -inf  ;;  %v3708_v10 = vpack.c.bf16 %v3666_v22, %v3666_v22  ;;  %v3770_v29 = vunpack.c.l.b16 %v3706_v16 }
 0x230   : > { %v3562_v11 = vmax.f32 %v3560_v59, %v3561_v41  ;;  %v3669_v23 = vmax.f32 %v3667_v34, %v3668_v44  ;;  %v3569_v35 = vmax.f32 %v3567_v42, %v3568_v53  ;;  %v3575_v61 = vrot.slane %v3574_v14, 2 }
 0x231   : > { %v3771_v15 = vunpack.c.l.b16 %v3707_v50  ;;  %v3772_v40 = vunpack.c.l.b16 %v3708_v10  ;;  %v3528_v39 = vrot.slane %v5914_v43, 1  ;;  %v3581_v37 = vmax.f32 %v3579_v27, %v3580_v49 }
 0x232   : > { %v3563_v25 = vrot.slane %v3562_v11, 1  ;;  %v3709_v60 = vpack.c.bf16 %v3669_v23, %v3669_v23  ;;  %v3570_v0 = vrot.slane %v3569_v35, 1  ;;  %v3576_v52 = vmax.f32 %v3574_v14, %v3575_v61 }
 0x233   : > { %v3806_v47 = vsel %vm3778_vm2, %v3771_v15, %v3770_v29  ;;  %v3522_v34 = vmax.f32 %v5910_v4, %v3521_v24  ;;  %v3670_v19 = vsel %vm2707_vm0, %v3508_v21, -inf  ;;  %v3673_v33 = vsel %vm2707_vm0, %v3515_v20, -inf }
 0x234   : > { %v3807_v18 = vsel %vm3780_vm3, %v3772_v40, %v3806_v47  ;;  %v3564_v36 = vmax.f32 %v3562_v11, %v3563_v25  ;;  %v3773_v3 = vunpack.c.l.b16 %v3709_v60  ;;  %v3571_v46 = vmax.f32 %v3569_v35, %v3570_v0 }
 0x235   : > { %v3577_v57 = vrot.slane %v3576_v52, 1  ;;  %v3582_v55 = vrot.slane %v3581_v37, 2  ;;  %v3676_v4 = vsel %vm2707_vm0, %v3522_v34, -inf  ;;  %v3529_v21 = vmax.f32 %v5914_v43, %v3528_v39 }
 0x236   : > { %v3671_v26 = vsel %vm2707_vm0, %v3564_v36, -inf  ;;  %v3808_v30 = vsel %vm3782_vm4, %v3773_v3, %v3807_v18  ;;  %v3674_v38 = vsel %vm2707_vm0, %v3571_v46, -inf }
 0x237   : > { %v3578_v63 = vmax.f32 %v3576_v52, %v3577_v57  ;;  %v3672_v1 = vmax.f32 %v3670_v19, %v3671_v26  ;;  %v3583_v5 = vmax.f32 %v3581_v37, %v3582_v55  ;;  %v3675_v9 = vmax.f32 %v3673_v33, %v3674_v38 }
 0x238   : > { %v3679_v62 = vsel %vm2707_vm0, %v3529_v21, -inf }
 0x239   : > { %v3677_v24 = vsel %vm2707_vm0, %v3578_v63, -inf  ;;  %v3710_v17 = vpack.c.bf16 %v3672_v1, %v3672_v1  ;;  %v3584_v31 = vrot.slane %v3583_v5, 1  ;;  %v3711_v13 = vpack.c.bf16 %v3675_v9, %v3675_v9 }
 0x23a   : > { %v3678_v7 = vmax.f32 %v3676_v4, %v3677_v24 }
 0x23b   : > { %v3774_v6 = vunpack.c.l.b16 %v3710_v17  ;;  %v3585_v32 = vmax.f32 %v3583_v5, %v3584_v31  ;;  %v3775_v56 = vunpack.c.l.b16 %v3711_v13 }
 0x23c   : > { %v3712_v48 = vpack.c.bf16 %v3678_v7, %v3678_v7 }
 0x23d   : > { %v3809_v28 = vsel %vm3784_vm5, %v3774_v6, %v3808_v30  ;;  %v3680_v51 = vsel %vm2707_vm0, %v3585_v32, -inf }
 0x23e   : > { %v3776_v54 = vunpack.c.l.b16 %v3712_v48  ;;  %v3810_v12 = vsel %vm3786_vm7, %v3775_v56, %v3809_v28  ;;  %v3681_v59 = vmax.f32 %v3679_v62, %v3680_v51 }
 0x240   : > { %v3811_v43 = vsel %vm3788_vm8, %v3776_v54, %v3810_v12  ;;  %v3713_v8 = vpack.c.bf16 %v3681_v59, %v3681_v59 }
 0x242   : > { %v3777_v2 = vunpack.c.l.b16 %v3713_v8 }
 0x244   : > { %v3812_v42 = vsel %vm3790_vm9, %v3777_v2, %v3811_v43 }
 0x245   : > { %v3816_v58 = vpack.c.b16 %v3812_v42, %v3812_v42 }
 0x247   : > { %3824 = vst.msk [vmem:[%s5720_s30 + $0xc] sm:$0xf] %vm478_vm6, %v3816_v58 }
 0x248 PF: > { %s17_s25 = sadd.s32 1, %s4556_s25   ;;  %s5984_s21 = smov %s4548_s23 }
 0x249   : > { %p14_p9 = scmp.ge.s32.totalorder %s17_s25, 6   ;;  %s5985_s22 = smov %s4552_s24 }
 0x24a   : > { %s5986_s23 = smov %s5989_s26  ;;  %s5987_s24 = smov %s5993_s27 }
 0x24b   :  { %16 = sbr.rel (!%p14_p9) target bundleno = 3 (0x3), region = 91 }

// kernel: vgg_features.6
= control target key start
LH: loop header
LB: loop body
LE: loop exit
PB: predicated region body
PF: predicated region fallthrough
CT: control target
= control target key end

     0   :  { %s2527_s18 = smov 0   ;;  %s2529_s19 = smov 0   ;;  %s3032_s0 = inlined_call_operand.vmem [shape: bf16[2,8,8,64], index: 0, kind: input, shape index: {}]   ;;  %s3033_s1 = inlined_call_operand.vmem [shape: bf16[2,1,8,64], index: 1, kind: input, shape index: {}, may-alias: {1,2}]   ;;  %s3034_s2 = inlined_call_operand.vmem [shape: bf16[2,1,8,64], index: 2, kind: input, shape index: {}, may-alias: {1,2}]   ;;  %s3035_s3 = inlined_call_operand.vmem [shape: bf16[9,64,128], index: 3, kind: input, shape index: {}]   ;;  %s3036_s4 = inlined_call_operand.vmem [shape: f32[1,128], index: 4, kind: input, shape index: {}]   ;;  %s3037_s5 = inlined_call_operand.vmem [shape: bf16[2,8,8,128], index: 5, kind: output, shape index: {}]  }
   0x1   :  { %s2531_s20 = smov 0  }
   0x2 LB: > { %s27_s21 = sadd.s32 1, %s2490_s19  ;;  %p2088_p0 = scmp.ge.s32.totalorder %s2494_s20, 1  ;;  %s2494_s20 = sphi %s2531_s20, %s15_s20   ;;  %s2490_s19 = sphi %s2529_s19, %s3049_s19   ;;  %s2486_s18 = sphi %s2527_s18, %s3048_s18  }
   0x3   : > { %p29_p1 = scmp.ge.s32.totalorder %s27_s21, 2  ;;  %p236_p2 = scmp.lt.s32.totalorder %s2494_s20, 3 }
   0x5   : > { %s3051_s21 = smov (%p29_p1, %s27_s21), 0  ;;  %p237_p3 = pnand %p2088_p0, %p236_p2 }
   0x6   : > { %p287_p4 = scmp.lt.s32.totalorder (!%p237_p3), %s2486_s18, 1  ;;  %s2496_s30 = smov (!%p237_p3), 64  }
   0x7   : > { %240 = sbr.rel (%p237_p3) target bundleno = 405 (0x195), region = 40 }
   0xc   : > { %vm321_vm0 = vcmask 516096   ;;  %vm322_vm1 = vsmask.f32 256  ;;  %v342_v0 = vld [vmem:[#allocation2 + $0x30] sm:$0x1]  ;;  %s3053_s18 = smov (!%p287_p4, %s2486_s18), 1 }
   0xd   : > { %vm2545_vm2 = vmand %vm321_vm0, %vm322_vm1  ;;  %vm354_vm3 = vsmask.f32 7938  ;;  %v374_v2 = vld [vmem:[#allocation2 + $0x34] sm:$0x1]  ;;  %v330_v6 = vld [vmem:[#allocation2 + $0x10] sm:$0x1] }
   0xe   : > { %v343_v3 = vsel %vm2545_vm2, 0, %v342_v0  ;;  %vm2554_vm4 = vmand %vm321_vm0, %vm354_vm3  ;;  %s2349_s22 = sshll.u32 %s3053_s18, 5  ;;  %v331_v7 = vsel %vm2545_vm2, 0, %v330_v6  ;;  %v362_v8 = vld [vmem:[#allocation2 + $0x14] sm:$0x1]  ;;  %vm397_vm5 = vcmask 519168  }
   0xf   : > { %344 = vst [vmem:[#allocation2 + $0x30] sm:$0x1] %v343_v3  ;;  %v375_v5 = vsel %vm2554_vm4, 0, %v374_v2  ;;  %s2568_s25 = scalar_lea.vmem %s3032_s0, %s2349_s22  ;;  %v363_v9 = vsel %vm2554_vm4, 0, %v362_v8  ;;  %v345_v10 = vld [vmem:[#allocation2 + $0x38] sm:$0x1]  ;;  %vm2582_vm6 = vmand %vm397_vm5, %vm354_vm3  ;;  %s3010_s6 = scalar_lea.vmem %s3037_s5, %s2349_s22 }
  0x10   : > { %376 = vst [vmem:[#allocation2 + $0x34] sm:$0x1] %v375_v5  ;;  %v410_v11 = vld [vmem:[%s2568_s25 + $0x14] sm:$0xf]  ;;  %v406_v12 = vld [vmem:[%s2568_s25 + $0x4] sm:$0xf] }
  0x11   : > { %332 = vst [vmem:[#allocation2 + $0x10] sm:$0x1] %v331_v7  ;;  %v454_v13 = vshrl.u32 %v410_v11, 16  ;;  %v457_v14 = vshll.u32 %v410_v11, 16  ;;  %v422_v15 = vshrl.u32 %v406_v12, 16  ;;  %v425_v16 = vshll.u32 %v406_v12, 16 }
  0x12   : > { %364 = vst [vmem:[#allocation2 + $0x14] sm:$0x1] %v363_v9  ;;  %v377_v17 = vld [vmem:[#allocation2 + $0x3c] sm:$0x1]  ;;  %v346_v18 = vsel %vm2545_vm2, 0, %v345_v10  ;;  %s2091_s26 = sshll.u32 %s3053_s18, 2 }
  0x13   : > { %v378_v19 = vsel %vm2554_vm4, 0, %v377_v17  ;;  %v411_v20 = vld [vmem:[%s2568_s25 + $0x18] sm:$0xf]  ;;  %v456_v22 = vrot.slane %v454_v13, 7  ;;  %v424_v23 = vrot.slane %v422_v15, 7  ;;  %s302_s29 = scalar_lea.vmem %s3033_s1, %s2091_s26  ;;  %vm773_vm10 = vcmask 1042432   ;;  %s309_s8 = scalar_lea.vmem %s3034_s2, %s2091_s26 }
  0x14   : > { %v333_v21 = vld [vmem:[#allocation2 + $0x18] sm:$0x1]  ;;  %347 = vst [vmem:[#allocation2 + $0x38] sm:$0x1] %v346_v18  ;;  %v462_v24 = vshrl.u32 %v411_v20, 16  ;;  %v465_v27 = vshll.u32 %v411_v20, 16 }
  0x15   : > { %379 = vst [vmem:[#allocation2 + $0x3c] sm:$0x1] %v378_v19  ;;  %v334_v28 = vsel %vm2545_vm2, 0, %v333_v21  ;;  %v459_v29 = vor.u32 %v457_v14, %v456_v22  ;;  %v460_v30 = vrot.slane %v456_v22, 4  ;;  %v427_v32 = vor.u32 %v425_v16, %v424_v23  ;;  %v365_v40 = vld [vmem:[#allocation2 + $0x1c] sm:$0x1] }
  0x16   : > { %v524_v26 = vld [vmem:[#allocation2 + $0x30] sm:$0xf]  ;;  %v428_v33 = vrot.slane %v424_v23, 4  ;;  %335 = vst [vmem:[#allocation2 + $0x18] sm:$0x1] %v334_v28  ;;  %v464_v35 = vrot.slane %v462_v24, 7 }
  0x17   : > { %v527_v31 = vld [vmem:[#allocation2 + $0x34] sm:$0x1]  ;;  %v525_v36 = vsel %vm2582_vm6, %v459_v29, %v524_v26  ;;  %v407_v41 = vld [vmem:[%s2568_s25 + $0x8] sm:$0xf]  ;;  %v324_v46 = vld [vmem:[#allocation2] sm:$0x1] }
  0x18   : > { %v500_v34 = vld [vmem:[#allocation2 + $0x10] sm:$0xf]  ;;  %v528_v37 = vsel %vm2545_vm2, %v460_v30, %v527_v31  ;;  %526 = vst [vmem:[#allocation2 + $0x30] sm:$0xf] %v525_v36  ;;  %v467_v43 = vor.u32 %v465_v27, %v464_v35  ;;  %v468_v44 = vrot.slane %v464_v35, 4  ;;  %v430_v45 = vshrl.u32 %v407_v41, 16 }
  0x19   : > { %v501_v38 = vsel %vm2582_vm6, %v427_v32, %v500_v34  ;;  %v503_v39 = vld [vmem:[#allocation2 + $0x14] sm:$0x1]  ;;  %529 = vst [vmem:[#allocation2 + $0x34] sm:$0x1] %v528_v37  ;;  %v433_v47 = vshll.u32 %v407_v41, 16  ;;  %v366_v50 = vsel %vm2554_vm4, 0, %v365_v40 }
  0x1a   : > { %v504_v42 = vsel %vm2545_vm2, %v428_v33, %v503_v39  ;;  %v356_v48 = vld [vmem:[#allocation2 + $0x4] sm:$0x1]  ;;  %vm593_vm7 = vsmask.f32 3328  ;;  %vm594_vm8 = vsmask.f32 7440 }
  0x1b   : > { %502 = vst [vmem:[#allocation2 + $0x10] sm:$0xf] %v501_v38  ;;  %v530_v49 = vld [vmem:[#allocation2 + $0x38] sm:$0xf]  ;;  %v432_v51 = vrot.slane %v430_v45, 7  ;;  %v325_v59 = vsel %vm2545_vm2, 0, %v324_v46  ;;  %vm2620_vm9 = vmor %vm593_vm7, %vm594_vm8 }
  0x1c   : > { %505 = vst [vmem:[#allocation2 + $0x14] sm:$0x1] %v504_v42  ;;  %v531_v52 = vsel %vm2582_vm6, %v467_v43, %v530_v49  ;;  %v533_v53 = vld [vmem:[#allocation2 + $0x3c] sm:$0x1]  ;;  %v386_v54 = vld [vmem:[%s302_s29] sm:$0xf] }
  0x1d   : > { %532 = vst [vmem:[#allocation2 + $0x38] sm:$0xf] %v531_v52  ;;  %v534_v55 = vsel %vm2545_vm2, %v468_v44, %v533_v53  ;;  %v435_v56 = vor.u32 %v433_v47, %v432_v51  ;;  %v506_v57 = vld [vmem:[#allocation2 + $0x18] sm:$0xf]  ;;  %v388_v58 = vshrl.u32 %v386_v54, 16  ;;  %v357_v60 = vsel %vm2554_vm4, 0, %v356_v48 }
  0x1e   : > { %535 = vst [vmem:[#allocation2 + $0x3c] sm:$0x1] %v534_v55  ;;  %v327_v61 = vld [vmem:[#allocation2 + $0x8] sm:$0x1]  ;;  %v436_v62 = vrot.slane %v432_v51, 4  ;;  %v391_v0 = vshll.u32 %v386_v54, 16 }
  0x1f   : > { %367 = vst [vmem:[#allocation2 + $0x1c] sm:$0x1] %v366_v50  ;;  %v507_v63 = vsel %vm2582_vm6, %v435_v56, %v506_v57  ;;  %v359_v2 = vld [vmem:[#allocation2 + $0xc] sm:$0x1]  ;;  %v589_v3 = vld [vmem:[#allocation2 + $0x30] sm:$0xf] }
  0x20   : > { %508 = vst [vmem:[#allocation2 + $0x18] sm:$0xf] %v507_v63  ;;  %v390_v5 = vrot.slane %v388_v58, 7  ;;  %v328_v6 = vsel %vm2545_vm2, 0, %v327_v61  ;;  %v590_v7 = vld [vmem:[#allocation2 + $0x34] sm:$0x1] }
  0x21   : > { %v681_v8 = vshrl.u32 %v589_v3, 16  ;;  %v684_v9 = vshll.u32 %v589_v3, 16  ;;  %326 = vst [vmem:[#allocation2] sm:$0x1] %v325_v59  ;;  %v690_v10 = vshll.u32 %v590_v7, 16  ;;  %v360_v12 = vsel %vm2554_vm4, 0, %v359_v2 }
  0x22   : > { %v581_v11 = vld [vmem:[#allocation2 + $0x10] sm:$0xf]  ;;  %358 = vst [vmem:[#allocation2 + $0x4] sm:$0x1] %v357_v60  ;;  %v393_v21 = vor.u32 %v391_v0, %v390_v5  ;;  %v394_v33 = vrot.slane %v390_v5, 4  ;;  %vm774_vm11 = vcmask 1046532  }
  0x23   : > { %v683_v13 = vrot.slane %v681_v8, 4  ;;  %v686_v14 = vrot.slane %v684_v9, 5  ;;  %v582_v15 = vld [vmem:[#allocation2 + $0x14] sm:$0x1]  ;;  %v625_v16 = vshrl.u32 %v581_v11, 16  ;;  %v628_v17 = vshll.u32 %v581_v11, 16  ;;  %vm2666_vm12 = vmor %vm773_vm10, %vm774_vm11 }
  0x24   : > { %v692_v18 = vrot.slane %v690_v10, 5  ;;  %v634_v19 = vshll.u32 %v582_v15, 16  ;;  %v591_v20 = vld [vmem:[#allocation2 + $0x38] sm:$0xf]  ;;  %329 = vst [vmem:[#allocation2 + $0x8] sm:$0x1] %v328_v6 }
  0x25   : > { %v687_v22 = vor.u32 %v686_v14, %v683_v13  ;;  %v627_v23 = vrot.slane %v625_v16, 4  ;;  %v630_v24 = vrot.slane %v628_v17, 5  ;;  %v592_v26 = vld [vmem:[#allocation2 + $0x3c] sm:$0x1]  ;;  %v695_v27 = vshrl.u32 %v591_v20, 16 }
  0x26   : > { %v636_v29 = vrot.slane %v634_v19, 5  ;;  %v698_v30 = vshll.u32 %v591_v20, 16  ;;  %v704_v31 = vshll.u32 %v592_v26, 16  ;;  %v509_v32 = vld [vmem:[#allocation2 + $0x1c] sm:$0x1]  ;;  %vm732_vm13 = vcmask 1043968  }
  0x27   : > { %v688_v34 = vrot.slane %v687_v22, 4  ;;  %v631_v35 = vor.u32 %v630_v24, %v627_v23  ;;  %v697_v36 = vrot.slane %v695_v27, 4  ;;  %v510_v37 = vsel %vm2545_vm2, %v436_v62, %v509_v32  ;;  %v583_v38 = vld [vmem:[#allocation2 + $0x18] sm:$0xf]  ;;  %361 = vst [vmem:[#allocation2 + $0xc] sm:$0x1] %v360_v12 }
  0x28   : > { %v700_v39 = vrot.slane %v698_v30, 5  ;;  %511 = vst [vmem:[#allocation2 + $0x1c] sm:$0x1] %v510_v37  ;;  %v639_v40 = vshrl.u32 %v583_v38, 16  ;;  %v642_v41 = vshll.u32 %v583_v38, 16  ;;  %v706_v44 = vrot.slane %v704_v31, 5 }
  0x29   : > { %v693_v42 = vsel %vm2620_vm9, %v688_v34, %v692_v18  ;;  %v632_v43 = vrot.slane %v631_v35, 4  ;;  %v399_v45 = vld [vmem:[#allocation2] sm:$0xf]  ;;  %v402_v46 = vld [vmem:[#allocation2 + $0x4] sm:$0x1]  ;;  %vm1785_vm14 = vcmask 523264  }
  0x2a   : > { %720 = vrot.lane.b32.xlu1 %v693_v42, %s2496_s30  ;;  %v701_v47 = vor.u32 %v700_v39, %v697_v36  ;;  %v641_v48 = vrot.slane %v639_v40, 4  ;;  %v644_v49 = vrot.slane %v642_v41, 5  ;;  %v400_v50 = vsel %vm2582_vm6, %v393_v21, %v399_v45  ;;  %v405_v51 = vld [vmem:[%s2568_s25] sm:$0xf]  ;;  %v368_v61 = vld [vmem:[#allocation2 + $0x24] sm:$0x1] }
  0x2b   : > { %v336_v52 = vld [vmem:[#allocation2 + $0x20] sm:$0x1]  ;;  %v637_v53 = vsel %vm2620_vm9, %v632_v43, %v636_v29  ;;  %401 = vst [vmem:[#allocation2] sm:$0xf] %v400_v50  ;;  %v403_v54 = vsel %vm2545_vm2, %v394_v33, %v402_v46  ;;  %v414_v55 = vshrl.u32 %v405_v51, 16  ;;  %v417_v56 = vshll.u32 %v405_v51, 16 }
  0x2c   : > { %712 = vrot.lane.b32.xlu0 %v637_v53, %s2496_s30  ;;  %v702_v57 = vrot.slane %v701_v47, 4  ;;  %v645_v58 = vor.u32 %v644_v49, %v641_v48  ;;  %404 = vst [vmem:[#allocation2 + $0x4] sm:$0x1] %v403_v54  ;;  %v494_v59 = vld [vmem:[#allocation2 + $0x8] sm:$0xf]  ;;  %v337_v60 = vsel %vm2545_vm2, 0, %v336_v52 }
  0x2d   : > { %v416_v62 = vrot.slane %v414_v55, 7  ;;  %338 = vst [vmem:[#allocation2 + $0x20] sm:$0x1] %v337_v60  ;;  %v369_v63 = vsel %vm2554_vm4, 0, %v368_v61  ;;  %v408_v0 = vld [vmem:[%s2568_s25 + $0xc] sm:$0xf] }
  0x2e   : > { %v497_v2 = vld [vmem:[#allocation2 + $0xc] sm:$0x1]  ;;  %370 = vst [vmem:[#allocation2 + $0x24] sm:$0x1] %v369_v63  ;;  %v438_v3 = vshrl.u32 %v408_v0, 16  ;;  %v707_v5 = vsel %vm2620_vm9, %v702_v57, %v706_v44  ;;  %v441_v9 = vshll.u32 %v408_v0, 16 }
  0x2f   : > { %v584_v6 = vld [vmem:[#allocation2 + $0x1c] sm:$0x1]  ;;  %v419_v7 = vor.u32 %v417_v56, %v416_v62  ;;  %v420_v8 = vrot.slane %v416_v62, 4  ;;  %v646_v10 = vrot.slane %v645_v58, 4  ;;  %v1129_v26 = vld [vmem:[#allocation2 + $0x10] sm:$0xf] }
  0x30   : > { %v648_v11 = vshll.u32 %v584_v6, 16  ;;  %v440_v12 = vrot.slane %v438_v3, 7  ;;  %v1146_v35 = vshrl.u32 %v1129_v26, 16  ;;  %v339_v36 = vld [vmem:[#allocation2 + $0x28] sm:$0x1]  ;;  %v1149_v39 = vshll.u32 %v1129_v26, 16 }
  0x31   : > { %v495_v13 = vsel %vm2582_vm6, %v419_v7, %v494_v59  ;;  %v498_v14 = vsel %vm2545_vm2, %v420_v8, %v497_v2  ;;  %v1018_v37 = vld [vmem:[#allocation2 + $0x10] sm:$0xe]  ;;  %v1019_v38 = vld [vmem:[#allocation2 + $0x14] sm:$0x1]  ;;  %v340_v40 = vsel %vm2545_vm2, 0, %v339_v36 }
  0x32   : > { %722 = vrot.lane.b32.xlu1 %v707_v5, %s2496_s30  ;;  %v650_v15 = vrot.slane %v648_v11, 5  ;;  %v577_v16 = vld [vmem:[#allocation2] sm:$0xf]  ;;  %496 = vst [vmem:[#allocation2 + $0x8] sm:$0xf] %v495_v13  ;;  %v443_v17 = vor.u32 %v441_v9, %v440_v12  ;;  %v444_v18 = vrot.slane %v440_v12, 4 }
  0x33   : > { %v578_v19 = vld [vmem:[#allocation2 + $0x4] sm:$0x1]  ;;  %v597_v20 = vshrl.u32 %v577_v16, 16  ;;  %v600_v21 = vshll.u32 %v577_v16, 16  ;;  %499 = vst [vmem:[#allocation2 + $0xc] sm:$0x1] %v498_v14 }
  0x34   : > { %v651_v22 = vsel %vm2620_vm9, %v646_v10, %v650_v15  ;;  %v606_v23 = vshll.u32 %v578_v19, 16  ;;  %v512_v24 = vld [vmem:[#allocation2 + $0x20] sm:$0xf]  ;;  %v371_v41 = vld [vmem:[#allocation2 + $0x2c] sm:$0x1]  ;;  %v1148_v52 = vrot.slane %v1146_v35, 4 }
  0x35   : > { %714 = vrot.lane.b32.xlu0 %v651_v22, %s2496_s30  ;;  %v599_v27 = vrot.slane %v597_v20, 4  ;;  %v602_v29 = vrot.slane %v600_v21, 5  ;;  %v513_v30 = vsel %vm2582_vm6, %v443_v17, %v512_v24  ;;  %v515_v31 = vld [vmem:[#allocation2 + $0x24] sm:$0x1]  ;;  %v409_v42 = vld [vmem:[%s2568_s25 + $0x10] sm:$0xf] }
  0x36   : > { %514 = vst [vmem:[#allocation2 + $0x20] sm:$0xf] %v513_v30  ;;  %v516_v32 = vsel %vm2545_vm2, %v444_v18, %v515_v31  ;;  %v608_v34 = vrot.slane %v606_v23, 5  ;;  %v372_v45 = vsel %vm2554_vm4, 0, %v371_v41  ;;  %v446_v49 = vshrl.u32 %v409_v42, 16 }
  0x37   : > { %v603_v33 = vor.u32 %v602_v29, %v599_v27  ;;  %517 = vst [vmem:[#allocation2 + $0x24] sm:$0x1] %v516_v32  ;;  %v449_v53 = vshll.u32 %v409_v42, 16  ;;  %v1130_v56 = vld [vmem:[#allocation2 + $0x14] sm:$0x1]  ;;  %v1151_v57 = vrot.slane %v1149_v39, 5 }
  0x38   : > { %341 = vst [vmem:[#allocation2 + $0x28] sm:$0x1] %v340_v40  ;;  %v448_v58 = vrot.slane %v446_v49, 7  ;;  %v2104_v61 = vrot.slane %v1018_v37, 9  ;;  %v1054_v62 = vrot.slane %v1019_v38, 5  ;;  %v1155_v8 = vshll.u32 %v1130_v56, 16 }
  0x39   : > { %v604_v43 = vrot.slane %v603_v33, 4  ;;  %v579_v44 = vld [vmem:[#allocation2 + $0x8] sm:$0xf]  ;;  %373 = vst [vmem:[#allocation2 + $0x2c] sm:$0x1] %v372_v45  ;;  %v1152_v13 = vor.u32 %v1151_v57, %v1148_v52 }
  0x3a   : > { %v580_v46 = vld [vmem:[#allocation2 + $0xc] sm:$0x1]  ;;  %v611_v47 = vshrl.u32 %v579_v44, 16  ;;  %v614_v48 = vshll.u32 %v579_v44, 16  ;;  %v451_v5 = vor.u32 %v449_v53, %v448_v58  ;;  %v452_v9 = vrot.slane %v448_v58, 4 }
  0x3b   : > { %v609_v50 = vsel %vm2620_vm9, %v604_v43, %v608_v34  ;;  %v620_v51 = vshll.u32 %v580_v46, 16  ;;  %v1055_v19 = vsel %vm2666_vm12, %v2104_v61, %v1054_v62  ;;  %v1157_v21 = vrot.slane %v1155_v8, 5  ;;  %v824_v33 = vld [vmem:[#allocation2 + $0x8] sm:$0xf]  ;;  %v1131_v45 = vld [vmem:[#allocation2 + $0x18] sm:$0xf] }
  0x3c   : > { %v613_v54 = vrot.slane %v611_v47, 4  ;;  %v616_v55 = vrot.slane %v614_v48, 5  ;;  %v1153_v24 = vrot.slane %v1152_v13, 4  ;;  %v1016_v46 = vld [vmem:[#allocation2 + $0x8] sm:$0xe]  ;;  %v1163_v56 = vshll.u32 %v1131_v45, 16 }
  0x3d   : > { %708 = vrot.lane.b32.xlu0 %v609_v50, %s2496_s30  ;;  %v622_v59 = vrot.slane %v620_v51, 5  ;;  %v585_v60 = vld [vmem:[#allocation2 + $0x20] sm:$0xf]  ;;  %v1017_v47 = vld [vmem:[#allocation2 + $0xc] sm:$0x1]  ;;  %v2103_v62 = vrot.slane %v1016_v46, 9 }
  0x3e   : > { %v617_v63 = vor.u32 %v616_v55, %v613_v54  ;;  %v586_v0 = vld [vmem:[#allocation2 + $0x24] sm:$0x1]  ;;  %v653_v2 = vshrl.u32 %v585_v60, 16  ;;  %v656_v3 = vshll.u32 %v585_v60, 16  ;;  %v1133_v26 = vld [vmem:[#allocation2 + $0x20] sm:$0xf]  ;;  %v1158_v31 = vsel %vm2620_vm9, %v1153_v24, %v1157_v21 }
  0x3f   : > { %v662_v6 = vshll.u32 %v586_v0, 16  ;;  %v518_v14 = vld [vmem:[#allocation2 + $0x28] sm:$0xf]  ;;  %v1174_v29 = vshrl.u32 %v1133_v26, 16  ;;  %v1177_v30 = vshll.u32 %v1133_v26, 16  ;;  %v1160_v55 = vshrl.u32 %v1131_v45, 16 }
  0x40   : > { %v618_v10 = vrot.slane %v617_v63, 4  ;;  %v655_v11 = vrot.slane %v653_v2, 4  ;;  %v658_v12 = vrot.slane %v656_v3, 5  ;;  %v519_v15 = vsel %vm2582_vm6, %v451_v5, %v518_v14  ;;  %v521_v20 = vld [vmem:[#allocation2 + $0x2c] sm:$0x1] }
  0x41   : > { %v664_v18 = vrot.slane %v662_v6, 5  ;;  %520 = vst [vmem:[#allocation2 + $0x28] sm:$0xf] %v519_v15  ;;  %v522_v22 = vsel %vm2545_vm2, %v452_v9, %v521_v20  ;;  %v1022_v36 = vld [vmem:[#allocation2 + $0x20] sm:$0xe]  ;;  %v1176_v40 = vrot.slane %v1174_v29, 4 }
  0x42   : > { %v623_v16 = vsel %vm2620_vm9, %v618_v10, %v622_v59  ;;  %v659_v17 = vor.u32 %v658_v12, %v655_v11  ;;  %523 = vst [vmem:[#allocation2 + $0x2c] sm:$0x1] %v522_v22  ;;  %v1023_v37 = vld [vmem:[#allocation2 + $0x24] sm:$0x1]  ;;  %v1179_v41 = vrot.slane %v1177_v30, 5  ;;  %v2106_v48 = vrot.slane %v1022_v36, 9 }
  0x43   : > { %710 = vrot.lane.b32.xlu1 %v623_v16, %s2496_s30  ;;  %v1134_v39 = vld [vmem:[#allocation2 + $0x24] sm:$0x1]  ;;  %v1062_v51 = vrot.slane %v1023_v37, 5  ;;  %v348_v53 = vld [vmem:[#allocation2 + $0x40] sm:$0x1]  ;;  %v1050_v63 = vrot.slane %v1017_v47, 5 }
  0x44   : > { %v660_v23 = vrot.slane %v659_v17, 4  ;;  %v1183_v52 = vshll.u32 %v1134_v39, 16  ;;  %v1180_v54 = vor.u32 %v1179_v41, %v1176_v40  ;;  %v349_v57 = vsel %vm2545_vm2, 0, %v348_v53  ;;  %v380_v58 = vld [vmem:[#allocation2 + $0x44] sm:$0x1] }
  0x45   : > { %1082 = vrot.lane.b32.xlu0 %v1055_v19, %s2496_s30  ;;  %v825_v60 = vld [vmem:[#allocation2 + $0x10] sm:$0xf]  ;;  %350 = vst [vmem:[#allocation2 + $0x40] sm:$0x1] %v349_v57  ;;  %v381_v61 = vsel %vm2554_vm4, 0, %v380_v58  ;;  %v1063_v3 = vsel %vm2666_vm12, %v2106_v48, %v1062_v51  ;;  %v1162_v11 = vrot.slane %v1160_v55, 4 }
  0x46   : > { %v665_v27 = vsel %vm2620_vm9, %v660_v23, %v664_v18  ;;  %382 = vst [vmem:[#allocation2 + $0x44] sm:$0x1] %v381_v61  ;;  %v412_v0 = vld [vmem:[%s2568_s25 + $0x1c] sm:$0xf]  ;;  %v1181_v9 = vrot.slane %v1180_v54, 4  ;;  %v1185_v10 = vrot.slane %v1183_v52, 5  ;;  %v1051_v18 = vsel %vm2666_vm12, %v2103_v62, %v1050_v63 }
  0x47   : > { %716 = vrot.lane.b32.xlu2 %v665_v27, %s2496_s30  ;;  %v1132_v5 = vld [vmem:[#allocation2 + $0x1c] sm:$0x1]  ;;  %v470_v6 = vshrl.u32 %v412_v0, 16  ;;  %v473_v8 = vshll.u32 %v412_v0, 16  ;;  %v1165_v12 = vrot.slane %v1163_v56, 5 }
  0x48   : > { %v587_v32 = vld [vmem:[#allocation2 + $0x28] sm:$0xf]  ;;  %v1169_v14 = vshll.u32 %v1132_v5, 16  ;;  %v1137_v15 = vld [vmem:[#allocation2 + $0x30] sm:$0xf]  ;;  %v1186_v19 = vsel %vm2620_vm9, %v1181_v9, %v1185_v10 }
  0x49   : > { %v667_v34 = vshrl.u32 %v587_v32, 16  ;;  %v670_v35 = vshll.u32 %v587_v32, 16  ;;  %v588_v38 = vld [vmem:[#allocation2 + $0x2c] sm:$0x1]  ;;  %v472_v13 = vrot.slane %v470_v6, 7  ;;  %v1166_v20 = vor.u32 %v1165_v12, %v1162_v11 }
  0x4a   : > { %v676_v44 = vshll.u32 %v588_v38, 16  ;;  %v351_v22 = vld [vmem:[#allocation2 + $0x48] sm:$0x1]  ;;  %v1202_v23 = vshrl.u32 %v1137_v15, 16  ;;  %v1205_v24 = vshll.u32 %v1137_v15, 16  ;;  %v1171_v30 = vrot.slane %v1169_v14, 5 }
  0x4b   : > { %1257 = vrot.lane.b32.xlu1 %v1158_v31, %s2496_s30  ;;  %v669_v42 = vrot.slane %v667_v34, 4  ;;  %v672_v43 = vrot.slane %v670_v35, 5  ;;  %v475_v16 = vor.u32 %v473_v8, %v472_v13  ;;  %v476_v17 = vrot.slane %v472_v13, 4  ;;  %v826_v31 = vld [vmem:[#allocation2 + $0x18] sm:$0xf] }
  0x4c   : > { %v678_v50 = vrot.slane %v676_v44, 5  ;;  %v536_v21 = vld [vmem:[#allocation2 + $0x40] sm:$0xf]  ;;  %v352_v29 = vsel %vm2545_vm2, 0, %v351_v22  ;;  %v1027_v35 = vld [vmem:[#allocation2 + $0x34] sm:$0x1] }
  0x4d   : > { %840 = vrot.lane.b32.xlu0 %v824_v33, %s2496_s30  ;;  %v673_v49 = vor.u32 %v672_v43, %v669_v42  ;;  %v537_v26 = vsel %vm2582_vm6, %v475_v16, %v536_v21  ;;  %v539_v27 = vld [vmem:[#allocation2 + $0x44] sm:$0x1]  ;;  %v1026_v33 = vld [vmem:[#allocation2 + $0x30] sm:$0xe]  ;;  %v542_v34 = vld [vmem:[%s309_s8] sm:$0xf] }
  0x4e   : > { %538 = vst [vmem:[#allocation2 + $0x40] sm:$0xf] %v537_v26  ;;  %v540_v32 = vsel %vm2545_vm2, %v476_v17, %v539_v27  ;;  %v383_v36 = vld [vmem:[#allocation2 + $0x4c] sm:$0x1]  ;;  %v1167_v37 = vrot.slane %v1166_v20, 4  ;;  %v1204_v38 = vrot.slane %v1202_v23, 4 }
  0x4f   : > { %v674_v59 = vrot.slane %v673_v49, 4  ;;  %541 = vst [vmem:[#allocation2 + $0x44] sm:$0x1] %v540_v32  ;;  %v1207_v39 = vrot.slane %v1205_v24, 5  ;;  %v1135_v40 = vld [vmem:[#allocation2 + $0x28] sm:$0xf] }
  0x50   : > { %353 = vst [vmem:[#allocation2 + $0x48] sm:$0x1] %v352_v29  ;;  %v384_v41 = vsel %vm2554_vm4, 0, %v383_v36  ;;  %v1138_v42 = vld [vmem:[#allocation2 + $0x34] sm:$0x1]  ;;  %v544_v43 = vshrl.u32 %v542_v34, 16  ;;  %v1172_v52 = vsel %vm2620_vm9, %v1167_v37, %v1171_v30 }
  0x51   : > { %v679_v2 = vsel %vm2620_vm9, %v674_v59, %v678_v50  ;;  %385 = vst [vmem:[#allocation2 + $0x4c] sm:$0x1] %v384_v41  ;;  %v547_v44 = vshll.u32 %v542_v34, 16  ;;  %v1020_v45 = vld [vmem:[#allocation2 + $0x18] sm:$0xe]  ;;  %v2108_v46 = vrot.slane %v1026_v33, 9  ;;  %v1208_v54 = vor.u32 %v1207_v39, %v1204_v38 }
  0x52   : > { %718 = vrot.lane.b32.xlu2 %v679_v2, %s2496_s30  ;;  %v1070_v47 = vrot.slane %v1027_v35, 5  ;;  %v1021_v48 = vld [vmem:[#allocation2 + $0x1c] sm:$0x1]  ;;  %v1188_v49 = vshrl.u32 %v1135_v40, 16  ;;  %v1191_v50 = vshll.u32 %v1135_v40, 16  ;;  %v546_v51 = vrot.slane %v544_v43, 7 }
  0x53   : > { %842 = vrot.lane.b32.xlu1 %v825_v60, %s2496_s30  ;;  %v827_v53 = vld [vmem:[#allocation2 + $0x20] sm:$0xf]  ;;  %v1211_v4 = vshll.u32 %v1138_v42, 16  ;;  %v2105_v56 = vrot.slane %v1020_v45, 9  ;;  %v1058_v57 = vrot.slane %v1021_v48, 5  ;;  %v1209_v0 = vrot.slane %v1208_v54, 4 }
  0x54   : > { %v549_v55 = vor.u32 %v547_v44, %v546_v51  ;;  %v1071_v58 = vsel %vm2666_vm12, %v2108_v46, %v1070_v47  ;;  %v1190_v60 = vrot.slane %v1188_v49, 4  ;;  %v1193_v61 = vrot.slane %v1191_v50, 5  ;;  %v828_v14 = vld [vmem:[#allocation2 + $0x28] sm:$0xf]  ;;  %v2378_v15 = vld [vmem:[%s3035_s3 + $0x38] sm:$0xff]  ;;  %v2377_v21 = vld [vmem:[%s3035_s3 + $0x30] sm:$0xff] }
  0x55   : > { %1086 = vrot.lane.b32.xlu0 %v1063_v3, %s2496_s30  ;;  %v550_v62 = vrot.slane %v546_v51, 4  ;;  %v1213_v2 = vrot.slane %v1211_v4, 5  ;;  %v1136_v3 = vld [vmem:[#allocation2 + $0x2c] sm:$0x1]  ;;  %v1141_v5 = vld [vmem:[#allocation2 + $0x40] sm:$0xf]  ;;  %v1059_v11 = vsel %vm2666_vm12, %v2105_v56, %v1058_v57  ;;  %2431 = vmatpush.bf16.msra.mxu2 %v2378_v15 }
  0x56   : > { %v1194_v9 = vor.u32 %v1193_v61, %v1190_v60  ;;  %v1197_v10 = vshll.u32 %v1136_v3, 16  ;;  %v1230_v12 = vshrl.u32 %v1141_v5, 16  ;;  %v1233_v13 = vshll.u32 %v1141_v5, 16  ;;  %v1030_v17 = vld [vmem:[#allocation2 + $0x40] sm:$0xe]  ;;  %2430 = vmatpush.bf16.msra.mxu1 %v2378_v15  ;;  %1798 = vmatpush.bf16.msra.mxu0 %v2378_v15  ;;  %v2376_v37 = vld [vmem:[%s3035_s3 + $0x28] sm:$0xff] }
  0x57   : > { %v554_v59 = vld [vmem:[#allocation2 + $0x48] sm:$0xf]  ;;  %v1214_v25 = vsel %vm2620_vm9, %v1209_v0, %v1213_v2  ;;  %v1142_v22 = vld [vmem:[#allocation2 + $0x44] sm:$0x1]  ;;  %v1139_v23 = vld [vmem:[#allocation2 + $0x38] sm:$0xf] }
  0x58   : > { %v555_v63 = vsel %vm2582_vm6, %v549_v55, %v554_v59  ;;  %v557_v6 = vld [vmem:[#allocation2 + $0x4c] sm:$0x1]  ;;  %v1195_v1 = vrot.slane %v1194_v9, 4  ;;  %v1199_v16 = vrot.slane %v1197_v10, 5  ;;  %v1235_v20 = vrot.slane %v1233_v13, 5  ;;  %v2375_v44 = vld [vmem:[%s3035_s3 + $0x20] sm:$0xff] }
  0x59   : > { %556 = vst [vmem:[#allocation2 + $0x48] sm:$0xf] %v555_v63  ;;  %v558_v8 = vsel %vm2545_vm2, %v550_v62, %v557_v6  ;;  %v2110_v24 = vrot.slane %v1030_v17, 9  ;;  %v829_v29 = vld [vmem:[#allocation2 + $0x30] sm:$0xf]  ;;  %v1239_v33 = vshll.u32 %v1142_v22, 16  ;;  %2433 = vmatpush.bf16.msra.mxu2 %v2377_v21 }
  0x5a   : > { %1080 = vrot.lane.b32.xlu2 %v1051_v18, %s2496_s30  ;;  %559 = vst [vmem:[#allocation2 + $0x4c] sm:$0x1] %v558_v8  ;;  %v1031_v18 = vld [vmem:[#allocation2 + $0x44] sm:$0x1]  ;;  %v1200_v27 = vsel %vm2620_vm9, %v1195_v1, %v1199_v16  ;;  %v1024_v30 = vld [vmem:[#allocation2 + $0x28] sm:$0xe]  ;;  %2432 = vmatpush.bf16.msra.mxu1 %v2377_v21 }
  0x5b   : > { %1261 = vrot.lane.b32.xlu1 %v1186_v19, %s2496_s30  ;;  %v1232_v19 = vrot.slane %v1230_v12, 4  ;;  %v1078_v26 = vrot.slane %v1031_v18, 5  ;;  %v1216_v34 = vshrl.u32 %v1139_v23, 16  ;;  %v1219_v35 = vshll.u32 %v1139_v23, 16  ;;  %1799 = vmatpush.bf16.msra.mxu0 %v2377_v21  ;;  %v1140_v45 = vld [vmem:[#allocation2 + $0x3c] sm:$0x1] }
  0x5c   : > { %v2107_v38 = vrot.slane %v1024_v30, 9  ;;  %v1241_v41 = vrot.slane %v1239_v33, 5  ;;  %v1225_v49 = vshll.u32 %v1140_v45, 16  ;;  %v2374_v50 = vld [vmem:[%s3035_s3 + $0x18] sm:$0xff]  ;;  %v2373_v54 = vld [vmem:[%s3035_s3 + $0x10] sm:$0xff]  ;;  %v2372_v61 = vld [vmem:[%s3035_s3 + $0x8] sm:$0xff] }
  0x5d   : > { %844 = vrot.lane.b32.xlu0 %v826_v31, %s2496_s30  ;;  %v1025_v31 = vld [vmem:[#allocation2 + $0x2c] sm:$0x1]  ;;  %v1236_v32 = vor.u32 %v1235_v20, %v1232_v19  ;;  %v1079_v36 = vsel %vm2666_vm12, %v2110_v24, %v1078_v26  ;;  %v1218_v42 = vrot.slane %v1216_v34, 4  ;;  %v1221_v43 = vrot.slane %v1219_v35, 5  ;;  %2435 = vmatpush.bf16.msra.mxu2 %v2376_v37  ;;  %v830_v51 = vld [vmem:[#allocation2 + $0x38] sm:$0xf] }
  0x5e   : > { %v1066_v39 = vrot.slane %v1025_v31, 5  ;;  %2434 = vmatpush.bf16.msra.mxu1 %v2376_v37  ;;  %v566_v4 = vld [vmem:[#allocation2 + $0x30] sm:$0xf]  ;;  %v1028_v56 = vld [vmem:[#allocation2 + $0x38] sm:$0xe]  ;;  %v2392_v20 = vld [vmem:[%s3035_s3 + $0xa8] sm:$0xff] }
  0x5f   : > { %v1237_v40 = vrot.slane %v1236_v32, 4  ;;  %1800 = vmatpush.bf16.msra.mxu0 %v2376_v37  ;;  %v1222_v48 = vor.u32 %v1221_v43, %v1218_v42  ;;  %575 = vst.msk [vmem:[#allocation3 + $0x78] sm:$0xf] %vm397_vm5, %v566_v4  ;;  %v1029_v62 = vld [vmem:[#allocation2 + $0x3c] sm:$0x1]  ;;  %v2109_v2 = vrot.slane %v1028_v56, 9 }
  0x60   : > { %v1067_v46 = vsel %vm2666_vm12, %v2107_v38, %v1066_v39  ;;  %v1143_v55 = vld [vmem:[#allocation2 + $0x48] sm:$0xf]  ;;  %v564_v63 = vld [vmem:[#allocation2 + $0x20] sm:$0xf]  ;;  %v562_v0 = vld [vmem:[#allocation2 + $0x10] sm:$0xf] }
  0x61   : > { %v1242_v47 = vsel %vm2620_vm9, %v1237_v40, %v1241_v41  ;;  %2437 = vmatpush.bf16.msra.mxu2 %v2375_v44  ;;  %v1244_v59 = vshrl.u32 %v1143_v55, 16  ;;  %v1247_v60 = vshll.u32 %v1143_v55, 16  ;;  %573 = vst.msk [vmem:[#allocation3 + $0x50] sm:$0xf] %vm397_vm5, %v564_v63  ;;  %v1144_v3 = vld [vmem:[#allocation2 + $0x4c] sm:$0x1] }
  0x62   : > { %1259 = vrot.lane.b32.xlu2 %v1172_v52, %s2496_s30  ;;  %2436 = vmatpush.bf16.msra.mxu1 %v2375_v44  ;;  %v1223_v52 = vrot.slane %v1222_v48, 4  ;;  %571 = vst.msk [vmem:[#allocation3 + $0x28] sm:$0xf] %vm397_vm5, %v562_v0  ;;  %v2402_v5 = vld [vmem:[%s3035_s3 + $0xf8] sm:$0xff]  ;;  %v1074_v8 = vrot.slane %v1029_v62, 5  ;;  %v2401_v12 = vld [vmem:[%s3035_s3 + $0xf0] sm:$0xff] }
  0x63   : > { %846 = vrot.lane.b32.xlu1 %v827_v53, %s2496_s30  ;;  %1801 = vmatpush.bf16.msra.mxu0 %v2375_v44  ;;  %v1227_v53 = vrot.slane %v1225_v49, 5  ;;  %v567_v6 = vld [vmem:[#allocation2 + $0x38] sm:$0xf]  ;;  %v1246_v9 = vrot.slane %v1244_v59, 4  ;;  %v1249_v10 = vrot.slane %v1247_v60, 5  ;;  %v1253_v1 = vshll.u32 %v1144_v3, 16 }
  0x64   : > { %576 = vst.msk [vmem:[#allocation3 + $0x8c] sm:$0xf] %vm397_vm5, %v567_v6  ;;  %1885 = vmatpush.bf16.msra.mxu3 %v2402_v5  ;;  %v565_v13 = vld [vmem:[#allocation2 + $0x28] sm:$0xf]  ;;  %v2393_v16 = vld [vmem:[%s3035_s3 + $0xb0] sm:$0xff]  ;;  %v2399_v24 = vld [vmem:[%s3035_s3 + $0xe0] sm:$0xff] }
  0x65   : > { %1090 = vrot.lane.b32.xlu0 %v1071_v58, %s2496_s30  ;;  %2439 = vmatpush.bf16.msra.mxu2 %v2374_v50  ;;  %v1228_v57 = vsel %vm2620_vm9, %v1223_v52, %v1227_v53  ;;  %v831_v58 = vld [vmem:[#allocation2 + $0x40] sm:$0xf]  ;;  %574 = vst.msk [vmem:[#allocation3 + $0x64] sm:$0xf] %vm397_vm5, %v565_v13  ;;  %v1250_v15 = vor.u32 %v1249_v10, %v1246_v9  ;;  %v1255_v18 = vrot.slane %v1253_v1, 5  ;;  %v2400_v21 = vld [vmem:[%s3035_s3 + $0xe8] sm:$0xff] }
  0x66   : > { %2438 = vmatpush.bf16.msra.mxu1 %v2374_v50  ;;  %v563_v19 = vld [vmem:[#allocation2 + $0x18] sm:$0xf]  ;;  %v560_v22 = vld [vmem:[#allocation2] sm:$0xf]  ;;  %v873_v26 = vld [vmem:[#allocation2 + $0xc] sm:$0x1] }
  0x67   : > { %1802 = vmatpush.bf16.msra.mxu0 %v2374_v50  ;;  %v1251_v17 = vrot.slane %v1250_v15, 4  ;;  %572 = vst.msk [vmem:[#allocation3 + $0x3c] sm:$0xf] %vm397_vm5, %v563_v19  ;;  %v872_v30 = vld [vmem:[#allocation2 + $0x8] sm:$0xf]  ;;  %v2386_v39 = vld [vmem:[%s3035_s3 + $0x78] sm:$0xff] }
  0x68   : > { %1886 = vmatpush.bf16.msra.mxu3 %v2401_v12  ;;  %569 = vst.msk [vmem:[#allocation3] sm:$0xf] %vm397_vm5, %v560_v22  ;;  %v889_v31 = vshrl.u32 %v872_v30, 16  ;;  %v892_v32 = vshll.u32 %v872_v30, 16  ;;  %v561_v33 = vld [vmem:[#allocation2 + $0x8] sm:$0xf] }
  0x69   : > { %2441 = vmatpush.bf16.msra.mxu2 %v2373_v54  ;;  %v1256_v23 = vsel %vm2620_vm9, %v1251_v17, %v1255_v18  ;;  %v874_v34 = vld [vmem:[#allocation2 + $0x10] sm:$0xf]  ;;  %570 = vst.msk [vmem:[#allocation3 + $0x14] sm:$0xf] %vm397_vm5, %v561_v33  ;;  %v2390_v40 = vld [vmem:[%s3035_s3 + $0x98] sm:$0xff]  ;;  %v2384_v60 = vld [vmem:[%s3035_s3 + $0x68] sm:$0xff] }
  0x6a   : > { %1084 = vrot.lane.b32.xlu2 %v1059_v11, %s2496_s30  ;;  %2440 = vmatpush.bf16.msra.mxu1 %v2373_v54  ;;  %v2371_v11 = vld [vmem:[%s3035_s3] sm:$0xff]  ;;  %v903_v35 = vshrl.u32 %v874_v34, 16  ;;  %v891_v37 = vrot.slane %v889_v31, 4  ;;  %v894_v38 = vrot.slane %v892_v32, 5  ;;  %v2398_v41 = vld [vmem:[%s3035_s3 + $0xd8] sm:$0xff]  ;;  %v2397_v52 = vld [vmem:[%s3035_s3 + $0xd0] sm:$0xff] }
  0x6b   : > { %1265 = vrot.lane.b32.xlu1 %v1214_v25, %s2496_s30  ;;  %1803 = vmatpush.bf16.msra.mxu0 %v2373_v54  ;;  %v2394_v25 = vld [vmem:[%s3035_s3 + $0xb8] sm:$0xff]  ;;  %v875_v48 = vld [vmem:[#allocation2 + $0x14] sm:$0x1]  ;;  %v1113_v59 = vld [vmem:[#allocation2 + $0x10] sm:$0xf] }
  0x6c   : > { %1887 = vmatpush.bf16.msra.mxu3 %v2400_v21  ;;  %v905_v42 = vrot.slane %v903_v35, 4  ;;  %v895_v45 = vor.u32 %v894_v38, %v891_v37  ;;  %v1114_v50 = vld [vmem:[#allocation2 + $0x18] sm:$0xf]  ;;  %v912_v53 = vshll.u32 %v875_v48, 16  ;;  %v2396_v62 = vld [vmem:[%s3035_s3 + $0xc8] sm:$0xff]  ;;  %v2383_v0 = vld [vmem:[%s3035_s3 + $0x60] sm:$0xff] }
  0x6d   : > { %848 = vrot.lane.b32.xlu0 %v828_v14, %s2496_s30  ;;  %2443 = vmatpush.bf16.msra.mxu2 %v2372_v61  ;;  %v1075_v14 = vsel %vm2666_vm12, %v2109_v2, %v1074_v8  ;;  %1122 = vst.msk [vmem:[#allocation3 + $0x20] sm:$0xf] %vm397_vm5, %v1114_v50  ;;  %v2387_v2 = vld [vmem:[%s3035_s3 + $0x80] sm:$0xff]  ;;  %v876_v3 = vld [vmem:[#allocation2 + $0x18] sm:$0xf]  ;;  %v2405_v32 = vld [vmem:[%s3035_s3 + $0x110] sm:$0xff] }
  0x6e   : > { %2442 = vmatpush.bf16.msra.mxu1 %v2372_v61  ;;  %v914_v56 = vrot.slane %v912_v53, 5  ;;  %1121 = vst.msk [vmem:[#allocation3 + $0xc] sm:$0xf] %vm397_vm5, %v1113_v59  ;;  %v877_v5 = vld [vmem:[#allocation2 + $0x1c] sm:$0x1]  ;;  %v2395_v6 = vld [vmem:[%s3035_s3 + $0xc0] sm:$0xff] }
  0x6f   : > { %1804 = vmatpush.bf16.msra.mxu0 %v2372_v61  ;;  %v2388_v61 = vld [vmem:[%s3035_s3 + $0x88] sm:$0xff]  ;;  %v917_v8 = vshrl.u32 %v876_v3, 16  ;;  %v920_v9 = vshll.u32 %v876_v3, 16  ;;  %v926_v10 = vshll.u32 %v877_v5, 16  ;;  %v741_v1 = vld [vmem:[#allocation2] sm:$0xe] }
  0x70   : > { %1888 = vmatpush.bf16.msra.mxu3 %v2399_v24  ;;  %v2095_v19 = vrot.slane %v741_v1, 9  ;;  %v743_v21 = vld [vmem:[#allocation2 + $0x8] sm:$0xe]  ;;  %v744_v22 = vld [vmem:[#allocation2 + $0xc] sm:$0x1]  ;;  %v2381_v33 = vld [vmem:[%s3035_s3 + $0x50] sm:$0xff] }
  0x71   : > { %2445 = vmatpush.bf16.msra.mxu2 %v2371_v11  ;;  %v919_v12 = vrot.slane %v917_v8, 4  ;;  %v922_v13 = vrot.slane %v920_v9, 5  ;;  %v928_v15 = vrot.slane %v926_v10, 5  ;;  %v782_v24 = vrot.slane %v744_v22, 5  ;;  %v879_v37 = vld [vmem:[#allocation2 + $0x24] sm:$0x1] }
  0x72   : > { %1263 = vrot.lane.b32.xlu2 %v1200_v27, %s2496_s30  ;;  %2444 = vmatpush.bf16.msra.mxu1 %v2371_v11  ;;  %v2391_v27 = vld [vmem:[%s3035_s3 + $0xa0] sm:$0xff]  ;;  %v1291_v50 = vld [vmem:[#allocation2 + $0x18] sm:$0xe] }
  0x73   : > { %850 = vrot.lane.b32.xlu1 %v829_v29, %s2496_s30  ;;  %1805 = vmatpush.bf16.msra.mxu0 %v2371_v11  ;;  %v898_v29 = vshll.u32 %v873_v26, 16  ;;  %v923_v18 = vor.u32 %v922_v13, %v919_v12  ;;  %v2406_v26 = vld [vmem:[%s3035_s3 + $0x118] sm:$0xff]  ;;  %v1115_v48 = vld [vmem:[#allocation2 + $0x20] sm:$0xf]  ;;  %v2112_v5 = vrot.slane %v1291_v50, 9 }
  0x74   : > { %1889 = vmatpush.bf16.msra.mxu3 %v2398_v41  ;;  %v1289_v41 = vld [vmem:[#allocation2 + $0x10] sm:$0xe]  ;;  %1123 = vst.msk [vmem:[#allocation3 + $0x34] sm:$0xf] %vm397_vm5, %v1115_v48  ;;  %v2379_v8 = vld [vmem:[%s3035_s3 + $0x40] sm:$0xff] }
  0x75   : > { %1094 = vrot.lane.b32.xlu0 %v1079_v36, %s2496_s30  ;;  %1856 = vmatpush.bf16.msrb.mxu2 %v2394_v25  ;;  %v906_v36 = vshll.u32 %v874_v34, 16  ;;  %v900_v44 = vrot.slane %v898_v29, 5  ;;  %v878_v25 = vld [vmem:[#allocation2 + $0x20] sm:$0xf]  ;;  %v924_v30 = vrot.slane %v923_v18, 4 }
  0x76   : > { %1827 = vmatpush.bf16.msrb.mxu1 %v2386_v39  ;;  %v934_v39 = vshll.u32 %v878_v25, 16  ;;  %v746_v18 = vld [vmem:[#allocation2 + $0x14] sm:$0x1] }
  0x77   : > { %v908_v43 = vrot.slane %v906_v36, 5  ;;  %1918 = vmatpush.bf16.msrb.mxu0 %v2406_v26  ;;  %v1116_v36 = vld [vmem:[#allocation2 + $0x28] sm:$0xf]  ;;  %v929_v38 = vsel %vm2620_vm9, %v924_v30, %v928_v15 }
  0x78   : > { %1890 = vmatpush.bf16.msra.mxu3 %v2397_v52  ;;  %1010 = vst.msk [vmem:[#allocation3 + $0x30] sm:$0xf] %vm397_vm5, %v929_v38 }
  0x79   : > { %1857 = vmatpush.bf16.msrb.mxu2 %v2393_v16  ;;  %v909_v49 = vor.u32 %v908_v43, %v905_v42  ;;  %v742_v16 = vld [vmem:[#allocation2 + $0x4] sm:$0x1]  ;;  %v1290_v43 = vld [vmem:[#allocation2 + $0x14] sm:$0x1]  ;;  %1124 = vst.msk [vmem:[#allocation3 + $0x48] sm:$0xf] %vm397_vm5, %v1116_v36 }
  0x7a   : > { %1088 = vrot.lane.b32.xlu2 %v1067_v46, %s2496_s30  ;;  %v2385_v46 = vld [vmem:[%s3035_s3 + $0x70] sm:$0xff]  ;;  %v1118_v36 = vld [vmem:[#allocation2 + $0x38] sm:$0xf] }
  0x7b   : > { %1269 = vrot.lane.b32.xlu1 %v1242_v47, %s2496_s30  ;;  %v2389_v47 = vld [vmem:[%s3035_s3 + $0x90] sm:$0xff]  ;;  %v910_v54 = vrot.slane %v909_v49, 4  ;;  %1828 = vmatpush.bf16.msrb.mxu1 %v2385_v46  ;;  %v2404_v49 = vld [vmem:[%s3035_s3 + $0x108] sm:$0xff]  ;;  %1126 = vst.msk [vmem:[#allocation3 + $0x70] sm:$0xf] %vm397_vm5, %v1118_v36 }
  0x7c   : > { %1891 = vmatpush.bf16.msra.mxu3 %v2396_v62  ;;  %1919 = vmatpush.bf16.msrb.mxu0 %v2405_v32  ;;  %v887_v36 = vld [vmem:[#allocation2 + $0x44] sm:$0x1] }
  0x7d   : > { %852 = vrot.lane.b32.xlu0 %v830_v51, %s2496_s30  ;;  %1858 = vmatpush.bf16.msrb.mxu2 %v2392_v20  ;;  %v896_v51 = vrot.slane %v895_v45, 4  ;;  %v778_v20 = vrot.slane %v742_v16, 5 }
  0x7f   : > { %v901_v55 = vsel %vm2620_vm9, %v896_v51, %v900_v44  ;;  %1829 = vmatpush.bf16.msrb.mxu1 %v2384_v60  ;;  %v779_v31 = vsel %vm2666_vm12, %v2095_v19, %v778_v20  ;;  %v2111_v51 = vrot.slane %v1289_v41, 9  ;;  %v881_v60 = vld [vmem:[#allocation2 + $0x2c] sm:$0x1] }
  0x80   : > { %1008 = vst.msk [vmem:[#allocation3 + $0x8] sm:$0xf] %vm397_vm5, %v901_v55  ;;  %1892 = vmatpush.bf16.msra.mxu3 %v2395_v6  ;;  %v2380_v55 = vld [vmem:[%s3035_s3 + $0x48] sm:$0xff]  ;;  %1920 = vmatpush.bf16.msrb.mxu0 %v2404_v49 }
  0x81   : > { %1859 = vmatpush.bf16.msrb.mxu2 %v2391_v27  ;;  %v2382_v27 = vld [vmem:[%s3035_s3 + $0x58] sm:$0xff]  ;;  %816 = vst.msk [vmem:[#allocation3 + $0x4] sm:$0xf] %vm397_vm5, %v779_v31 }
  0x82   : > { %1267 = vrot.lane.b32.xlu2 %v1228_v57, %s2496_s30 }
  0x83   : > { %854 = vrot.lane.b32.xlu1 %v831_v58, %s2496_s30  ;;  %v915_v58 = vsel %vm2620_vm9, %v910_v54, %v914_v56  ;;  %1830 = vmatpush.bf16.msrb.mxu1 %v2383_v0  ;;  %v954_v0 = vshll.u32 %v881_v60, 16  ;;  %v1294_v60 = vld [vmem:[#allocation2 + $0x24] sm:$0x1] }
  0x84   : > { %1009 = vst.msk [vmem:[#allocation3 + $0x1c] sm:$0xf] %vm397_vm5, %v915_v58  ;;  %v1323_v58 = vrot.slane %v1290_v43, 5 }
  0x85   : > { %1860 = vmatpush.bf16.msrb.mxu2 %v2390_v40  ;;  %v940_v40 = vshll.u32 %v879_v37, 16  ;;  %v956_v15 = vrot.slane %v954_v0, 5  ;;  %v883_v37 = vld [vmem:[#allocation2 + $0x34] sm:$0x1]  ;;  %v1296_v0 = vld [vmem:[#allocation2 + $0x2c] sm:$0x1] }
  0x86   : > { %v1324_v3 = vsel %vm2666_vm12, %v2111_v51, %v1323_v58  ;;  %v968_v41 = vshll.u32 %v883_v37, 16 }
  0x87   : > { %1831 = vmatpush.bf16.msrb.mxu1 %v2382_v27  ;;  %1361 = vst.msk [vmem:[#allocation3 + $0x10] sm:$0xf] %vm397_vm5, %v1324_v3  ;;  %v748_v27 = vld [vmem:[#allocation2 + $0x1c] sm:$0x1]  ;;  %v1331_v3 = vrot.slane %v1294_v60, 5 }
  0x88   : > { %v790_v32 = vrot.slane %v748_v27, 5  ;;  %v970_v48 = vrot.slane %v968_v41, 5 }
  0x89   : > { %1861 = vmatpush.bf16.msrb.mxu2 %v2389_v47  ;;  %v936_v47 = vrot.slane %v934_v39, 5 }
  0x8a   : > { %1092 = vrot.lane.b32.xlu2 %v1075_v14, %s2496_s30  ;;  %v931_v14 = vshrl.u32 %v878_v25, 16  ;;  %v882_v25 = vld [vmem:[#allocation2 + $0x30] sm:$0xf] }
  0x8b   : > { %1832 = vmatpush.bf16.msrb.mxu1 %v2381_v33  ;;  %v959_v1 = vshrl.u32 %v882_v25, 16  ;;  %v962_v16 = vshll.u32 %v882_v25, 16 }
  0x8c   : > { %v933_v34 = vrot.slane %v931_v14, 4 }
  0x8d   : > { %1862 = vmatpush.bf16.msrb.mxu2 %v2388_v61  ;;  %v961_v30 = vrot.slane %v959_v1, 4  ;;  %v964_v33 = vrot.slane %v962_v16, 5 }
  0x8e   : > { %v937_v54 = vor.u32 %v936_v47, %v933_v34 }
  0x8f   : > { %1833 = vmatpush.bf16.msrb.mxu1 %v2380_v55  ;;  %v885_v55 = vld [vmem:[#allocation2 + $0x3c] sm:$0x1] }
  0x90   : > { %v938_v59 = vrot.slane %v937_v54, 4 }
  0x91   : > { %1863 = vmatpush.bf16.msrb.mxu2 %v2387_v2  ;;  %v1292_v2 = vld [vmem:[#allocation2 + $0x1c] sm:$0x1] }
  0x92   : > { %1271 = vrot.lane.b32.xlu2 %v1256_v23, %s2496_s30  ;;  %v2096_v23 = vrot.slane %v743_v21, 9 }
  0x93   : > { %1834 = vmatpush.bf16.msrb.mxu1 %v2379_v8  ;;  %v886_v8 = vld [vmem:[#allocation2 + $0x40] sm:$0xf] }
  0x94   : > { %v783_v35 = vsel %vm2666_vm12, %v2096_v23, %v782_v24  ;;  %v786_v23 = vrot.slane %v746_v18, 5  ;;  %v747_v24 = vld [vmem:[#allocation2 + $0x18] sm:$0xe] }
  0x95   : > { %817 = vst.msk [vmem:[#allocation3 + $0x18] sm:$0xf] %vm397_vm5, %v783_v35 }
  0x9c   : > { %v721_v4 = vpop.permute.xlu1 %720 }
  0x9d   : > { %739 = vst.msk [vmem:[#allocation3 + $0x78] sm:$0xf] %vm732_vm13, %v721_v4  ;;  %v942_v4 = vrot.slane %v940_v40, 5  ;;  %v965_v40 = vor.u32 %v964_v33, %v961_v30  ;;  %v752_v30 = vld [vmem:[#allocation2 + $0x2c] sm:$0x1] }
  0x9e   : > { %v713_v57 = vpop.permute.xlu0 %712  ;;  %v798_v33 = vrot.slane %v752_v30, 5 }
  0x9f   : > { %735 = vst.msk [vmem:[#allocation3 + $0x28] sm:$0xf] %vm732_vm13, %v713_v57  ;;  %v880_v57 = vld [vmem:[#allocation2 + $0x28] sm:$0xf]  ;;  %v943_v6 = vsel %vm2620_vm9, %v938_v59, %v942_v4  ;;  %v966_v47 = vrot.slane %v965_v40, 4  ;;  %v982_v59 = vshll.u32 %v885_v55, 16 }
  0xa0   : > { %v945_v61 = vshrl.u32 %v880_v57, 16  ;;  %v948_v62 = vshll.u32 %v880_v57, 16  ;;  %1011 = vst.msk [vmem:[#allocation3 + $0x44] sm:$0xf] %vm397_vm5, %v943_v6  ;;  %v1335_v6 = vrot.slane %v1296_v0, 5  ;;  %v996_v40 = vshll.u32 %v887_v36, 16 }
  0xa1   : > { %v717_v63 = vpop.permute.xlu2 %716  ;;  %v971_v4 = vsel %vm2620_vm9, %v966_v47, %v970_v48 }
  0xa2   : > { %737 = vst.msk [vmem:[#allocation3 + $0x50] sm:$0xf] %vm732_vm13, %v717_v63  ;;  %v2403_v63 = vld [vmem:[%s3035_s3 + $0x100] sm:$0xff]  ;;  %v947_v9 = vrot.slane %v945_v61, 4  ;;  %v950_v10 = vrot.slane %v948_v62, 5  ;;  %v998_v48 = vrot.slane %v996_v40, 5 }
  0xa3   : > { %1921 = vmatpush.bf16.msrb.mxu0 %v2403_v63  ;;  %1013 = vst.msk [vmem:[#allocation3 + $0x6c] sm:$0xf] %vm397_vm5, %v971_v4  ;;  %v1295_v61 = vld [vmem:[#allocation2 + $0x28] sm:$0xe]  ;;  %v1298_v4 = vld [vmem:[#allocation2 + $0x34] sm:$0x1] }
  0xa4   : > { %v723_v11 = vpop.permute.xlu1 %722  ;;  %v2181_v29 = vld [vmem:[#allocation3 + $0x78] sm:$0xf]  ;;  %v951_v14 = vor.u32 %v950_v10, %v947_v9 }
  0xa5   : > { %740 = vst.msk [vmem:[#allocation3 + $0x8c] sm:$0xf] %vm732_vm13, %v723_v11  ;;  %v1327_v11 = vrot.slane %v1292_v2, 5 }
  0xa6   : > { %v2141_v45 = vld [vmem:[#allocation3 + $0x28] sm:$0xf]  ;;  %v952_v21 = vrot.slane %v951_v14, 4 }
  0xa7   : > { %v715_v17 = vpop.permute.xlu0 %714  ;;  %v1328_v19 = vsel %vm2666_vm12, %v2112_v5, %v1327_v11  ;;  %v2114_v5 = vrot.slane %v1295_v61, 9 }
  0xa8   : > { %736 = vst.msk [vmem:[#allocation3 + $0x3c] sm:$0xf] %vm732_vm13, %v715_v17  ;;  %v745_v17 = vld [vmem:[#allocation2 + $0x10] sm:$0xe]  ;;  %v957_v26 = vsel %vm2620_vm9, %v952_v21, %v956_v15  ;;  %v749_v15 = vld [vmem:[#allocation2 + $0x20] sm:$0xe] }
  0xa9   : > { %v2097_v22 = vrot.slane %v745_v17, 9  ;;  %1362 = vst.msk [vmem:[#allocation3 + $0x24] sm:$0xf] %vm397_vm5, %v1328_v19  ;;  %v2161_v34 = vld [vmem:[#allocation3 + $0x50] sm:$0xf]  ;;  %v2099_v19 = vrot.slane %v749_v15, 9 }
  0xaa   : > { %1012 = vst.msk [vmem:[#allocation3 + $0x58] sm:$0xf] %vm397_vm5, %v957_v26  ;;  %v2137_v21 = vld [vmem:[#allocation3 + $0x10] sm:$0xf]  ;;  %v1336_v26 = vsel %vm2666_vm12, %v2114_v5, %v1335_v6 }
  0xab   : > { %v787_v31 = vsel %vm2666_vm12, %v2097_v22, %v786_v23  ;;  %v750_v23 = vld [vmem:[#allocation2 + $0x24] sm:$0x1]  ;;  %1364 = vst.msk [vmem:[#allocation3 + $0x4c] sm:$0xf] %vm397_vm5, %v1336_v26 }
  0xac   : > { %v2368_v42 = vld [vmem:[#allocation3 + $0x88] sm:$0xf0]  ;;  %v719_v44 = vpop.permute.xlu2 %718  ;;  %818 = vst.msk [vmem:[#allocation3 + $0x2c] sm:$0xf] %vm397_vm5, %v787_v31 }
  0xad   : > { %v2182_v46 = vor.u32 %v2368_v42, %v2181_v29  ;;  %738 = vst.msk [vmem:[#allocation3 + $0x64] sm:$0xf] %vm732_vm13, %v719_v44  ;;  %v2098_v29 = vrot.slane %v747_v24, 9  ;;  %v751_v24 = vld [vmem:[#allocation2 + $0x28] sm:$0xe] }
  0xae   : > { %v2100_v31 = vrot.slane %v751_v24, 9 }
  0xaf   : > { %v709_v52 = vpop.permute.xlu0 %708  ;;  %v2358_v53 = vld [vmem:[#allocation3 + $0x38] sm:$0xf0]  ;;  %1821 = vmatmul.bf16.vlgmr.msra.gmra.mxu2 %v2182_v46  ;;  %v791_v39 = vsel %vm2666_vm12, %v2098_v29, %v790_v32  ;;  %v794_v29 = vrot.slane %v750_v23, 5 }
  0xb0   : > { %733 = vst.msk [vmem:[#allocation3] sm:$0xf] %vm732_vm13, %v709_v52  ;;  %v2142_v56 = vor.u32 %v2358_v53, %v2141_v45  ;;  %v1117_v45 = vld [vmem:[#allocation2 + $0x30] sm:$0xf]  ;;  %v884_v52 = vld [vmem:[#allocation2 + $0x38] sm:$0xf] }
  0xb1   : > { %819 = vst.msk [vmem:[#allocation3 + $0x40] sm:$0xf] %vm397_vm5, %v791_v39  ;;  %v973_v57 = vshrl.u32 %v884_v52, 16  ;;  %v976_v58 = vshll.u32 %v884_v52, 16  ;;  %v2355_v22 = vld [vmem:[#allocation3 + $0x20] sm:$0xf0] }
  0xb2   : > { %1811 = vmatmul.bf16.vlgmr.msra.gmra.mxu1 %v2142_v56  ;;  %v1293_v56 = vld [vmem:[#allocation2 + $0x20] sm:$0xe]  ;;  %1125 = vst.msk [vmem:[#allocation3 + $0x5c] sm:$0xf] %vm397_vm5, %v1117_v45  ;;  %v1120_v39 = vld [vmem:[#allocation2 + $0x48] sm:$0xf] }
  0xb3   : > { %v975_v62 = vrot.slane %v973_v57, 4  ;;  %v978_v63 = vrot.slane %v976_v58, 5  ;;  %v2113_v2 = vrot.slane %v1293_v56, 9  ;;  %1128 = vst.msk [vmem:[#allocation3 + $0x98] sm:$0xf] %vm397_vm5, %v1120_v39 }
  0xb4   : > { %v1081_v12 = vpop.permute.xlu2 %1080  ;;  %v2363_v35 = vld [vmem:[#allocation3 + $0x60] sm:$0xf0]  ;;  %v1299_v57 = vld [vmem:[#allocation2 + $0x38] sm:$0xe]  ;;  %v1300_v58 = vld [vmem:[#allocation2 + $0x3c] sm:$0x1] }
  0xb5   : > { %v711_v13 = vpop.permute.xlu1 %710  ;;  %1104 = vst.msk [vmem:[#allocation3 + $0x8] sm:$0xf] %vm732_vm13, %v1081_v12  ;;  %v2162_v53 = vor.u32 %v2363_v35, %v2161_v34  ;;  %v979_v25 = vor.u32 %v978_v63, %v975_v62  ;;  %v984_v12 = vrot.slane %v982_v59, 5  ;;  %v1332_v1 = vsel %vm2666_vm12, %v2113_v2, %v1331_v3 }
  0xb6   : > { %734 = vst.msk [vmem:[#allocation3 + $0x14] sm:$0xf] %vm732_vm13, %v711_v13  ;;  %v987_v13 = vshrl.u32 %v886_v8, 16  ;;  %v795_v35 = vsel %vm2666_vm12, %v2099_v19, %v794_v29  ;;  %v1339_v59 = vrot.slane %v1298_v4, 5  ;;  %v2116_v60 = vrot.slane %v1299_v57, 9 }
  0xb7   : > { %v1083_v20 = vpop.permute.xlu0 %1082  ;;  %v2121_v38 = vld [vmem:[#allocation3] sm:$0xf]  ;;  %v980_v18 = vrot.slane %v979_v25, 4  ;;  %1363 = vst.msk [vmem:[#allocation3 + $0x38] sm:$0xf] %vm397_vm5, %v1332_v1  ;;  %v1343_v61 = vrot.slane %v1300_v58, 5 }
  0xb8   : > { %1105 = vst.msk [vmem:[#allocation3 + $0x1c] sm:$0xf] %vm732_vm13, %v1083_v20  ;;  %v990_v20 = vshll.u32 %v886_v8, 16  ;;  %v989_v34 = vrot.slane %v987_v13, 4  ;;  %v755_v13 = vld [vmem:[#allocation2 + $0x38] sm:$0xe] }
  0xb9   : > { %v985_v27 = vsel %vm2620_vm9, %v980_v18, %v984_v12  ;;  %820 = vst.msk [vmem:[#allocation3 + $0x54] sm:$0xf] %vm397_vm5, %v795_v35  ;;  %v1344_v3 = vsel %vm2666_vm12, %v2116_v60, %v1343_v61  ;;  %v2102_v15 = vrot.slane %v755_v13, 9 }
  0xba   : > { %1014 = vst.msk [vmem:[#allocation3 + $0x80] sm:$0xf] %vm397_vm5, %v985_v27  ;;  %v992_v37 = vrot.slane %v990_v20, 5  ;;  %v1303_v20 = vld [vmem:[#allocation2 + $0x48] sm:$0xe] }
  0xbb   : > { %1366 = vst.msk [vmem:[#allocation3 + $0x74] sm:$0xf] %vm397_vm5, %v1344_v3 }
  0xbc   : > { %v1260_v42 = vpop.permute.xlu2 %1259  ;;  %v2129_v44 = vld [vmem:[#allocation3 + $0x8] sm:$0xf]  ;;  %v993_v45 = vor.u32 %v992_v37, %v989_v34 }
  0xbd   : > { %v1258_v43 = vpop.permute.xlu1 %1257  ;;  %1282 = vst.msk [vmem:[#allocation3 + $0x20] sm:$0xf] %vm732_vm13, %v1260_v42  ;;  %v2353_v46 = vld [vmem:[#allocation3 + $0x10] sm:$0xf0] }
  0xbe   : > { %1281 = vst.msk [vmem:[#allocation3 + $0xc] sm:$0xf] %vm732_vm13, %v1258_v43  ;;  %v2122_v49 = vor.u32 %v2353_v46, %v2121_v38  ;;  %v799_v38 = vsel %vm2666_vm12, %v2100_v31, %v798_v33  ;;  %v2138_v43 = vor.u32 %v2355_v22, %v2137_v21  ;;  %v1297_v46 = vld [vmem:[#allocation2 + $0x30] sm:$0xe]  ;;  %v2157_v8 = vld [vmem:[#allocation3 + $0x38] sm:$0xf] }
  0xbf   : > { %v841_v50 = vpop.permute.xlu0 %840  ;;  %v2354_v51 = vld [vmem:[#allocation3 + $0x18] sm:$0xf0]  ;;  %821 = vst.msk [vmem:[#allocation3 + $0x68] sm:$0xf] %vm397_vm5, %v799_v38  ;;  %v2115_v55 = vrot.slane %v1297_v46, 9 }
  0xc0   : > { %864 = vst.msk [vmem:[#allocation3 + $0x4] sm:$0xf] %vm732_vm13, %v841_v50  ;;  %v2130_v54 = vor.u32 %v2354_v51, %v2129_v44  ;;  %1806 = vmatmul.bf16.vlgmr.msra.gmra.mxu0 %v2122_v49  ;;  %v1119_v49 = vld [vmem:[#allocation2 + $0x40] sm:$0xf]  ;;  %v1304_v21 = vld [vmem:[#allocation2 + $0x4c] sm:$0x1] }
  0xc1   : > { %1127 = vst.msk [vmem:[#allocation3 + $0x84] sm:$0xf] %vm397_vm5, %v1119_v49  ;;  %v1340_v62 = vsel %vm2666_vm12, %v2115_v55, %v1339_v59  ;;  %v1351_v33 = vrot.slane %v1304_v21, 5 }
  0xc2   : > { %1816 = vmatmul.bf16.gmra.mxu1 %v2162_v53  ;;  %1864 = vmatmul.bf16.vlgmr.msrb.gmra.mxu2 %v2130_v54  ;;  %v994_v53 = vrot.slane %v993_v45, 4  ;;  %1365 = vst.msk [vmem:[#allocation3 + $0x60] sm:$0xf] %vm397_vm5, %v1340_v62  ;;  %v2365_v46 = vld [vmem:[#allocation3 + $0x70] sm:$0xf0] }
  0xc4   : > { %v1085_v9 = vpop.permute.xlu2 %1084  ;;  %v2131_v11 = vld [vmem:[#allocation3 + $0x1c] sm:$0xf0]  ;;  %v999_v56 = vsel %vm2620_vm9, %v994_v53, %v998_v48 }
  0xc5   : > { %v843_v10 = vpop.permute.xlu1 %842  ;;  %1106 = vst.msk [vmem:[#allocation3 + $0x30] sm:$0xf] %vm732_vm13, %v1085_v9  ;;  %v2352_v14 = vld [vmem:[#allocation3 + $0xc] sm:$0xf] }
  0xc6   : > { %865 = vst.msk [vmem:[#allocation3 + $0x18] sm:$0xf] %vm732_vm13, %v843_v10  ;;  %v2134_v16 = vor.u32 %v2352_v14, %v2131_v11  ;;  %v2360_v9 = vld [vmem:[#allocation3 + $0x48] sm:$0xf0]  ;;  %v753_v10 = vld [vmem:[#allocation2 + $0x30] sm:$0xe] }
  0xc7   : > { %v1087_v17 = vpop.permute.xlu0 %1086  ;;  %v2351_v32 = vld [vmem:[#allocation3 + $0x4] sm:$0xf]  ;;  %1015 = vst.msk [vmem:[#allocation3 + $0x94] sm:$0xf] %vm397_vm5, %v999_v56  ;;  %v2101_v25 = vrot.slane %v753_v10, 9  ;;  %v2158_v24 = vor.u32 %v2360_v9, %v2157_v8 }
  0xc8   : > { %1107 = vst.msk [vmem:[#allocation3 + $0x44] sm:$0xf] %vm732_vm13, %v1087_v17  ;;  %1893 = vmatmul.bf16.vlgmr.msra.gmra.mxu3 %v2134_v16  ;;  %v754_v11 = vld [vmem:[#allocation2 + $0x34] sm:$0x1]  ;;  %v756_v14 = vld [vmem:[#allocation2 + $0x3c] sm:$0x1] }
  0xc9   : > { %v802_v12 = vrot.slane %v754_v11, 5  ;;  %v806_v1 = vrot.slane %v756_v14, 5  ;;  %v1301_v16 = vld [vmem:[#allocation2 + $0x40] sm:$0xe]  ;;  %v1302_v17 = vld [vmem:[#allocation2 + $0x44] sm:$0x1] }
  0xca   : > { %v2117_v27 = vrot.slane %v1301_v16, 9  ;;  %v1347_v29 = vrot.slane %v1302_v17, 5  ;;  %v2177_v45 = vld [vmem:[#allocation3 + $0x60] sm:$0xf] }
  0xcb   : > { %v803_v19 = vsel %vm2666_vm12, %v2101_v25, %v802_v12  ;;  %v807_v31 = vsel %vm2666_vm12, %v2102_v15, %v806_v1  ;;  %v3000_v12 = vld [vmem:[%s3036_s4] ss:$0 sm:$0xff] }
  0xcc   : > { %v1264_v41 = vpop.permute.xlu2 %1263  ;;  %v2149_v44 = vld [vmem:[#allocation3 + $0x30] sm:$0xf]  ;;  %822 = vst.msk [vmem:[#allocation3 + $0x7c] sm:$0xf] %vm397_vm5, %v803_v19  ;;  %v1348_v37 = vsel %vm2666_vm12, %v2117_v27, %v1347_v29 }
  0xcd   : > { %v1262_v42 = vpop.permute.xlu1 %1261  ;;  %1284 = vst.msk [vmem:[#allocation3 + $0x48] sm:$0xf] %vm732_vm13, %v1264_v41  ;;  %v2123_v47 = vld [vmem:[#allocation3 + $0x14] sm:$0xf0] }
  0xce   : > { %1283 = vst.msk [vmem:[#allocation3 + $0x34] sm:$0xf] %vm732_vm13, %v1262_v42  ;;  %v2126_v51 = vor.u32 %v2351_v32, %v2123_v47  ;;  %v2118_v32 = vrot.slane %v1303_v20, 9 }
  0xcf   : > { %v845_v50 = vpop.permute.xlu0 %844  ;;  %v2359_v52 = vld [vmem:[#allocation3 + $0x40] sm:$0xf0]  ;;  %823 = vst.msk [vmem:[#allocation3 + $0x90] sm:$0xf] %vm397_vm5, %v807_v31 }
  0xd0   : > { %866 = vst.msk [vmem:[#allocation3 + $0x2c] sm:$0xf] %vm732_vm13, %v845_v50  ;;  %v2150_v54 = vor.u32 %v2359_v52, %v2149_v44  ;;  %2343 = vmatmul.msk.bf16.vlgmr.msrb.gmra.mxu0 %vm1785_vm14, %v2138_v43  ;;  %v1352_v39 = vsel %vm2666_vm12, %v2118_v32, %v1351_v33  ;;  %v2178_v50 = vor.u32 %v2365_v46, %v2177_v45 }
  0xd1   : > { %1367 = vst.msk [vmem:[#allocation3 + $0x88] sm:$0xf] %vm397_vm5, %v1348_v37 }
  0xd2   : > { %1835 = vmatmul.bf16.vlgmr.msrb.gmra.mxu1 %v2126_v51  ;;  %1869 = vmatmul.bf16.gmra.mxu2 %v2150_v54  ;;  %1368 = vst.msk [vmem:[#allocation3 + $0x9c] sm:$0xf] %vm397_vm5, %v1352_v39 }
  0xd4   : > { %v1089_v63 = vpop.permute.xlu2 %1088  ;;  %v2151_v2 = vld [vmem:[#allocation3 + $0x44] sm:$0xf0] }
  0xd5   : > { %v847_v0 = vpop.permute.xlu1 %846  ;;  %1108 = vst.msk [vmem:[#allocation3 + $0x58] sm:$0xf] %vm732_vm13, %v1089_v63  ;;  %v2357_v28 = vld [vmem:[#allocation3 + $0x34] sm:$0xf] }
  0xd6   : > { %867 = vst.msk [vmem:[#allocation3 + $0x40] sm:$0xf] %vm732_vm13, %v847_v0  ;;  %v2154_v5 = vor.u32 %v2357_v28, %v2151_v2 }
  0xd7   : > { %v1091_v6 = vpop.permute.xlu0 %1090  ;;  %v2356_v18 = vld [vmem:[#allocation3 + $0x2c] sm:$0xf] }
  0xd8   : > { %1109 = vst.msk [vmem:[#allocation3 + $0x6c] sm:$0xf] %vm732_vm13, %v1091_v6  ;;  %1898 = vmatmul.bf16.gmra.mxu3 %v2154_v5  ;;  %v2197_v60 = vld [vmem:[#allocation3 + $0x88] sm:$0xf] }
  0xd9   : > { %v2370_v61 = vld [vmem:[#allocation3 + $0x98] sm:$0xf0] }
  0xda   : > { %v2198_v63 = vor.u32 %v2370_v61, %v2197_v60 }
  0xdc   : > { %v1268_v22 = vpop.permute.xlu2 %1267  ;;  %v2169_v26 = vld [vmem:[#allocation3 + $0x58] sm:$0xf] }
  0xdd   : > { %v1266_v23 = vpop.permute.xlu1 %1265  ;;  %1286 = vst.msk [vmem:[#allocation3 + $0x70] sm:$0xf] %vm732_vm13, %v1268_v22  ;;  %v2143_v30 = vld [vmem:[#allocation3 + $0x3c] sm:$0xf0] }
  0xde   : > { %1285 = vst.msk [vmem:[#allocation3 + $0x5c] sm:$0xf] %vm732_vm13, %v1266_v23  ;;  %v2146_v35 = vor.u32 %v2356_v18, %v2143_v30 }
  0xdf   : > { %v849_v34 = vpop.permute.xlu0 %848  ;;  %v2364_v36 = vld [vmem:[#allocation3 + $0x68] sm:$0xf0] }
  0xe0   : > { %868 = vst.msk [vmem:[#allocation3 + $0x54] sm:$0xf] %vm732_vm13, %v849_v34  ;;  %v2170_v38 = vor.u32 %v2364_v36, %v2169_v26  ;;  %2344 = vmatmul.msk.bf16.gmra.mxu0 %vm1785_vm14, %v2158_v24 }
  0xe2   : > { %1840 = vmatmul.bf16.gmra.mxu1 %v2146_v35  ;;  %1874 = vmatmul.bf16.gmra.mxu2 %v2170_v38 }
  0xe4   : > { %v1093_v40 = vpop.permute.xlu2 %1092  ;;  %v2171_v42 = vld [vmem:[#allocation3 + $0x6c] sm:$0xf0] }
  0xe5   : > { %v851_v41 = vpop.permute.xlu1 %850  ;;  %1110 = vst.msk [vmem:[#allocation3 + $0x80] sm:$0xf] %vm732_vm13, %v1093_v40  ;;  %v2362_v43 = vld [vmem:[#allocation3 + $0x5c] sm:$0xf] }
  0xe6   : > { %869 = vst.msk [vmem:[#allocation3 + $0x68] sm:$0xf] %vm732_vm13, %v851_v41  ;;  %v2174_v7 = vor.u32 %v2362_v43, %v2171_v42 }
  0xe7   : > { %v1095_v44 = vpop.permute.xlu0 %1094  ;;  %v2361_v47 = vld [vmem:[#allocation3 + $0x54] sm:$0xf] }
  0xe8   : > { %1111 = vst.msk [vmem:[#allocation3 + $0x94] sm:$0xf] %vm732_vm13, %v1095_v44  ;;  %1903 = vmatmul.bf16.gmra.mxu3 %v2174_v7 }
  0xec   : > { %v1272_v48 = vpop.permute.xlu2 %1271  ;;  %v2189_v51 = vld [vmem:[#allocation3 + $0x80] sm:$0xf] }
  0xed   : > { %v1270_v49 = vpop.permute.xlu1 %1269  ;;  %1288 = vst.msk [vmem:[#allocation3 + $0x98] sm:$0xf] %vm732_vm13, %v1272_v48  ;;  %v2163_v52 = vld [vmem:[#allocation3 + $0x64] sm:$0xf0] }
  0xee   : > { %1287 = vst.msk [vmem:[#allocation3 + $0x84] sm:$0xf] %vm732_vm13, %v1270_v49  ;;  %v2166_v53 = vor.u32 %v2361_v47, %v2163_v52 }
  0xef   : > { %v2369_v54 = vld [vmem:[#allocation3 + $0x90] sm:$0xf0]  ;;  %v853_v4 = vpop.permute.xlu0 %852 }
  0xf0   : > { %v2190_v55 = vor.u32 %v2369_v54, %v2189_v51  ;;  %870 = vst.msk [vmem:[#allocation3 + $0x7c] sm:$0xf] %vm732_vm13, %v853_v4  ;;  %2345 = vmatmul.msk.bf16.gmra.mxu0 %vm1785_vm14, %v2178_v50 }
  0xf2   : > { %1845 = vmatmul.bf16.gmra.mxu1 %v2166_v53  ;;  %1879 = vmatmul.bf16.gmra.mxu2 %v2190_v55 }
  0xf4   : > { %v2191_v56 = vld [vmem:[#allocation3 + $0x94] sm:$0xf0] }
  0xf5   : > { %v855_v57 = vpop.permute.xlu1 %854  ;;  %v2367_v58 = vld [vmem:[#allocation3 + $0x84] sm:$0xf] }
  0xf6   : > { %871 = vst.msk [vmem:[#allocation3 + $0x90] sm:$0xf] %vm732_vm13, %v855_v57  ;;  %v2194_v59 = vor.u32 %v2367_v58, %v2191_v56 }
  0xf7   : > { %v2366_v62 = vld [vmem:[#allocation3 + $0x7c] sm:$0xf] }
  0xf8   : > { %1908 = vmatmul.bf16.gmra.mxu3 %v2194_v59 }
  0xfd   : > { %v2183_v0 = vld [vmem:[#allocation3 + $0x8c] sm:$0xf0] }
  0xfe   : > { %v2186_v2 = vor.u32 %v2366_v62, %v2183_v0 }
 0x100   : > { %2346 = vmatmul.msk.bf16.gmra.mxu0 %vm1785_vm14, %v2198_v63 }
 0x102   : > { %1850 = vmatmul.bf16.gmra.mxu1 %v2186_v2 }
 0x12f   : > { %v1812_v28 = vpop.f32.mrf.mxu1 }
 0x130   : > { %v1813_v32 = vadd.f32 %v3000_v12, %v1812_v28 }
 0x132   : > { %v2993_v3 = vpop.f32.mrf.mxu2 }
 0x137   : > { %v1814_v5 = vpop.f32.mrf.mxu1 }
 0x138   : > { %v1815_v43 = vadd.f32 %v3000_v12, %v1814_v5 }
 0x13a   : > { %v2995_v6 = vpop.f32.mrf.mxu2 }
 0x13d   : > { %v1807_v8 = vpop.f32.mrf.mxu0 }
 0x13e   : > { %v1808_v15 = vadd.f32 %v3000_v12, %v1807_v8 }
 0x13f   : > { %v1817_v9 = vpop.f32.mrf.mxu1 }
 0x140   : > { %v1818_v52 = vadd.f32 %v3000_v12, %v1817_v9 }
 0x145   : > { %v1865_v10 = vpop.f32.mrf.mxu2  ;;  %v1809_v11 = vpop.f32.mrf.mxu0 }
 0x146   : > { %v1810_v20 = vadd.f32 %v3000_v12, %v1809_v11 }
 0x147   : > { %v1819_v25 = vpop.f32.mrf.mxu1 }
 0x148   : > { %v1820_v61 = vadd.f32 %v3000_v12, %v1819_v25 }
 0x14b   : > { %v1894_v13 = vpop.f32.mrf.mxu3 }
 0x14d   : > { %v1867_v14 = vpop.f32.mrf.mxu2  ;;  %v1923_v1 = vpop.f32.mrf.mxu0 }
 0x14f   : > { %v1836_v16 = vpop.f32.mrf.mxu1 }
 0x150   : > { %v1837_v17 = vadd.f32 %v1836_v16, %v1808_v15 }
 0x152   : > { %v1866_v19 = vadd.f32 %v1865_v10, %v1837_v17  ;;  %v1823_v10 = vadd.f32 %v3000_v12, %v2993_v3 }
 0x153   : > { %v1896_v18 = vpop.f32.mrf.mxu3 }
 0x154   : > { %v1895_v24 = vadd.f32 %v1894_v13, %v1866_v19 }
 0x155   : > { %v1925_v21 = vpop.f32.mrf.mxu0  ;;  %v1870_v22 = vpop.f32.mrf.mxu2 }
 0x156   : > { %v1924_v29 = vadd.f32 %v1923_v1, %v1895_v24 }
 0x157   : > { %v1838_v23 = vpop.f32.mrf.mxu1 }
 0x158   : > { %v1839_v26 = vadd.f32 %v1838_v23, %v1810_v20  ;;  %v1943_v36 = vmax.f32 %v1924_v29, 0.0  ;;  %v1825_v20 = vadd.f32 %v3000_v12, %v2995_v6 }
 0x15a   : > { %v1868_v27 = vadd.f32 %v1867_v14, %v1839_v26 }
 0x15b   : > { %v1899_v30 = vpop.f32.mrf.mxu3 }
 0x15c   : > { %v1897_v31 = vadd.f32 %v1896_v18, %v1868_v27 }
 0x15d   : > { %v1928_v34 = vpop.f32.mrf.mxu0  ;;  %v1872_v39 = vpop.f32.mrf.mxu2 }
 0x15e   : > { %v1926_v33 = vadd.f32 %v1925_v21, %v1897_v31 }
 0x15f   : > { %v1841_v35 = vpop.f32.mrf.mxu1 }
 0x160   : > { %v1944_v37 = vmax.f32 %v1926_v33, 0.0  ;;  %v1842_v38 = vadd.f32 %v1841_v35, %v1813_v32 }
 0x162   : > { %v2410_v40 = vpack.c.bf16 %v1944_v37, %v1943_v36  ;;  %v1871_v42 = vadd.f32 %v1870_v22, %v1842_v38 }
 0x163   : > { %v1901_v41 = vpop.f32.mrf.mxu3 }
 0x164   : > { %2411 = vst [vmem:[%s3010_s6] sm:$0xff] %v2410_v40   ;;  %v1900_v45 = vadd.f32 %v1899_v30, %v1871_v42 }
 0x165   : > { %v1930_v7 = vpop.f32.mrf.mxu0  ;;  %v1875_v48 = vpop.f32.mrf.mxu2 }
 0x166   : > { %v1929_v49 = vadd.f32 %v1928_v34, %v1900_v45 }
 0x167   : > { %v1843_v44 = vpop.f32.mrf.mxu1 }
 0x168   : > { %v1844_v46 = vadd.f32 %v1843_v44, %v1815_v43  ;;  %v1945_v55 = vmax.f32 %v1929_v49, 0.0 }
 0x16a   : > { %v1873_v47 = vadd.f32 %v1872_v39, %v1844_v46 }
 0x16b   : > { %v1904_v51 = vpop.f32.mrf.mxu3 }
 0x16c   : > { %v1902_v50 = vadd.f32 %v1901_v41, %v1873_v47 }
 0x16d   : > { %v1933_v54 = vpop.f32.mrf.mxu0  ;;  %v1877_v60 = vpop.f32.mrf.mxu2 }
 0x16e   : > { %v1931_v53 = vadd.f32 %v1930_v7, %v1902_v50 }
 0x16f   : > { %v1846_v4 = vpop.f32.mrf.mxu1 }
 0x170   : > { %v1946_v56 = vmax.f32 %v1931_v53, 0.0  ;;  %v1847_v57 = vadd.f32 %v1846_v4, %v1818_v52 }
 0x172   : > { %v2415_v58 = vpack.c.bf16 %v1946_v56, %v1945_v55  ;;  %v1876_v59 = vadd.f32 %v1875_v48, %v1847_v57 }
 0x173   : > { %v1906_v62 = vpop.f32.mrf.mxu3 }
 0x174   : > { %2427 = vst [vmem:[%s3010_s6 + $0x8] sm:$0xff] %v2415_v58   ;;  %v1905_v0 = vadd.f32 %v1904_v51, %v1876_v59 }
 0x175   : > { %v1935_v28 = vpop.f32.mrf.mxu0  ;;  %v1880_v13 = vpop.f32.mrf.mxu2 }
 0x176   : > { %v1934_v8 = vadd.f32 %v1933_v54, %v1905_v0 }
 0x177   : > { %v1848_v63 = vpop.f32.mrf.mxu1 }
 0x178   : > { %v1849_v2 = vadd.f32 %v1848_v63, %v1820_v61  ;;  %v1947_v15 = vmax.f32 %v1934_v8, 0.0 }
 0x17a   : > { %v1878_v5 = vadd.f32 %v1877_v60, %v1849_v2 }
 0x17b   : > { %v1909_v17 = vpop.f32.mrf.mxu3 }
 0x17c   : > { %v1907_v9 = vadd.f32 %v1906_v62, %v1878_v5 }
 0x17d   : > { %v1938_v18 = vpop.f32.mrf.mxu0  ;;  %v1882_v24 = vpop.f32.mrf.mxu2 }
 0x17e   : > { %v1936_v11 = vadd.f32 %v1935_v28, %v1907_v9 }
 0x17f   : > { %v1851_v14 = vpop.f32.mrf.mxu1 }
 0x180   : > { %v1948_v1 = vmax.f32 %v1936_v11, 0.0  ;;  %v1852_v16 = vadd.f32 %v1851_v14, %v1823_v10 }
 0x182   : > { %v2420_v25 = vpack.c.bf16 %v1948_v1, %v1947_v15  ;;  %v1881_v19 = vadd.f32 %v1880_v13, %v1852_v16 }
 0x183   : > { %v1911_v26 = vpop.f32.mrf.mxu3 }
 0x184   : > { %2428 = vst [vmem:[%s3010_s6 + $0x10] sm:$0xff] %v2420_v25   ;;  %v1910_v22 = vadd.f32 %v1909_v17, %v1881_v19 }
 0x185   : > { %v1940_v30 = vpop.f32.mrf.mxu0 }
 0x186   : > { %v1939_v27 = vadd.f32 %v1938_v18, %v1910_v22 }
 0x187   : > { %v1853_v21 = vpop.f32.mrf.mxu1 }
 0x188   : > { %v1854_v23 = vadd.f32 %v1853_v21, %v1825_v20  ;;  %v1949_v32 = vmax.f32 %v1939_v27, 0.0 }
 0x18a   : > { %v1883_v3 = vadd.f32 %v1882_v24, %v1854_v23 }
 0x18c   : > { %v1912_v29 = vadd.f32 %v1911_v26, %v1883_v3 }
 0x18e   : > { %v1941_v31 = vadd.f32 %v1940_v30, %v1912_v29 }
 0x190   : > { %v1950_v33 = vmax.f32 %v1941_v31, 0.0 }
 0x192   : > { %v2425_v34 = vpack.c.bf16 %v1950_v33, %v1949_v32 }
 0x194   : > { %2429 = vst [vmem:[%s3010_s6 + $0x18] sm:$0xff] %v2425_v34  }
 0x195 PF: > { %s15_s20 = sadd.s32 1, %s2494_s20   ;;  %s3048_s18 = smov %s2490_s19 }
 0x196   : > { %p12_p5 = scmp.ge.s32.totalorder %s15_s20, 4   ;;  %s3049_s19 = smov %s3051_s21 }
 0x198   :  { %14 = sbr.rel (!%p12_p5) target bundleno = 2 (0x2), region = 79 }

// kernel: vgg_features.7
= control target key start
LH: loop header
LB: loop body
LE: loop exit
PB: predicated region body
PF: predicated region fallthrough
CT: control target
= control target key end

     0   :  { %s3182_s18 = smov 0   ;;  %s3184_s19 = smov 0   ;;  %s3773_s0 = inlined_call_operand.vmem [shape: bf16[2,8,8,128], index: 0, kind: input, shape index: {}]   ;;  %s3774_s1 = inlined_call_operand.vmem [shape: bf16[2,1,8,128], index: 1, kind: input, shape index: {}, may-alias: {1,2}]   ;;  %s3775_s2 = inlined_call_operand.vmem [shape: bf16[2,1,8,128], index: 2, kind: input, shape index: {}, may-alias: {1,2}]   ;;  %s3776_s3 = inlined_call_operand.vmem [shape: bf16[9,128,128], index: 3, kind: input, shape index: {}]   ;;  %s3777_s4 = inlined_call_operand.vmem [shape: f32[1,128], index: 4, kind: input, shape index: {}]   ;;  %s3778_s5 = inlined_call_operand.vmem [shape: bf16[2,8,8,128], index: 5, kind: output, shape index: {}]  }
   0x1   :  { %s3186_s20 = smov 0  }
   0x2 LB: > { %s27_s21 = sadd.s32 1, %s3146_s19  ;;  %p2489_p0 = scmp.ge.s32.totalorder %s3150_s20, 1  ;;  %s3150_s20 = sphi %s3186_s20, %s15_s20   ;;  %s3146_s19 = sphi %s3184_s19, %s3790_s19   ;;  %s3142_s18 = sphi %s3182_s18, %s3789_s18  }
   0x3   : > { %p29_p1 = scmp.ge.s32.totalorder %s27_s21, 2  ;;  %p236_p2 = scmp.lt.s32.totalorder %s3150_s20, 3 }
   0x5   : > { %s3792_s21 = smov (%p29_p1, %s27_s21), 0  ;;  %p237_p3 = pnand %p2489_p0, %p236_p2 }
   0x6   : > { %p287_p4 = scmp.lt.s32.totalorder (!%p237_p3), %s3142_s18, 1 }
   0x7   : > { %240 = sbr.rel (%p237_p3) target bundleno = 354 (0x162), region = 40 }
   0xc   : > { %v2999_v0 = vld [vmem:[%s3776_s3 + $0x38] sm:$0xff]  ;;  %v2998_v2 = vld [vmem:[%s3776_s3 + $0x30] sm:$0xff]  ;;  %s3794_s18 = smov (!%p287_p4, %s3142_s18), 1  ;;  %vm321_vm0 = vcmask 1040384   ;;  %vm322_vm1 = vsmask.f32 256 }
   0xd   : > { %v3015_v1 = vld [vmem:[%s3776_s3 + $0xb8] sm:$0xff]  ;;  %3087 = vmatpush.bf16.msra.mxu1 %v2999_v0  ;;  %2091 = vmatpush.bf16.msra.mxu0 %v2999_v0  ;;  %v3014_v3 = vld [vmem:[%s3776_s3 + $0xb0] sm:$0xff]  ;;  %s2954_s7 = sshll.u32 %s3794_s18, 5  ;;  %v2997_v5 = vld [vmem:[%s3776_s3 + $0x28] sm:$0xff]  ;;  %s2492_s15 = sshll.u32 %s3794_s18, 2  ;;  %vm397_vm4 = vcmask 1043456  }
   0xe   : > { %2149 = vmatpush.bf16.msra.mxu2 %v3015_v1  ;;  %v3023_v4 = vld [vmem:[%s3776_s3 + $0xf8] sm:$0xff]  ;;  %v3022_v6 = vld [vmem:[%s3776_s3 + $0xf0] sm:$0xff]  ;;  %s3229_s14 = scalar_lea.vmem %s3773_s0, %s2954_s7  ;;  %vm3232_vm2 = vmand %vm321_vm0, %vm322_vm1  ;;  %s302_s24 = scalar_lea.vmem %s3774_s1, %s2492_s15  ;;  %vm354_vm3 = vsmask.f32 7938  ;;  %vm755_vm7 = vcmask 1042432   ;;  %vm756_vm8 = vcmask 1046532  }
   0xf   : > { %2178 = vmatpush.bf16.msra.mxu3 %v3023_v4  ;;  %v3013_v8 = vld [vmem:[%s3776_s3 + $0xa8] sm:$0xff]  ;;  %v336_v9 = vld [vmem:[#allocation2 + $0x20] sm:$0x1]  ;;  %v409_v14 = vld [vmem:[%s3229_s14 + $0x10] sm:$0xf]  ;;  %s309_s27 = scalar_lea.vmem %s3775_s2, %s2492_s15  ;;  %s3755_s6 = scalar_lea.vmem %s3778_s5, %s2954_s7 }
  0x10   : > { %v339_v10 = vld [vmem:[#allocation2 + $0x28] sm:$0x1]  ;;  %v337_v11 = vsel %vm3232_vm2, 0, %v336_v9  ;;  %v408_v13 = vld [vmem:[%s3229_s14 + $0xc] sm:$0xf]  ;;  %v446_v17 = vshrl.u32 %v409_v14, 16  ;;  %vm3268_vm5 = vmand %vm321_vm0, %vm354_vm3 }
  0x11   : > { %3088 = vmatpush.bf16.msra.mxu1 %v2998_v2  ;;  %2092 = vmatpush.bf16.msra.mxu0 %v2998_v2  ;;  %v340_v12 = vsel %vm3232_vm2, 0, %v339_v10  ;;  %338 = vst [vmem:[#allocation2 + $0x20] sm:$0x1] %v337_v11  ;;  %v438_v15 = vshrl.u32 %v408_v13, 16  ;;  %v441_v16 = vshll.u32 %v408_v13, 16  ;;  %v449_v18 = vshll.u32 %v409_v14, 16  ;;  %vm3277_vm6 = vmand %vm397_vm4, %vm354_vm3 }
  0x12   : > { %2150 = vmatpush.bf16.msra.mxu2 %v3014_v3  ;;  %v3021_v19 = vld [vmem:[%s3776_s3 + $0xe8] sm:$0xff]  ;;  %341 = vst [vmem:[#allocation2 + $0x28] sm:$0x1] %v340_v12  ;;  %v2996_v20 = vld [vmem:[%s3776_s3 + $0x20] sm:$0xff]  ;;  %v3259_v22 = vrot.slane %v446_v17, 7  ;;  %v2995_v38 = vld [vmem:[%s3776_s3 + $0x18] sm:$0xff] }
  0x13   : > { %2179 = vmatpush.bf16.msra.mxu3 %v3022_v6  ;;  %v3257_v21 = vrot.slane %v438_v15, 7  ;;  %v324_v23 = vld [vmem:[#allocation2] sm:$0x1]  ;;  %v327_v26 = vld [vmem:[#allocation2 + $0x8] sm:$0x1]  ;;  %v3011_v41 = vld [vmem:[%s3776_s3 + $0x98] sm:$0xff] }
  0x14   : > { %v3012_v24 = vld [vmem:[%s3776_s3 + $0xa0] sm:$0xff]  ;;  %v325_v25 = vsel %vm3232_vm2, 0, %v324_v23  ;;  %v451_v30 = vor.u32 %v449_v18, %v3259_v22  ;;  %v328_v34 = vsel %vm3232_vm2, 0, %v327_v26  ;;  %v359_v48 = vld [vmem:[#allocation2 + $0xc] sm:$0x1]  ;;  %v3019_v51 = vld [vmem:[%s3776_s3 + $0xd8] sm:$0xff] }
  0x15   : > { %3089 = vmatpush.bf16.msra.mxu1 %v2997_v5  ;;  %2093 = vmatpush.bf16.msra.mxu0 %v2997_v5  ;;  %v386_v27 = vld [vmem:[%s302_s24] sm:$0xf]  ;;  %v443_v29 = vor.u32 %v441_v16, %v3257_v21  ;;  %326 = vst [vmem:[#allocation2] sm:$0x1] %v325_v25  ;;  %v356_v40 = vld [vmem:[#allocation2 + $0x4] sm:$0x1]  ;;  %vm3382_vm9 = vmor %vm755_vm7, %vm756_vm8 }
  0x16   : > { %2151 = vmatpush.bf16.msra.mxu2 %v3013_v8  ;;  %v405_v31 = vld [vmem:[%s3229_s14] sm:$0xf]  ;;  %v388_v35 = vshrl.u32 %v386_v27, 16  ;;  %v391_v36 = vshll.u32 %v386_v27, 16  ;;  %329 = vst [vmem:[#allocation2 + $0x8] sm:$0x1] %v328_v34 }
  0x17   : > { %2180 = vmatpush.bf16.msra.mxu3 %v3021_v19  ;;  %v3020_v33 = vld [vmem:[%s3776_s3 + $0xe0] sm:$0xff]  ;;  %v414_v37 = vshrl.u32 %v405_v31, 16  ;;  %v417_v39 = vshll.u32 %v405_v31, 16  ;;  %v357_v45 = vsel %vm3268_vm5, 0, %v356_v40  ;;  %v2994_v52 = vld [vmem:[%s3776_s3 + $0x10] sm:$0xff]  ;;  %v360_v56 = vsel %vm3268_vm5, 0, %v359_v48 }
  0x18   : > { %v512_v42 = vld [vmem:[#allocation2 + $0x20] sm:$0xf]  ;;  %v390_v43 = vrot.slane %v388_v35, 7  ;;  %358 = vst [vmem:[#allocation2 + $0x4] sm:$0x1] %v357_v45  ;;  %v3010_v53 = vld [vmem:[%s3776_s3 + $0x90] sm:$0xff] }
  0x19   : > { %3090 = vmatpush.bf16.msra.mxu1 %v2996_v20  ;;  %2094 = vmatpush.bf16.msra.mxu0 %v2996_v20  ;;  %v3292_v44 = vrot.slane %v414_v37, 7  ;;  %v513_v46 = vsel %vm3277_vm6, %v443_v29, %v512_v42  ;;  %v518_v47 = vld [vmem:[#allocation2 + $0x28] sm:$0xf]  ;;  %361 = vst [vmem:[#allocation2 + $0xc] sm:$0x1] %v360_v56  ;;  %v3018_v61 = vld [vmem:[%s3776_s3 + $0xd0] sm:$0xff] }
  0x1a   : > { %2152 = vmatpush.bf16.msra.mxu2 %v3012_v24  ;;  %514 = vst [vmem:[#allocation2 + $0x20] sm:$0xf] %v513_v46  ;;  %v519_v49 = vsel %vm3277_vm6, %v451_v30, %v518_v47  ;;  %v393_v50 = vor.u32 %v391_v36, %v390_v43  ;;  %v394_v54 = vrot.slane %v390_v43, 4  ;;  %v342_v58 = vld [vmem:[#allocation2 + $0x30] sm:$0x1]  ;;  %v2993_v59 = vld [vmem:[%s3776_s3 + $0x8] sm:$0xff] }
  0x1b   : > { %2181 = vmatpush.bf16.msra.mxu3 %v3020_v33  ;;  %520 = vst [vmem:[#allocation2 + $0x28] sm:$0xf] %v519_v49  ;;  %v419_v55 = vor.u32 %v417_v39, %v3292_v44  ;;  %v343_v62 = vsel %vm3232_vm2, 0, %v342_v58  ;;  %v345_v63 = vld [vmem:[#allocation2 + $0x38] sm:$0x1]  ;;  %v3009_v1 = vld [vmem:[%s3776_s3 + $0x88] sm:$0xff] }
  0x1c   : > { %v399_v57 = vld [vmem:[#allocation2] sm:$0xf]  ;;  %v410_v0 = vld [vmem:[%s3229_s14 + $0x14] sm:$0xf]  ;;  %v346_v3 = vsel %vm3232_vm2, 0, %v345_v63  ;;  %v420_v5 = vrot.slane %v3292_v44, 4 }
  0x1d   : > { %3091 = vmatpush.bf16.msra.mxu1 %v2995_v38  ;;  %2095 = vmatpush.bf16.msra.mxu0 %v2995_v38  ;;  %v400_v60 = vsel %vm3277_vm6, %v393_v50, %v399_v57  ;;  %v494_v2 = vld [vmem:[#allocation2 + $0x8] sm:$0xf]  ;;  %v454_v4 = vshrl.u32 %v410_v0, 16  ;;  %344 = vst [vmem:[#allocation2 + $0x30] sm:$0x1] %v343_v62  ;;  %v457_v9 = vshll.u32 %v410_v0, 16 }
  0x1e   : > { %2153 = vmatpush.bf16.msra.mxu2 %v3011_v41  ;;  %401 = vst [vmem:[#allocation2] sm:$0xf] %v400_v60  ;;  %v495_v6 = vsel %vm3277_vm6, %v419_v55, %v494_v2  ;;  %v411_v8 = vld [vmem:[%s3229_s14 + $0x18] sm:$0xf]  ;;  %v2992_v13 = vld [vmem:[%s3776_s3] sm:$0xff]  ;;  %v3017_v18 = vld [vmem:[%s3776_s3 + $0xc8] sm:$0xff] }
  0x1f   : > { %2182 = vmatpush.bf16.msra.mxu3 %v3019_v51  ;;  %496 = vst [vmem:[#allocation2 + $0x8] sm:$0xf] %v495_v6  ;;  %v402_v10 = vld [vmem:[#allocation2 + $0x4] sm:$0x1]  ;;  %v3332_v11 = vrot.slane %v454_v4, 7  ;;  %v462_v12 = vshrl.u32 %v411_v8, 16 }
  0x20   : > { %v403_v15 = vsel %vm3232_vm2, %v394_v54, %v402_v10  ;;  %347 = vst [vmem:[#allocation2 + $0x38] sm:$0x1] %v346_v3  ;;  %v465_v16 = vshll.u32 %v411_v8, 16  ;;  %v3007_v20 = vld [vmem:[%s3776_s3 + $0x78] sm:$0xff]  ;;  %v3008_v23 = vld [vmem:[%s3776_s3 + $0x80] sm:$0xff]  ;;  %v3006_v35 = vld [vmem:[%s3776_s3 + $0x70] sm:$0xff] }
  0x21   : > { %3092 = vmatpush.bf16.msra.mxu1 %v2994_v52  ;;  %2096 = vmatpush.bf16.msra.mxu0 %v2994_v52  ;;  %v564_v14 = vld [vmem:[#allocation2 + $0x20] sm:$0xf]  ;;  %v3342_v19 = vrot.slane %v462_v12, 7  ;;  %v497_v24 = vld [vmem:[#allocation2 + $0xc] sm:$0x1]  ;;  %v459_v25 = vor.u32 %v457_v9, %v3332_v11  ;;  %v3031_v26 = vld [vmem:[%s3776_s3 + $0x138] sm:$0xff] }
  0x22   : > { %2154 = vmatpush.bf16.msra.mxu2 %v3010_v53  ;;  %v565_v17 = vld [vmem:[#allocation2 + $0x28] sm:$0xf]  ;;  %572 = vst [vmem:[#allocation3 + $0x90] sm:$0xf] %v564_v14  ;;  %v498_v27 = vsel %vm3232_vm2, %v420_v5, %v497_v24  ;;  %v3047_v29 = vld [vmem:[%s3776_s3 + $0x1b8] sm:$0xff]  ;;  %v3016_v37 = vld [vmem:[%s3776_s3 + $0xc0] sm:$0xff] }
  0x23   : > { %2183 = vmatpush.bf16.msra.mxu3 %v3018_v61  ;;  %573 = vst [vmem:[#allocation3 + $0xb4] sm:$0xf] %v565_v17  ;;  %v330_v30 = vld [vmem:[#allocation2 + $0x10] sm:$0x1]  ;;  %v467_v34 = vor.u32 %v465_v16, %v3342_v19  ;;  %v333_v47 = vld [vmem:[#allocation2 + $0x18] sm:$0x1] }
  0x24   : > { %404 = vst [vmem:[#allocation2 + $0x4] sm:$0x1] %v403_v15  ;;  %v524_v36 = vld [vmem:[#allocation2 + $0x30] sm:$0xf]  ;;  %v331_v38 = vsel %vm3232_vm2, 0, %v330_v30  ;;  %v3005_v49 = vld [vmem:[%s3776_s3 + $0x68] sm:$0xff] }
  0x25   : > { %3093 = vmatpush.bf16.msra.mxu1 %v2993_v59  ;;  %2097 = vmatpush.bf16.msra.mxu0 %v2993_v59  ;;  %v560_v31 = vld [vmem:[#allocation2] sm:$0xf]  ;;  %499 = vst [vmem:[#allocation2 + $0xc] sm:$0x1] %v498_v27  ;;  %v525_v41 = vsel %vm3277_vm6, %v459_v25, %v524_v36  ;;  %v3030_v43 = vld [vmem:[%s3776_s3 + $0x130] sm:$0xff]  ;;  %v334_v51 = vsel %vm3232_vm2, 0, %v333_v47 }
  0x26   : > { %2155 = vmatpush.bf16.msra.mxu2 %v3009_v1  ;;  %v723_v33 = vld [vmem:[#allocation2] sm:$0xe]  ;;  %568 = vst [vmem:[#allocation3] sm:$0xf] %v560_v31  ;;  %v561_v39 = vld [vmem:[#allocation2 + $0x8] sm:$0xf] }
  0x27   : > { %2184 = vmatpush.bf16.msra.mxu3 %v3017_v18  ;;  %v725_v40 = vld [vmem:[#allocation2 + $0x8] sm:$0xe]  ;;  %332 = vst [vmem:[#allocation2 + $0x10] sm:$0x1] %v331_v38  ;;  %v2496_v42 = vrot.slane %v723_v33, 9  ;;  %v3004_v10 = vld [vmem:[%s3776_s3 + $0x60] sm:$0xff] }
  0x28   : > { %569 = vst [vmem:[#allocation3 + $0x24] sm:$0xf] %v561_v39  ;;  %v530_v44 = vld [vmem:[#allocation2 + $0x38] sm:$0xf]  ;;  %v2497_v50 = vrot.slane %v725_v40, 9  ;;  %v3029_v55 = vld [vmem:[%s3776_s3 + $0x128] sm:$0xff] }
  0x29   : > { %3094 = vmatpush.bf16.msra.mxu1 %v2992_v13  ;;  %2098 = vmatpush.bf16.msra.mxu0 %v2992_v13  ;;  %v2594_v45 = vld [vmem:[#allocation3 + $0x90] sm:$0xf]  ;;  %526 = vst [vmem:[#allocation2 + $0x30] sm:$0xf] %v525_v41  ;;  %v531_v46 = vsel %vm3277_vm6, %v467_v34, %v530_v44  ;;  %v406_v56 = vld [vmem:[%s3229_s14 + $0x4] sm:$0xf] }
  0x2a   : > { %2156 = vmatpush.bf16.msra.mxu2 %v3008_v23  ;;  %v2978_v48 = vld [vmem:[#allocation3 + $0xb0] sm:$0xf0]  ;;  %532 = vst [vmem:[#allocation2 + $0x38] sm:$0xf] %v531_v46  ;;  %v407_v59 = vld [vmem:[%s3229_s14 + $0x8] sm:$0xf] }
  0x2b   : > { %2185 = vmatpush.bf16.msra.mxu3 %v3016_v37  ;;  %v2595_v52 = vor.u32 %v2978_v48, %v2594_v45  ;;  %v724_v53 = vld [vmem:[#allocation2 + $0x4] sm:$0x1]  ;;  %335 = vst [vmem:[#allocation2 + $0x18] sm:$0x1] %v334_v51  ;;  %v422_v60 = vshrl.u32 %v406_v56, 16  ;;  %v425_v63 = vshll.u32 %v406_v56, 16 }
  0x2c   : > { %v726_v57 = vld [vmem:[#allocation2 + $0xc] sm:$0x1]  ;;  %v760_v58 = vrot.slane %v724_v53, 5  ;;  %v430_v0 = vshrl.u32 %v407_v59, 16  ;;  %v433_v1 = vshll.u32 %v407_v59, 16  ;;  %v3028_v13 = vld [vmem:[%s3776_s3 + $0x120] sm:$0xff] }
  0x2d   : > { %2120 = vmatpush.bf16.msrb.mxu1 %v3007_v20  ;;  %2207 = vmatpush.bf16.msrb.mxu0 %v3031_v26  ;;  %v2522_v61 = vld [vmem:[#allocation3] sm:$0xf]  ;;  %v764_v62 = vrot.slane %v726_v57, 5  ;;  %v3393_v3 = vrot.slane %v422_v60, 7  ;;  %v806_v17 = vld [vmem:[#allocation2 + $0x8] sm:$0xf] }
  0x2e   : > { %2265 = vmatpush.bf16.msrb.mxu2 %v3047_v29  ;;  %2109 = vmatmul.bf16.vlgmr.msra.gmra.mxu1 %v2595_v52  ;;  %v761_v2 = vsel %vm3382_vm9, %v2496_v42, %v760_v58  ;;  %v500_v4 = vld [vmem:[#allocation2 + $0x10] sm:$0xf]  ;;  %v3397_v8 = vrot.slane %v430_v0, 7  ;;  %v362_v23 = vld [vmem:[#allocation2 + $0x14] sm:$0x1]  ;;  %v3003_v27 = vld [vmem:[%s3776_s3 + $0x58] sm:$0xff] }
  0x2f   : > { %v2960_v5 = vld [vmem:[#allocation3 + $0x20] sm:$0xf0]  ;;  %v765_v6 = vsel %vm3382_vm9, %v2497_v50, %v764_v62  ;;  %798 = vst [vmem:[#allocation3 + $0x8] sm:$0xf] %v761_v2  ;;  %v427_v14 = vor.u32 %v425_v63, %v3393_v3  ;;  %v363_v25 = vsel %vm3268_vm5, 0, %v362_v23  ;;  %v3027_v30 = vld [vmem:[%s3776_s3 + $0x118] sm:$0xff] }
  0x30   : > { %v2523_v9 = vor.u32 %v2960_v5, %v2522_v61  ;;  %799 = vst [vmem:[#allocation3 + $0x2c] sm:$0xf] %v765_v6  ;;  %v566_v12 = vld [vmem:[#allocation2 + $0x30] sm:$0xf]  ;;  %v435_v16 = vor.u32 %v433_v1, %v3397_v8  ;;  %v365_v26 = vld [vmem:[#allocation2 + $0x1c] sm:$0x1] }
  0x31   : > { %2121 = vmatpush.bf16.msrb.mxu1 %v3006_v35  ;;  %2208 = vmatpush.bf16.msrb.mxu0 %v3030_v43  ;;  %v567_v15 = vld [vmem:[#allocation2 + $0x38] sm:$0xf]  ;;  %574 = vst [vmem:[#allocation3 + $0xd8] sm:$0xf] %v566_v12  ;;  %v501_v18 = vsel %vm3277_vm6, %v427_v14, %v500_v4  ;;  %v366_v29 = vsel %vm3268_vm5, 0, %v365_v26  ;;  %v3046_v31 = vld [vmem:[%s3776_s3 + $0x1b0] sm:$0xff] }
  0x32   : > { %2099 = vmatmul.bf16.vlgmr.msra.gmra.mxu0 %v2523_v9  ;;  %575 = vst [vmem:[#allocation3 + $0xfc] sm:$0xf] %v567_v15  ;;  %v506_v20 = vld [vmem:[#allocation2 + $0x18] sm:$0xf]  ;;  %v576_v33 = vld [vmem:[#allocation2] sm:$0xf]  ;;  %2266 = vmatpush.bf16.msrb.mxu2 %v3046_v31 }
  0x33   : > { %502 = vst [vmem:[#allocation2 + $0x10] sm:$0xf] %v501_v18  ;;  %v507_v24 = vsel %vm3277_vm6, %v435_v16, %v506_v20  ;;  %v3055_v35 = vld [vmem:[%s3776_s3 + $0x1f8] sm:$0xff]  ;;  %v3002_v37 = vld [vmem:[%s3776_s3 + $0x50] sm:$0xff]  ;;  %v428_v40 = vrot.slane %v3393_v3, 4  ;;  %v436_v41 = vrot.slane %v3397_v8, 4 }
  0x34   : > { %508 = vst [vmem:[#allocation2 + $0x18] sm:$0xf] %v507_v24  ;;  %v3026_v42 = vld [vmem:[%s3776_s3 + $0x110] sm:$0xff]  ;;  %2294 = vmatpush.bf16.msrb.mxu3 %v3055_v35  ;;  %v596_v43 = vshrl.u32 %v576_v33, 16  ;;  %v577_v45 = vld [vmem:[#allocation2 + $0x4] sm:$0x1] }
  0x35   : > { %2122 = vmatpush.bf16.msrb.mxu1 %v3005_v49  ;;  %2209 = vmatpush.bf16.msrb.mxu0 %v3029_v55  ;;  %814 = vst [vmem:[#allocation3 + $0xc] sm:$0xf] %v806_v17  ;;  %v578_v46 = vld [vmem:[#allocation2 + $0x8] sm:$0xf]  ;;  %vm592_vm10 = vsmask.f32 3328 }
  0x36   : > { %v2530_v34 = vld [vmem:[#allocation3 + $0x8] sm:$0xf]  ;;  %364 = vst [vmem:[#allocation2 + $0x14] sm:$0x1] %v363_v25  ;;  %v3001_v50 = vld [vmem:[%s3776_s3 + $0x48] sm:$0xff]  ;;  %v598_v60 = vrot.slane %v596_v43, 4 }
  0x37   : > { %v2961_v36 = vld [vmem:[#allocation3 + $0x28] sm:$0xf0]  ;;  %367 = vst [vmem:[#allocation2 + $0x1c] sm:$0x1] %v366_v29  ;;  %v579_v52 = vld [vmem:[#allocation2 + $0xc] sm:$0x1] }
  0x38   : > { %v2531_v38 = vor.u32 %v2961_v36, %v2530_v34  ;;  %v2630_v39 = vld [vmem:[#allocation3 + $0xd8] sm:$0xf]  ;;  %vm593_vm11 = vsmask.f32 7440  ;;  %v599_v61 = vshll.u32 %v576_v33, 16  ;;  %v3000_v0 = vld [vmem:[%s3776_s3 + $0x40] sm:$0xff] }
  0x39   : > { %2123 = vmatpush.bf16.msrb.mxu1 %v3004_v10  ;;  %2210 = vmatpush.bf16.msrb.mxu0 %v3028_v13  ;;  %v2987_v44 = vld [vmem:[#allocation3 + $0xf8] sm:$0xf0]  ;;  %v605_v1 = vshll.u32 %v577_v45, 16  ;;  %v610_v2 = vshrl.u32 %v578_v46, 16  ;;  %v613_v3 = vshll.u32 %v578_v46, 16  ;;  %v619_v6 = vshll.u32 %v579_v52, 16  ;;  %vm3468_vm12 = vmor %vm592_vm10, %vm593_vm11 }
  0x3a   : > { %2157 = vmatmul.bf16.vlgmr.msra.gmra.mxu2 %v2531_v38  ;;  %v2631_v47 = vor.u32 %v2987_v44, %v2630_v39  ;;  %v562_v48 = vld [vmem:[#allocation2 + $0x10] sm:$0xf]  ;;  %v3025_v56 = vld [vmem:[%s3776_s3 + $0x108] sm:$0xff]  ;;  %v601_v5 = vrot.slane %v599_v61, 5  ;;  %v3039_v8 = vld [vmem:[%s3776_s3 + $0x178] sm:$0xff] }
  0x3b   : > { %v807_v49 = vld [vmem:[#allocation2 + $0x10] sm:$0xf]  ;;  %v563_v53 = vld [vmem:[#allocation2 + $0x18] sm:$0xf]  ;;  %570 = vst [vmem:[#allocation3 + $0x48] sm:$0xf] %v562_v48 }
  0x3c   : > { %v3438_v51 = vld [vmem:[#allocation2 + $0x10] sm:$0xe]  ;;  %v3440_v55 = vld [vmem:[#allocation2 + $0x18] sm:$0xe]  ;;  %571 = vst [vmem:[#allocation3 + $0x6c] sm:$0xf] %v563_v53  ;;  %v602_v16 = vor.u32 %v601_v5, %v598_v60 }
  0x3d   : > { %2124 = vmatpush.bf16.msrb.mxu1 %v3003_v27  ;;  %2211 = vmatpush.bf16.msrb.mxu0 %v3027_v30  ;;  %v2498_v57 = vrot.slane %v3438_v51, 9  ;;  %v2499_v58 = vrot.slane %v3440_v55, 9  ;;  %815 = vst [vmem:[#allocation3 + $0x30] sm:$0xf] %v807_v49  ;;  %v503_v59 = vld [vmem:[#allocation2 + $0x14] sm:$0x1] }
  0x3e   : > { %2114 = vmatmul.bf16.gmra.mxu1 %v2631_v47  ;;  %v504_v62 = vsel %vm3232_vm2, %v428_v40, %v503_v59  ;;  %v509_v63 = vld [vmem:[#allocation2 + $0x1c] sm:$0x1]  ;;  %v3045_v9 = vld [vmem:[%s3776_s3 + $0x1a8] sm:$0xff]  ;;  %v612_v12 = vrot.slane %v610_v2, 4  ;;  %v615_v13 = vrot.slane %v613_v3, 5  ;;  %v3024_v14 = vld [vmem:[%s3776_s3 + $0x100] sm:$0xff] }
  0x3f   : > { %505 = vst [vmem:[#allocation2 + $0x14] sm:$0x1] %v504_v62  ;;  %v510_v4 = vsel %vm3232_vm2, %v436_v41, %v509_v63  ;;  %v2957_v10 = vld [vmem:[#allocation3 + $0xc] sm:$0xf]  ;;  %v3054_v15 = vld [vmem:[%s3776_s3 + $0x1f0] sm:$0xff]  ;;  %v607_v17 = vrot.slane %v605_v1, 5  ;;  %2267 = vmatpush.bf16.msrb.mxu2 %v3045_v9 }
  0x40   : > { %511 = vst [vmem:[#allocation2 + $0x1c] sm:$0x1] %v510_v4  ;;  %v621_v18 = vrot.slane %v619_v6, 5  ;;  %v808_v20 = vld [vmem:[#allocation2 + $0x18] sm:$0xf]  ;;  %v616_v26 = vor.u32 %v615_v13, %v612_v12  ;;  %2295 = vmatpush.bf16.msrb.mxu3 %v3054_v15  ;;  %v603_v30 = vrot.slane %v602_v16, 4 }
  0x41   : > { %2125 = vmatpush.bf16.msrb.mxu1 %v3002_v37  ;;  %2212 = vmatpush.bf16.msrb.mxu0 %v3026_v42  ;;  %v809_v23 = vld [vmem:[#allocation2 + $0x20] sm:$0xf]  ;;  %816 = vst [vmem:[#allocation3 + $0x54] sm:$0xf] %v808_v20  ;;  %v822_v27 = vld [vmem:[#allocation2 + $0x8] sm:$0xf] }
  0x42   : > { %v2558_v24 = vld [vmem:[#allocation3 + $0x48] sm:$0xf]  ;;  %817 = vst [vmem:[#allocation3 + $0x78] sm:$0xf] %v809_v23  ;;  %v839_v31 = vshrl.u32 %v822_v27, 16  ;;  %v617_v35 = vrot.slane %v616_v26, 4  ;;  %v608_v39 = vsel %vm3468_vm12, %v603_v30, %v607_v17 }
  0x43   : > { %v2969_v29 = vld [vmem:[#allocation3 + $0x68] sm:$0xf0]  ;;  %v823_v36 = vld [vmem:[#allocation2 + $0xc] sm:$0x1]  ;;  %v842_v37 = vshll.u32 %v822_v27, 16  ;;  %v3038_v4 = vld [vmem:[%s3776_s3 + $0x170] sm:$0xff] }
  0x44   : > { %v2559_v33 = vor.u32 %v2969_v29, %v2558_v24  ;;  %v2532_v34 = vld [vmem:[#allocation3 + $0x2c] sm:$0xf0]  ;;  %v824_v40 = vld [vmem:[#allocation2 + $0x10] sm:$0xf]  ;;  %v841_v41 = vrot.slane %v839_v31, 4  ;;  %v848_v42 = vshll.u32 %v823_v36, 16  ;;  %v622_v45 = vsel %vm3468_vm12, %v617_v35, %v621_v18 }
  0x45   : > { %2126 = vmatpush.bf16.msrb.mxu1 %v3001_v50  ;;  %2213 = vmatpush.bf16.msrb.mxu0 %v3025_v56  ;;  %v2535_v38 = vor.u32 %v2957_v10, %v2532_v34  ;;  %v368_v43 = vld [vmem:[#allocation2 + $0x24] sm:$0x1]  ;;  %715 = vst [vmem:[#allocation3 + $0x4] sm:$0xf] %v608_v39  ;;  %v844_v49 = vrot.slane %v842_v37, 5  ;;  %v853_v53 = vshrl.u32 %v824_v40, 16 }
  0x46   : > { %2104 = vmatmul.bf16.gmra.mxu0 %v2559_v33  ;;  %v728_v44 = vld [vmem:[#allocation2 + $0x14] sm:$0x1]  ;;  %716 = vst [vmem:[#allocation3 + $0x28] sm:$0xf] %v622_v45  ;;  %v850_v52 = vrot.slane %v848_v42, 5  ;;  %v856_v56 = vshll.u32 %v824_v40, 16 }
  0x47   : > { %v825_v46 = vld [vmem:[#allocation2 + $0x14] sm:$0x1]  ;;  %2186 = vmatmul.bf16.vlgmr.msra.gmra.mxu3 %v2535_v38  ;;  %v730_v47 = vld [vmem:[#allocation2 + $0x1c] sm:$0x1]  ;;  %v768_v48 = vrot.slane %v728_v44, 5  ;;  %v845_v61 = vor.u32 %v844_v49, %v841_v41  ;;  %v369_v63 = vsel %vm3268_vm5, 0, %v368_v43 }
  0x48   : > { %v772_v50 = vrot.slane %v730_v47, 5  ;;  %v371_v59 = vld [vmem:[#allocation2 + $0x2c] sm:$0x1]  ;;  %v862_v62 = vshll.u32 %v825_v46, 16  ;;  %v855_v1 = vrot.slane %v853_v53, 4  ;;  %v858_v2 = vrot.slane %v856_v56, 5 }
  0x49   : > { %2127 = vmatpush.bf16.msrb.mxu1 %v3000_v0  ;;  %2214 = vmatpush.bf16.msrb.mxu0 %v3024_v14  ;;  %v769_v60 = vsel %vm3382_vm9, %v2498_v57, %v768_v48  ;;  %v3486_v3 = vld [vmem:[#allocation2 + $0x20] sm:$0xe]  ;;  %v846_v51 = vrot.slane %v845_v61, 4  ;;  %v372_v57 = vsel %vm3268_vm5, 0, %v371_v59  ;;  %v444_v5 = vrot.slane %v3257_v21, 4  ;;  %v3053_v21 = vld [vmem:[%s3776_s3 + $0x1e8] sm:$0xff] }
  0x4a   : > { %v773_v0 = vsel %vm3382_vm9, %v2499_v58, %v772_v50  ;;  %800 = vst [vmem:[#allocation3 + $0x50] sm:$0xf] %v769_v60  ;;  %v452_v55 = vrot.slane %v3259_v22, 4  ;;  %v859_v6 = vor.u32 %v858_v2, %v855_v1  ;;  %v864_v58 = vrot.slane %v862_v62, 5  ;;  %v2966_v13 = vld [vmem:[#allocation3 + $0x54] sm:$0xf]  ;;  %2296 = vmatpush.bf16.msrb.mxu3 %v3053_v21 }
  0x4b   : > { %801 = vst [vmem:[#allocation3 + $0x74] sm:$0xf] %v773_v0  ;;  %v851_v10 = vsel %vm3468_vm12, %v846_v51, %v850_v52  ;;  %v2500_v12 = vrot.slane %v3486_v3, 9  ;;  %v2568_v14 = vld [vmem:[#allocation3 + $0x74] sm:$0xf0]  ;;  %v3043_v31 = vld [vmem:[%s3776_s3 + $0x198] sm:$0xff] }
  0x4c   : > { %370 = vst [vmem:[#allocation2 + $0x24] sm:$0x1] %v369_v63  ;;  %v2956_v9 = vld [vmem:[#allocation3 + $0x4] sm:$0xf]  ;;  %v860_v15 = vrot.slane %v859_v6, 4  ;;  %v3037_v16 = vld [vmem:[%s3776_s3 + $0x168] sm:$0xff]  ;;  %v2571_v42 = vor.u32 %v2966_v13, %v2568_v14 }
  0x4d   : > { %2236 = vmatpush.bf16.msra.mxu1 %v3039_v8  ;;  %v3044_v8 = vld [vmem:[%s3776_s3 + $0x1a0] sm:$0xff]  ;;  %373 = vst [vmem:[#allocation2 + $0x2c] sm:$0x1] %v372_v57  ;;  %v2524_v22 = vld [vmem:[#allocation3 + $0x24] sm:$0xf0] }
  0x4e   : > { %958 = vst [vmem:[#allocation3 + $0x10] sm:$0xf] %v851_v10  ;;  %2268 = vmatpush.bf16.msrb.mxu2 %v3044_v8  ;;  %v2527_v17 = vor.u32 %v2956_v9, %v2524_v22  ;;  %v580_v18 = vld [vmem:[#allocation2 + $0x10] sm:$0xf]  ;;  %v581_v20 = vld [vmem:[#allocation2 + $0x14] sm:$0x1]  ;;  %v865_v24 = vsel %vm3468_vm12, %v860_v15, %v864_v58 }
  0x4f   : > { %v582_v23 = vld [vmem:[#allocation2 + $0x18] sm:$0xf]  ;;  %v583_v26 = vld [vmem:[#allocation2 + $0x1c] sm:$0x1]  ;;  %v624_v27 = vshrl.u32 %v580_v18, 16  ;;  %v627_v29 = vshll.u32 %v580_v18, 16 }
  0x50   : > { %v633_v30 = vshll.u32 %v581_v20, 16  ;;  %2128 = vmatmul.bf16.vlgmr.msrb.gmra.mxu1 %v2527_v17  ;;  %959 = vst [vmem:[#allocation3 + $0x34] sm:$0xf] %v865_v24  ;;  %v638_v34 = vshrl.u32 %v582_v23, 16  ;;  %v641_v35 = vshll.u32 %v582_v23, 16  ;;  %v647_v40 = vshll.u32 %v583_v26, 16 }
  0x51   : > { %2237 = vmatpush.bf16.msra.mxu1 %v3038_v4  ;;  %v2566_v33 = vld [vmem:[#allocation3 + $0x50] sm:$0xf]  ;;  %v626_v37 = vrot.slane %v624_v27, 4  ;;  %v629_v38 = vrot.slane %v627_v29, 5  ;;  %v810_v46 = vld [vmem:[#allocation2 + $0x28] sm:$0xf] }
  0x52   : > { %v2970_v36 = vld [vmem:[#allocation3 + $0x70] sm:$0xf0]  ;;  %v635_v39 = vrot.slane %v633_v30, 5  ;;  %2269 = vmatpush.bf16.msrb.mxu2 %v3043_v31  ;;  %v640_v44 = vrot.slane %v638_v34, 4  ;;  %v643_v45 = vrot.slane %v641_v35, 5  ;;  %v649_v50 = vrot.slane %v647_v40, 5 }
  0x53   : > { %v2567_v41 = vor.u32 %v2970_v36, %v2566_v33  ;;  %v515_v43 = vld [vmem:[#allocation2 + $0x24] sm:$0x1]  ;;  %v630_v49 = vor.u32 %v629_v38, %v626_v37  ;;  %v811_v52 = vld [vmem:[#allocation2 + $0x30] sm:$0xf]  ;;  %v733_v60 = vld [vmem:[#allocation2 + $0x28] sm:$0xe] }
  0x54   : > { %v516_v47 = vsel %vm3232_vm2, %v444_v5, %v515_v43  ;;  %v521_v48 = vld [vmem:[#allocation2 + $0x2c] sm:$0x1]  ;;  %v3052_v53 = vld [vmem:[%s3776_s3 + $0x1e0] sm:$0xff]  ;;  %v644_v61 = vor.u32 %v643_v45, %v640_v44  ;;  %v826_v62 = vld [vmem:[#allocation2 + $0x18] sm:$0xf]  ;;  %v2501_v22 = vrot.slane %v733_v60, 9 }
  0x55   : > { %2238 = vmatpush.bf16.msra.mxu1 %v3037_v16  ;;  %2162 = vmatmul.bf16.gmra.mxu2 %v2567_v41  ;;  %v2538_v56 = vld [vmem:[#allocation3 + $0x10] sm:$0xf]  ;;  %517 = vst [vmem:[#allocation2 + $0x24] sm:$0x1] %v516_v47  ;;  %v522_v59 = vsel %vm3232_vm2, %v452_v55, %v521_v48  ;;  %v631_v63 = vrot.slane %v630_v49, 4  ;;  %v867_v1 = vshrl.u32 %v826_v62, 16 }
  0x56   : > { %523 = vst [vmem:[#allocation2 + $0x2c] sm:$0x1] %v522_v59  ;;  %v827_v0 = vld [vmem:[#allocation2 + $0x1c] sm:$0x1]  ;;  %2297 = vmatpush.bf16.msrb.mxu3 %v3052_v53  ;;  %v645_v2 = vrot.slane %v644_v61, 4  ;;  %v870_v57 = vshll.u32 %v826_v62, 16 }
  0x57   : > { %2191 = vmatmul.bf16.gmra.mxu3 %v2571_v42  ;;  %818 = vst [vmem:[#allocation3 + $0x9c] sm:$0xf] %v810_v46  ;;  %v828_v51 = vld [vmem:[#allocation2 + $0x20] sm:$0xf]  ;;  %v2962_v4 = vld [vmem:[#allocation3 + $0x30] sm:$0xf0]  ;;  %v636_v5 = vsel %vm3468_vm12, %v631_v63, %v635_v39 }
  0x58   : > { %819 = vst [vmem:[#allocation3 + $0xc0] sm:$0xf] %v811_v52  ;;  %v869_v6 = vrot.slane %v867_v1, 4  ;;  %v876_v55 = vshll.u32 %v827_v0, 16  ;;  %v2539_v58 = vor.u32 %v2962_v4, %v2538_v56  ;;  %v650_v8 = vsel %vm3468_vm12, %v645_v2, %v649_v50  ;;  %v3526_v21 = vld [vmem:[%s3776_s3 + $0x238] sm:$0xff]  ;;  %v3036_v38 = vld [vmem:[%s3776_s3 + $0x160] sm:$0xff] }
  0x59   : > { %717 = vst [vmem:[#allocation3 + $0x4c] sm:$0xf] %v636_v5  ;;  %v872_v9 = vrot.slane %v870_v57, 5  ;;  %v881_v10 = vshrl.u32 %v828_v51, 16  ;;  %v884_v13 = vshll.u32 %v828_v51, 16  ;;  %2323 = vmatpush.bf16.msra.mxu0 %v3526_v21  ;;  %v3042_v43 = vld [vmem:[%s3776_s3 + $0x190] sm:$0xff]  ;;  %2239 = vmatpush.bf16.msra.mxu1 %v3036_v38 }
  0x5a   : > { %718 = vst [vmem:[#allocation3 + $0x70] sm:$0xf] %v650_v8  ;;  %v374_v14 = vld [vmem:[#allocation2 + $0x34] sm:$0x1]  ;;  %2215 = vmatmul.bf16.vlgmr.msrb.gmra.mxu0 %v2539_v58  ;;  %v878_v16 = vrot.slane %v876_v55, 5  ;;  %v3051_v3 = vld [vmem:[%s3776_s3 + $0x1d8] sm:$0xff]  ;;  %2270 = vmatpush.bf16.msrb.mxu2 %v3042_v43 }
  0x5b   : > { %v873_v15 = vor.u32 %v872_v9, %v869_v6  ;;  %v883_v17 = vrot.slane %v881_v10, 4  ;;  %v375_v18 = vsel %vm3268_vm5, 0, %v374_v14  ;;  %v377_v20 = vld [vmem:[#allocation2 + $0x3c] sm:$0x1]  ;;  %v886_v26 = vrot.slane %v884_v13, 5  ;;  %2298 = vmatpush.bf16.msrb.mxu3 %v3051_v3  ;;  %v3560_v53 = vld [vmem:[%s3776_s3 + $0x230] sm:$0xff] }
  0x5c   : > { %v732_v23 = vld [vmem:[#allocation2 + $0x24] sm:$0x1]  ;;  %v378_v27 = vsel %vm3268_vm5, 0, %v377_v20  ;;  %v3533_v34 = vld [vmem:[#allocation2 + $0x30] sm:$0xe]  ;;  %v468_v47 = vrot.slane %v3342_v19, 4 }
  0x5d   : > { %v829_v24 = vld [vmem:[#allocation2 + $0x24] sm:$0x1]  ;;  %v734_v29 = vld [vmem:[#allocation2 + $0x2c] sm:$0x1]  ;;  %v776_v30 = vrot.slane %v732_v23, 5  ;;  %v874_v31 = vrot.slane %v873_v15, 4  ;;  %v887_v37 = vor.u32 %v886_v26, %v883_v17  ;;  %2324 = vmatpush.bf16.msra.mxu0 %v3560_v53 }
  0x5e   : > { %v890_v33 = vshll.u32 %v829_v24, 16  ;;  %v780_v35 = vrot.slane %v734_v29, 5  ;;  %v2975_v36 = vld [vmem:[#allocation3 + $0x9c] sm:$0xf]  ;;  %376 = vst [vmem:[#allocation2 + $0x34] sm:$0x1] %v375_v18 }
  0x5f   : > { %v777_v39 = vsel %vm3382_vm9, %v2500_v12, %v776_v30  ;;  %v2604_v40 = vld [vmem:[#allocation3 + $0xbc] sm:$0xf0]  ;;  %v879_v41 = vsel %vm3468_vm12, %v874_v31, %v878_v16  ;;  %379 = vst [vmem:[#allocation2 + $0x3c] sm:$0x1] %v378_v27  ;;  %v888_v46 = vrot.slane %v887_v37, 4  ;;  %v460_v12 = vrot.slane %v3332_v11, 4 }
  0x60   : > { %v892_v42 = vrot.slane %v890_v33, 5  ;;  %v781_v44 = vsel %vm3382_vm9, %v2501_v22, %v780_v35  ;;  %802 = vst [vmem:[#allocation3 + $0x98] sm:$0xf] %v777_v39  ;;  %v2965_v45 = vld [vmem:[#allocation3 + $0x4c] sm:$0xf]  ;;  %v2502_v52 = vrot.slane %v3533_v34, 9  ;;  %v2607_v11 = vor.u32 %v2975_v36, %v2604_v40 }
  0x61   : > { %803 = vst [vmem:[#allocation3 + $0xbc] sm:$0xf] %v781_v44  ;;  %v2560_v48 = vld [vmem:[#allocation3 + $0x6c] sm:$0xf0]  ;;  %v585_v19 = vld [vmem:[#allocation2 + $0x24] sm:$0x1] }
  0x62   : > { %v2563_v49 = vor.u32 %v2965_v45, %v2560_v48  ;;  %v893_v50 = vsel %vm3468_vm12, %v888_v46, %v892_v42  ;;  %960 = vst [vmem:[#allocation3 + $0x58] sm:$0xf] %v879_v41  ;;  %v584_v56 = vld [vmem:[#allocation2 + $0x20] sm:$0xf]  ;;  %v586_v59 = vld [vmem:[#allocation2 + $0x28] sm:$0xf] }
  0x63   : > { %961 = vst [vmem:[#allocation3 + $0x7c] sm:$0xf] %v893_v50  ;;  %v587_v60 = vld [vmem:[#allocation2 + $0x2c] sm:$0x1]  ;;  %v652_v61 = vshrl.u32 %v584_v56, 16  ;;  %v655_v62 = vshll.u32 %v584_v56, 16 }
  0x64   : > { %2133 = vmatmul.bf16.gmra.mxu1 %v2563_v49  ;;  %v661_v63 = vshll.u32 %v585_v19, 16  ;;  %v666_v0 = vshrl.u32 %v586_v59, 16  ;;  %v669_v2 = vshll.u32 %v586_v59, 16  ;;  %v675_v51 = vshll.u32 %v587_v60, 16  ;;  %v3035_v57 = vld [vmem:[%s3776_s3 + $0x158] sm:$0xff]  ;;  %v3041_v4 = vld [vmem:[%s3776_s3 + $0x188] sm:$0xff] }
  0x65   : > { %v527_v1 = vld [vmem:[#allocation2 + $0x34] sm:$0x1]  ;;  %v654_v55 = vrot.slane %v652_v61, 4  ;;  %v657_v58 = vrot.slane %v655_v62, 5  ;;  %v3040_v9 = vld [vmem:[%s3776_s3 + $0x180] sm:$0xff]  ;;  %2240 = vmatpush.bf16.msra.mxu1 %v3035_v57  ;;  %2271 = vmatpush.bf16.msrb.mxu2 %v3041_v4  ;;  %v3061_v40 = vld [vmem:[%s3776_s3 + $0x228] sm:$0xff] }
  0x66   : > { %v528_v5 = vsel %vm3232_vm2, %v460_v12, %v527_v1  ;;  %v533_v6 = vld [vmem:[#allocation2 + $0x3c] sm:$0x1]  ;;  %v663_v8 = vrot.slane %v661_v63, 5  ;;  %v668_v13 = vrot.slane %v666_v0, 4  ;;  %v671_v14 = vrot.slane %v669_v2, 5  ;;  %v3050_v18 = vld [vmem:[%s3776_s3 + $0x1d0] sm:$0xff]  ;;  %2325 = vmatpush.bf16.msra.mxu0 %v3061_v40 }
  0x67   : > { %v2602_v10 = vld [vmem:[#allocation3 + $0x98] sm:$0xf]  ;;  %2196 = vmatmul.bf16.gmra.mxu3 %v2607_v11  ;;  %529 = vst [vmem:[#allocation2 + $0x34] sm:$0x1] %v528_v5  ;;  %v534_v22 = vsel %vm3232_vm2, %v468_v47, %v533_v6  ;;  %v658_v16 = vor.u32 %v657_v58, %v654_v55  ;;  %v677_v17 = vrot.slane %v675_v51, 5  ;;  %v3034_v44 = vld [vmem:[%s3776_s3 + $0x150] sm:$0xff] }
  0x68   : > { %v2979_v15 = vld [vmem:[#allocation3 + $0xb8] sm:$0xf0]  ;;  %535 = vst [vmem:[#allocation2 + $0x3c] sm:$0x1] %v534_v22  ;;  %v737_v24 = vld [vmem:[#allocation2 + $0x38] sm:$0xe]  ;;  %v672_v26 = vor.u32 %v671_v14, %v668_v13  ;;  %2299 = vmatpush.bf16.msrb.mxu3 %v3050_v18 }
  0x69   : > { %v2603_v20 = vor.u32 %v2979_v15, %v2602_v10  ;;  %v2574_v23 = vld [vmem:[#allocation3 + $0x58] sm:$0xf]  ;;  %v348_v27 = vld [vmem:[#allocation2 + $0x40] sm:$0x1]  ;;  %v412_v29 = vld [vmem:[%s3229_s14 + $0x1c] sm:$0xf]  ;;  %2272 = vmatpush.bf16.msrb.mxu2 %v3040_v9  ;;  %2241 = vmatpush.bf16.msra.mxu1 %v3034_v44 }
  0x6a   : > { %v2971_v30 = vld [vmem:[#allocation3 + $0x78] sm:$0xf0]  ;;  %v659_v31 = vrot.slane %v658_v16, 4  ;;  %v349_v33 = vsel %vm3232_vm2, 0, %v348_v27  ;;  %v470_v35 = vshrl.u32 %v412_v29, 16  ;;  %v473_v36 = vshll.u32 %v412_v29, 16 }
  0x6b   : > { %2167 = vmatmul.bf16.gmra.mxu2 %v2603_v20  ;;  %v2575_v37 = vor.u32 %v2971_v30, %v2574_v23  ;;  %v673_v38 = vrot.slane %v672_v26, 4  ;;  %350 = vst [vmem:[#allocation2 + $0x40] sm:$0x1] %v349_v33  ;;  %v812_v39 = vld [vmem:[#allocation2 + $0x38] sm:$0xf]  ;;  %v2503_v47 = vrot.slane %v737_v24, 9 }
  0x6c   : > { %v664_v41 = vsel %vm3468_vm12, %v659_v31, %v663_v8  ;;  %v3587_v42 = vrot.slane %v470_v35, 7  ;;  %820 = vst [vmem:[#allocation3 + $0xe4] sm:$0xf] %v812_v39  ;;  %v830_v43 = vld [vmem:[#allocation2 + $0x28] sm:$0xf]  ;;  %v3048_v15 = vld [vmem:[%s3776_s3 + $0x1c0] sm:$0xff] }
  0x6d   : > { %2220 = vmatmul.bf16.gmra.mxu0 %v2575_v37  ;;  %v678_v45 = vsel %vm3468_vm12, %v673_v38, %v677_v17  ;;  %719 = vst [vmem:[#allocation3 + $0x94] sm:$0xf] %v664_v41  ;;  %v831_v46 = vld [vmem:[#allocation2 + $0x2c] sm:$0x1]  ;;  %v832_v3 = vld [vmem:[#allocation2 + $0x30] sm:$0xf]  ;;  %3095 = vmatpush.bf16.msra.mxu2 %v3526_v21 }
  0x6e   : > { %v736_v12 = vld [vmem:[#allocation2 + $0x34] sm:$0x1]  ;;  %720 = vst [vmem:[#allocation3 + $0xb8] sm:$0xf] %v678_v45  ;;  %v895_v48 = vshrl.u32 %v830_v43, 16  ;;  %v475_v56 = vor.u32 %v473_v36, %v3587_v42  ;;  %v898_v19 = vshll.u32 %v830_v43, 16 }
  0x6f   : > { %v738_v49 = vld [vmem:[#allocation2 + $0x3c] sm:$0x1]  ;;  %v784_v50 = vrot.slane %v736_v12, 5  ;;  %v833_v11 = vld [vmem:[#allocation2 + $0x34] sm:$0x1]  ;;  %v904_v61 = vshll.u32 %v831_v46, 16 }
  0x70   : > { %v788_v59 = vrot.slane %v738_v49, 5  ;;  %v897_v60 = vrot.slane %v895_v48, 4  ;;  %v909_v62 = vshrl.u32 %v832_v3, 16  ;;  %v900_v63 = vrot.slane %v898_v19, 5  ;;  %v1047_v2 = vld [vmem:[#allocation2 + $0x10] sm:$0xf] }
  0x71   : > { %v785_v21 = vsel %vm3382_vm9, %v2502_v52, %v784_v50  ;;  %v912_v0 = vshll.u32 %v832_v3, 16  ;;  %v918_v1 = vshll.u32 %v833_v11, 16  ;;  %v3049_v51 = vld [vmem:[%s3776_s3 + $0x1c8] sm:$0xff]  ;;  %3096 = vmatpush.bf16.msra.mxu2 %v3560_v53  ;;  %v906_v5 = vrot.slane %v904_v61, 5  ;;  %v1048_v8 = vld [vmem:[#allocation2 + $0x18] sm:$0xf] }
  0x72   : > { %v789_v57 = vsel %vm3382_vm9, %v2503_v47, %v788_v59  ;;  %804 = vst [vmem:[#allocation3 + $0xe0] sm:$0xf] %v785_v21  ;;  %v536_v4 = vld [vmem:[#allocation2 + $0x40] sm:$0xf]  ;;  %v911_v34 = vrot.slane %v909_v62, 4  ;;  %v901_v6 = vor.u32 %v900_v63, %v897_v60  ;;  %2300 = vmatpush.bf16.msrb.mxu3 %v3049_v51  ;;  %v3033_v10 = vld [vmem:[%s3776_s3 + $0x148] sm:$0xff] }
  0x73   : > { %805 = vst [vmem:[#allocation3 + $0x104] sm:$0xf] %v789_v57  ;;  %v537_v52 = vsel %vm3277_vm6, %v475_v56, %v536_v4  ;;  %v914_v55 = vrot.slane %v912_v0, 5  ;;  %v920_v58 = vrot.slane %v918_v1, 5  ;;  %v3060_v53 = vld [vmem:[%s3776_s3 + $0x220] sm:$0xff]  ;;  %2242 = vmatpush.bf16.msra.mxu1 %v3033_v10  ;;  %v3059_v48 = vld [vmem:[%s3776_s3 + $0x218] sm:$0xff] }
  0x74   : > { %v2974_v9 = vld [vmem:[#allocation3 + $0x94] sm:$0xf]  ;;  %538 = vst [vmem:[#allocation2 + $0x40] sm:$0xf] %v537_v52  ;;  %v902_v13 = vrot.slane %v901_v6, 4  ;;  %2326 = vmatpush.bf16.msra.mxu0 %v3060_v53  ;;  %v476_v49 = vrot.slane %v3587_v42, 4 }
  0x75   : > { %v2596_v22 = vld [vmem:[#allocation3 + $0xb4] sm:$0xf0]  ;;  %v915_v14 = vor.u32 %v914_v55, %v911_v34  ;;  %1055 = vst [vmem:[#allocation3 + $0x18] sm:$0xf] %v1047_v2  ;;  %3097 = vmatpush.bf16.msra.mxu2 %v3061_v40  ;;  %v588_v17 = vld [vmem:[#allocation2 + $0x30] sm:$0xf] }
  0x76   : > { %v2599_v16 = vor.u32 %v2974_v9, %v2596_v22  ;;  %1056 = vst [vmem:[#allocation3 + $0x3c] sm:$0xf] %v1048_v8  ;;  %v589_v18 = vld [vmem:[#allocation2 + $0x34] sm:$0x1]  ;;  %v907_v20 = vsel %vm3468_vm12, %v902_v13, %v906_v5  ;;  %v590_v24 = vld [vmem:[#allocation2 + $0x38] sm:$0xf]  ;;  %2301 = vmatpush.bf16.msrb.mxu3 %v3048_v15 }
  0x77   : > { %v916_v23 = vrot.slane %v915_v14, 4  ;;  %v591_v26 = vld [vmem:[#allocation2 + $0x3c] sm:$0x1]  ;;  %v680_v27 = vshrl.u32 %v588_v17, 16  ;;  %962 = vst [vmem:[#allocation3 + $0xa0] sm:$0xf] %v907_v20 }
  0x78   : > { %2138 = vmatmul.bf16.gmra.mxu1 %v2599_v16  ;;  %v683_v29 = vshll.u32 %v588_v17, 16  ;;  %v689_v30 = vshll.u32 %v589_v18, 16  ;;  %v694_v31 = vshrl.u32 %v590_v24, 16  ;;  %v697_v33 = vshll.u32 %v590_v24, 16  ;;  %v380_v39 = vld [vmem:[#allocation2 + $0x44] sm:$0x1]  ;;  %2327 = vmatpush.bf16.msra.mxu0 %v3059_v48 }
  0x79   : > { %v2638_v35 = vld [vmem:[#allocation3 + $0xe0] sm:$0xf]  ;;  %v921_v36 = vsel %vm3468_vm12, %v916_v23, %v920_v58  ;;  %v682_v37 = vrot.slane %v680_v27, 4  ;;  %v703_v38 = vshll.u32 %v591_v26, 16  ;;  %3098 = vmatpush.bf16.msra.mxu2 %v3060_v53  ;;  %v381_v47 = vsel %vm3268_vm5, 0, %v380_v39  ;;  %v3032_v26 = vld [vmem:[%s3776_s3 + $0x140] sm:$0xff] }
  0x7a   : > { %v2988_v40 = vld [vmem:[#allocation3 + $0x100] sm:$0xf0]  ;;  %963 = vst [vmem:[#allocation3 + $0xc4] sm:$0xf] %v921_v36  ;;  %v685_v41 = vrot.slane %v683_v29, 5  ;;  %v696_v45 = vrot.slane %v694_v31, 4  ;;  %2243 = vmatpush.bf16.msra.mxu1 %v3032_v26 }
  0x7b   : > { %v2639_v43 = vor.u32 %v2988_v40, %v2638_v35  ;;  %v813_v44 = vld [vmem:[#allocation2 + $0x40] sm:$0xf]  ;;  %v699_v46 = vrot.slane %v697_v33, 5  ;;  %v691_v12 = vrot.slane %v689_v30, 5  ;;  %v705_v56 = vrot.slane %v703_v38, 5  ;;  %v3058_v27 = vld [vmem:[%s3776_s3 + $0x210] sm:$0xff] }
  0x7c   : > { %821 = vst [vmem:[#allocation3 + $0x108] sm:$0xf] %v813_v44  ;;  %v686_v3 = vor.u32 %v685_v41, %v682_v37  ;;  %v834_v11 = vld [vmem:[#allocation2 + $0x38] sm:$0xf]  ;;  %v835_v59 = vld [vmem:[#allocation2 + $0x3c] sm:$0x1]  ;;  %2328 = vmatpush.bf16.msra.mxu0 %v3058_v27 }
  0x7d   : > { %2172 = vmatmul.bf16.gmra.mxu2 %v2639_v43  ;;  %v700_v50 = vor.u32 %v699_v46, %v696_v45  ;;  %382 = vst [vmem:[#allocation2 + $0x44] sm:$0x1] %v381_v47  ;;  %v836_v60 = vld [vmem:[#allocation2 + $0x40] sm:$0xf]  ;;  %v923_v61 = vshrl.u32 %v834_v11, 16  ;;  %v926_v0 = vshll.u32 %v834_v11, 16 }
  0x7e   : > { %v687_v19 = vrot.slane %v686_v3, 4  ;;  %3099 = vmatpush.bf16.msra.mxu2 %v3059_v48  ;;  %v2984_v62 = vld [vmem:[#allocation3 + $0xe4] sm:$0xf]  ;;  %v2610_v21 = vld [vmem:[#allocation3 + $0xa0] sm:$0xf]  ;;  %v932_v1 = vshll.u32 %v835_v59, 16 }
  0x7f   : > { %v701_v63 = vrot.slane %v700_v50, 4  ;;  %v937_v2 = vshrl.u32 %v836_v60, 16  ;;  %v925_v42 = vrot.slane %v923_v61, 4  ;;  %v940_v57 = vshll.u32 %v836_v60, 16  ;;  %v1063_v4 = vld [vmem:[#allocation2 + $0x10] sm:$0xf] }
  0x80   : > { %v692_v51 = vsel %vm3468_vm12, %v687_v19, %v691_v12  ;;  %v1064_v5 = vld [vmem:[#allocation2 + $0x14] sm:$0x1]  ;;  %v928_v6 = vrot.slane %v926_v0, 5  ;;  %v934_v55 = vrot.slane %v932_v1, 5  ;;  %v1065_v53 = vld [vmem:[#allocation2 + $0x18] sm:$0xf] }
  0x81   : > { %v2980_v34 = vld [vmem:[#allocation3 + $0xc0] sm:$0xf0]  ;;  %v706_v52 = vsel %vm3468_vm12, %v701_v63, %v705_v56  ;;  %721 = vst [vmem:[#allocation3 + $0xdc] sm:$0xf] %v692_v51  ;;  %v3631_v8 = vrot.slane %v937_v2, 4  ;;  %v3633_v9 = vrot.slane %v940_v57, 5 }
  0x82   : > { %v2611_v58 = vor.u32 %v2980_v34, %v2610_v21  ;;  %722 = vst [vmem:[#allocation3 + $0x100] sm:$0xf] %v706_v52  ;;  %v929_v22 = vor.u32 %v928_v6, %v925_v42  ;;  %v1066_v13 = vld [vmem:[#allocation2 + $0x1c] sm:$0x1]  ;;  %v1080_v14 = vshrl.u32 %v1063_v4, 16  ;;  %v1083_v15 = vshll.u32 %v1063_v4, 16  ;;  %3100 = vmatpush.bf16.msra.mxu2 %v3058_v27 }
  0x83   : > { %v2640_v10 = vld [vmem:[#allocation3 + $0x104] sm:$0xf0]  ;;  %v2546_v17 = vld [vmem:[#allocation3 + $0x18] sm:$0xf]  ;;  %v2963_v18 = vld [vmem:[#allocation3 + $0x38] sm:$0xf0]  ;;  %v943_v47 = vor.u32 %v3633_v9, %v3631_v8 }
  0x84   : > { %v2643_v16 = vor.u32 %v2984_v62, %v2640_v10  ;;  %2225 = vmatmul.bf16.gmra.mxu0 %v2611_v58  ;;  %v539_v20 = vld [vmem:[#allocation2 + $0x44] sm:$0x1]  ;;  %v1089_v23 = vshll.u32 %v1064_v5, 16  ;;  %v1094_v24 = vshrl.u32 %v1065_v53, 16  ;;  %v930_v30 = vrot.slane %v929_v22, 4  ;;  %v3057_v38 = vld [vmem:[%s3776_s3 + $0x208] sm:$0xff] }
  0x85   : > { %v540_v29 = vsel %vm3232_vm2, %v476_v49, %v539_v20  ;;  %v1082_v31 = vrot.slane %v1080_v14, 4  ;;  %v1085_v33 = vrot.slane %v1083_v15, 5  ;;  %v1049_v35 = vld [vmem:[#allocation2 + $0x20] sm:$0xf]  ;;  %v1097_v37 = vshll.u32 %v1065_v53, 16  ;;  %2329 = vmatpush.bf16.msra.mxu0 %v3057_v38 }
  0x86   : > { %2201 = vmatmul.bf16.gmra.mxu3 %v2643_v16  ;;  %541 = vst [vmem:[#allocation2 + $0x44] sm:$0x1] %v540_v29  ;;  %v1096_v36 = vrot.slane %v1094_v24, 4  ;;  %v935_v39 = vsel %vm3468_vm12, %v930_v30, %v934_v55  ;;  %v1091_v41 = vrot.slane %v1089_v23, 5  ;;  %v1103_v43 = vshll.u32 %v1066_v13, 16  ;;  %v3056_v0 = vld [vmem:[%s3776_s3 + $0x200] sm:$0xff]  ;;  %3101 = vmatpush.bf16.msra.mxu2 %v3057_v38 }
  0x87   : > { %v1086_v40 = vor.u32 %v1085_v33, %v1082_v31  ;;  %v1050_v44 = vld [vmem:[#allocation2 + $0x28] sm:$0xf]  ;;  %1057 = vst [vmem:[#allocation3 + $0x60] sm:$0xf] %v1049_v35  ;;  %v1099_v46 = vrot.slane %v1097_v37, 5  ;;  %v2547_v3 = vor.u32 %v2963_v18, %v2546_v17  ;;  %v944_v57 = vrot.slane %v943_v47, 4 }
  0x88   : > { %v2983_v45 = vld [vmem:[#allocation3 + $0xdc] sm:$0xf]  ;;  %964 = vst [vmem:[#allocation3 + $0xe8] sm:$0xf] %v935_v39  ;;  %v1105_v49 = vrot.slane %v1103_v43, 5 }
  0x89   : > { %v2632_v12 = vld [vmem:[#allocation3 + $0xfc] sm:$0xf0]  ;;  %v1087_v48 = vrot.slane %v1086_v40, 4  ;;  %1058 = vst [vmem:[#allocation3 + $0x84] sm:$0xf] %v1050_v44  ;;  %v1100_v56 = vor.u32 %v1099_v46, %v1096_v36  ;;  %2330 = vmatpush.bf16.msra.mxu0 %v3056_v0 }
  0x8a   : > { %v2635_v50 = vor.u32 %v2983_v45, %v2632_v12  ;;  %v966_v11 = vld [vmem:[#allocation2 + $0x8] sm:$0xe]  ;;  %v967_v19 = vld [vmem:[#allocation2 + $0xc] sm:$0x1]  ;;  %v968_v59 = vld [vmem:[#allocation2 + $0x10] sm:$0xe]  ;;  %3102 = vmatpush.bf16.msra.mxu2 %v3056_v0 }
  0x8b   : > { %v1092_v60 = vsel %vm3468_vm12, %v1087_v48, %v1091_v41  ;;  %v969_v61 = vld [vmem:[#allocation2 + $0x14] sm:$0x1]  ;;  %v2504_v62 = vrot.slane %v966_v11, 9  ;;  %v1000_v21 = vrot.slane %v967_v19, 5  ;;  %v2505_v63 = vrot.slane %v968_v59, 9 }
  0x8c   : > { %2143 = vmatmul.bf16.gmra.mxu1 %v2635_v50  ;;  %v1101_v1 = vrot.slane %v1100_v56, 4  ;;  %1199 = vst [vmem:[#allocation3 + $0x1c] sm:$0xf] %v1092_v60  ;;  %v1004_v2 = vrot.slane %v969_v61, 5  ;;  %v1067_v51 = vld [vmem:[#allocation2 + $0x20] sm:$0xf] }
  0x8d   : > { %2273 = vmatmul.bf16.vlgmr.msrb.gmra.mxu2 %v2547_v3  ;;  %v837_v42 = vld [vmem:[#allocation2 + $0x44] sm:$0x1]  ;;  %v1001_v4 = vsel %vm3382_vm9, %v2504_v62, %v1000_v21  ;;  %v1069_v55 = vld [vmem:[#allocation2 + $0x28] sm:$0xf]  ;;  %v1108_v58 = vshrl.u32 %v1067_v51, 16  ;;  %v1111_v10 = vshll.u32 %v1067_v51, 16 }
  0x8e   : > { %v1068_v5 = vld [vmem:[#allocation2 + $0x24] sm:$0x1]  ;;  %v946_v34 = vshll.u32 %v837_v42, 16  ;;  %v1106_v52 = vsel %vm3468_vm12, %v1101_v1, %v1105_v49  ;;  %v1005_v6 = vsel %vm3382_vm9, %v2505_v63, %v1004_v2  ;;  %1038 = vst [vmem:[#allocation3 + $0x14] sm:$0xf] %v1001_v4  ;;  %v1122_v13 = vshrl.u32 %v1069_v55, 16 }
  0x8f   : > { %1200 = vst [vmem:[#allocation3 + $0x40] sm:$0xf] %v1106_v52  ;;  %v1070_v8 = vld [vmem:[#allocation2 + $0x2c] sm:$0x1]  ;;  %v1110_v53 = vrot.slane %v1108_v58, 4  ;;  %v1117_v22 = vshll.u32 %v1068_v5, 16 }
  0x90   : > { %v948_v9 = vrot.slane %v946_v34, 5  ;;  %1039 = vst [vmem:[#allocation3 + $0x38] sm:$0xf] %v1005_v6  ;;  %v1207_v14 = vld [vmem:[#allocation2 + $0x10] sm:$0xe]  ;;  %v1125_v16 = vshll.u32 %v1069_v55, 16 }
  0x91   : > { %v1131_v17 = vshll.u32 %v1070_v8, 16  ;;  %v1208_v18 = vld [vmem:[#allocation2 + $0x14] sm:$0x1]  ;;  %v1209_v20 = vld [vmem:[#allocation2 + $0x18] sm:$0xe]  ;;  %v1113_v24 = vrot.slane %v1111_v10, 5 }
  0x92   : > { %v949_v15 = vsel %vm3468_vm12, %v944_v57, %v948_v9  ;;  %v2582_v26 = vld [vmem:[#allocation3 + $0x60] sm:$0xf]  ;;  %v2972_v27 = vld [vmem:[#allocation3 + $0x80] sm:$0xf0]  ;;  %v1119_v29 = vrot.slane %v1117_v22, 5  ;;  %v1124_v30 = vrot.slane %v1122_v13, 4 }
  0x93   : > { %965 = vst [vmem:[#allocation3 + $0x10c] sm:$0xf] %v949_v15  ;;  %v2959_v23 = vld [vmem:[#allocation3 + $0x1c] sm:$0xf]  ;;  %v1127_v31 = vrot.slane %v1125_v16, 5  ;;  %v2512_v35 = vrot.slane %v1207_v14, 9  ;;  %v1114_v37 = vor.u32 %v1113_v24, %v1110_v53  ;;  %v2583_v59 = vor.u32 %v2972_v27, %v2582_v26 }
  0x94   : > { %v1210_v33 = vld [vmem:[#allocation2 + $0x1c] sm:$0x1]  ;;  %v1241_v38 = vrot.slane %v1208_v18, 5  ;;  %v2513_v39 = vrot.slane %v1209_v20, 9  ;;  %v2646_v41 = vld [vmem:[#allocation3 + $0xe8] sm:$0xf] }
  0x95   : > { %v2958_v36 = vld [vmem:[#allocation3 + $0x14] sm:$0xf]  ;;  %v1245_v40 = vrot.slane %v1210_v33, 5  ;;  %v1128_v44 = vor.u32 %v1127_v31, %v1124_v30  ;;  %v1133_v45 = vrot.slane %v1131_v17, 5  ;;  %v1051_v46 = vld [vmem:[#allocation2 + $0x30] sm:$0xf] }
  0x96   : > { %v2548_v43 = vld [vmem:[#allocation3 + $0x3c] sm:$0xf0]  ;;  %v1115_v47 = vrot.slane %v1114_v37, 4  ;;  %v1242_v48 = vsel %vm3382_vm9, %v2512_v35, %v1241_v38  ;;  %v1052_v50 = vld [vmem:[#allocation2 + $0x38] sm:$0xf] }
  0x97   : > { %v2551_v3 = vor.u32 %v2959_v23, %v2548_v43  ;;  %v2540_v12 = vld [vmem:[#allocation3 + $0x34] sm:$0xf0]  ;;  %v1246_v49 = vsel %vm3382_vm9, %v2513_v39, %v1245_v40  ;;  %1059 = vst [vmem:[#allocation3 + $0xa8] sm:$0xf] %v1051_v46  ;;  %v1129_v11 = vrot.slane %v1128_v44, 4 }
  0x98   : > { %v2543_v56 = vor.u32 %v2958_v36, %v2540_v12  ;;  %1279 = vst [vmem:[#allocation3 + $0x20] sm:$0xf] %v1242_v48  ;;  %v970_v19 = vld [vmem:[#allocation2 + $0x18] sm:$0xe]  ;;  %v1120_v60 = vsel %vm3468_vm12, %v1115_v47, %v1119_v29  ;;  %v971_v61 = vld [vmem:[#allocation2 + $0x1c] sm:$0x1] }
  0x99   : > { %2302 = vmatmul.bf16.vlgmr.msrb.gmra.mxu3 %v2551_v3  ;;  %1280 = vst [vmem:[#allocation3 + $0x44] sm:$0xf] %v1246_v49  ;;  %v972_v62 = vld [vmem:[#allocation2 + $0x20] sm:$0xe]  ;;  %v1134_v63 = vsel %vm3468_vm12, %v1129_v11, %v1133_v45  ;;  %v973_v0 = vld [vmem:[#allocation2 + $0x24] sm:$0x1] }
  0x9a   : > { %v2989_v21 = vld [vmem:[#allocation3 + $0x108] sm:$0xf0]  ;;  %1201 = vst [vmem:[#allocation3 + $0x64] sm:$0xf] %v1120_v60  ;;  %v2506_v2 = vrot.slane %v970_v19, 9  ;;  %v1008_v51 = vrot.slane %v971_v61, 5 }
  0x9b   : > { %v2647_v1 = vor.u32 %v2989_v21, %v2646_v41  ;;  %1202 = vst [vmem:[#allocation3 + $0x88] sm:$0xf] %v1134_v63  ;;  %v2507_v42 = vrot.slane %v972_v62, 9  ;;  %v1012_v57 = vrot.slane %v973_v0, 5  ;;  %v1071_v4 = vld [vmem:[#allocation2 + $0x30] sm:$0xf] }
  0x9c   : > { %2244 = vmatmul.bf16.vlgmr.msra.gmra.mxu1 %v2543_v56  ;;  %1060 = vst [vmem:[#allocation3 + $0xcc] sm:$0xf] %v1052_v50  ;;  %v1009_v5 = vsel %vm3382_vm9, %v2506_v2, %v1008_v51  ;;  %v1072_v34 = vld [vmem:[#allocation2 + $0x34] sm:$0x1]  ;;  %v1073_v52 = vld [vmem:[#allocation2 + $0x38] sm:$0xf] }
  0x9d   : > { %2230 = vmatmul.bf16.gmra.mxu0 %v2647_v1  ;;  %2278 = vmatmul.bf16.gmra.mxu2 %v2583_v59  ;;  %v1074_v6 = vld [vmem:[#allocation2 + $0x3c] sm:$0x1]  ;;  %v1013_v55 = vsel %vm3382_vm9, %v2507_v42, %v1012_v57  ;;  %1040 = vst [vmem:[#allocation3 + $0x5c] sm:$0xf] %v1009_v5  ;;  %v1136_v58 = vshrl.u32 %v1071_v4, 16  ;;  %v1139_v8 = vshll.u32 %v1071_v4, 16 }
  0x9e   : > { %1041 = vst [vmem:[#allocation3 + $0x80] sm:$0xf] %v1013_v55  ;;  %v1145_v9 = vshll.u32 %v1072_v34, 16  ;;  %v1150_v53 = vshrl.u32 %v1073_v52, 16  ;;  %v1153_v13 = vshll.u32 %v1073_v52, 16  ;;  %v1159_v14 = vshll.u32 %v1074_v6, 16 }
  0x9f   : > { %v1138_v10 = vrot.slane %v1136_v58, 4  ;;  %v1141_v22 = vrot.slane %v1139_v8, 5  ;;  %v1211_v17 = vld [vmem:[#allocation2 + $0x20] sm:$0xe]  ;;  %v1212_v26 = vld [vmem:[#allocation2 + $0x24] sm:$0x1] }
  0xa0   : > { %v1152_v16 = vrot.slane %v1150_v53, 4  ;;  %v1147_v23 = vrot.slane %v1145_v9, 5  ;;  %v1155_v24 = vrot.slane %v1153_v13, 5  ;;  %v1161_v27 = vrot.slane %v1159_v14, 5  ;;  %v1213_v29 = vld [vmem:[#allocation2 + $0x28] sm:$0xe] }
  0xa1   : > { %v2968_v15 = vld [vmem:[#allocation3 + $0x64] sm:$0xf]  ;;  %v1142_v20 = vor.u32 %v1141_v22, %v1138_v10  ;;  %v1214_v30 = vld [vmem:[#allocation2 + $0x2c] sm:$0x1]  ;;  %v2554_v33 = vld [vmem:[#allocation3 + $0x20] sm:$0xf] }
  0xa2   : > { %v2584_v18 = vld [vmem:[#allocation3 + $0x84] sm:$0xf0]  ;;  %v2964_v35 = vld [vmem:[#allocation3 + $0x40] sm:$0xf0]  ;;  %v1156_v39 = vor.u32 %v1155_v24, %v1152_v16  ;;  %v2514_v40 = vrot.slane %v1211_v17, 9  ;;  %v1249_v45 = vrot.slane %v1212_v26, 5 }
  0xa3   : > { %v2587_v31 = vor.u32 %v2968_v15, %v2584_v18  ;;  %v2618_v36 = vld [vmem:[#allocation3 + $0xa8] sm:$0xf]  ;;  %v2981_v37 = vld [vmem:[#allocation3 + $0xc8] sm:$0xf0]  ;;  %v1143_v38 = vrot.slane %v1142_v20, 4  ;;  %v2515_v46 = vrot.slane %v1213_v29, 9  ;;  %v2555_v21 = vor.u32 %v2964_v35, %v2554_v33 }
  0xa4   : > { %v351_v41 = vld [vmem:[#allocation2 + $0x48] sm:$0x1]  ;;  %v542_v43 = vld [vmem:[%s309_s27] sm:$0xf]  ;;  %v2967_v44 = vld [vmem:[#allocation3 + $0x5c] sm:$0xf]  ;;  %v1250_v56 = vsel %vm3382_vm9, %v2514_v40, %v1249_v45  ;;  %v2619_v63 = vor.u32 %v2981_v37, %v2618_v36 }
  0xa5   : > { %v1253_v3 = vrot.slane %v1214_v30, 5  ;;  %v352_v12 = vsel %vm3232_vm2, 0, %v351_v41  ;;  %v2576_v47 = vld [vmem:[#allocation3 + $0x7c] sm:$0xf0]  ;;  %v1148_v48 = vsel %vm3468_vm12, %v1143_v38, %v1147_v23  ;;  %v1157_v49 = vrot.slane %v1156_v39, 4 }
  0xa6   : > { %353 = vst [vmem:[#allocation2 + $0x48] sm:$0x1] %v352_v12  ;;  %v544_v50 = vshrl.u32 %v542_v43, 16  ;;  %v547_v19 = vshll.u32 %v542_v43, 16  ;;  %v1053_v59 = vld [vmem:[#allocation2 + $0x40] sm:$0xf]  ;;  %v2579_v60 = vor.u32 %v2967_v44, %v2576_v47 }
  0xa7   : > { %1203 = vst [vmem:[#allocation3 + $0xac] sm:$0xf] %v1148_v48  ;;  %v1254_v11 = vsel %vm3382_vm9, %v2515_v46, %v1253_v3  ;;  %v1162_v61 = vsel %vm3468_vm12, %v1157_v49, %v1161_v27  ;;  %v974_v0 = vld [vmem:[#allocation2 + $0x28] sm:$0xe]  ;;  %v975_v51 = vld [vmem:[#allocation2 + $0x2c] sm:$0x1] }
  0xa8   : > { %1281 = vst [vmem:[#allocation3 + $0x68] sm:$0xf] %v1250_v56  ;;  %v546_v62 = vrot.slane %v544_v50, 7  ;;  %v2508_v42 = vrot.slane %v974_v0, 9  ;;  %v976_v57 = vld [vmem:[#allocation2 + $0x30] sm:$0xe] }
  0xa9   : > { %2307 = vmatmul.bf16.gmra.mxu3 %v2587_v31  ;;  %1204 = vst [vmem:[#allocation3 + $0xd0] sm:$0xf] %v1162_v61  ;;  %v977_v4 = vld [vmem:[#allocation2 + $0x34] sm:$0x1]  ;;  %v1016_v5 = vrot.slane %v975_v51, 5  ;;  %v2509_v34 = vrot.slane %v976_v57, 9 }
  0xaa   : > { %1282 = vst [vmem:[#allocation3 + $0x8c] sm:$0xf] %v1254_v11  ;;  %v549_v1 = vor.u32 %v547_v19, %v546_v62  ;;  %v1020_v52 = vrot.slane %v977_v4, 5  ;;  %v383_v6 = vld [vmem:[#allocation2 + $0x4c] sm:$0x1]  ;;  %v550_v20 = vrot.slane %v546_v62, 4 }
  0xab   : > { %v3690_v2 = vpop.f32.mrf.mxu1  ;;  %1061 = vst [vmem:[#allocation3 + $0xf0] sm:$0xf] %v1053_v59  ;;  %v384_v58 = vsel %vm3268_vm5, 0, %v383_v6  ;;  %v1075_v8 = vld [vmem:[#allocation2 + $0x40] sm:$0xf]  ;;  %v1017_v53 = vsel %vm3382_vm9, %v2508_v42, %v1016_v5 }
  0xac   : > { %2249 = vmatmul.bf16.gmra.mxu1 %v2579_v60  ;;  %v1021_v10 = vsel %vm3382_vm9, %v2509_v34, %v1020_v52  ;;  %385 = vst [vmem:[#allocation2 + $0x4c] sm:$0x1] %v384_v58  ;;  %v1076_v22 = vld [vmem:[#allocation2 + $0x44] sm:$0x1]  ;;  %v1164_v13 = vshrl.u32 %v1075_v8, 16  ;;  %v1167_v14 = vshll.u32 %v1075_v8, 16 }
  0xad   : > { %2331 = vmatmul.bf16.vlgmr.msra.gmra.mxu0 %v2555_v21  ;;  %2283 = vmatmul.bf16.gmra.mxu2 %v2619_v63  ;;  %v554_v55 = vld [vmem:[#allocation2 + $0x48] sm:$0xf]  ;;  %1042 = vst [vmem:[#allocation3 + $0xa4] sm:$0xf] %v1017_v53  ;;  %v1173_v28 = vshll.u32 %v1076_v22, 16 }
  0xae   : > { %v555_v9 = vsel %vm3277_vm6, %v549_v1, %v554_v55  ;;  %v2977_v16 = vld [vmem:[#allocation3 + $0xac] sm:$0xf]  ;;  %1043 = vst [vmem:[#allocation3 + $0xc8] sm:$0xf] %v1021_v10  ;;  %v1166_v17 = vrot.slane %v1164_v13, 4  ;;  %v1169_v32 = vrot.slane %v1167_v14, 5 }
  0xaf   : > { %556 = vst [vmem:[#allocation2 + $0x48] sm:$0xf] %v555_v9  ;;  %v3700_v15 = vpop.f32.mrf.mxu0  ;;  %v1175_v24 = vrot.slane %v1173_v28, 5  ;;  %v1215_v26 = vld [vmem:[#allocation2 + $0x30] sm:$0xe] }
  0xb0   : > { %v2620_v18 = vld [vmem:[#allocation3 + $0xcc] sm:$0xf0]  ;;  %v1170_v27 = vor.u32 %v1169_v32, %v1166_v17  ;;  %v1216_v29 = vld [vmem:[#allocation2 + $0x34] sm:$0x1]  ;;  %v1217_v30 = vld [vmem:[#allocation2 + $0x38] sm:$0xe] }
  0xb1   : > { %v1218_v31 = vld [vmem:[#allocation2 + $0x3c] sm:$0x1]  ;;  %v2590_v33 = vld [vmem:[#allocation3 + $0x68] sm:$0xf]  ;;  %v2516_v36 = vrot.slane %v1215_v26, 9  ;;  %v1257_v37 = vrot.slane %v1216_v29, 5  ;;  %v2623_v41 = vor.u32 %v2977_v16, %v2620_v18 }
  0xb2   : > { %v2973_v35 = vld [vmem:[#allocation3 + $0x88] sm:$0xf0]  ;;  %v2517_v38 = vrot.slane %v1217_v30, 9  ;;  %v1261_v39 = vrot.slane %v1218_v31, 5  ;;  %v1219_v40 = vld [vmem:[#allocation2 + $0x40] sm:$0xe] }
  0xb3   : > { %v3702_v23 = vpop.f32.mrf.mxu1  ;;  %v557_v43 = vld [vmem:[#allocation2 + $0x4c] sm:$0x1]  ;;  %v1171_v44 = vrot.slane %v1170_v27, 4  ;;  %v1220_v45 = vld [vmem:[#allocation2 + $0x44] sm:$0x1]  ;;  %v2518_v47 = vrot.slane %v1219_v40, 9  ;;  %v1258_v11 = vsel %vm3382_vm9, %v2516_v36, %v1257_v37  ;;  %v2591_v7 = vor.u32 %v2973_v35, %v2590_v33 }
  0xb4   : > { %v558_v3 = vsel %vm3232_vm2, %v550_v20, %v557_v43  ;;  %v2976_v48 = vld [vmem:[#allocation3 + $0xa4] sm:$0xf]  ;;  %v1262_v59 = vsel %vm3382_vm9, %v2517_v38, %v1261_v39  ;;  %v1265_v60 = vrot.slane %v1220_v45, 5  ;;  %v978_v0 = vld [vmem:[#allocation2 + $0x38] sm:$0xe] }
  0xb5   : > { %v1176_v49 = vsel %vm3468_vm12, %v1171_v44, %v1175_v24  ;;  %v2612_v19 = vld [vmem:[#allocation3 + $0xc4] sm:$0xf0]  ;;  %559 = vst [vmem:[#allocation2 + $0x4c] sm:$0x1] %v558_v3  ;;  %v979_v57 = vld [vmem:[#allocation2 + $0x3c] sm:$0x1] }
  0xb6   : > { %v1054_v46 = vld [vmem:[#allocation2 + $0x48] sm:$0xf]  ;;  %v2615_v61 = vor.u32 %v2976_v48, %v2612_v19  ;;  %1205 = vst [vmem:[#allocation3 + $0xf4] sm:$0xf] %v1176_v49  ;;  %v1266_v1 = vsel %vm3382_vm9, %v2518_v47, %v1265_v60  ;;  %v980_v4 = vld [vmem:[#allocation2 + $0x40] sm:$0xe] }
  0xb7   : > { %v1077_v12 = vld [vmem:[#allocation2 + $0x48] sm:$0xf]  ;;  %1062 = vst [vmem:[#allocation3 + $0x114] sm:$0xf] %v1054_v46  ;;  %v2102_v51 = vpop.f32.mrf.mxu0  ;;  %v981_v5 = vld [vmem:[#allocation2 + $0x44] sm:$0x1] }
  0xb8   : > { %v1178_v50 = vshrl.u32 %v1077_v12, 16  ;;  %v1181_v56 = vshll.u32 %v1077_v12, 16  ;;  %v1221_v63 = vld [vmem:[#allocation2 + $0x48] sm:$0xe]  ;;  %1283 = vst [vmem:[#allocation3 + $0xb0] sm:$0xf] %v1258_v11 }
  0xb9   : > { %2312 = vmatmul.bf16.gmra.mxu3 %v2623_v41  ;;  %1284 = vst [vmem:[#allocation3 + $0xd4] sm:$0xf] %v1262_v59  ;;  %v2510_v34 = vrot.slane %v978_v0, 9  ;;  %v1024_v52 = vrot.slane %v979_v57, 5  ;;  %v2654_v6 = vld [vmem:[#allocation3 + $0xf0] sm:$0xf] }
  0xba   : > { %v1180_v62 = vrot.slane %v1178_v50, 4  ;;  %v1183_v21 = vrot.slane %v1181_v56, 5  ;;  %1285 = vst [vmem:[#allocation3 + $0xf8] sm:$0xf] %v1266_v1  ;;  %v2511_v58 = vrot.slane %v980_v4, 9  ;;  %v1028_v8 = vrot.slane %v981_v5, 5 }
  0xbb   : > { %v3714_v42 = vpop.f32.mrf.mxu1  ;;  %v1025_v9 = vsel %vm3382_vm9, %v2510_v34, %v1024_v52  ;;  %v2519_v10 = vrot.slane %v1221_v63, 9  ;;  %v3729_v54 = vld [vmem:[%s3777_s4] ss:$0 sm:$0xff] }
  0xbc   : > { %2254 = vmatmul.bf16.gmra.mxu1 %v2615_v61  ;;  %v1184_v55 = vor.u32 %v1183_v21, %v1180_v62  ;;  %v1029_v22 = vsel %vm3382_vm9, %v2511_v58, %v1028_v8  ;;  %1044 = vst [vmem:[#allocation3 + $0xec] sm:$0xf] %v1025_v9  ;;  %v1078_v14 = vld [vmem:[#allocation2 + $0x4c] sm:$0x1]  ;;  %v2101_v41 = vadd.f32 %v3729_v54, %v3700_v15 }
  0xbd   : > { %2336 = vmatmul.bf16.gmra.mxu0 %v2591_v7  ;;  %v1222_v28 = vld [vmem:[#allocation2 + $0x4c] sm:$0x1]  ;;  %1045 = vst [vmem:[#allocation3 + $0x110] sm:$0xf] %v1029_v22  ;;  %v1187_v17 = vshll.u32 %v1078_v14, 16  ;;  %v2158_v33 = vpop.f32.mrf.mxu2  ;;  %v2103_v50 = vadd.f32 %v3729_v54, %v2102_v51  ;;  %v2111_v9 = vadd.f32 %v3729_v54, %v3690_v2  ;;  %v2116_v2 = vadd.f32 %v3729_v54, %v3714_v42 }
  0xbe   : > { %v2990_v53 = vld [vmem:[#allocation3 + $0x110] sm:$0xf0]  ;;  %v1185_v16 = vrot.slane %v1184_v55, 4  ;;  %v1269_v32 = vrot.slane %v1222_v28, 5 }
  0xbf   : > { %v2655_v13 = vor.u32 %v2990_v53, %v2654_v6  ;;  %v1189_v18 = vrot.slane %v1187_v17, 5  ;;  %v2626_v30 = vld [vmem:[#allocation3 + $0xb0] sm:$0xf]  ;;  %v2986_v38 = vld [vmem:[#allocation3 + $0xf4] sm:$0xf]  ;;  %v2113_v17 = vadd.f32 %v3729_v54, %v3702_v23 }
  0xc0   : > { %v1270_v20 = vsel %vm3382_vm9, %v2519_v10, %v1269_v32  ;;  %v2982_v31 = vld [vmem:[#allocation3 + $0xd0] sm:$0xf0] }
  0xc1   : > { %2288 = vmatmul.bf16.gmra.mxu2 %v2655_v13  ;;  %1286 = vst [vmem:[#allocation3 + $0x11c] sm:$0xf] %v1270_v20  ;;  %v1190_v24 = vsel %vm3468_vm12, %v1185_v16, %v1189_v18  ;;  %v2627_v37 = vor.u32 %v2982_v31, %v2626_v30  ;;  %v2662_v39 = vld [vmem:[#allocation3 + $0xf8] sm:$0xf] }
  0xc2   : > { %1206 = vst [vmem:[#allocation3 + $0x118] sm:$0xf] %v1190_v24 }
  0xc3   : > { %v2105_v26 = vpop.f32.mrf.mxu0  ;;  %v3724_v27 = vpop.f32.mrf.mxu1  ;;  %v2985_v29 = vld [vmem:[#allocation3 + $0xec] sm:$0xf] }
  0xc4   : > { %v2648_v35 = vld [vmem:[#allocation3 + $0x10c] sm:$0xf0]  ;;  %v2106_v61 = vadd.f32 %v3729_v54, %v2105_v26 }
  0xc5   : > { %v2651_v36 = vor.u32 %v2985_v29, %v2648_v35  ;;  %v2160_v47 = vpop.f32.mrf.mxu2 }
  0xc8   : > { %v2991_v40 = vld [vmem:[#allocation3 + $0x118] sm:$0xf0] }
  0xc9   : > { %v2656_v25 = vld [vmem:[#allocation3 + $0x114] sm:$0xf0]  ;;  %v2663_v44 = vor.u32 %v2991_v40, %v2662_v39  ;;  %v2118_v40 = vadd.f32 %v3729_v54, %v3724_v27 }
  0xca   : > { %v2659_v43 = vor.u32 %v2986_v38, %v2656_v25  ;;  %v2187_v45 = vpop.f32.mrf.mxu3 }
  0xcb   : > { %v2107_v46 = vpop.f32.mrf.mxu0 }
  0xcc   : > { %2259 = vmatmul.bf16.gmra.mxu1 %v2651_v36  ;;  %2317 = vmatmul.bf16.gmra.mxu3 %v2659_v43  ;;  %v2108_v5 = vadd.f32 %v3729_v54, %v2107_v46 }
  0xcd   : > { %2341 = vmatmul.bf16.gmra.mxu0 %v2627_v37  ;;  %v2129_v3 = vpop.f32.mrf.mxu1 }
  0xce   : > { %v2130_v12 = vadd.f32 %v2129_v3, %v2101_v41 }
  0xd0   : > { %v2159_v48 = vadd.f32 %v2158_v33, %v2130_v12 }
  0xd1   : > { %2346 = vmatmul.bf16.vlgmr.msra.gmra.mxu2 %v2663_v44 }
  0xd2   : > { %v2188_v49 = vadd.f32 %v2187_v45, %v2159_v48  ;;  %v2189_v11 = vpop.f32.mrf.mxu3 }
  0xd5   : > { %v2131_v56 = vpop.f32.mrf.mxu1 }
  0xd6   : > { %v2132_v19 = vadd.f32 %v2131_v56, %v2103_v50 }
  0xd7   : > { %v2216_v59 = vpop.f32.mrf.mxu0 }
  0xd8   : > { %v2217_v60 = vadd.f32 %v2216_v59, %v2188_v49  ;;  %v2161_v15 = vadd.f32 %v2160_v47, %v2132_v19  ;;  %v2163_v7 = vpop.f32.mrf.mxu2 }
  0xda   : > { %v2192_v21 = vpop.f32.mrf.mxu3  ;;  %v2190_v47 = vadd.f32 %v2189_v11, %v2161_v15 }
  0xdf   : > { %v2218_v62 = vpop.f32.mrf.mxu0 }
  0xe0   : > { %v2165_v1 = vpop.f32.mrf.mxu2  ;;  %v2219_v56 = vadd.f32 %v2218_v62, %v2190_v47 }
  0xe1   : > { %v2134_v63 = vpop.f32.mrf.mxu1 }
  0xe2   : > { %v2135_v0 = vadd.f32 %v2134_v63, %v2106_v61  ;;  %v2194_v6 = vpop.f32.mrf.mxu3 }
  0xe4   : > { %v2164_v57 = vadd.f32 %v2163_v7, %v2135_v0 }
  0xe6   : > { %v2193_v4 = vadd.f32 %v2192_v21, %v2164_v57 }
  0xe9   : > { %v2136_v34 = vpop.f32.mrf.mxu1 }
  0xea   : > { %v2221_v51 = vpop.f32.mrf.mxu0  ;;  %v2137_v52 = vadd.f32 %v2136_v34, %v2108_v5  ;;  %v2197_v53 = vpop.f32.mrf.mxu3 }
  0xeb   : > { %v3736_v55 = vadd.f32 %v2221_v51, %v2193_v4 }
  0xec   : > { %v2166_v58 = vadd.f32 %v2165_v1, %v2137_v52 }
  0xee   : > { %v2168_v8 = vpop.f32.mrf.mxu2  ;;  %v2195_v4 = vadd.f32 %v2194_v6, %v2166_v58 }
  0xf2   : > { %v2223_v14 = vpop.f32.mrf.mxu0  ;;  %v2199_v20 = vpop.f32.mrf.mxu3 }
  0xf3   : > { %v2224_v62 = vadd.f32 %v2223_v14, %v2195_v4 }
  0xf5   : > { %v2139_v10 = vpop.f32.mrf.mxu1 }
  0xf6   : > { %v2170_v22 = vpop.f32.mrf.mxu2  ;;  %v2140_v13 = vadd.f32 %v2139_v10, %v2111_v9 }
  0xf8   : > { %v2169_v28 = vadd.f32 %v2168_v8, %v2140_v13 }
  0xfa   : > { %v2198_v16 = vadd.f32 %v2197_v53, %v2169_v28 }
  0xfd   : > { %v2141_v32 = vpop.f32.mrf.mxu1 }
  0xfe   : > { %v2142_v18 = vadd.f32 %v2141_v32, %v2113_v17 }
 0x100   : > { %v2173_v24 = vpop.f32.mrf.mxu2  ;;  %v2171_v26 = vadd.f32 %v2170_v22, %v2142_v18 }
 0x101   : > { %v2226_v29 = vpop.f32.mrf.mxu0 }
 0x102   : > { %v3742_v30 = vadd.f32 %v2226_v29, %v2198_v16  ;;  %v2200_v16 = vadd.f32 %v2199_v20, %v2171_v26 }
 0x108   : > { %v2175_v31 = vpop.f32.mrf.mxu2 }
 0x109   : > { %v2202_v33 = vpop.f32.mrf.mxu3  ;;  %v2144_v35 = vpop.f32.mrf.mxu1 }
 0x10a   : > { %v2145_v36 = vadd.f32 %v2144_v35, %v2116_v2  ;;  %v2228_v39 = vpop.f32.mrf.mxu0 }
 0x10b   : > { %v2229_v29 = vadd.f32 %v2228_v39, %v2200_v16 }
 0x10c   : > { %v2174_v37 = vadd.f32 %v2173_v24, %v2145_v36 }
 0x10e   : > { %v3746_v38 = vadd.f32 %v2202_v33, %v2174_v37 }
 0x110   : > { %v2274_v23 = vpop.f32.mrf.mxu2 }
 0x111   : > { %v2204_v25 = vpop.f32.mrf.mxu3  ;;  %v2146_v41 = vpop.f32.mrf.mxu1 }
 0x112   : > { %v2147_v43 = vadd.f32 %v2146_v41, %v2118_v40 }
 0x114   : > { %v2176_v44 = vadd.f32 %v2175_v31, %v2147_v43 }
 0x116   : > { %v2205_v41 = vadd.f32 %v2204_v25, %v2176_v44 }
 0x118   : > { %v2276_v45 = vpop.f32.mrf.mxu2 }
 0x119   : > { %v2245_v3 = vpop.f32.mrf.mxu1 }
 0x11a   : > { %v2231_v46 = vpop.f32.mrf.mxu0  ;;  %v2246_v19 = vadd.f32 %v2245_v3, %v2217_v60 }
 0x11b   : > { %v2232_v20 = vadd.f32 %v2231_v46, %v3746_v38 }
 0x11c   : > { %v2303_v12 = vpop.f32.mrf.mxu3  ;;  %v2275_v54 = vadd.f32 %v2274_v23, %v2246_v19 }
 0x11e   : > { %v2304_v0 = vadd.f32 %v2303_v12, %v2275_v54 }
 0x120   : > { %v2279_v42 = vpop.f32.mrf.mxu2 }
 0x121   : > { %v2247_v49 = vpop.f32.mrf.mxu1 }
 0x122   : > { %v2233_v48 = vpop.f32.mrf.mxu0  ;;  %v2248_v59 = vadd.f32 %v2247_v49, %v2219_v56 }
 0x123   : > { %v2234_v3 = vadd.f32 %v2233_v48, %v2205_v41 }
 0x124   : > { %v2305_v50 = vpop.f32.mrf.mxu3  ;;  %v2277_v21 = vadd.f32 %v2276_v45, %v2248_v59 }
 0x126   : > { %v2306_v1 = vadd.f32 %v2305_v50, %v2277_v21 }
 0x128   : > { %v2281_v7 = vpop.f32.mrf.mxu2 }
 0x129   : > { %v2250_v27 = vpop.f32.mrf.mxu1 }
 0x12a   : > { %v2332_v61 = vpop.f32.mrf.mxu0  ;;  %v2251_v52 = vadd.f32 %v2250_v27, %v3736_v55 }
 0x12b   : > { %v2333_v11 = vadd.f32 %v2332_v61, %v2304_v0 }
 0x12c   : > { %v2308_v63 = vpop.f32.mrf.mxu3  ;;  %v2280_v53 = vadd.f32 %v2279_v42, %v2251_v52 }
 0x12e   : > { %v2309_v13 = vadd.f32 %v2308_v63, %v2280_v53 }
 0x130   : > { %v2284_v57 = vpop.f32.mrf.mxu2 }
 0x131   : > { %v2252_v34 = vpop.f32.mrf.mxu1 }
 0x132   : > { %v2334_v5 = vpop.f32.mrf.mxu0  ;;  %v2253_v8 = vadd.f32 %v2252_v34, %v2224_v62 }
 0x133   : > { %v2335_v15 = vadd.f32 %v2334_v5, %v2306_v1 }
 0x134   : > { %v2310_v60 = vpop.f32.mrf.mxu3  ;;  %v2282_v10 = vadd.f32 %v2281_v7, %v2253_v8 }
 0x135   : > { %v3067_v51 = vpack.c.bf16 %v2335_v15, %v2333_v11 }
 0x136   : > { %v2311_v28 = vadd.f32 %v2310_v60, %v2282_v10 }
 0x137   : > { %3068 = vst [vmem:[%s3755_s6] sm:$0xff] %v3067_v51  }
 0x138   : > { %v2286_v9 = vpop.f32.mrf.mxu2 }
 0x139   : > { %v2255_v58 = vpop.f32.mrf.mxu1 }
 0x13a   : > { %v2337_v6 = vpop.f32.mrf.mxu0  ;;  %v2256_v55 = vadd.f32 %v2255_v58, %v3742_v30 }
 0x13b   : > { %v2338_v18 = vadd.f32 %v2337_v6, %v2309_v13 }
 0x13c   : > { %v2313_v22 = vpop.f32.mrf.mxu3  ;;  %v2285_v37 = vadd.f32 %v2284_v57, %v2256_v55 }
 0x13e   : > { %v2314_v26 = vadd.f32 %v2313_v22, %v2285_v37 }
 0x141   : > { %v2257_v32 = vpop.f32.mrf.mxu1 }
 0x142   : > { %v2339_v17 = vpop.f32.mrf.mxu0  ;;  %v2258_v2 = vadd.f32 %v2257_v32, %v2229_v29 }
 0x143   : > { %v2340_v24 = vadd.f32 %v2339_v17, %v2311_v28 }
 0x144   : > { %v2289_v14 = vpop.f32.mrf.mxu2  ;;  %v2315_v33 = vpop.f32.mrf.mxu3  ;;  %v2287_v23 = vadd.f32 %v2286_v9, %v2258_v2 }
 0x145   : > { %v3072_v31 = vpack.c.bf16 %v2340_v24, %v2338_v18 }
 0x146   : > { %v2316_v43 = vadd.f32 %v2315_v33, %v2287_v23 }
 0x147   : > { %3084 = vst [vmem:[%s3755_s6 + $0x8] sm:$0xff] %v3072_v31  }
 0x149   : > { %v2260_v36 = vpop.f32.mrf.mxu1 }
 0x14a   : > { %v2342_v35 = vpop.f32.mrf.mxu0  ;;  %v2261_v45 = vadd.f32 %v2260_v36, %v2232_v20 }
 0x14b   : > { %v2343_v42 = vadd.f32 %v2342_v35, %v2314_v26 }
 0x14c   : > { %v2291_v40 = vpop.f32.mrf.mxu2  ;;  %v2290_v19 = vadd.f32 %v2289_v14, %v2261_v45 }
 0x14f   : > { %v2318_v39 = vpop.f32.mrf.mxu3 }
 0x150   : > { %v2319_v7 = vadd.f32 %v2318_v39, %v2290_v19 }
 0x151   : > { %v2262_v47 = vpop.f32.mrf.mxu1 }
 0x152   : > { %v2344_v12 = vpop.f32.mrf.mxu0  ;;  %v2263_v50 = vadd.f32 %v2262_v47, %v2234_v3 }
 0x153   : > { %v2345_v30 = vadd.f32 %v2344_v12, %v2316_v43 }
 0x154   : > { %v2347_v49 = vpop.f32.mrf.mxu2  ;;  %v2292_v59 = vadd.f32 %v2291_v40, %v2263_v50 }
 0x155   : > { %v3077_v56 = vpack.c.bf16 %v2345_v30, %v2343_v42  ;;  %v2348_v46 = vadd.f32 %v2347_v49, %v2319_v7 }
 0x157   : > { %3085 = vst [vmem:[%s3755_s6 + $0x10] sm:$0xff] %v3077_v56   ;;  %v2320_v25 = vpop.f32.mrf.mxu3 }
 0x158   : > { %v2321_v44 = vadd.f32 %v2320_v25, %v2292_v59 }
 0x15c   : > { %v2349_v38 = vpop.f32.mrf.mxu2 }
 0x15d   : > { %v2350_v61 = vadd.f32 %v2349_v38, %v2321_v44 }
 0x15f   : > { %v3082_v27 = vpack.c.bf16 %v2350_v61, %v2348_v46 }
 0x161   : > { %3086 = vst [vmem:[%s3755_s6 + $0x18] sm:$0xff] %v3082_v27  }
 0x162 PF: > { %s15_s20 = sadd.s32 1, %s3150_s20   ;;  %s3789_s18 = smov %s3146_s19 }
 0x163   : > { %p12_p5 = scmp.ge.s32.totalorder %s15_s20, 4   ;;  %s3790_s19 = smov %s3792_s21 }
 0x165   :  { %14 = sbr.rel (!%p12_p5) target bundleno = 2 (0x2), region = 79 }

</bundles_post_ra>
